<compile_context>
chip_gen: v5e
topology: v5e:2x2
jax: 0.10.0
libtpu: 0.0.40
codegen_flags: <defaults>
</compile_context>

<pallas_src>
import math

import numpy as np

import jax
import jax.numpy as jnp
from jax.experimental import pallas as pl
from jax.experimental.pallas import tpu as pltpu


def _argmax_dim1_kernel(x_ref, o_ref):
    # x_ref block: (BB, R, CC) float32 ; o_ref block: (BB, CC) int32
    BB, R, CC = x_ref.shape
    CHUNK = math.gcd(R, 8)          # 8 sublanes per streamed chunk (R=256 -> 8)
    n_chunks = R // CHUNK

    def key_of(xc):
        # Total-order int32 key reproducing torch.argmax comparison semantics:
        #  * monotone in the float value,
        #  * NaN (any sign) compares above +inf,
        #  * -0.0 normalized to +0.0 so exact ties keep first-occurrence order.
        bits = pltpu.bitcast(xc, jnp.int32)
        key = bits ^ ((bits >> 31) & jnp.int32(0x7FFFFFFF))
        key = jnp.where(xc == 0.0, jnp.int32(0), key)           # unify +/-0.0
        key = jnp.where(xc != xc, jnp.int32(0x7FFFFFFF), key)   # NaN -> maximum
        return key

    sub_iota = jax.lax.broadcasted_iota(jnp.int32, (BB, CHUNK, CC), 1)
    # Any real key is > int32 min (min possible key is key(-inf) ~= -2.14e9),
    # so strict '>' guarantees every state slot is written by the first chunk.
    init_key = jnp.full((BB, CHUNK, CC), jnp.iinfo(jnp.int32).min, dtype=jnp.int32)
    init_idx = jnp.zeros((BB, CHUNK, CC), dtype=jnp.int32)

    def body(i, carry):
        best_key, best_idx = carry
        base = pl.multiple_of(i * CHUNK, CHUNK)
        xc = x_ref[:, pl.ds(base, CHUNK), :]          # (BB, CHUNK, CC) chunk load
        kc = key_of(xc)
        rows = sub_iota + i * CHUNK
        take = kc > best_key                          # strict: earlier chunk wins ties
        return (jnp.where(take, kc, best_key),
                jnp.where(take, rows, best_idx))

    best_key, best_idx = jax.lax.fori_loop(
        0, n_chunks, body, (init_key, init_idx), unroll=True)

    # Final reduce across the CHUNK sublane positions: max key, ties -> smallest row.
    fkey = jnp.max(best_key, axis=1, keepdims=True)                       # (BB, 1, CC)
    fidx = jnp.min(jnp.where(best_key == fkey, best_idx, R), axis=1)      # (BB, CC)
    o_ref[...] = fidx.astype(o_ref.dtype)


def _argmax_dim1_i32(x: jax.Array) -> jax.Array:
    B, R, C = x.shape
    # bb=8 keeps the output block sublane-aligned (unmasked stores); cc=128 keeps it
    # lane-dense while giving >=2 grid steps per TensorCore for DMA/compute overlap.
    bb = 8 if B % 8 == 0 else B
    cc = 128 if (C % 128 == 0 and C // 128 >= 2) else C
    grid = (B // bb, C // cc)

    cost = pl.CostEstimate(
        flops=10 * B * R * C,                 # ~10 VALU ops/element (key + running argmax)
        transcendentals=0,
        bytes_accessed=B * R * C * 4 + B * C * 4,
    )

    return pl.pallas_call(
        _argmax_dim1_kernel,
        out_shape=jax.ShapeDtypeStruct((B, C), jnp.int32),
        grid=grid,
        in_specs=[pl.BlockSpec((bb, R, cc), lambda b, c: (b, 0, c))],
        out_specs=pl.BlockSpec((bb, cc), lambda b, c: (b, c)),
        compiler_params=pltpu.CompilerParams(
            dimension_semantics=("parallel", "arbitrary"),
        ),
        cost_estimate=cost,
    )(x)


@jax.jit
def argmax_dim1_i32(x: jax.Array) -> jax.Array:
    """Argmax over dim=1 of a (B, R, C) float32 array, as int32 (B, C)."""
    return _argmax_dim1_i32(x)


def argmax_dim1(x: jax.Array) -> np.ndarray:
    """Matches Model.forward: argmax over dim=1, returned as int64 (B, C).

    The kernel produces int32 (TPU vector lanes are 32-bit); the int64 widening
    happens once at the host boundary so the XLA graph stays int32 and no
    process-wide jax_enable_x64 flip is needed.
    """
    idx32 = jax.block_until_ready(argmax_dim1_i32(x))
    return np.asarray(idx32).astype(np.int64)


if __name__ == "__main__":
    key = jax.random.PRNGKey(0)
    # Shape matching the module's specialization: (16, 256, 256), argmax over dim=1.
    x = jax.random.normal(key, (16, 256, 256), dtype=jnp.float32)

    out_i32 = jax.block_until_ready(argmax_dim1_i32(x))
    ref_i32 = jnp.argmax(x, axis=1).astype(jnp.int32)
    assert out_i32.shape == (16, 256)
    assert bool(jnp.all(out_i32 == ref_i32))

    out64 = argmax_dim1(x)
    assert out64.shape == (16, 256)
    assert out64.dtype == np.int64
    assert bool(np.all(out64 == np.asarray(ref_i32).astype(np.int64)))

    # NaN / inf / tie edge cases (torch.argmax treats NaN as the maximum and
    # returns the first occurrence on ties) — jnp.argmax has the same semantics.
    x_edge = x.at[0, 37, 5].set(jnp.float32(jnp.nan))
    x_edge = x_edge.at[0, 200, 5].set(jnp.float32(jnp.inf))
    x_edge = x_edge.at[3, 10, 7].set(jnp.float32(jnp.inf))
    x_edge = x_edge.at[3, 100, 7].set(jnp.float32(jnp.inf))
    out_e = jax.block_until_ready(argmax_dim1_i32(x_edge))
    ref_e = jnp.argmax(x_edge, axis=1).astype(jnp.int32)
    assert bool(jnp.all(out_e == ref_e))

    print("KERNEL_OK")
</pallas_src>

<mosaic_0001>
module attributes {stable_mosaic.version = 11 : i64} {
  func.func @_argmax_dim1_kernel(%arg0: i32, %arg1: i32, %arg2: memref<8x256x128xf32, #tpu.memory_space<vmem>>, %arg3: memref<8x128xi32, #tpu.memory_space<vmem>>) attributes {dimension_semantics = [#tpu.dimension_semantics<parallel>, #tpu.dimension_semantics<arbitrary>], iteration_bounds = array<i64: 2, 2>, scalar_prefetch = 0 : i64, scratch_operands = 0 : i64, tpu.core_type = #tpu.core_type<tc>, window_params = [{transform_indices = @transform_0, window_bounds = array<i64: 8, 256, 128>}, {transform_indices = @transform_1, window_bounds = array<i64: 8, 128>}]} {
    %0 = tpu.iota {dimensions = array<i32: 1>} : vector<8x8x128xi32>
    %c-2147483648_i32 = arith.constant -2147483648 : i32
    %1 = vector.broadcast %c-2147483648_i32 : i32 to vector<8x8x128xi32>
    %c0_i32 = arith.constant 0 : i32
    %2 = vector.broadcast %c0_i32 : i32 to vector<8x8x128xi32>
    %c0_i32_0 = arith.constant 0 : i32
    %c8_i32 = arith.constant 8 : i32
    %3 = arith.muli %c0_i32_0, %c8_i32 : i32
    %4 = tpu.assume_multiple %3, 8 : i32
    %c0 = arith.constant 0 : index
    %5 = arith.index_cast %4 : i32 to index
    %c0_1 = arith.constant 0 : index
    %6 = vector.load %arg2[%c0, %5, %c0_1] : memref<8x256x128xf32, #tpu.memory_space<vmem>>, vector<8x8x128xf32>
    %7 = tpu.bitcast %6 : vector<8x8x128xf32> -> vector<8x8x128xi32>
    %c31_i32 = arith.constant 31 : i32
    %8 = vector.broadcast %c31_i32 : i32 to vector<8x8x128xi32>
    %9 = arith.shrsi %7, %8 : vector<8x8x128xi32>
    %c2147483647_i32 = arith.constant 2147483647 : i32
    %10 = vector.broadcast %c2147483647_i32 : i32 to vector<8x8x128xi32>
    %11 = arith.andi %9, %10 : vector<8x8x128xi32>
    %12 = arith.xori %7, %11 : vector<8x8x128xi32>
    %cst = arith.constant 0.000000e+00 : f32
    %13 = vector.broadcast %cst : f32 to vector<8x8x128xf32>
    %14 = arith.cmpf oeq, %6, %13 : vector<8x8x128xf32>
    %c0_i32_2 = arith.constant 0 : i32
    %15 = vector.broadcast %c0_i32_2 : i32 to vector<8x8x128xi32>
    %16 = arith.select %14, %15, %12 : vector<8x8x128xi1>, vector<8x8x128xi32>
    %17 = arith.cmpf one, %6, %6 : vector<8x8x128xf32>
    %c2147483647_i32_3 = arith.constant 2147483647 : i32
    %18 = vector.broadcast %c2147483647_i32_3 : i32 to vector<8x8x128xi32>
    %19 = arith.select %17, %18, %16 : vector<8x8x128xi1>, vector<8x8x128xi32>
    %c8_i32_4 = arith.constant 8 : i32
    %20 = arith.muli %c0_i32_0, %c8_i32_4 : i32
    %21 = vector.broadcast %20 : i32 to vector<8x8x128xi32>
    %22 = arith.addi %0, %21 : vector<8x8x128xi32>
    %23 = arith.cmpi sgt, %19, %1 : vector<8x8x128xi32>
    %24 = arith.select %23, %19, %1 : vector<8x8x128xi1>, vector<8x8x128xi32>
    %25 = arith.select %23, %22, %2 : vector<8x8x128xi1>, vector<8x8x128xi32>
    %c1_i32 = arith.constant 1 : i32
    %c8_i32_5 = arith.constant 8 : i32
    %26 = arith.muli %c1_i32, %c8_i32_5 : i32
    %27 = tpu.assume_multiple %26, 8 : i32
    %c0_6 = arith.constant 0 : index
    %28 = arith.index_cast %27 : i32 to index
    %c0_7 = arith.constant 0 : index
    %29 = vector.load %arg2[%c0_6, %28, %c0_7] : memref<8x256x128xf32, #tpu.memory_space<vmem>>, vector<8x8x128xf32>
    %30 = tpu.bitcast %29 : vector<8x8x128xf32> -> vector<8x8x128xi32>
    %c31_i32_8 = arith.constant 31 : i32
    %31 = vector.broadcast %c31_i32_8 : i32 to vector<8x8x128xi32>
    %32 = arith.shrsi %30, %31 : vector<8x8x128xi32>
    %c2147483647_i32_9 = arith.constant 2147483647 : i32
    %33 = vector.broadcast %c2147483647_i32_9 : i32 to vector<8x8x128xi32>
    %34 = arith.andi %32, %33 : vector<8x8x128xi32>
    %35 = arith.xori %30, %34 : vector<8x8x128xi32>
    %cst_10 = arith.constant 0.000000e+00 : f32
    %36 = vector.broadcast %cst_10 : f32 to vector<8x8x128xf32>
    %37 = arith.cmpf oeq, %29, %36 : vector<8x8x128xf32>
    %c0_i32_11 = arith.constant 0 : i32
    %38 = vector.broadcast %c0_i32_11 : i32 to vector<8x8x128xi32>
    %39 = arith.select %37, %38, %35 : vector<8x8x128xi1>, vector<8x8x128xi32>
    %40 = arith.cmpf one, %29, %29 : vector<8x8x128xf32>
    %c2147483647_i32_12 = arith.constant 2147483647 : i32
    %41 = vector.broadcast %c2147483647_i32_12 : i32 to vector<8x8x128xi32>
    %42 = arith.select %40, %41, %39 : vector<8x8x128xi1>, vector<8x8x128xi32>
    %c8_i32_13 = arith.constant 8 : i32
    %43 = arith.muli %c1_i32, %c8_i32_13 : i32
    %44 = vector.broadcast %43 : i32 to vector<8x8x128xi32>
    %45 = arith.addi %0, %44 : vector<8x8x128xi32>
    %46 = arith.cmpi sgt, %42, %24 : vector<8x8x128xi32>
    %47 = arith.select %46, %42, %24 : vector<8x8x128xi1>, vector<8x8x128xi32>
    %48 = arith.select %46, %45, %25 : vector<8x8x128xi1>, vector<8x8x128xi32>
    %c2_i32 = arith.constant 2 : i32
    %c8_i32_14 = arith.constant 8 : i32
    %49 = arith.muli %c2_i32, %c8_i32_14 : i32
    %50 = tpu.assume_multiple %49, 8 : i32
    %c0_15 = arith.constant 0 : index
    %51 = arith.index_cast %50 : i32 to index
    %c0_16 = arith.constant 0 : index
    %52 = vector.load %arg2[%c0_15, %51, %c0_16] : memref<8x256x128xf32, #tpu.memory_space<vmem>>, vector<8x8x128xf32>
    %53 = tpu.bitcast %52 : vector<8x8x128xf32> -> vector<8x8x128xi32>
    %c31_i32_17 = arith.constant 31 : i32
    %54 = vector.broadcast %c31_i32_17 : i32 to vector<8x8x128xi32>
    %55 = arith.shrsi %53, %54 : vector<8x8x128xi32>
    %c2147483647_i32_18 = arith.constant 2147483647 : i32
    %56 = vector.broadcast %c2147483647_i32_18 : i32 to vector<8x8x128xi32>
    %57 = arith.andi %55, %56 : vector<8x8x128xi32>
    %58 = arith.xori %53, %57 : vector<8x8x128xi32>
    %cst_19 = arith.constant 0.000000e+00 : f32
    %59 = vector.broadcast %cst_19 : f32 to vector<8x8x128xf32>
    %60 = arith.cmpf oeq, %52, %59 : vector<8x8x128xf32>
    %c0_i32_20 = arith.constant 0 : i32
    %61 = vector.broadcast %c0_i32_20 : i32 to vector<8x8x128xi32>
    %62 = arith.select %60, %61, %58 : vector<8x8x128xi1>, vector<8x8x128xi32>
    %63 = arith.cmpf one, %52, %52 : vector<8x8x128xf32>
    %c2147483647_i32_21 = arith.constant 2147483647 : i32
    %64 = vector.broadcast %c2147483647_i32_21 : i32 to vector<8x8x128xi32>
    %65 = arith.select %63, %64, %62 : vector<8x8x128xi1>, vector<8x8x128xi32>
    %c8_i32_22 = arith.constant 8 : i32
    %66 = arith.muli %c2_i32, %c8_i32_22 : i32
    %67 = vector.broadcast %66 : i32 to vector<8x8x128xi32>
    %68 = arith.addi %0, %67 : vector<8x8x128xi32>
    %69 = arith.cmpi sgt, %65, %47 : vector<8x8x128xi32>
    %70 = arith.select %69, %65, %47 : vector<8x8x128xi1>, vector<8x8x128xi32>
    %71 = arith.select %69, %68, %48 : vector<8x8x128xi1>, vector<8x8x128xi32>
    %c3_i32 = arith.constant 3 : i32
    %c8_i32_23 = arith.constant 8 : i32
    %72 = arith.muli %c3_i32, %c8_i32_23 : i32
    %73 = tpu.assume_multiple %72, 8 : i32
    %c0_24 = arith.constant 0 : index
    %74 = arith.index_cast %73 : i32 to index
    %c0_25 = arith.constant 0 : index
    %75 = vector.load %arg2[%c0_24, %74, %c0_25] : memref<8x256x128xf32, #tpu.memory_space<vmem>>, vector<8x8x128xf32>
    %76 = tpu.bitcast %75 : vector<8x8x128xf32> -> vector<8x8x128xi32>
    %c31_i32_26 = arith.constant 31 : i32
    %77 = vector.broadcast %c31_i32_26 : i32 to vector<8x8x128xi32>
    %78 = arith.shrsi %76, %77 : vector<8x8x128xi32>
    %c2147483647_i32_27 = arith.constant 2147483647 : i32
    %79 = vector.broadcast %c2147483647_i32_27 : i32 to vector<8x8x128xi32>
    %80 = arith.andi %78, %79 : vector<8x8x128xi32>
    %81 = arith.xori %76, %80 : vector<8x8x128xi32>
    %cst_28 = arith.constant 0.000000e+00 : f32
    %82 = vector.broadcast %cst_28 : f32 to vector<8x8x128xf32>
    %83 = arith.cmpf oeq, %75, %82 : vector<8x8x128xf32>
    %c0_i32_29 = arith.constant 0 : i32
    %84 = vector.broadcast %c0_i32_29 : i32 to vector<8x8x128xi32>
    %85 = arith.select %83, %84, %81 : vector<8x8x128xi1>, vector<8x8x128xi32>
    %86 = arith.cmpf one, %75, %75 : vector<8x8x128xf32>
    %c2147483647_i32_30 = arith.constant 2147483647 : i32
    %87 = vector.broadcast %c2147483647_i32_30 : i32 to vector<8x8x128xi32>
    %88 = arith.select %86, %87, %85 : vector<8x8x128xi1>, vector<8x8x128xi32>
    %c8_i32_31 = arith.constant 8 : i32
    %89 = arith.muli %c3_i32, %c8_i32_31 : i32
    %90 = vector.broadcast %89 : i32 to vector<8x8x128xi32>
    %91 = arith.addi %0, %90 : vector<8x8x128xi32>
    %92 = arith.cmpi sgt, %88, %70 : vector<8x8x128xi32>
    %93 = arith.select %92, %88, %70 : vector<8x8x128xi1>, vector<8x8x128xi32>
    %94 = arith.select %92, %91, %71 : vector<8x8x128xi1>, vector<8x8x128xi32>
    %c4_i32 = arith.constant 4 : i32
    %c8_i32_32 = arith.constant 8 : i32
    %95 = arith.muli %c4_i32, %c8_i32_32 : i32
    %96 = tpu.assume_multiple %95, 8 : i32
    %c0_33 = arith.constant 0 : index
    %97 = arith.index_cast %96 : i32 to index
    %c0_34 = arith.constant 0 : index
    %98 = vector.load %arg2[%c0_33, %97, %c0_34] : memref<8x256x128xf32, #tpu.memory_space<vmem>>, vector<8x8x128xf32>
    %99 = tpu.bitcast %98 : vector<8x8x128xf32> -> vector<8x8x128xi32>
    %c31_i32_35 = arith.constant 31 : i32
    %100 = vector.broadcast %c31_i32_35 : i32 to vector<8x8x128xi32>
    %101 = arith.shrsi %99, %100 : vector<8x8x128xi32>
    %c2147483647_i32_36 = arith.constant 2147483647 : i32
    %102 = vector.broadcast %c2147483647_i32_36 : i32 to vector<8x8x128xi32>
    %103 = arith.andi %101, %102 : vector<8x8x128xi32>
    %104 = arith.xori %99, %103 : vector<8x8x128xi32>
    %cst_37 = arith.constant 0.000000e+00 : f32
    %105 = vector.broadcast %cst_37 : f32 to vector<8x8x128xf32>
    %106 = arith.cmpf oeq, %98, %105 : vector<8x8x128xf32>
    %c0_i32_38 = arith.constant 0 : i32
    %107 = vector.broadcast %c0_i32_38 : i32 to vector<8x8x128xi32>
    %108 = arith.select %106, %107, %104 : vector<8x8x128xi1>, vector<8x8x128xi32>
    %109 = arith.cmpf one, %98, %98 : vector<8x8x128xf32>
    %c2147483647_i32_39 = arith.constant 2147483647 : i32
    %110 = vector.broadcast %c2147483647_i32_39 : i32 to vector<8x8x128xi32>
    %111 = arith.select %109, %110, %108 : vector<8x8x128xi1>, vector<8x8x128xi32>
    %c8_i32_40 = arith.constant 8 : i32
    %112 = arith.muli %c4_i32, %c8_i32_40 : i32
    %113 = vector.broadcast %112 : i32 to vector<8x8x128xi32>
    %114 = arith.addi %0, %113 : vector<8x8x128xi32>
    %115 = arith.cmpi sgt, %111, %93 : vector<8x8x128xi32>
    %116 = arith.select %115, %111, %93 : vector<8x8x128xi1>, vector<8x8x128xi32>
    %117 = arith.select %115, %114, %94 : vector<8x8x128xi1>, vector<8x8x128xi32>
    %c5_i32 = arith.constant 5 : i32
    %c8_i32_41 = arith.constant 8 : i32
    %118 = arith.muli %c5_i32, %c8_i32_41 : i32
    %119 = tpu.assume_multiple %118, 8 : i32
    %c0_42 = arith.constant 0 : index
    %120 = arith.index_cast %119 : i32 to index
    %c0_43 = arith.constant 0 : index
    %121 = vector.load %arg2[%c0_42, %120, %c0_43] : memref<8x256x128xf32, #tpu.memory_space<vmem>>, vector<8x8x128xf32>
    %122 = tpu.bitcast %121 : vector<8x8x128xf32> -> vector<8x8x128xi32>
    %c31_i32_44 = arith.constant 31 : i32
    %123 = vector.broadcast %c31_i32_44 : i32 to vector<8x8x128xi32>
    %124 = arith.shrsi %122, %123 : vector<8x8x128xi32>
    %c2147483647_i32_45 = arith.constant 2147483647 : i32
    %125 = vector.broadcast %c2147483647_i32_45 : i32 to vector<8x8x128xi32>
    %126 = arith.andi %124, %125 : vector<8x8x128xi32>
    %127 = arith.xori %122, %126 : vector<8x8x128xi32>
    %cst_46 = arith.constant 0.000000e+00 : f32
    %128 = vector.broadcast %cst_46 : f32 to vector<8x8x128xf32>
    %129 = arith.cmpf oeq, %121, %128 : vector<8x8x128xf32>
    %c0_i32_47 = arith.constant 0 : i32
    %130 = vector.broadcast %c0_i32_47 : i32 to vector<8x8x128xi32>
    %131 = arith.select %129, %130, %127 : vector<8x8x128xi1>, vector<8x8x128xi32>
    %132 = arith.cmpf one, %121, %121 : vector<8x8x128xf32>
    %c2147483647_i32_48 = arith.constant 2147483647 : i32
    %133 = vector.broadcast %c2147483647_i32_48 : i32 to vector<8x8x128xi32>
    %134 = arith.select %132, %133, %131 : vector<8x8x128xi1>, vector<8x8x128xi32>
    %c8_i32_49 = arith.constant 8 : i32
    %135 = arith.muli %c5_i32, %c8_i32_49 : i32
    %136 = vector.broadcast %135 : i32 to vector<8x8x128xi32>
    %137 = arith.addi %0, %136 : vector<8x8x128xi32>
    %138 = arith.cmpi sgt, %134, %116 : vector<8x8x128xi32>
    %139 = arith.select %138, %134, %116 : vector<8x8x128xi1>, vector<8x8x128xi32>
    %140 = arith.select %138, %137, %117 : vector<8x8x128xi1>, vector<8x8x128xi32>
    %c6_i32 = arith.constant 6 : i32
    %c8_i32_50 = arith.constant 8 : i32
    %141 = arith.muli %c6_i32, %c8_i32_50 : i32
    %142 = tpu.assume_multiple %141, 8 : i32
    %c0_51 = arith.constant 0 : index
    %143 = arith.index_cast %142 : i32 to index
    %c0_52 = arith.constant 0 : index
    %144 = vector.load %arg2[%c0_51, %143, %c0_52] : memref<8x256x128xf32, #tpu.memory_space<vmem>>, vector<8x8x128xf32>
    %145 = tpu.bitcast %144 : vector<8x8x128xf32> -> vector<8x8x128xi32>
    %c31_i32_53 = arith.constant 31 : i32
    %146 = vector.broadcast %c31_i32_53 : i32 to vector<8x8x128xi32>
    %147 = arith.shrsi %145, %146 : vector<8x8x128xi32>
    %c2147483647_i32_54 = arith.constant 2147483647 : i32
    %148 = vector.broadcast %c2147483647_i32_54 : i32 to vector<8x8x128xi32>
    %149 = arith.andi %147, %148 : vector<8x8x128xi32>
    %150 = arith.xori %145, %149 : vector<8x8x128xi32>
    %cst_55 = arith.constant 0.000000e+00 : f32
    %151 = vector.broadcast %cst_55 : f32 to vector<8x8x128xf32>
    %152 = arith.cmpf oeq, %144, %151 : vector<8x8x128xf32>
    %c0_i32_56 = arith.constant 0 : i32
    %153 = vector.broadcast %c0_i32_56 : i32 to vector<8x8x128xi32>
    %154 = arith.select %152, %153, %150 : vector<8x8x128xi1>, vector<8x8x128xi32>
    %155 = arith.cmpf one, %144, %144 : vector<8x8x128xf32>
    %c2147483647_i32_57 = arith.constant 2147483647 : i32
    %156 = vector.broadcast %c2147483647_i32_57 : i32 to vector<8x8x128xi32>
    %157 = arith.select %155, %156, %154 : vector<8x8x128xi1>, vector<8x8x128xi32>
    %c8_i32_58 = arith.constant 8 : i32
    %158 = arith.muli %c6_i32, %c8_i32_58 : i32
    %159 = vector.broadcast %158 : i32 to vector<8x8x128xi32>
    %160 = arith.addi %0, %159 : vector<8x8x128xi32>
    %161 = arith.cmpi sgt, %157, %139 : vector<8x8x128xi32>
    %162 = arith.select %161, %157, %139 : vector<8x8x128xi1>, vector<8x8x128xi32>
    %163 = arith.select %161, %160, %140 : vector<8x8x128xi1>, vector<8x8x128xi32>
    %c7_i32 = arith.constant 7 : i32
    %c8_i32_59 = arith.constant 8 : i32
    %164 = arith.muli %c7_i32, %c8_i32_59 : i32
    %165 = tpu.assume_multiple %164, 8 : i32
    %c0_60 = arith.constant 0 : index
    %166 = arith.index_cast %165 : i32 to index
    %c0_61 = arith.constant 0 : index
    %167 = vector.load %arg2[%c0_60, %166, %c0_61] : memref<8x256x128xf32, #tpu.memory_space<vmem>>, vector<8x8x128xf32>
    %168 = tpu.bitcast %167 : vector<8x8x128xf32> -> vector<8x8x128xi32>
    %c31_i32_62 = arith.constant 31 : i32
    %169 = vector.broadcast %c31_i32_62 : i32 to vector<8x8x128xi32>
    %170 = arith.shrsi %168, %169 : vector<8x8x128xi32>
    %c2147483647_i32_63 = arith.constant 2147483647 : i32
    %171 = vector.broadcast %c2147483647_i32_63 : i32 to vector<8x8x128xi32>
    %172 = arith.andi %170, %171 : vector<8x8x128xi32>
    %173 = arith.xori %168, %172 : vector<8x8x128xi32>
    %cst_64 = arith.constant 0.000000e+00 : f32
    %174 = vector.broadcast %cst_64 : f32 to vector<8x8x128xf32>
    %175 = arith.cmpf oeq, %167, %174 : vector<8x8x128xf32>
    %c0_i32_65 = arith.constant 0 : i32
    %176 = vector.broadcast %c0_i32_65 : i32 to vector<8x8x128xi32>
    %177 = arith.select %175, %176, %173 : vector<8x8x128xi1>, vector<8x8x128xi32>
    %178 = arith.cmpf one, %167, %167 : vector<8x8x128xf32>
    %c2147483647_i32_66 = arith.constant 2147483647 : i32
    %179 = vector.broadcast %c2147483647_i32_66 : i32 to vector<8x8x128xi32>
    %180 = arith.select %178, %179, %177 : vector<8x8x128xi1>, vector<8x8x128xi32>
    %c8_i32_67 = arith.constant 8 : i32
    %181 = arith.muli %c7_i32, %c8_i32_67 : i32
    %182 = vector.broadcast %181 : i32 to vector<8x8x128xi32>
    %183 = arith.addi %0, %182 : vector<8x8x128xi32>
    %184 = arith.cmpi sgt, %180, %162 : vector<8x8x128xi32>
    %185 = arith.select %184, %180, %162 : vector<8x8x128xi1>, vector<8x8x128xi32>
    %186 = arith.select %184, %183, %163 : vector<8x8x128xi1>, vector<8x8x128xi32>
    %c8_i32_68 = arith.constant 8 : i32
    %c8_i32_69 = arith.constant 8 : i32
    %187 = arith.muli %c8_i32_68, %c8_i32_69 : i32
    %188 = tpu.assume_multiple %187, 8 : i32
    %c0_70 = arith.constant 0 : index
    %189 = arith.index_cast %188 : i32 to index
    %c0_71 = arith.constant 0 : index
    %190 = vector.load %arg2[%c0_70, %189, %c0_71] : memref<8x256x128xf32, #tpu.memory_space<vmem>>, vector<8x8x128xf32>
    %191 = tpu.bitcast %190 : vector<8x8x128xf32> -> vector<8x8x128xi32>
    %c31_i32_72 = arith.constant 31 : i32
    %192 = vector.broadcast %c31_i32_72 : i32 to vector<8x8x128xi32>
    %193 = arith.shrsi %191, %192 : vector<8x8x128xi32>
    %c2147483647_i32_73 = arith.constant 2147483647 : i32
    %194 = vector.broadcast %c2147483647_i32_73 : i32 to vector<8x8x128xi32>
    %195 = arith.andi %193, %194 : vector<8x8x128xi32>
    %196 = arith.xori %191, %195 : vector<8x8x128xi32>
    %cst_74 = arith.constant 0.000000e+00 : f32
    %197 = vector.broadcast %cst_74 : f32 to vector<8x8x128xf32>
    %198 = arith.cmpf oeq, %190, %197 : vector<8x8x128xf32>
    %c0_i32_75 = arith.constant 0 : i32
    %199 = vector.broadcast %c0_i32_75 : i32 to vector<8x8x128xi32>
    %200 = arith.select %198, %199, %196 : vector<8x8x128xi1>, vector<8x8x128xi32>
    %201 = arith.cmpf one, %190, %190 : vector<8x8x128xf32>
    %c2147483647_i32_76 = arith.constant 2147483647 : i32
    %202 = vector.broadcast %c2147483647_i32_76 : i32 to vector<8x8x128xi32>
    %203 = arith.select %201, %202, %200 : vector<8x8x128xi1>, vector<8x8x128xi32>
    %c8_i32_77 = arith.constant 8 : i32
    %204 = arith.muli %c8_i32_68, %c8_i32_77 : i32
    %205 = vector.broadcast %204 : i32 to vector<8x8x128xi32>
    %206 = arith.addi %0, %205 : vector<8x8x128xi32>
    %207 = arith.cmpi sgt, %203, %185 : vector<8x8x128xi32>
    %208 = arith.select %207, %203, %185 : vector<8x8x128xi1>, vector<8x8x128xi32>
    %209 = arith.select %207, %206, %186 : vector<8x8x128xi1>, vector<8x8x128xi32>
    %c9_i32 = arith.constant 9 : i32
    %c8_i32_78 = arith.constant 8 : i32
    %210 = arith.muli %c9_i32, %c8_i32_78 : i32
    %211 = tpu.assume_multiple %210, 8 : i32
    %c0_79 = arith.constant 0 : index
    %212 = arith.index_cast %211 : i32 to index
    %c0_80 = arith.constant 0 : index
    %213 = vector.load %arg2[%c0_79, %212, %c0_80] : memref<8x256x128xf32, #tpu.memory_space<vmem>>, vector<8x8x128xf32>
    %214 = tpu.bitcast %213 : vector<8x8x128xf32> -> vector<8x8x128xi32>
    %c31_i32_81 = arith.constant 31 : i32
    %215 = vector.broadcast %c31_i32_81 : i32 to vector<8x8x128xi32>
    %216 = arith.shrsi %214, %215 : vector<8x8x128xi32>
    %c2147483647_i32_82 = arith.constant 2147483647 : i32
    %217 = vector.broadcast %c2147483647_i32_82 : i32 to vector<8x8x128xi32>
    %218 = arith.andi %216, %217 : vector<8x8x128xi32>
    %219 = arith.xori %214, %218 : vector<8x8x128xi32>
    %cst_83 = arith.constant 0.000000e+00 : f32
    %220 = vector.broadcast %cst_83 : f32 to vector<8x8x128xf32>
    %221 = arith.cmpf oeq, %213, %220 : vector<8x8x128xf32>
    %c0_i32_84 = arith.constant 0 : i32
    %222 = vector.broadcast %c0_i32_84 : i32 to vector<8x8x128xi32>
    %223 = arith.select %221, %222, %219 : vector<8x8x128xi1>, vector<8x8x128xi32>
    %224 = arith.cmpf one, %213, %213 : vector<8x8x128xf32>
    %c2147483647_i32_85 = arith.constant 2147483647 : i32
    %225 = vector.broadcast %c2147483647_i32_85 : i32 to vector<8x8x128xi32>
    %226 = arith.select %224, %225, %223 : vector<8x8x128xi1>, vector<8x8x128xi32>
    %c8_i32_86 = arith.constant 8 : i32
    %227 = arith.muli %c9_i32, %c8_i32_86 : i32
    %228 = vector.broadcast %227 : i32 to vector<8x8x128xi32>
    %229 = arith.addi %0, %228 : vector<8x8x128xi32>
    %230 = arith.cmpi sgt, %226, %208 : vector<8x8x128xi32>
    %231 = arith.select %230, %226, %208 : vector<8x8x128xi1>, vector<8x8x128xi32>
    %232 = arith.select %230, %229, %209 : vector<8x8x128xi1>, vector<8x8x128xi32>
    %c10_i32 = arith.constant 10 : i32
    %c8_i32_87 = arith.constant 8 : i32
    %233 = arith.muli %c10_i32, %c8_i32_87 : i32
    %234 = tpu.assume_multiple %233, 8 : i32
    %c0_88 = arith.constant 0 : index
    %235 = arith.index_cast %234 : i32 to index
    %c0_89 = arith.constant 0 : index
    %236 = vector.load %arg2[%c0_88, %235, %c0_89] : memref<8x256x128xf32, #tpu.memory_space<vmem>>, vector<8x8x128xf32>
    %237 = tpu.bitcast %236 : vector<8x8x128xf32> -> vector<8x8x128xi32>
    %c31_i32_90 = arith.constant 31 : i32
    %238 = vector.broadcast %c31_i32_90 : i32 to vector<8x8x128xi32>
    %239 = arith.shrsi %237, %238 : vector<8x8x128xi32>
    %c2147483647_i32_91 = arith.constant 2147483647 : i32
    %240 = vector.broadcast %c2147483647_i32_91 : i32 to vector<8x8x128xi32>
    %241 = arith.andi %239, %240 : vector<8x8x128xi32>
    %242 = arith.xori %237, %241 : vector<8x8x128xi32>
    %cst_92 = arith.constant 0.000000e+00 : f32
    %243 = vector.broadcast %cst_92 : f32 to vector<8x8x128xf32>
    %244 = arith.cmpf oeq, %236, %243 : vector<8x8x128xf32>
    %c0_i32_93 = arith.constant 0 : i32
    %245 = vector.broadcast %c0_i32_93 : i32 to vector<8x8x128xi32>
    %246 = arith.select %244, %245, %242 : vector<8x8x128xi1>, vector<8x8x128xi32>
    %247 = arith.cmpf one, %236, %236 : vector<8x8x128xf32>
    %c2147483647_i32_94 = arith.constant 2147483647 : i32
    %248 = vector.broadcast %c2147483647_i32_94 : i32 to vector<8x8x128xi32>
    %249 = arith.select %247, %248, %246 : vector<8x8x128xi1>, vector<8x8x128xi32>
    %c8_i32_95 = arith.constant 8 : i32
    %250 = arith.muli %c10_i32, %c8_i32_95 : i32
    %251 = vector.broadcast %250 : i32 to vector<8x8x128xi32>
    %252 = arith.addi %0, %251 : vector<8x8x128xi32>
    %253 = arith.cmpi sgt, %249, %231 : vector<8x8x128xi32>
    %254 = arith.select %253, %249, %231 : vector<8x8x128xi1>, vector<8x8x128xi32>
    %255 = arith.select %253, %252, %232 : vector<8x8x128xi1>, vector<8x8x128xi32>
    %c11_i32 = arith.constant 11 : i32
    %c8_i32_96 = arith.constant 8 : i32
    %256 = arith.muli %c11_i32, %c8_i32_96 : i32
    %257 = tpu.assume_multiple %256, 8 : i32
    %c0_97 = arith.constant 0 : index
    %258 = arith.index_cast %257 : i32 to index
    %c0_98 = arith.constant 0 : index
    %259 = vector.load %arg2[%c0_97, %258, %c0_98] : memref<8x256x128xf32, #tpu.memory_space<vmem>>, vector<8x8x128xf32>
    %260 = tpu.bitcast %259 : vector<8x8x128xf32> -> vector<8x8x128xi32>
    %c31_i32_99 = arith.constant 31 : i32
    %261 = vector.broadcast %c31_i32_99 : i32 to vector<8x8x128xi32>
    %262 = arith.shrsi %260, %261 : vector<8x8x128xi32>
    %c2147483647_i32_100 = arith.constant 2147483647 : i32
    %263 = vector.broadcast %c2147483647_i32_100 : i32 to vector<8x8x128xi32>
    %264 = arith.andi %262, %263 : vector<8x8x128xi32>
    %265 = arith.xori %260, %264 : vector<8x8x128xi32>
    %cst_101 = arith.constant 0.000000e+00 : f32
    %266 = vector.broadcast %cst_101 : f32 to vector<8x8x128xf32>
    %267 = arith.cmpf oeq, %259, %266 : vector<8x8x128xf32>
    %c0_i32_102 = arith.constant 0 : i32
    %268 = vector.broadcast %c0_i32_102 : i32 to vector<8x8x128xi32>
    %269 = arith.select %267, %268, %265 : vector<8x8x128xi1>, vector<8x8x128xi32>
    %270 = arith.cmpf one, %259, %259 : vector<8x8x128xf32>
    %c2147483647_i32_103 = arith.constant 2147483647 : i32
    %271 = vector.broadcast %c2147483647_i32_103 : i32 to vector<8x8x128xi32>
    %272 = arith.select %270, %271, %269 : vector<8x8x128xi1>, vector<8x8x128xi32>
    %c8_i32_104 = arith.constant 8 : i32
    %273 = arith.muli %c11_i32, %c8_i32_104 : i32
    %274 = vector.broadcast %273 : i32 to vector<8x8x128xi32>
    %275 = arith.addi %0, %274 : vector<8x8x128xi32>
    %276 = arith.cmpi sgt, %272, %254 : vector<8x8x128xi32>
    %277 = arith.select %276, %272, %254 : vector<8x8x128xi1>, vector<8x8x128xi32>
    %278 = arith.select %276, %275, %255 : vector<8x8x128xi1>, vector<8x8x128xi32>
    %c12_i32 = arith.constant 12 : i32
    %c8_i32_105 = arith.constant 8 : i32
    %279 = arith.muli %c12_i32, %c8_i32_105 : i32
    %280 = tpu.assume_multiple %279, 8 : i32
    %c0_106 = arith.constant 0 : index
    %281 = arith.index_cast %280 : i32 to index
    %c0_107 = arith.constant 0 : index
    %282 = vector.load %arg2[%c0_106, %281, %c0_107] : memref<8x256x128xf32, #tpu.memory_space<vmem>>, vector<8x8x128xf32>
    %283 = tpu.bitcast %282 : vector<8x8x128xf32> -> vector<8x8x128xi32>
    %c31_i32_108 = arith.constant 31 : i32
    %284 = vector.broadcast %c31_i32_108 : i32 to vector<8x8x128xi32>
    %285 = arith.shrsi %283, %284 : vector<8x8x128xi32>
    %c2147483647_i32_109 = arith.constant 2147483647 : i32
    %286 = vector.broadcast %c2147483647_i32_109 : i32 to vector<8x8x128xi32>
    %287 = arith.andi %285, %286 : vector<8x8x128xi32>
    %288 = arith.xori %283, %287 : vector<8x8x128xi32>
    %cst_110 = arith.constant 0.000000e+00 : f32
    %289 = vector.broadcast %cst_110 : f32 to vector<8x8x128xf32>
    %290 = arith.cmpf oeq, %282, %289 : vector<8x8x128xf32>
    %c0_i32_111 = arith.constant 0 : i32
    %291 = vector.broadcast %c0_i32_111 : i32 to vector<8x8x128xi32>
    %292 = arith.select %290, %291, %288 : vector<8x8x128xi1>, vector<8x8x128xi32>
    %293 = arith.cmpf one, %282, %282 : vector<8x8x128xf32>
    %c2147483647_i32_112 = arith.constant 2147483647 : i32
    %294 = vector.broadcast %c2147483647_i32_112 : i32 to vector<8x8x128xi32>
    %295 = arith.select %293, %294, %292 : vector<8x8x128xi1>, vector<8x8x128xi32>
    %c8_i32_113 = arith.constant 8 : i32
    %296 = arith.muli %c12_i32, %c8_i32_113 : i32
    %297 = vector.broadcast %296 : i32 to vector<8x8x128xi32>
    %298 = arith.addi %0, %297 : vector<8x8x128xi32>
    %299 = arith.cmpi sgt, %295, %277 : vector<8x8x128xi32>
    %300 = arith.select %299, %295, %277 : vector<8x8x128xi1>, vector<8x8x128xi32>
    %301 = arith.select %299, %298, %278 : vector<8x8x128xi1>, vector<8x8x128xi32>
    %c13_i32 = arith.constant 13 : i32
    %c8_i32_114 = arith.constant 8 : i32
    %302 = arith.muli %c13_i32, %c8_i32_114 : i32
    %303 = tpu.assume_multiple %302, 8 : i32
    %c0_115 = arith.constant 0 : index
    %304 = arith.index_cast %303 : i32 to index
    %c0_116 = arith.constant 0 : index
    %305 = vector.load %arg2[%c0_115, %304, %c0_116] : memref<8x256x128xf32, #tpu.memory_space<vmem>>, vector<8x8x128xf32>
    %306 = tpu.bitcast %305 : vector<8x8x128xf32> -> vector<8x8x128xi32>
    %c31_i32_117 = arith.constant 31 : i32
    %307 = vector.broadcast %c31_i32_117 : i32 to vector<8x8x128xi32>
    %308 = arith.shrsi %306, %307 : vector<8x8x128xi32>
    %c2147483647_i32_118 = arith.constant 2147483647 : i32
    %309 = vector.broadcast %c2147483647_i32_118 : i32 to vector<8x8x128xi32>
    %310 = arith.andi %308, %309 : vector<8x8x128xi32>
    %311 = arith.xori %306, %310 : vector<8x8x128xi32>
    %cst_119 = arith.constant 0.000000e+00 : f32
    %312 = vector.broadcast %cst_119 : f32 to vector<8x8x128xf32>
    %313 = arith.cmpf oeq, %305, %312 : vector<8x8x128xf32>
    %c0_i32_120 = arith.constant 0 : i32
    %314 = vector.broadcast %c0_i32_120 : i32 to vector<8x8x128xi32>
    %315 = arith.select %313, %314, %311 : vector<8x8x128xi1>, vector<8x8x128xi32>
    %316 = arith.cmpf one, %305, %305 : vector<8x8x128xf32>
    %c2147483647_i32_121 = arith.constant 2147483647 : i32
    %317 = vector.broadcast %c2147483647_i32_121 : i32 to vector<8x8x128xi32>
    %318 = arith.select %316, %317, %315 : vector<8x8x128xi1>, vector<8x8x128xi32>
    %c8_i32_122 = arith.constant 8 : i32
    %319 = arith.muli %c13_i32, %c8_i32_122 : i32
    %320 = vector.broadcast %319 : i32 to vector<8x8x128xi32>
    %321 = arith.addi %0, %320 : vector<8x8x128xi32>
    %322 = arith.cmpi sgt, %318, %300 : vector<8x8x128xi32>
    %323 = arith.select %322, %318, %300 : vector<8x8x128xi1>, vector<8x8x128xi32>
    %324 = arith.select %322, %321, %301 : vector<8x8x128xi1>, vector<8x8x128xi32>
    %c14_i32 = arith.constant 14 : i32
    %c8_i32_123 = arith.constant 8 : i32
    %325 = arith.muli %c14_i32, %c8_i32_123 : i32
    %326 = tpu.assume_multiple %325, 8 : i32
    %c0_124 = arith.constant 0 : index
    %327 = arith.index_cast %326 : i32 to index
    %c0_125 = arith.constant 0 : index
    %328 = vector.load %arg2[%c0_124, %327, %c0_125] : memref<8x256x128xf32, #tpu.memory_space<vmem>>, vector<8x8x128xf32>
    %329 = tpu.bitcast %328 : vector<8x8x128xf32> -> vector<8x8x128xi32>
    %c31_i32_126 = arith.constant 31 : i32
    %330 = vector.broadcast %c31_i32_126 : i32 to vector<8x8x128xi32>
    %331 = arith.shrsi %329, %330 : vector<8x8x128xi32>
    %c2147483647_i32_127 = arith.constant 2147483647 : i32
    %332 = vector.broadcast %c2147483647_i32_127 : i32 to vector<8x8x128xi32>
    %333 = arith.andi %331, %332 : vector<8x8x128xi32>
    %334 = arith.xori %329, %333 : vector<8x8x128xi32>
    %cst_128 = arith.constant 0.000000e+00 : f32
    %335 = vector.broadcast %cst_128 : f32 to vector<8x8x128xf32>
    %336 = arith.cmpf oeq, %328, %335 : vector<8x8x128xf32>
    %c0_i32_129 = arith.constant 0 : i32
    %337 = vector.broadcast %c0_i32_129 : i32 to vector<8x8x128xi32>
    %338 = arith.select %336, %337, %334 : vector<8x8x128xi1>, vector<8x8x128xi32>
    %339 = arith.cmpf one, %328, %328 : vector<8x8x128xf32>
    %c2147483647_i32_130 = arith.constant 2147483647 : i32
    %340 = vector.broadcast %c2147483647_i32_130 : i32 to vector<8x8x128xi32>
    %341 = arith.select %339, %340, %338 : vector<8x8x128xi1>, vector<8x8x128xi32>
    %c8_i32_131 = arith.constant 8 : i32
    %342 = arith.muli %c14_i32, %c8_i32_131 : i32
    %343 = vector.broadcast %342 : i32 to vector<8x8x128xi32>
    %344 = arith.addi %0, %343 : vector<8x8x128xi32>
    %345 = arith.cmpi sgt, %341, %323 : vector<8x8x128xi32>
    %346 = arith.select %345, %341, %323 : vector<8x8x128xi1>, vector<8x8x128xi32>
    %347 = arith.select %345, %344, %324 : vector<8x8x128xi1>, vector<8x8x128xi32>
    %c15_i32 = arith.constant 15 : i32
    %c8_i32_132 = arith.constant 8 : i32
    %348 = arith.muli %c15_i32, %c8_i32_132 : i32
    %349 = tpu.assume_multiple %348, 8 : i32
    %c0_133 = arith.constant 0 : index
    %350 = arith.index_cast %349 : i32 to index
    %c0_134 = arith.constant 0 : index
    %351 = vector.load %arg2[%c0_133, %350, %c0_134] : memref<8x256x128xf32, #tpu.memory_space<vmem>>, vector<8x8x128xf32>
    %352 = tpu.bitcast %351 : vector<8x8x128xf32> -> vector<8x8x128xi32>
    %c31_i32_135 = arith.constant 31 : i32
    %353 = vector.broadcast %c31_i32_135 : i32 to vector<8x8x128xi32>
    %354 = arith.shrsi %352, %353 : vector<8x8x128xi32>
    %c2147483647_i32_136 = arith.constant 2147483647 : i32
    %355 = vector.broadcast %c2147483647_i32_136 : i32 to vector<8x8x128xi32>
    %356 = arith.andi %354, %355 : vector<8x8x128xi32>
    %357 = arith.xori %352, %356 : vector<8x8x128xi32>
    %cst_137 = arith.constant 0.000000e+00 : f32
    %358 = vector.broadcast %cst_137 : f32 to vector<8x8x128xf32>
    %359 = arith.cmpf oeq, %351, %358 : vector<8x8x128xf32>
    %c0_i32_138 = arith.constant 0 : i32
    %360 = vector.broadcast %c0_i32_138 : i32 to vector<8x8x128xi32>
    %361 = arith.select %359, %360, %357 : vector<8x8x128xi1>, vector<8x8x128xi32>
    %362 = arith.cmpf one, %351, %351 : vector<8x8x128xf32>
    %c2147483647_i32_139 = arith.constant 2147483647 : i32
    %363 = vector.broadcast %c2147483647_i32_139 : i32 to vector<8x8x128xi32>
    %364 = arith.select %362, %363, %361 : vector<8x8x128xi1>, vector<8x8x128xi32>
    %c8_i32_140 = arith.constant 8 : i32
    %365 = arith.muli %c15_i32, %c8_i32_140 : i32
    %366 = vector.broadcast %365 : i32 to vector<8x8x128xi32>
    %367 = arith.addi %0, %366 : vector<8x8x128xi32>
    %368 = arith.cmpi sgt, %364, %346 : vector<8x8x128xi32>
    %369 = arith.select %368, %364, %346 : vector<8x8x128xi1>, vector<8x8x128xi32>
    %370 = arith.select %368, %367, %347 : vector<8x8x128xi1>, vector<8x8x128xi32>
    %c16_i32 = arith.constant 16 : i32
    %c8_i32_141 = arith.constant 8 : i32
    %371 = arith.muli %c16_i32, %c8_i32_141 : i32
    %372 = tpu.assume_multiple %371, 8 : i32
    %c0_142 = arith.constant 0 : index
    %373 = arith.index_cast %372 : i32 to index
    %c0_143 = arith.constant 0 : index
    %374 = vector.load %arg2[%c0_142, %373, %c0_143] : memref<8x256x128xf32, #tpu.memory_space<vmem>>, vector<8x8x128xf32>
    %375 = tpu.bitcast %374 : vector<8x8x128xf32> -> vector<8x8x128xi32>
    %c31_i32_144 = arith.constant 31 : i32
    %376 = vector.broadcast %c31_i32_144 : i32 to vector<8x8x128xi32>
    %377 = arith.shrsi %375, %376 : vector<8x8x128xi32>
    %c2147483647_i32_145 = arith.constant 2147483647 : i32
    %378 = vector.broadcast %c2147483647_i32_145 : i32 to vector<8x8x128xi32>
    %379 = arith.andi %377, %378 : vector<8x8x128xi32>
    %380 = arith.xori %375, %379 : vector<8x8x128xi32>
    %cst_146 = arith.constant 0.000000e+00 : f32
    %381 = vector.broadcast %cst_146 : f32 to vector<8x8x128xf32>
    %382 = arith.cmpf oeq, %374, %381 : vector<8x8x128xf32>
    %c0_i32_147 = arith.constant 0 : i32
    %383 = vector.broadcast %c0_i32_147 : i32 to vector<8x8x128xi32>
    %384 = arith.select %382, %383, %380 : vector<8x8x128xi1>, vector<8x8x128xi32>
    %385 = arith.cmpf one, %374, %374 : vector<8x8x128xf32>
    %c2147483647_i32_148 = arith.constant 2147483647 : i32
    %386 = vector.broadcast %c2147483647_i32_148 : i32 to vector<8x8x128xi32>
    %387 = arith.select %385, %386, %384 : vector<8x8x128xi1>, vector<8x8x128xi32>
    %c8_i32_149 = arith.constant 8 : i32
    %388 = arith.muli %c16_i32, %c8_i32_149 : i32
    %389 = vector.broadcast %388 : i32 to vector<8x8x128xi32>
    %390 = arith.addi %0, %389 : vector<8x8x128xi32>
    %391 = arith.cmpi sgt, %387, %369 : vector<8x8x128xi32>
    %392 = arith.select %391, %387, %369 : vector<8x8x128xi1>, vector<8x8x128xi32>
    %393 = arith.select %391, %390, %370 : vector<8x8x128xi1>, vector<8x8x128xi32>
    %c17_i32 = arith.constant 17 : i32
    %c8_i32_150 = arith.constant 8 : i32
    %394 = arith.muli %c17_i32, %c8_i32_150 : i32
    %395 = tpu.assume_multiple %394, 8 : i32
    %c0_151 = arith.constant 0 : index
    %396 = arith.index_cast %395 : i32 to index
    %c0_152 = arith.constant 0 : index
    %397 = vector.load %arg2[%c0_151, %396, %c0_152] : memref<8x256x128xf32, #tpu.memory_space<vmem>>, vector<8x8x128xf32>
    %398 = tpu.bitcast %397 : vector<8x8x128xf32> -> vector<8x8x128xi32>
    %c31_i32_153 = arith.constant 31 : i32
    %399 = vector.broadcast %c31_i32_153 : i32 to vector<8x8x128xi32>
    %400 = arith.shrsi %398, %399 : vector<8x8x128xi32>
    %c2147483647_i32_154 = arith.constant 2147483647 : i32
    %401 = vector.broadcast %c2147483647_i32_154 : i32 to vector<8x8x128xi32>
    %402 = arith.andi %400, %401 : vector<8x8x128xi32>
    %403 = arith.xori %398, %402 : vector<8x8x128xi32>
    %cst_155 = arith.constant 0.000000e+00 : f32
    %404 = vector.broadcast %cst_155 : f32 to vector<8x8x128xf32>
    %405 = arith.cmpf oeq, %397, %404 : vector<8x8x128xf32>
    %c0_i32_156 = arith.constant 0 : i32
    %406 = vector.broadcast %c0_i32_156 : i32 to vector<8x8x128xi32>
    %407 = arith.select %405, %406, %403 : vector<8x8x128xi1>, vector<8x8x128xi32>
    %408 = arith.cmpf one, %397, %397 : vector<8x8x128xf32>
    %c2147483647_i32_157 = arith.constant 2147483647 : i32
    %409 = vector.broadcast %c2147483647_i32_157 : i32 to vector<8x8x128xi32>
    %410 = arith.select %408, %409, %407 : vector<8x8x128xi1>, vector<8x8x128xi32>
    %c8_i32_158 = arith.constant 8 : i32
    %411 = arith.muli %c17_i32, %c8_i32_158 : i32
    %412 = vector.broadcast %411 : i32 to vector<8x8x128xi32>
    %413 = arith.addi %0, %412 : vector<8x8x128xi32>
    %414 = arith.cmpi sgt, %410, %392 : vector<8x8x128xi32>
    %415 = arith.select %414, %410, %392 : vector<8x8x128xi1>, vector<8x8x128xi32>
    %416 = arith.select %414, %413, %393 : vector<8x8x128xi1>, vector<8x8x128xi32>
    %c18_i32 = arith.constant 18 : i32
    %c8_i32_159 = arith.constant 8 : i32
    %417 = arith.muli %c18_i32, %c8_i32_159 : i32
    %418 = tpu.assume_multiple %417, 8 : i32
    %c0_160 = arith.constant 0 : index
    %419 = arith.index_cast %418 : i32 to index
    %c0_161 = arith.constant 0 : index
    %420 = vector.load %arg2[%c0_160, %419, %c0_161] : memref<8x256x128xf32, #tpu.memory_space<vmem>>, vector<8x8x128xf32>
    %421 = tpu.bitcast %420 : vector<8x8x128xf32> -> vector<8x8x128xi32>
    %c31_i32_162 = arith.constant 31 : i32
    %422 = vector.broadcast %c31_i32_162 : i32 to vector<8x8x128xi32>
    %423 = arith.shrsi %421, %422 : vector<8x8x128xi32>
    %c2147483647_i32_163 = arith.constant 2147483647 : i32
    %424 = vector.broadcast %c2147483647_i32_163 : i32 to vector<8x8x128xi32>
    %425 = arith.andi %423, %424 : vector<8x8x128xi32>
    %426 = arith.xori %421, %425 : vector<8x8x128xi32>
    %cst_164 = arith.constant 0.000000e+00 : f32
    %427 = vector.broadcast %cst_164 : f32 to vector<8x8x128xf32>
    %428 = arith.cmpf oeq, %420, %427 : vector<8x8x128xf32>
    %c0_i32_165 = arith.constant 0 : i32
    %429 = vector.broadcast %c0_i32_165 : i32 to vector<8x8x128xi32>
    %430 = arith.select %428, %429, %426 : vector<8x8x128xi1>, vector<8x8x128xi32>
    %431 = arith.cmpf one, %420, %420 : vector<8x8x128xf32>
    %c2147483647_i32_166 = arith.constant 2147483647 : i32
    %432 = vector.broadcast %c2147483647_i32_166 : i32 to vector<8x8x128xi32>
    %433 = arith.select %431, %432, %430 : vector<8x8x128xi1>, vector<8x8x128xi32>
    %c8_i32_167 = arith.constant 8 : i32
    %434 = arith.muli %c18_i32, %c8_i32_167 : i32
    %435 = vector.broadcast %434 : i32 to vector<8x8x128xi32>
    %436 = arith.addi %0, %435 : vector<8x8x128xi32>
    %437 = arith.cmpi sgt, %433, %415 : vector<8x8x128xi32>
    %438 = arith.select %437, %433, %415 : vector<8x8x128xi1>, vector<8x8x128xi32>
    %439 = arith.select %437, %436, %416 : vector<8x8x128xi1>, vector<8x8x128xi32>
    %c19_i32 = arith.constant 19 : i32
    %c8_i32_168 = arith.constant 8 : i32
    %440 = arith.muli %c19_i32, %c8_i32_168 : i32
    %441 = tpu.assume_multiple %440, 8 : i32
    %c0_169 = arith.constant 0 : index
    %442 = arith.index_cast %441 : i32 to index
    %c0_170 = arith.constant 0 : index
    %443 = vector.load %arg2[%c0_169, %442, %c0_170] : memref<8x256x128xf32, #tpu.memory_space<vmem>>, vector<8x8x128xf32>
    %444 = tpu.bitcast %443 : vector<8x8x128xf32> -> vector<8x8x128xi32>
    %c31_i32_171 = arith.constant 31 : i32
    %445 = vector.broadcast %c31_i32_171 : i32 to vector<8x8x128xi32>
    %446 = arith.shrsi %444, %445 : vector<8x8x128xi32>
    %c2147483647_i32_172 = arith.constant 2147483647 : i32
    %447 = vector.broadcast %c2147483647_i32_172 : i32 to vector<8x8x128xi32>
    %448 = arith.andi %446, %447 : vector<8x8x128xi32>
    %449 = arith.xori %444, %448 : vector<8x8x128xi32>
    %cst_173 = arith.constant 0.000000e+00 : f32
    %450 = vector.broadcast %cst_173 : f32 to vector<8x8x128xf32>
    %451 = arith.cmpf oeq, %443, %450 : vector<8x8x128xf32>
    %c0_i32_174 = arith.constant 0 : i32
    %452 = vector.broadcast %c0_i32_174 : i32 to vector<8x8x128xi32>
    %453 = arith.select %451, %452, %449 : vector<8x8x128xi1>, vector<8x8x128xi32>
    %454 = arith.cmpf one, %443, %443 : vector<8x8x128xf32>
    %c2147483647_i32_175 = arith.constant 2147483647 : i32
    %455 = vector.broadcast %c2147483647_i32_175 : i32 to vector<8x8x128xi32>
    %456 = arith.select %454, %455, %453 : vector<8x8x128xi1>, vector<8x8x128xi32>
    %c8_i32_176 = arith.constant 8 : i32
    %457 = arith.muli %c19_i32, %c8_i32_176 : i32
    %458 = vector.broadcast %457 : i32 to vector<8x8x128xi32>
    %459 = arith.addi %0, %458 : vector<8x8x128xi32>
    %460 = arith.cmpi sgt, %456, %438 : vector<8x8x128xi32>
    %461 = arith.select %460, %456, %438 : vector<8x8x128xi1>, vector<8x8x128xi32>
    %462 = arith.select %460, %459, %439 : vector<8x8x128xi1>, vector<8x8x128xi32>
    %c20_i32 = arith.constant 20 : i32
    %c8_i32_177 = arith.constant 8 : i32
    %463 = arith.muli %c20_i32, %c8_i32_177 : i32
    %464 = tpu.assume_multiple %463, 8 : i32
    %c0_178 = arith.constant 0 : index
    %465 = arith.index_cast %464 : i32 to index
    %c0_179 = arith.constant 0 : index
    %466 = vector.load %arg2[%c0_178, %465, %c0_179] : memref<8x256x128xf32, #tpu.memory_space<vmem>>, vector<8x8x128xf32>
    %467 = tpu.bitcast %466 : vector<8x8x128xf32> -> vector<8x8x128xi32>
    %c31_i32_180 = arith.constant 31 : i32
    %468 = vector.broadcast %c31_i32_180 : i32 to vector<8x8x128xi32>
    %469 = arith.shrsi %467, %468 : vector<8x8x128xi32>
    %c2147483647_i32_181 = arith.constant 2147483647 : i32
    %470 = vector.broadcast %c2147483647_i32_181 : i32 to vector<8x8x128xi32>
    %471 = arith.andi %469, %470 : vector<8x8x128xi32>
    %472 = arith.xori %467, %471 : vector<8x8x128xi32>
    %cst_182 = arith.constant 0.000000e+00 : f32
    %473 = vector.broadcast %cst_182 : f32 to vector<8x8x128xf32>
    %474 = arith.cmpf oeq, %466, %473 : vector<8x8x128xf32>
    %c0_i32_183 = arith.constant 0 : i32
    %475 = vector.broadcast %c0_i32_183 : i32 to vector<8x8x128xi32>
    %476 = arith.select %474, %475, %472 : vector<8x8x128xi1>, vector<8x8x128xi32>
    %477 = arith.cmpf one, %466, %466 : vector<8x8x128xf32>
    %c2147483647_i32_184 = arith.constant 2147483647 : i32
    %478 = vector.broadcast %c2147483647_i32_184 : i32 to vector<8x8x128xi32>
    %479 = arith.select %477, %478, %476 : vector<8x8x128xi1>, vector<8x8x128xi32>
    %c8_i32_185 = arith.constant 8 : i32
    %480 = arith.muli %c20_i32, %c8_i32_185 : i32
    %481 = vector.broadcast %480 : i32 to vector<8x8x128xi32>
    %482 = arith.addi %0, %481 : vector<8x8x128xi32>
    %483 = arith.cmpi sgt, %479, %461 : vector<8x8x128xi32>
    %484 = arith.select %483, %479, %461 : vector<8x8x128xi1>, vector<8x8x128xi32>
    %485 = arith.select %483, %482, %462 : vector<8x8x128xi1>, vector<8x8x128xi32>
    %c21_i32 = arith.constant 21 : i32
    %c8_i32_186 = arith.constant 8 : i32
    %486 = arith.muli %c21_i32, %c8_i32_186 : i32
    %487 = tpu.assume_multiple %486, 8 : i32
    %c0_187 = arith.constant 0 : index
    %488 = arith.index_cast %487 : i32 to index
    %c0_188 = arith.constant 0 : index
    %489 = vector.load %arg2[%c0_187, %488, %c0_188] : memref<8x256x128xf32, #tpu.memory_space<vmem>>, vector<8x8x128xf32>
    %490 = tpu.bitcast %489 : vector<8x8x128xf32> -> vector<8x8x128xi32>
    %c31_i32_189 = arith.constant 31 : i32
    %491 = vector.broadcast %c31_i32_189 : i32 to vector<8x8x128xi32>
    %492 = arith.shrsi %490, %491 : vector<8x8x128xi32>
    %c2147483647_i32_190 = arith.constant 2147483647 : i32
    %493 = vector.broadcast %c2147483647_i32_190 : i32 to vector<8x8x128xi32>
    %494 = arith.andi %492, %493 : vector<8x8x128xi32>
    %495 = arith.xori %490, %494 : vector<8x8x128xi32>
    %cst_191 = arith.constant 0.000000e+00 : f32
    %496 = vector.broadcast %cst_191 : f32 to vector<8x8x128xf32>
    %497 = arith.cmpf oeq, %489, %496 : vector<8x8x128xf32>
    %c0_i32_192 = arith.constant 0 : i32
    %498 = vector.broadcast %c0_i32_192 : i32 to vector<8x8x128xi32>
    %499 = arith.select %497, %498, %495 : vector<8x8x128xi1>, vector<8x8x128xi32>
    %500 = arith.cmpf one, %489, %489 : vector<8x8x128xf32>
    %c2147483647_i32_193 = arith.constant 2147483647 : i32
    %501 = vector.broadcast %c2147483647_i32_193 : i32 to vector<8x8x128xi32>
    %502 = arith.select %500, %501, %499 : vector<8x8x128xi1>, vector<8x8x128xi32>
    %c8_i32_194 = arith.constant 8 : i32
    %503 = arith.muli %c21_i32, %c8_i32_194 : i32
    %504 = vector.broadcast %503 : i32 to vector<8x8x128xi32>
    %505 = arith.addi %0, %504 : vector<8x8x128xi32>
    %506 = arith.cmpi sgt, %502, %484 : vector<8x8x128xi32>
    %507 = arith.select %506, %502, %484 : vector<8x8x128xi1>, vector<8x8x128xi32>
    %508 = arith.select %506, %505, %485 : vector<8x8x128xi1>, vector<8x8x128xi32>
    %c22_i32 = arith.constant 22 : i32
    %c8_i32_195 = arith.constant 8 : i32
    %509 = arith.muli %c22_i32, %c8_i32_195 : i32
    %510 = tpu.assume_multiple %509, 8 : i32
    %c0_196 = arith.constant 0 : index
    %511 = arith.index_cast %510 : i32 to index
    %c0_197 = arith.constant 0 : index
    %512 = vector.load %arg2[%c0_196, %511, %c0_197] : memref<8x256x128xf32, #tpu.memory_space<vmem>>, vector<8x8x128xf32>
    %513 = tpu.bitcast %512 : vector<8x8x128xf32> -> vector<8x8x128xi32>
    %c31_i32_198 = arith.constant 31 : i32
    %514 = vector.broadcast %c31_i32_198 : i32 to vector<8x8x128xi32>
    %515 = arith.shrsi %513, %514 : vector<8x8x128xi32>
    %c2147483647_i32_199 = arith.constant 2147483647 : i32
    %516 = vector.broadcast %c2147483647_i32_199 : i32 to vector<8x8x128xi32>
    %517 = arith.andi %515, %516 : vector<8x8x128xi32>
    %518 = arith.xori %513, %517 : vector<8x8x128xi32>
    %cst_200 = arith.constant 0.000000e+00 : f32
    %519 = vector.broadcast %cst_200 : f32 to vector<8x8x128xf32>
    %520 = arith.cmpf oeq, %512, %519 : vector<8x8x128xf32>
    %c0_i32_201 = arith.constant 0 : i32
    %521 = vector.broadcast %c0_i32_201 : i32 to vector<8x8x128xi32>
    %522 = arith.select %520, %521, %518 : vector<8x8x128xi1>, vector<8x8x128xi32>
    %523 = arith.cmpf one, %512, %512 : vector<8x8x128xf32>
    %c2147483647_i32_202 = arith.constant 2147483647 : i32
    %524 = vector.broadcast %c2147483647_i32_202 : i32 to vector<8x8x128xi32>
    %525 = arith.select %523, %524, %522 : vector<8x8x128xi1>, vector<8x8x128xi32>
    %c8_i32_203 = arith.constant 8 : i32
    %526 = arith.muli %c22_i32, %c8_i32_203 : i32
    %527 = vector.broadcast %526 : i32 to vector<8x8x128xi32>
    %528 = arith.addi %0, %527 : vector<8x8x128xi32>
    %529 = arith.cmpi sgt, %525, %507 : vector<8x8x128xi32>
    %530 = arith.select %529, %525, %507 : vector<8x8x128xi1>, vector<8x8x128xi32>
    %531 = arith.select %529, %528, %508 : vector<8x8x128xi1>, vector<8x8x128xi32>
    %c23_i32 = arith.constant 23 : i32
    %c8_i32_204 = arith.constant 8 : i32
    %532 = arith.muli %c23_i32, %c8_i32_204 : i32
    %533 = tpu.assume_multiple %532, 8 : i32
    %c0_205 = arith.constant 0 : index
    %534 = arith.index_cast %533 : i32 to index
    %c0_206 = arith.constant 0 : index
    %535 = vector.load %arg2[%c0_205, %534, %c0_206] : memref<8x256x128xf32, #tpu.memory_space<vmem>>, vector<8x8x128xf32>
    %536 = tpu.bitcast %535 : vector<8x8x128xf32> -> vector<8x8x128xi32>
    %c31_i32_207 = arith.constant 31 : i32
    %537 = vector.broadcast %c31_i32_207 : i32 to vector<8x8x128xi32>
    %538 = arith.shrsi %536, %537 : vector<8x8x128xi32>
    %c2147483647_i32_208 = arith.constant 2147483647 : i32
    %539 = vector.broadcast %c2147483647_i32_208 : i32 to vector<8x8x128xi32>
    %540 = arith.andi %538, %539 : vector<8x8x128xi32>
    %541 = arith.xori %536, %540 : vector<8x8x128xi32>
    %cst_209 = arith.constant 0.000000e+00 : f32
    %542 = vector.broadcast %cst_209 : f32 to vector<8x8x128xf32>
    %543 = arith.cmpf oeq, %535, %542 : vector<8x8x128xf32>
    %c0_i32_210 = arith.constant 0 : i32
    %544 = vector.broadcast %c0_i32_210 : i32 to vector<8x8x128xi32>
    %545 = arith.select %543, %544, %541 : vector<8x8x128xi1>, vector<8x8x128xi32>
    %546 = arith.cmpf one, %535, %535 : vector<8x8x128xf32>
    %c2147483647_i32_211 = arith.constant 2147483647 : i32
    %547 = vector.broadcast %c2147483647_i32_211 : i32 to vector<8x8x128xi32>
    %548 = arith.select %546, %547, %545 : vector<8x8x128xi1>, vector<8x8x128xi32>
    %c8_i32_212 = arith.constant 8 : i32
    %549 = arith.muli %c23_i32, %c8_i32_212 : i32
    %550 = vector.broadcast %549 : i32 to vector<8x8x128xi32>
    %551 = arith.addi %0, %550 : vector<8x8x128xi32>
    %552 = arith.cmpi sgt, %548, %530 : vector<8x8x128xi32>
    %553 = arith.select %552, %548, %530 : vector<8x8x128xi1>, vector<8x8x128xi32>
    %554 = arith.select %552, %551, %531 : vector<8x8x128xi1>, vector<8x8x128xi32>
    %c24_i32 = arith.constant 24 : i32
    %c8_i32_213 = arith.constant 8 : i32
    %555 = arith.muli %c24_i32, %c8_i32_213 : i32
    %556 = tpu.assume_multiple %555, 8 : i32
    %c0_214 = arith.constant 0 : index
    %557 = arith.index_cast %556 : i32 to index
    %c0_215 = arith.constant 0 : index
    %558 = vector.load %arg2[%c0_214, %557, %c0_215] : memref<8x256x128xf32, #tpu.memory_space<vmem>>, vector<8x8x128xf32>
    %559 = tpu.bitcast %558 : vector<8x8x128xf32> -> vector<8x8x128xi32>
    %c31_i32_216 = arith.constant 31 : i32
    %560 = vector.broadcast %c31_i32_216 : i32 to vector<8x8x128xi32>
    %561 = arith.shrsi %559, %560 : vector<8x8x128xi32>
    %c2147483647_i32_217 = arith.constant 2147483647 : i32
    %562 = vector.broadcast %c2147483647_i32_217 : i32 to vector<8x8x128xi32>
    %563 = arith.andi %561, %562 : vector<8x8x128xi32>
    %564 = arith.xori %559, %563 : vector<8x8x128xi32>
    %cst_218 = arith.constant 0.000000e+00 : f32
    %565 = vector.broadcast %cst_218 : f32 to vector<8x8x128xf32>
    %566 = arith.cmpf oeq, %558, %565 : vector<8x8x128xf32>
    %c0_i32_219 = arith.constant 0 : i32
    %567 = vector.broadcast %c0_i32_219 : i32 to vector<8x8x128xi32>
    %568 = arith.select %566, %567, %564 : vector<8x8x128xi1>, vector<8x8x128xi32>
    %569 = arith.cmpf one, %558, %558 : vector<8x8x128xf32>
    %c2147483647_i32_220 = arith.constant 2147483647 : i32
    %570 = vector.broadcast %c2147483647_i32_220 : i32 to vector<8x8x128xi32>
    %571 = arith.select %569, %570, %568 : vector<8x8x128xi1>, vector<8x8x128xi32>
    %c8_i32_221 = arith.constant 8 : i32
    %572 = arith.muli %c24_i32, %c8_i32_221 : i32
    %573 = vector.broadcast %572 : i32 to vector<8x8x128xi32>
    %574 = arith.addi %0, %573 : vector<8x8x128xi32>
    %575 = arith.cmpi sgt, %571, %553 : vector<8x8x128xi32>
    %576 = arith.select %575, %571, %553 : vector<8x8x128xi1>, vector<8x8x128xi32>
    %577 = arith.select %575, %574, %554 : vector<8x8x128xi1>, vector<8x8x128xi32>
    %c25_i32 = arith.constant 25 : i32
    %c8_i32_222 = arith.constant 8 : i32
    %578 = arith.muli %c25_i32, %c8_i32_222 : i32
    %579 = tpu.assume_multiple %578, 8 : i32
    %c0_223 = arith.constant 0 : index
    %580 = arith.index_cast %579 : i32 to index
    %c0_224 = arith.constant 0 : index
    %581 = vector.load %arg2[%c0_223, %580, %c0_224] : memref<8x256x128xf32, #tpu.memory_space<vmem>>, vector<8x8x128xf32>
    %582 = tpu.bitcast %581 : vector<8x8x128xf32> -> vector<8x8x128xi32>
    %c31_i32_225 = arith.constant 31 : i32
    %583 = vector.broadcast %c31_i32_225 : i32 to vector<8x8x128xi32>
    %584 = arith.shrsi %582, %583 : vector<8x8x128xi32>
    %c2147483647_i32_226 = arith.constant 2147483647 : i32
    %585 = vector.broadcast %c2147483647_i32_226 : i32 to vector<8x8x128xi32>
    %586 = arith.andi %584, %585 : vector<8x8x128xi32>
    %587 = arith.xori %582, %586 : vector<8x8x128xi32>
    %cst_227 = arith.constant 0.000000e+00 : f32
    %588 = vector.broadcast %cst_227 : f32 to vector<8x8x128xf32>
    %589 = arith.cmpf oeq, %581, %588 : vector<8x8x128xf32>
    %c0_i32_228 = arith.constant 0 : i32
    %590 = vector.broadcast %c0_i32_228 : i32 to vector<8x8x128xi32>
    %591 = arith.select %589, %590, %587 : vector<8x8x128xi1>, vector<8x8x128xi32>
    %592 = arith.cmpf one, %581, %581 : vector<8x8x128xf32>
    %c2147483647_i32_229 = arith.constant 2147483647 : i32
    %593 = vector.broadcast %c2147483647_i32_229 : i32 to vector<8x8x128xi32>
    %594 = arith.select %592, %593, %591 : vector<8x8x128xi1>, vector<8x8x128xi32>
    %c8_i32_230 = arith.constant 8 : i32
    %595 = arith.muli %c25_i32, %c8_i32_230 : i32
    %596 = vector.broadcast %595 : i32 to vector<8x8x128xi32>
    %597 = arith.addi %0, %596 : vector<8x8x128xi32>
    %598 = arith.cmpi sgt, %594, %576 : vector<8x8x128xi32>
    %599 = arith.select %598, %594, %576 : vector<8x8x128xi1>, vector<8x8x128xi32>
    %600 = arith.select %598, %597, %577 : vector<8x8x128xi1>, vector<8x8x128xi32>
    %c26_i32 = arith.constant 26 : i32
    %c8_i32_231 = arith.constant 8 : i32
    %601 = arith.muli %c26_i32, %c8_i32_231 : i32
    %602 = tpu.assume_multiple %601, 8 : i32
    %c0_232 = arith.constant 0 : index
    %603 = arith.index_cast %602 : i32 to index
    %c0_233 = arith.constant 0 : index
    %604 = vector.load %arg2[%c0_232, %603, %c0_233] : memref<8x256x128xf32, #tpu.memory_space<vmem>>, vector<8x8x128xf32>
    %605 = tpu.bitcast %604 : vector<8x8x128xf32> -> vector<8x8x128xi32>
    %c31_i32_234 = arith.constant 31 : i32
    %606 = vector.broadcast %c31_i32_234 : i32 to vector<8x8x128xi32>
    %607 = arith.shrsi %605, %606 : vector<8x8x128xi32>
    %c2147483647_i32_235 = arith.constant 2147483647 : i32
    %608 = vector.broadcast %c2147483647_i32_235 : i32 to vector<8x8x128xi32>
    %609 = arith.andi %607, %608 : vector<8x8x128xi32>
    %610 = arith.xori %605, %609 : vector<8x8x128xi32>
    %cst_236 = arith.constant 0.000000e+00 : f32
    %611 = vector.broadcast %cst_236 : f32 to vector<8x8x128xf32>
    %612 = arith.cmpf oeq, %604, %611 : vector<8x8x128xf32>
    %c0_i32_237 = arith.constant 0 : i32
    %613 = vector.broadcast %c0_i32_237 : i32 to vector<8x8x128xi32>
    %614 = arith.select %612, %613, %610 : vector<8x8x128xi1>, vector<8x8x128xi32>
    %615 = arith.cmpf one, %604, %604 : vector<8x8x128xf32>
    %c2147483647_i32_238 = arith.constant 2147483647 : i32
    %616 = vector.broadcast %c2147483647_i32_238 : i32 to vector<8x8x128xi32>
    %617 = arith.select %615, %616, %614 : vector<8x8x128xi1>, vector<8x8x128xi32>
    %c8_i32_239 = arith.constant 8 : i32
    %618 = arith.muli %c26_i32, %c8_i32_239 : i32
    %619 = vector.broadcast %618 : i32 to vector<8x8x128xi32>
    %620 = arith.addi %0, %619 : vector<8x8x128xi32>
    %621 = arith.cmpi sgt, %617, %599 : vector<8x8x128xi32>
    %622 = arith.select %621, %617, %599 : vector<8x8x128xi1>, vector<8x8x128xi32>
    %623 = arith.select %621, %620, %600 : vector<8x8x128xi1>, vector<8x8x128xi32>
    %c27_i32 = arith.constant 27 : i32
    %c8_i32_240 = arith.constant 8 : i32
    %624 = arith.muli %c27_i32, %c8_i32_240 : i32
    %625 = tpu.assume_multiple %624, 8 : i32
    %c0_241 = arith.constant 0 : index
    %626 = arith.index_cast %625 : i32 to index
    %c0_242 = arith.constant 0 : index
    %627 = vector.load %arg2[%c0_241, %626, %c0_242] : memref<8x256x128xf32, #tpu.memory_space<vmem>>, vector<8x8x128xf32>
    %628 = tpu.bitcast %627 : vector<8x8x128xf32> -> vector<8x8x128xi32>
    %c31_i32_243 = arith.constant 31 : i32
    %629 = vector.broadcast %c31_i32_243 : i32 to vector<8x8x128xi32>
    %630 = arith.shrsi %628, %629 : vector<8x8x128xi32>
    %c2147483647_i32_244 = arith.constant 2147483647 : i32
    %631 = vector.broadcast %c2147483647_i32_244 : i32 to vector<8x8x128xi32>
    %632 = arith.andi %630, %631 : vector<8x8x128xi32>
    %633 = arith.xori %628, %632 : vector<8x8x128xi32>
    %cst_245 = arith.constant 0.000000e+00 : f32
    %634 = vector.broadcast %cst_245 : f32 to vector<8x8x128xf32>
    %635 = arith.cmpf oeq, %627, %634 : vector<8x8x128xf32>
    %c0_i32_246 = arith.constant 0 : i32
    %636 = vector.broadcast %c0_i32_246 : i32 to vector<8x8x128xi32>
    %637 = arith.select %635, %636, %633 : vector<8x8x128xi1>, vector<8x8x128xi32>
    %638 = arith.cmpf one, %627, %627 : vector<8x8x128xf32>
    %c2147483647_i32_247 = arith.constant 2147483647 : i32
    %639 = vector.broadcast %c2147483647_i32_247 : i32 to vector<8x8x128xi32>
    %640 = arith.select %638, %639, %637 : vector<8x8x128xi1>, vector<8x8x128xi32>
    %c8_i32_248 = arith.constant 8 : i32
    %641 = arith.muli %c27_i32, %c8_i32_248 : i32
    %642 = vector.broadcast %641 : i32 to vector<8x8x128xi32>
    %643 = arith.addi %0, %642 : vector<8x8x128xi32>
    %644 = arith.cmpi sgt, %640, %622 : vector<8x8x128xi32>
    %645 = arith.select %644, %640, %622 : vector<8x8x128xi1>, vector<8x8x128xi32>
    %646 = arith.select %644, %643, %623 : vector<8x8x128xi1>, vector<8x8x128xi32>
    %c28_i32 = arith.constant 28 : i32
    %c8_i32_249 = arith.constant 8 : i32
    %647 = arith.muli %c28_i32, %c8_i32_249 : i32
    %648 = tpu.assume_multiple %647, 8 : i32
    %c0_250 = arith.constant 0 : index
    %649 = arith.index_cast %648 : i32 to index
    %c0_251 = arith.constant 0 : index
    %650 = vector.load %arg2[%c0_250, %649, %c0_251] : memref<8x256x128xf32, #tpu.memory_space<vmem>>, vector<8x8x128xf32>
    %651 = tpu.bitcast %650 : vector<8x8x128xf32> -> vector<8x8x128xi32>
    %c31_i32_252 = arith.constant 31 : i32
    %652 = vector.broadcast %c31_i32_252 : i32 to vector<8x8x128xi32>
    %653 = arith.shrsi %651, %652 : vector<8x8x128xi32>
    %c2147483647_i32_253 = arith.constant 2147483647 : i32
    %654 = vector.broadcast %c2147483647_i32_253 : i32 to vector<8x8x128xi32>
    %655 = arith.andi %653, %654 : vector<8x8x128xi32>
    %656 = arith.xori %651, %655 : vector<8x8x128xi32>
    %cst_254 = arith.constant 0.000000e+00 : f32
    %657 = vector.broadcast %cst_254 : f32 to vector<8x8x128xf32>
    %658 = arith.cmpf oeq, %650, %657 : vector<8x8x128xf32>
    %c0_i32_255 = arith.constant 0 : i32
    %659 = vector.broadcast %c0_i32_255 : i32 to vector<8x8x128xi32>
    %660 = arith.select %658, %659, %656 : vector<8x8x128xi1>, vector<8x8x128xi32>
    %661 = arith.cmpf one, %650, %650 : vector<8x8x128xf32>
    %c2147483647_i32_256 = arith.constant 2147483647 : i32
    %662 = vector.broadcast %c2147483647_i32_256 : i32 to vector<8x8x128xi32>
    %663 = arith.select %661, %662, %660 : vector<8x8x128xi1>, vector<8x8x128xi32>
    %c8_i32_257 = arith.constant 8 : i32
    %664 = arith.muli %c28_i32, %c8_i32_257 : i32
    %665 = vector.broadcast %664 : i32 to vector<8x8x128xi32>
    %666 = arith.addi %0, %665 : vector<8x8x128xi32>
    %667 = arith.cmpi sgt, %663, %645 : vector<8x8x128xi32>
    %668 = arith.select %667, %663, %645 : vector<8x8x128xi1>, vector<8x8x128xi32>
    %669 = arith.select %667, %666, %646 : vector<8x8x128xi1>, vector<8x8x128xi32>
    %c29_i32 = arith.constant 29 : i32
    %c8_i32_258 = arith.constant 8 : i32
    %670 = arith.muli %c29_i32, %c8_i32_258 : i32
    %671 = tpu.assume_multiple %670, 8 : i32
    %c0_259 = arith.constant 0 : index
    %672 = arith.index_cast %671 : i32 to index
    %c0_260 = arith.constant 0 : index
    %673 = vector.load %arg2[%c0_259, %672, %c0_260] : memref<8x256x128xf32, #tpu.memory_space<vmem>>, vector<8x8x128xf32>
    %674 = tpu.bitcast %673 : vector<8x8x128xf32> -> vector<8x8x128xi32>
    %c31_i32_261 = arith.constant 31 : i32
    %675 = vector.broadcast %c31_i32_261 : i32 to vector<8x8x128xi32>
    %676 = arith.shrsi %674, %675 : vector<8x8x128xi32>
    %c2147483647_i32_262 = arith.constant 2147483647 : i32
    %677 = vector.broadcast %c2147483647_i32_262 : i32 to vector<8x8x128xi32>
    %678 = arith.andi %676, %677 : vector<8x8x128xi32>
    %679 = arith.xori %674, %678 : vector<8x8x128xi32>
    %cst_263 = arith.constant 0.000000e+00 : f32
    %680 = vector.broadcast %cst_263 : f32 to vector<8x8x128xf32>
    %681 = arith.cmpf oeq, %673, %680 : vector<8x8x128xf32>
    %c0_i32_264 = arith.constant 0 : i32
    %682 = vector.broadcast %c0_i32_264 : i32 to vector<8x8x128xi32>
    %683 = arith.select %681, %682, %679 : vector<8x8x128xi1>, vector<8x8x128xi32>
    %684 = arith.cmpf one, %673, %673 : vector<8x8x128xf32>
    %c2147483647_i32_265 = arith.constant 2147483647 : i32
    %685 = vector.broadcast %c2147483647_i32_265 : i32 to vector<8x8x128xi32>
    %686 = arith.select %684, %685, %683 : vector<8x8x128xi1>, vector<8x8x128xi32>
    %c8_i32_266 = arith.constant 8 : i32
    %687 = arith.muli %c29_i32, %c8_i32_266 : i32
    %688 = vector.broadcast %687 : i32 to vector<8x8x128xi32>
    %689 = arith.addi %0, %688 : vector<8x8x128xi32>
    %690 = arith.cmpi sgt, %686, %668 : vector<8x8x128xi32>
    %691 = arith.select %690, %686, %668 : vector<8x8x128xi1>, vector<8x8x128xi32>
    %692 = arith.select %690, %689, %669 : vector<8x8x128xi1>, vector<8x8x128xi32>
    %c30_i32 = arith.constant 30 : i32
    %c8_i32_267 = arith.constant 8 : i32
    %693 = arith.muli %c30_i32, %c8_i32_267 : i32
    %694 = tpu.assume_multiple %693, 8 : i32
    %c0_268 = arith.constant 0 : index
    %695 = arith.index_cast %694 : i32 to index
    %c0_269 = arith.constant 0 : index
    %696 = vector.load %arg2[%c0_268, %695, %c0_269] : memref<8x256x128xf32, #tpu.memory_space<vmem>>, vector<8x8x128xf32>
    %697 = tpu.bitcast %696 : vector<8x8x128xf32> -> vector<8x8x128xi32>
    %c31_i32_270 = arith.constant 31 : i32
    %698 = vector.broadcast %c31_i32_270 : i32 to vector<8x8x128xi32>
    %699 = arith.shrsi %697, %698 : vector<8x8x128xi32>
    %c2147483647_i32_271 = arith.constant 2147483647 : i32
    %700 = vector.broadcast %c2147483647_i32_271 : i32 to vector<8x8x128xi32>
    %701 = arith.andi %699, %700 : vector<8x8x128xi32>
    %702 = arith.xori %697, %701 : vector<8x8x128xi32>
    %cst_272 = arith.constant 0.000000e+00 : f32
    %703 = vector.broadcast %cst_272 : f32 to vector<8x8x128xf32>
    %704 = arith.cmpf oeq, %696, %703 : vector<8x8x128xf32>
    %c0_i32_273 = arith.constant 0 : i32
    %705 = vector.broadcast %c0_i32_273 : i32 to vector<8x8x128xi32>
    %706 = arith.select %704, %705, %702 : vector<8x8x128xi1>, vector<8x8x128xi32>
    %707 = arith.cmpf one, %696, %696 : vector<8x8x128xf32>
    %c2147483647_i32_274 = arith.constant 2147483647 : i32
    %708 = vector.broadcast %c2147483647_i32_274 : i32 to vector<8x8x128xi32>
    %709 = arith.select %707, %708, %706 : vector<8x8x128xi1>, vector<8x8x128xi32>
    %c8_i32_275 = arith.constant 8 : i32
    %710 = arith.muli %c30_i32, %c8_i32_275 : i32
    %711 = vector.broadcast %710 : i32 to vector<8x8x128xi32>
    %712 = arith.addi %0, %711 : vector<8x8x128xi32>
    %713 = arith.cmpi sgt, %709, %691 : vector<8x8x128xi32>
    %714 = arith.select %713, %709, %691 : vector<8x8x128xi1>, vector<8x8x128xi32>
    %715 = arith.select %713, %712, %692 : vector<8x8x128xi1>, vector<8x8x128xi32>
    %c31_i32_276 = arith.constant 31 : i32
    %c8_i32_277 = arith.constant 8 : i32
    %716 = arith.muli %c31_i32_276, %c8_i32_277 : i32
    %717 = tpu.assume_multiple %716, 8 : i32
    %c0_278 = arith.constant 0 : index
    %718 = arith.index_cast %717 : i32 to index
    %c0_279 = arith.constant 0 : index
    %719 = vector.load %arg2[%c0_278, %718, %c0_279] : memref<8x256x128xf32, #tpu.memory_space<vmem>>, vector<8x8x128xf32>
    %720 = tpu.bitcast %719 : vector<8x8x128xf32> -> vector<8x8x128xi32>
    %c31_i32_280 = arith.constant 31 : i32
    %721 = vector.broadcast %c31_i32_280 : i32 to vector<8x8x128xi32>
    %722 = arith.shrsi %720, %721 : vector<8x8x128xi32>
    %c2147483647_i32_281 = arith.constant 2147483647 : i32
    %723 = vector.broadcast %c2147483647_i32_281 : i32 to vector<8x8x128xi32>
    %724 = arith.andi %722, %723 : vector<8x8x128xi32>
    %725 = arith.xori %720, %724 : vector<8x8x128xi32>
    %cst_282 = arith.constant 0.000000e+00 : f32
    %726 = vector.broadcast %cst_282 : f32 to vector<8x8x128xf32>
    %727 = arith.cmpf oeq, %719, %726 : vector<8x8x128xf32>
    %c0_i32_283 = arith.constant 0 : i32
    %728 = vector.broadcast %c0_i32_283 : i32 to vector<8x8x128xi32>
    %729 = arith.select %727, %728, %725 : vector<8x8x128xi1>, vector<8x8x128xi32>
    %730 = arith.cmpf one, %719, %719 : vector<8x8x128xf32>
    %c2147483647_i32_284 = arith.constant 2147483647 : i32
    %731 = vector.broadcast %c2147483647_i32_284 : i32 to vector<8x8x128xi32>
    %732 = arith.select %730, %731, %729 : vector<8x8x128xi1>, vector<8x8x128xi32>
    %c8_i32_285 = arith.constant 8 : i32
    %733 = arith.muli %c31_i32_276, %c8_i32_285 : i32
    %734 = vector.broadcast %733 : i32 to vector<8x8x128xi32>
    %735 = arith.addi %0, %734 : vector<8x8x128xi32>
    %736 = arith.cmpi sgt, %732, %714 : vector<8x8x128xi32>
    %737 = arith.select %736, %732, %714 : vector<8x8x128xi1>, vector<8x8x128xi32>
    %738 = arith.select %736, %735, %715 : vector<8x8x128xi1>, vector<8x8x128xi32>
    %c32_i32 = arith.constant 32 : i32
    %cst_286 = arith.constant dense<-2147483648> : vector<8x128xi32>
    %739 = vector.multi_reduction <maxsi>, %737, %cst_286 [1] : vector<8x8x128xi32> to vector<8x128xi32>
    %740 = vector.shape_cast %739 : vector<8x128xi32> to vector<8x1x128xi32>
    %741 = vector.broadcast %740 : vector<8x1x128xi32> to vector<8x8x128xi32>
    %742 = arith.cmpi eq, %737, %741 : vector<8x8x128xi32>
    %c256_i32 = arith.constant 256 : i32
    %743 = vector.broadcast %c256_i32 : i32 to vector<8x8x128xi32>
    %744 = arith.select %742, %738, %743 : vector<8x8x128xi1>, vector<8x8x128xi32>
    %cst_287 = arith.constant dense<2147483647> : vector<8x128xi32>
    %745 = vector.multi_reduction <minsi>, %744, %cst_287 [1] : vector<8x8x128xi32> to vector<8x128xi32>
    %c0_288 = arith.constant 0 : index
    %c0_289 = arith.constant 0 : index
    %746 = vector.load %arg3[%c0_288, %c0_289] : memref<8x128xi32, #tpu.memory_space<vmem>>, vector<8x128xi32>
    tpu.vector_store %arg3[%c0_288, %c0_289], %745 {strides = array<i32>} : memref<8x128xi32, #tpu.memory_space<vmem>>, vector<8x128xi32>,
    return
  }
  func.func @transform_0(%arg0: i32, %arg1: i32) -> (i32, i32, i32) {
    %c0_i32 = arith.constant 0 : i32
    %c0_i32_0 = arith.constant 0 : i32
    return %arg0, %c0_i32, %arg1 : i32, i32, i32
  }
  func.func @transform_1(%arg0: i32, %arg1: i32) -> (i32, i32) {
    %c0_i32 = arith.constant 0 : i32
    return %arg0, %arg1 : i32, i32
  }
}

</mosaic_0001>

<bundles_post_ra>
// kernel: argmax_dim1_i32.1
= control target key start
LH: loop header
LB: loop body
LE: loop exit
PB: predicated region body
PF: predicated region fallthrough
CT: control target
= control target key end

     0   :  { %6 = vsyncpa [#allocation3], 0  ;;  %s9778_s0 = inlined_call_operand.hbm [shape: f32[16,256,256], index: 0, kind: input, shape index: {}]   ;;  %s9779_s1 = inlined_call_operand.hbm [shape: s32[16,256], index: 1, kind: output, shape index: {}]  }
   0x1   :  { %8 = vsyncpa [#allocation3 + $0x1], 0 }
   0x2   :  { %9 = vsyncpa [#allocation4], 0 }
   0x3   :  { %11 = vsyncpa [#allocation4 + $0x1], 0  ;;  %s4059_s6 = smov 0   ;;  %s4061_s7 = smov 0  }
   0x4   :  { %s4063_s8 = smov 0   ;;  %s4065_s9 = smov 0  }
   0x5   :  { %s4067_s10 = smov 0   ;;  %s4069_s11 = smov 0  }
   0x6   :  { %s4071_s12 = smov 0   ;;  %s4073_s13 = smov 0  }
   0x7 LB: > { %s3570_s14 = sadd.s32 4294967295, %s4044_s13   ;;  %s3571_s15 = sadd.s32 4294967294, %s4044_s13   ;;  %s4044_s13 = sphi %s4073_s13, %s17_s13   ;;  %s4040_s12 = sphi %s4071_s12, %s9907_s12   ;;  %s4036_s11 = sphi %s4069_s11, %s9906_s11   ;;  %s4032_s10 = sphi %s4067_s10, %s9905_s10   ;;  %s4028_s9 = sphi %s4065_s9, %s9904_s9   ;;  %s4024_s8 = sphi %s4063_s8, %s9903_s8   ;;  %s4020_s7 = sphi %s4061_s7, %s9902_s7   ;;  %s4016_s6 = sphi %s4059_s6, %s9901_s6  }
   0x8   : > { %s26_s16 = sadd.s32 1, %s4036_s11  ;;  %s29_s17 = sadd.s32 1, %s4040_s12 }
   0x9   : > { %p27_p0 = scmp.ge.s32.totalorder %s26_s16, 2  ;;  %s38_s18 = sadd.s32 1, %s4024_s8 }
   0xa   : > { %p45_p1 = scmp.ne.s32.totalorder %s4024_s8, %s4020_s7  ;;  %p46_p2 = scmp.eq.s32.totalorder %s4044_s13, 0 }
   0xb   : > { %s9909_s16 = smov (%p27_p0, %s26_s16), 0  ;;  %s9911_s17 = smov (!%p27_p0, %s29_s17), %s4040_s12 }
   0xc   : > { %s34_s19 = ssub.s32 %s4036_s11, %s9909_s16  ;;  %p4112_p3 = por %p46_p2, %p45_p1 }
   0xd   : > { %p31_p4 = scmp.ge.s32.totalorder %s9911_s17, 2  ;;  %p51_p5 = scmp.ne.s32.totalorder %s4020_s7, %s4016_s6 }
   0xe   : > { %p52_p6 = scmp.eq.s32.totalorder %s3570_s14, 0  ;;  %p77_p7 = scmp.eq.s32.totalorder %s3570_s14, 3 }
   0xf   : > { %s9913_s17 = smov (%p31_p4, %s9911_s17), 0  ;;  %p83_p10 = scmp.eq.s32.totalorder %s3571_s15, 3 }
  0x10   : > { %9838 = sst [smem:[#allocation8_spill]] %s9913_s17  ;;  %p4120_p8 = por %p52_p6, %p51_p5 }
  0x11   : > { %p4124_p9 = por %p77_p7, %p45_p1  ;;  %s33_s23 = ssub.s32 %s4040_s12, %s9913_s17 }
  0x12   : > { %s35_s24 = sor.u32 %s34_s19, %s33_s23  ;;  %p4130_p12 = por %p83_p10, %p51_p5 }
  0x13   : > { %p36_p11 = scmp.eq.s32.totalorder %s35_s24, 0  ;;  %p3847_p13 = scmp.lt.s32.totalorder %s4044_s13, 4 }
  0x14   : > { %s103_s26 = sand.u32 1, %s4024_s8   ;;  %s3834_s29 = sshll.u32 %s4040_s12, 9 }
  0x15   : > { %s4137_s27 = scalar_select %p36_p11, %s4024_s8, %s38_s18  }
  0x16   : > { %s3574_s28 = sshll.u32 %s103_s26, 11  ;;  %s112_s30 = sadd.s32 %s4036_s11, %s3834_s29 }
  0x17   : > { %s107_s2 = scalar_lea.vmem [#allocation2], %s3574_s28  ;;  %s3577_s4 = sshll.u32 %s112_s30, 3 }
  0x18   : > { %s117_s3 = sshll.u32 %s107_s2, 4  ;;  %s114_s15 = scalar_lea.hbm %s9778_s0, %s3577_s4  ;;  %s118_s3 = int_to_ptr.vmem [resolvable:$true] %s117_s3 }
  0x19   : > { %p3840_p0 = pnand %p3847_p13, %p4112_p3  ;;  %s115_s19 = sshll.u32 %s114_s15, 4  ;;  %s116_s19 = int_to_ptr.hbm [resolvable:$true] %s115_s19 }
  0x1a   : > { %s104_s23 = scalar_lea.sflag [#allocation3], %s103_s26  ;;  %s4046_s18 = smov 256  }
  0x1b   : > { %s4047_s24 = smov 128   ;;  %s4048_s17 = smov 8  }
  0x1c   : > { %3842 = dma.hbm_to_vmem [thread:$0]  (!%p3840_p0), %s116_s19, 32768, %s118_s3, %s104_s23, %s4046_s18, %s4047_s24, %s4048_s17  }
  0x1d   : > { %p3578_p1 = scmp.ge.s32.totalorder %s4044_s13, 1  ;;  %p125_p2 = scmp.lt.s32.totalorder %s4044_s13, 5 }
  0x1f   : > { %p126_p4 = pnand %p3578_p1, %p125_p2 }
  0x20   : > { %s4149_s28 = sand.u32 (!%p126_p4), 1, %s4020_s7  }
  0x21   : > { %129 = sbr.rel (%p126_p4) target bundleno = 753 (0x2f1), region = 24  ;;  %s3579_s29 = sshll.u32 (!%p126_p4), %s4149_s28, 11 }
  0x22   : > { %s132_s20 = scalar_lea.sflag (!%p126_p4), [#allocation3], %s4149_s28  ;;  %s4153_s30 = scalar_lea.vmem (!%p126_p4), [#allocation2], %s3579_s29 }
  0x26   : > { %4007 = dma.done.wait (%p4120_p8), %s132_s20, 32768  }
  0x27   : > { %4009 = vsyncadd (%p4120_p8), %s132_s20, 4294934528  ;;  %v158_v0 = vld [vmem:[%s4153_s30] sm:$0xff]  ;;  %v156_v3 = vlaneseq  ;;  %v4191_v50 = vld [vmem:[%s4153_s30 + $0x8] sm:$0xff]  ;;  %s3830_s17 = sshll.u32 %s4032_s10, 1  ;;  %s3580_s10 = sshll.u32 %s4149_s28, 3 }
  0x28   : > { %v159_v1 = vld [vmem:[%s4153_s30 + $0x100] sm:$0xff]  ;;  %v174_v7 = vshra.s32 %v158_v0, 31  ;;  %vm198_vm0 = vcmp.eq.f32.partialorder %v158_v0, 0.0  ;;  %vm214_vm1 = vcmp.ne.f32.partialorder %v158_v0, %v158_v0  ;;  %v4194_v51 = vld [vmem:[%s4153_s30 + $0x108] sm:$0xff]  ;;  %s3478_s21 = sadd.s32 %s4028_s9, %s3830_s17  ;;  %s154_s4 = scalar_lea.vmem [#allocation5], %s3580_s10 }
  0x29   : > { %v160_v2 = vld [vmem:[%s4153_s30 + $0x200] sm:$0xff]  ;;  %v175_v8 = vshra.s32 %v159_v1, 31  ;;  %vm215_vm2 = vcmp.ne.f32.partialorder %v159_v1, %v159_v1  ;;  %vm199_vm3 = vcmp.eq.f32.partialorder %v159_v1, 0.0  ;;  %v4178_v47 = vshrl.u32 %v156_v3, 7  ;;  %v4197_v52 = vld [vmem:[%s4153_s30 + $0x208] sm:$0xff]  ;;  %s3831_s26 = sshll.u32 %s3478_s21, 3 }
  0x2a   : > { %v161_v4 = vld [vmem:[%s4153_s30 + $0x300] sm:$0xff]  ;;  %v176_v9 = vshra.s32 %v160_v2, 31  ;;  %v182_v17 = vand.u32 2147483647, %v174_v7  ;;  %vm200_vm4 = vcmp.eq.f32.partialorder %v160_v2, 0.0  ;;  %vm216_vm10 = vcmp.ne.f32.partialorder %v160_v2, %v160_v2  ;;  %v4200_v53 = vld [vmem:[%s4153_s30 + $0x308] sm:$0xff]  ;;  %s3480_s3 = scalar_lea.hbm %s9779_s1, %s3831_s26 }
  0x2b   : > { %v162_v5 = vld [vmem:[%s4153_s30 + $0x400] sm:$0xff]  ;;  %v177_v12 = vshra.s32 %v161_v4, 31  ;;  %v183_v18 = vand.u32 2147483647, %v175_v8  ;;  %vm201_vm5 = vcmp.eq.f32.partialorder %v161_v4, 0.0  ;;  %vm217_vm11 = vcmp.ne.f32.partialorder %v161_v4, %v161_v4  ;;  %v4219_v58 = vld [vmem:[%s4153_s30 + $0x408] sm:$0xff] }
  0x2c   : > { %v163_v6 = vld [vmem:[%s4153_s30 + $0x500] sm:$0xff]  ;;  %v178_v13 = vshra.s32 %v162_v5, 31  ;;  %v184_v19 = vand.u32 2147483647, %v176_v9  ;;  %v190_v25 = vxor.u32 %v182_v17, %v158_v0  ;;  %vm202_vm6 = vcmp.eq.f32.partialorder %v162_v5, 0.0  ;;  %v4222_v59 = vld [vmem:[%s4153_s30 + $0x508] sm:$0xff] }
  0x2d   : > { %v164_v10 = vld [vmem:[%s4153_s30 + $0x600] sm:$0xff]  ;;  %v179_v14 = vshra.s32 %v163_v6, 31  ;;  %v185_v20 = vand.u32 2147483647, %v177_v12  ;;  %v191_v26 = vxor.u32 %v183_v18, %v159_v1  ;;  %vm203_vm7 = vcmp.eq.f32.partialorder %v163_v6, 0.0  ;;  %v3587_v0 = vld [vmem:[%s4153_s30 + $0x608] sm:$0xff] }
  0x2e   : > { %v165_v11 = vld [vmem:[%s4153_s30 + $0x700] sm:$0xff]  ;;  %v180_v15 = vshra.s32 %v164_v10, 31  ;;  %v186_v21 = vand.u32 2147483647, %v178_v13  ;;  %v192_v27 = vxor.u32 %v184_v19, %v160_v2  ;;  %vm204_vm8 = vcmp.eq.f32.partialorder %v164_v10, 0.0  ;;  %v3588_v1 = vld [vmem:[%s4153_s30 + $0x708] sm:$0xff] }
  0x2f   : > { %v181_v16 = vshra.s32 %v165_v11, 31  ;;  %v187_v22 = vand.u32 2147483647, %v179_v14  ;;  %v193_v28 = vxor.u32 %v185_v20, %v161_v4  ;;  %vm205_vm9 = vcmp.eq.f32.partialorder %v165_v11, 0.0  ;;  %s3482_s5 = sshll.u32 %s154_s4, 4  ;;  %s3484_s14 = sshll.u32 %s3480_s3, 4  ;;  %s3483_s5 = int_to_ptr.vmem [resolvable:$true] %s3482_s5  ;;  %s3485_s14 = int_to_ptr.hbm [resolvable:$true] %s3484_s14 }
  0x30   : > { %v188_v23 = vand.u32 2147483647, %v180_v15  ;;  %v194_v29 = vxor.u32 %v186_v21, %v162_v5  ;;  %v206_v33 = vsel %vm198_vm0, 0, %v190_v25  ;;  %v207_v34 = vsel %vm199_vm3, 0, %v191_v26  ;;  %s3468_s15 = scalar_lea.sflag [#allocation4], %s4149_s28  ;;  %s3960_s19 = sshra.s32 %s3485_s14, 4  ;;  %s3961_s19 = int_to_ptr.hbm [resolvable:$true] %s3960_s19 }
  0x31   : > { %v189_v24 = vand.u32 2147483647, %v181_v16  ;;  %v195_v30 = vxor.u32 %v187_v22, %v163_v6  ;;  %v208_v35 = vsel %vm200_vm4, 0, %v192_v27  ;;  %v209_v36 = vsel %vm201_vm5, 0, %v193_v28  ;;  %s3962_s23 = scalar_lea.hbm %s3961_s19, 8  ;;  %s3966_s29 = scalar_lea.hbm %s9779_s1, 32 }
  0x32   : > { %v196_v31 = vxor.u32 %v188_v23, %v164_v10  ;;  %v210_v37 = vsel %vm202_vm6, 0, %v194_v29  ;;  %vm218_vm12 = vcmp.ne.f32.partialorder %v162_v5, %v162_v5  ;;  %vm219_vm13 = vcmp.ne.f32.partialorder %v163_v6, %v163_v6  ;;  %p3963_p3 = scmp.ne.s32.totalorder %s3961_s19, %s3962_s23  ;;  %p3967_p7 = scmp.lt.s32.totalorder %s3961_s19, %s9779_s1 }
  0x33   : > { %v197_v32 = vxor.u32 %v189_v24, %v165_v11  ;;  %v211_v38 = vsel %vm203_vm7, 0, %v195_v30  ;;  %vm220_vm14 = vcmp.ne.f32.partialorder %v164_v10, %v164_v10  ;;  %vm221_vm15 = vcmp.ne.f32.partialorder %v165_v11, %v165_v11  ;;  %p3968_p8 = scmp.lt.s32.totalorder %s3966_s29, %s3962_s23 }
  0x34   : > { %v212_v39 = vsel %vm204_vm8, 0, %v196_v31  ;;  %v222_v41 = vsel %vm214_vm1, 2147483647, %v206_v33  ;;  %v223_v42 = vsel %vm215_vm2, 2147483647, %v207_v34  ;;  %v271_v4 = vshra.s32 %v4191_v50, 31  ;;  %p3964_p5 = pnand %p3963_p3, %p4124_p9 }
  0x35   : > { %v213_v40 = vsel %vm205_vm9, 0, %v197_v32  ;;  %v4170_v43 = vsel %vm216_vm10, 2147483647, %v208_v35  ;;  %v4172_v44 = vsel %vm217_vm11, 2147483647, %v209_v36  ;;  %vm230_vm0 = vcmp.gt.s32.totalorder %v222_v41, 2147483648  ;;  %p3969_p10 = por %p3968_p8, %p3967_p7 }
  0x36   : > { %v4174_v45 = vsel %vm218_vm12, 2147483647, %v210_v37  ;;  %v4176_v46 = vsel %vm219_vm13, 2147483647, %v211_v38  ;;  %v4180_v48 = vsel %vm220_vm14, 2147483647, %v212_v39  ;;  %vm311_vm8 = vcmp.ne.f32.partialorder %v4191_v50, %v4191_v50  ;;  %p3965_p6 = pneg %p3964_p5 }
  0x37   : > { %v4182_v49 = vsel %vm221_vm15, 2147483647, %v213_v40  ;;  %vm231_vm1 = vcmp.gt.s32.totalorder %v223_v42, 2147483648  ;;  %vm9786_vm2 = vcmp.gt.s32.totalorder %v4170_v43, 2147483648  ;;  %vm9785_vm3 = vcmp.gt.s32.totalorder %v4172_v44, 2147483648 }
  0x38   : > { %vm9784_vm4 = vcmp.gt.s32.totalorder %v4174_v45, 2147483648  ;;  %vm9783_vm5 = vcmp.gt.s32.totalorder %v4176_v46, 2147483648  ;;  %vm9782_vm6 = vcmp.gt.s32.totalorder %v4180_v48, 2147483648  ;;  %vm9781_vm7 = vcmp.gt.s32.totalorder %v4182_v49, 2147483648  ;;  %p3970_p11 = pnand %p3969_p10, %p3965_p6 }
  0x39   : > { %v4203_v54 = vsel %vm230_vm0, %v222_v41, 2147483648  ;;  %v4206_v55 = vsel %vm231_vm1, %v223_v42, 2147483648  ;;  %v4211_v56 = vsel %vm9786_vm2, %v4170_v43, 2147483648  ;;  %v4216_v57 = vsel %vm9785_vm3, %v4172_v44, 2147483648 }
  0x3a   : > { %v4227_v60 = vsel %vm9784_vm4, %v4174_v45, 2147483648  ;;  %v4232_v61 = vsel %vm9783_vm5, %v4176_v46, 2147483648  ;;  %v4237_v62 = vsel %vm9782_vm6, %v4180_v48, 2147483648  ;;  %v4242_v63 = vsel %vm9781_vm7, %v4182_v49, 2147483648 }
  0x3b   : > { %v4248_v2 = vsel %vm230_vm0, %v4178_v47, 0  ;;  %v4252_v3 = vsel %vm231_vm1, %v4178_v47, 0  ;;  %v272_v5 = vshra.s32 %v4194_v51, 31  ;;  %v273_v6 = vshra.s32 %v4197_v52, 31 }
  0x3c   : > { %v274_v7 = vshra.s32 %v4200_v53, 31  ;;  %v275_v8 = vshra.s32 %v4219_v58, 31  ;;  %v276_v9 = vshra.s32 %v4222_v59, 31  ;;  %vm312_vm9 = vcmp.ne.f32.partialorder %v4194_v51, %v4194_v51 }
  0x3d   : > { %v277_v10 = vshra.s32 %v3587_v0, 31  ;;  %v278_v11 = vshra.s32 %v3588_v1, 31  ;;  %v279_v12 = vand.u32 2147483647, %v271_v4  ;;  %v280_v13 = vand.u32 2147483647, %v272_v5 }
  0x3e   : > { %v281_v14 = vand.u32 2147483647, %v273_v6  ;;  %v282_v15 = vand.u32 2147483647, %v274_v7  ;;  %v283_v16 = vand.u32 2147483647, %v275_v8  ;;  %vm313_vm10 = vcmp.ne.f32.partialorder %v4197_v52, %v4197_v52 }
  0x3f   : > { %v284_v17 = vand.u32 2147483647, %v276_v9  ;;  %v285_v18 = vand.u32 2147483647, %v277_v10  ;;  %v286_v19 = vand.u32 2147483647, %v278_v11  ;;  %v287_v20 = vxor.u32 %v4191_v50, %v279_v12 }
  0x40   : > { %v288_v21 = vxor.u32 %v4194_v51, %v280_v13  ;;  %v289_v22 = vxor.u32 %v4197_v52, %v281_v14  ;;  %v290_v23 = vxor.u32 %v4200_v53, %v282_v15  ;;  %v291_v24 = vxor.u32 %v4219_v58, %v283_v16  ;;  %v4384_v4 = vld [vmem:[%s4153_s30 + $0x310] sm:$0xff] }
  0x41   : > { %v292_v25 = vxor.u32 %v4222_v59, %v284_v17  ;;  %v293_v26 = vxor.u32 %v3587_v0, %v285_v18  ;;  %v294_v27 = vxor.u32 %v3588_v1, %v286_v19  ;;  %vm295_vm11 = vcmp.eq.f32.partialorder %v4191_v50, 0.0  ;;  %v4387_v5 = vld [vmem:[%s4153_s30 + $0x410] sm:$0xff] }
  0x42   : > { %vm296_vm12 = vcmp.eq.f32.partialorder %v4194_v51, 0.0  ;;  %vm297_vm13 = vcmp.eq.f32.partialorder %v4197_v52, 0.0  ;;  %vm298_vm14 = vcmp.eq.f32.partialorder %v4200_v53, 0.0  ;;  %vm299_vm15 = vcmp.eq.f32.partialorder %v4219_v58, 0.0  ;;  %v4390_v6 = vld [vmem:[%s4153_s30 + $0x510] sm:$0xff] }
  0x43   : > { %vm300_vm0 = vcmp.eq.f32.partialorder %v4222_v59, 0.0  ;;  %vm301_vm1 = vcmp.eq.f32.partialorder %v3587_v0, 0.0  ;;  %vm302_vm7 = vcmp.eq.f32.partialorder %v3588_v1, 0.0  ;;  %v303_v28 = vsel %vm295_vm11, 0, %v287_v20  ;;  %v3595_v11 = vld [vmem:[%s4153_s30 + $0x610] sm:$0xff] }
  0x44   : > { %v304_v29 = vsel %vm296_vm12, 0, %v288_v21  ;;  %v305_v30 = vsel %vm297_vm13, 0, %v289_v22  ;;  %v306_v31 = vsel %vm298_vm14, 0, %v290_v23  ;;  %v307_v32 = vsel %vm299_vm15, 0, %v291_v24  ;;  %v3596_v12 = vld [vmem:[%s4153_s30 + $0x710] sm:$0xff] }
  0x45   : > { %v308_v33 = vsel %vm300_vm0, 0, %v292_v25  ;;  %v309_v34 = vsel %vm301_vm1, 0, %v293_v26  ;;  %v310_v35 = vsel %vm302_vm7, 0, %v294_v27  ;;  %vm314_vm6 = vcmp.ne.f32.partialorder %v4200_v53, %v4200_v53 }
  0x46   : > { %vm315_vm5 = vcmp.ne.f32.partialorder %v4219_v58, %v4219_v58  ;;  %vm316_vm4 = vcmp.ne.f32.partialorder %v4222_v59, %v4222_v59  ;;  %vm317_vm3 = vcmp.ne.f32.partialorder %v3587_v0, %v3587_v0  ;;  %vm318_vm2 = vcmp.ne.f32.partialorder %v3588_v1, %v3588_v1  ;;  %v4351_v59 = vld [vmem:[%s4153_s30 + $0x10] sm:$0xff] }
  0x47   : > { %v319_v36 = vsel %vm311_vm8, 2147483647, %v303_v28  ;;  %v4290_v37 = vsel %vm312_vm9, 2147483647, %v304_v29  ;;  %v4295_v38 = vsel %vm313_vm10, 2147483647, %v305_v30  ;;  %vm409_vm0 = vcmp.ne.f32.partialorder %v4351_v59, %v4351_v59 }
  0x48   : > { %v4297_v39 = vsel %vm314_vm6, 2147483647, %v306_v31  ;;  %v4299_v40 = vsel %vm315_vm5, 2147483647, %v307_v32  ;;  %v4301_v41 = vsel %vm316_vm4, 2147483647, %v308_v33  ;;  %vm328_vm4 = vcmp.gt.s32.totalorder %v319_v36, %v4203_v54 }
  0x49   : > { %vm9842_vm7 = vcmp.gt.s32.totalorder %v4170_v43, 2147483648  ;;  %vm9843_vm8 = vcmp.gt.s32.totalorder %v4172_v44, 2147483648  ;;  %v4313_v51 = vsel %vm317_vm3, 2147483647, %v309_v34  ;;  %v4315_v52 = vsel %vm318_vm2, 2147483647, %v310_v35 }
  0x4a   : > { %v4306_v42 = vsel %vm9842_vm7, %v4178_v47, 0  ;;  %v4311_v50 = vsel %vm9843_vm8, %v4178_v47, 0  ;;  %v4318_v53 = vadd.s32 8, %v4178_v47  ;;  %vm329_vm5 = vcmp.gt.s32.totalorder %v4290_v37, %v4206_v55  ;;  %v4357_v0 = vld [vmem:[%s4153_s30 + $0x210] sm:$0xff] }
  0x4b   : > { %vm330_vm6 = vcmp.gt.s32.totalorder %v4295_v38, %v4211_v56  ;;  %vm9791_vm9 = vcmp.gt.s32.totalorder %v4297_v39, %v4216_v57  ;;  %vm9790_vm2 = vcmp.gt.s32.totalorder %v4299_v40, %v4227_v60  ;;  %vm9789_vm3 = vcmp.gt.s32.totalorder %v4301_v41, %v4232_v61 }
  0x4c   : > { %vm9788_vm10 = vcmp.gt.s32.totalorder %v4313_v51, %v4237_v62  ;;  %vm9844_vm11 = vcmp.gt.s32.totalorder %v4174_v45, 2147483648  ;;  %vm9845_vm12 = vcmp.gt.s32.totalorder %v4176_v46, 2147483648  ;;  %vm9846_vm13 = vcmp.gt.s32.totalorder %v4180_v48, 2147483648  ;;  %v4354_v45 = vld [vmem:[%s4153_s30 + $0x110] sm:$0xff] }
  0x4d   : > { %v4336_v43 = vsel %vm9844_vm11, %v4178_v47, 0  ;;  %v4341_v44 = vsel %vm9845_vm12, %v4178_v47, 0  ;;  %v4346_v58 = vsel %vm9846_vm13, %v4178_v47, 0  ;;  %vm9787_vm14 = vcmp.gt.s32.totalorder %v4315_v52, %v4242_v63 }
  0x4e   : > { %vm9847_vm15 = vcmp.gt.s32.totalorder %v4182_v49, 2147483648  ;;  %v4367_v48 = vsel %vm328_vm4, %v319_v36, %v4203_v54  ;;  %v4374_v1 = vsel %vm329_vm5, %v4290_v37, %v4206_v55  ;;  %v4381_v49 = vsel %vm330_vm6, %v4295_v38, %v4211_v56 }
  0x4f   : > { %v4362_v46 = vsel %vm9847_vm15, %v4178_v47, 0  ;;  %v4397_v7 = vsel %vm9791_vm9, %v4297_v39, %v4216_v57  ;;  %v4404_v8 = vsel %vm9790_vm2, %v4299_v40, %v4227_v60  ;;  %v4411_v9 = vsel %vm9789_vm3, %v4301_v41, %v4232_v61 }
  0x50   : > { %v4418_v10 = vsel %vm9788_vm10, %v4313_v51, %v4237_v62  ;;  %v4427_v13 = vsel %vm9787_vm14, %v4315_v52, %v4242_v63  ;;  %v4433_v14 = vsel %vm328_vm4, %v4318_v53, %v4248_v2  ;;  %v369_v15 = vshra.s32 %v4351_v59, 31 }
  0x51   : > { %v370_v16 = vshra.s32 %v4354_v45, 31  ;;  %v371_v17 = vshra.s32 %v4357_v0, 31  ;;  %v372_v18 = vshra.s32 %v4384_v4, 31  ;;  %v373_v19 = vshra.s32 %v4387_v5, 31 }
  0x52   : > { %v374_v20 = vshra.s32 %v4390_v6, 31  ;;  %v375_v21 = vshra.s32 %v3595_v11, 31  ;;  %v376_v22 = vshra.s32 %v3596_v12, 31  ;;  %v377_v54 = vand.u32 2147483647, %v369_v15 }
  0x53   : > { %v378_v2 = vand.u32 2147483647, %v370_v16  ;;  %v379_v23 = vand.u32 2147483647, %v371_v17  ;;  %v380_v24 = vand.u32 2147483647, %v372_v18  ;;  %vm410_vm1 = vcmp.ne.f32.partialorder %v4354_v45, %v4354_v45 }
  0x54   : > { %v381_v25 = vand.u32 2147483647, %v373_v19  ;;  %v382_v26 = vand.u32 2147483647, %v374_v20  ;;  %v383_v27 = vand.u32 2147483647, %v375_v21  ;;  %v385_v29 = vxor.u32 %v4351_v59, %v377_v54 }
  0x55   : > { %v384_v28 = vand.u32 2147483647, %v376_v22  ;;  %v386_v30 = vxor.u32 %v4354_v45, %v378_v2  ;;  %v387_v31 = vxor.u32 %v4357_v0, %v379_v23  ;;  %v388_v32 = vxor.u32 %v4384_v4, %v380_v24 }
  0x56   : > { %v389_v33 = vxor.u32 %v4387_v5, %v381_v25  ;;  %v390_v34 = vxor.u32 %v4390_v6, %v382_v26  ;;  %v391_v35 = vxor.u32 %v3595_v11, %v383_v27  ;;  %vm393_vm7 = vcmp.eq.f32.partialorder %v4351_v59, 0.0 }
  0x57   : > { %v392_v36 = vxor.u32 %v3596_v12, %v384_v28  ;;  %vm394_vm8 = vcmp.eq.f32.partialorder %v4354_v45, 0.0  ;;  %vm395_vm4 = vcmp.eq.f32.partialorder %v4357_v0, 0.0  ;;  %vm396_vm11 = vcmp.eq.f32.partialorder %v4384_v4, 0.0 }
  0x58   : > { %vm397_vm12 = vcmp.eq.f32.partialorder %v4387_v5, 0.0  ;;  %vm398_vm13 = vcmp.eq.f32.partialorder %v4390_v6, 0.0  ;;  %vm399_vm15 = vcmp.eq.f32.partialorder %v3595_v11, 0.0  ;;  %vm400_vm14 = vcmp.eq.f32.partialorder %v3596_v12, 0.0 }
  0x59   : > { %v401_v15 = vsel %vm393_vm7, 0, %v385_v29  ;;  %v402_v16 = vsel %vm394_vm8, 0, %v386_v30  ;;  %v403_v17 = vsel %vm395_vm4, 0, %v387_v31  ;;  %v404_v18 = vsel %vm396_vm11, 0, %v388_v32 }
  0x5a   : > { %v405_v19 = vsel %vm397_vm12, 0, %v389_v33  ;;  %v406_v20 = vsel %vm398_vm13, 0, %v390_v34  ;;  %v407_v21 = vsel %vm399_vm15, 0, %v391_v35  ;;  %v408_v22 = vsel %vm400_vm14, 0, %v392_v36 }
  0x5b   : > { %vm411_vm10 = vcmp.ne.f32.partialorder %v4357_v0, %v4357_v0  ;;  %vm412_vm3 = vcmp.ne.f32.partialorder %v4384_v4, %v4384_v4  ;;  %vm413_vm2 = vcmp.ne.f32.partialorder %v4387_v5, %v4387_v5  ;;  %vm414_vm9 = vcmp.ne.f32.partialorder %v4390_v6, %v4390_v6 }
  0x5c   : > { %vm415_vm7 = vcmp.ne.f32.partialorder %v3595_v11, %v3595_v11  ;;  %vm416_vm8 = vcmp.ne.f32.partialorder %v3596_v12, %v3596_v12  ;;  %v417_v54 = vsel %vm409_vm0, 2147483647, %v401_v15  ;;  %v4471_v2 = vsel %vm410_vm1, 2147483647, %v402_v16 }
  0x5d   : > { %v4473_v0 = vsel %vm411_vm10, 2147483647, %v403_v17  ;;  %v4480_v4 = vsel %vm329_vm5, %v4318_v53, %v4252_v3  ;;  %v4482_v5 = vsel %vm412_vm3, 2147483647, %v404_v18  ;;  %v4484_v6 = vsel %vm413_vm2, 2147483647, %v405_v19 }
  0x5e   : > { %v4486_v59 = vsel %vm414_vm9, 2147483647, %v406_v20  ;;  %v4493_v45 = vsel %vm330_vm6, %v4318_v53, %v4306_v42  ;;  %vm9848_vm10 = vcmp.gt.s32.totalorder %v4297_v39, %v4216_v57  ;;  %v4502_v3 = vsel %vm415_vm7, 2147483647, %v407_v21  ;;  %v4549_v39 = vld [vmem:[%s4153_s30 + $0x118] sm:$0xff] }
  0x5f   : > { %v4500_v55 = vsel %vm9848_vm10, %v4318_v53, %v4311_v50  ;;  %v4504_v37 = vsel %vm416_vm8, 2147483647, %v408_v22  ;;  %v4507_v11 = vadd.s32 16, %v4178_v47  ;;  %vm426_vm5 = vcmp.gt.s32.totalorder %v417_v54, %v4367_v48  ;;  %v4581_v42 = vld [vmem:[%s4153_s30 + $0x318] sm:$0xff] }
  0x60   : > { %vm427_vm6 = vcmp.gt.s32.totalorder %v4471_v2, %v4374_v1  ;;  %vm428_vm9 = vcmp.gt.s32.totalorder %v4473_v0, %v4381_v49  ;;  %vm429_vm2 = vcmp.gt.s32.totalorder %v4482_v5, %v4397_v7  ;;  %vm9795_vm3 = vcmp.gt.s32.totalorder %v4484_v6, %v4404_v8  ;;  %v4584_v50 = vld [vmem:[%s4153_s30 + $0x418] sm:$0xff] }
  0x61   : > { %vm9794_vm14 = vcmp.gt.s32.totalorder %v4486_v59, %v4411_v9  ;;  %vm9793_vm0 = vcmp.gt.s32.totalorder %v4502_v3, %v4418_v10  ;;  %vm9849_vm1 = vcmp.gt.s32.totalorder %v4299_v40, %v4227_v60  ;;  %vm9850_vm4 = vcmp.gt.s32.totalorder %v4301_v41, %v4232_v61  ;;  %v4546_v60 = vld [vmem:[%s4153_s30 + $0x18] sm:$0xff] }
  0x62   : > { %v4527_v56 = vsel %vm9849_vm1, %v4318_v53, %v4336_v43  ;;  %v4534_v57 = vsel %vm9850_vm4, %v4318_v53, %v4341_v44  ;;  %vm9851_vm11 = vcmp.gt.s32.totalorder %v4313_v51, %v4237_v62  ;;  %vm9792_vm12 = vcmp.gt.s32.totalorder %v4504_v37, %v4427_v13  ;;  %v4552_v40 = vld [vmem:[%s4153_s30 + $0x218] sm:$0xff] }
  0x63   : > { %v4541_v38 = vsel %vm9851_vm11, %v4318_v53, %v4346_v58  ;;  %vm9852_vm13 = vcmp.gt.s32.totalorder %v4315_v52, %v4242_v63  ;;  %v4564_v62 = vsel %vm426_vm5, %v417_v54, %v4367_v48  ;;  %v4571_v41 = vsel %vm427_vm6, %v4471_v2, %v4374_v1  ;;  %v4587_v51 = vld [vmem:[%s4153_s30 + $0x518] sm:$0xff] }
  0x64   : > { %v4559_v61 = vsel %vm9852_vm13, %v4318_v53, %v4362_v46  ;;  %v4578_v63 = vsel %vm428_vm9, %v4473_v0, %v4381_v49  ;;  %v4594_v52 = vsel %vm429_vm2, %v4482_v5, %v4397_v7  ;;  %v4601_v53 = vsel %vm9795_vm3, %v4484_v6, %v4404_v8  ;;  %v3603_v58 = vld [vmem:[%s4153_s30 + $0x618] sm:$0xff]  ;;  %v4733_v0 = vld [vmem:[%s4153_s30 + $0x20] sm:$0xff] }
  0x65   : > { %v4608_v43 = vsel %vm9794_vm14, %v4486_v59, %v4411_v9  ;;  %v4615_v44 = vsel %vm9793_vm0, %v4502_v3, %v4418_v10  ;;  %v3604_v46 = vld [vmem:[%s4153_s30 + $0x718] sm:$0xff]  ;;  %v4624_v12 = vsel %vm9792_vm12, %v4504_v37, %v4427_v13  ;;  %v4630_v23 = vsel %vm426_vm5, %v4507_v11, %v4433_v14 }
  0x66   : > { %v467_v24 = vshra.s32 %v4546_v60, 31  ;;  %v468_v25 = vshra.s32 %v4549_v39, 31  ;;  %v469_v26 = vshra.s32 %v4552_v40, 31  ;;  %v470_v27 = vshra.s32 %v4581_v42, 31 }
  0x67   : > { %v471_v28 = vshra.s32 %v4584_v50, 31  ;;  %v472_v29 = vshra.s32 %v4587_v51, 31  ;;  %v473_v30 = vshra.s32 %v3603_v58, 31  ;;  %v474_v31 = vshra.s32 %v3604_v46, 31 }
  0x68   : > { %v475_v32 = vand.u32 2147483647, %v467_v24  ;;  %v476_v33 = vand.u32 2147483647, %v468_v25  ;;  %v477_v34 = vand.u32 2147483647, %v469_v26  ;;  %vm507_vm15 = vcmp.ne.f32.partialorder %v4546_v60, %v4546_v60 }
  0x69   : > { %v478_v48 = vand.u32 2147483647, %v470_v27  ;;  %v479_v14 = vand.u32 2147483647, %v471_v28  ;;  %v480_v35 = vand.u32 2147483647, %v472_v29  ;;  %vm508_vm12 = vcmp.ne.f32.partialorder %v4549_v39, %v4549_v39 }
  0x6a   : > { %v481_v36 = vand.u32 2147483647, %v473_v30  ;;  %v482_v15 = vand.u32 2147483647, %v474_v31  ;;  %v483_v16 = vxor.u32 %v4546_v60, %v475_v32  ;;  %v484_v17 = vxor.u32 %v4549_v39, %v476_v33 }
  0x6b   : > { %v485_v18 = vxor.u32 %v4552_v40, %v477_v34  ;;  %v486_v19 = vxor.u32 %v4581_v42, %v478_v48  ;;  %v487_v20 = vxor.u32 %v4584_v50, %v479_v14  ;;  %v488_v21 = vxor.u32 %v4587_v51, %v480_v35 }
  0x6c   : > { %v489_v22 = vxor.u32 %v3603_v58, %v481_v36  ;;  %v490_v54 = vxor.u32 %v3604_v46, %v482_v15  ;;  %vm491_vm7 = vcmp.eq.f32.partialorder %v4546_v60, 0.0  ;;  %vm492_vm8 = vcmp.eq.f32.partialorder %v4549_v39, 0.0 }
  0x6d   : > { %vm493_vm10 = vcmp.eq.f32.partialorder %v4552_v40, 0.0  ;;  %vm494_vm5 = vcmp.eq.f32.partialorder %v4581_v42, 0.0  ;;  %vm495_vm1 = vcmp.eq.f32.partialorder %v4584_v50, 0.0  ;;  %vm496_vm4 = vcmp.eq.f32.partialorder %v4587_v51, 0.0 }
  0x6e   : > { %vm497_vm11 = vcmp.eq.f32.partialorder %v3603_v58, 0.0  ;;  %vm498_vm13 = vcmp.eq.f32.partialorder %v3604_v46, 0.0  ;;  %v499_v24 = vsel %vm491_vm7, 0, %v483_v16  ;;  %v500_v25 = vsel %vm492_vm8, 0, %v484_v17 }
  0x6f   : > { %v501_v26 = vsel %vm493_vm10, 0, %v485_v18  ;;  %v502_v27 = vsel %vm494_vm5, 0, %v486_v19  ;;  %v503_v28 = vsel %vm495_vm1, 0, %v487_v20  ;;  %v504_v29 = vsel %vm496_vm4, 0, %v488_v21 }
  0x70   : > { %v505_v30 = vsel %vm497_vm11, 0, %v489_v22  ;;  %v506_v31 = vsel %vm498_vm13, 0, %v490_v54  ;;  %vm509_vm0 = vcmp.ne.f32.partialorder %v4552_v40, %v4552_v40  ;;  %vm510_vm14 = vcmp.ne.f32.partialorder %v4581_v42, %v4581_v42 }
  0x71   : > { %vm511_vm3 = vcmp.ne.f32.partialorder %v4584_v50, %v4584_v50  ;;  %vm512_vm7 = vcmp.ne.f32.partialorder %v4587_v51, %v4587_v51  ;;  %vm513_vm8 = vcmp.ne.f32.partialorder %v3603_v58, %v3603_v58  ;;  %vm514_vm10 = vcmp.ne.f32.partialorder %v3604_v46, %v3604_v46 }
  0x72   : > { %v515_v32 = vsel %vm507_vm15, 2147483647, %v499_v24  ;;  %v4665_v33 = vsel %vm508_vm12, 2147483647, %v500_v25  ;;  %v4672_v39 = vsel %vm427_vm6, %v4507_v11, %v4480_v4  ;;  %v4674_v40 = vsel %vm509_vm0, 2147483647, %v501_v26 }
  0x73   : > { %v4676_v42 = vsel %vm510_vm14, 2147483647, %v502_v27  ;;  %v4678_v50 = vsel %vm511_vm3, 2147483647, %v503_v28  ;;  %v4685_v60 = vsel %vm428_vm9, %v4507_v11, %v4493_v45  ;;  %v4687_v51 = vsel %vm512_vm7, 2147483647, %v504_v29 }
  0x74   : > { %v4689_v1 = vsel %vm513_vm8, 2147483647, %v505_v30  ;;  %v4691_v2 = vsel %vm514_vm10, 2147483647, %v506_v31  ;;  %v4698_v4 = vsel %vm429_vm2, %v4507_v11, %v4500_v55  ;;  %v4701_v58 = vadd.s32 24, %v4178_v47  ;;  %v4768_v45 = vld [vmem:[%s4153_s30 + $0x320] sm:$0xff] }
  0x75   : > { %vm524_vm6 = vcmp.gt.s32.totalorder %v515_v32, %v4564_v62  ;;  %vm525_vm9 = vcmp.gt.s32.totalorder %v4665_v33, %v4571_v41  ;;  %vm526_vm3 = vcmp.gt.s32.totalorder %v4674_v40, %v4578_v63  ;;  %vm527_vm14 = vcmp.gt.s32.totalorder %v4676_v42, %v4594_v52  ;;  %v4771_v55 = vld [vmem:[%s4153_s30 + $0x420] sm:$0xff] }
  0x76   : > { %vm9799_vm2 = vcmp.gt.s32.totalorder %v4678_v50, %v4601_v53  ;;  %vm9798_vm0 = vcmp.gt.s32.totalorder %v4687_v51, %v4608_v43  ;;  %vm9853_vm12 = vcmp.gt.s32.totalorder %v4484_v6, %v4404_v8  ;;  %vm9854_vm15 = vcmp.gt.s32.totalorder %v4486_v59, %v4411_v9  ;;  %v4736_v8 = vld [vmem:[%s4153_s30 + $0x120] sm:$0xff] }
  0x77   : > { %v4719_v49 = vsel %vm9853_vm12, %v4507_v11, %v4527_v56  ;;  %v4726_v7 = vsel %vm9854_vm15, %v4507_v11, %v4534_v57  ;;  %vm9797_vm5 = vcmp.gt.s32.totalorder %v4689_v1, %v4615_v44  ;;  %vm9796_vm1 = vcmp.gt.s32.totalorder %v4691_v2, %v4624_v12  ;;  %v4765_v59 = vld [vmem:[%s4153_s30 + $0x220] sm:$0xff] }
  0x78   : > { %vm9855_vm4 = vcmp.gt.s32.totalorder %v4502_v3, %v4418_v10  ;;  %vm9856_vm11 = vcmp.gt.s32.totalorder %v4504_v37, %v4427_v13  ;;  %v4755_v6 = vsel %vm524_vm6, %v515_v32, %v4564_v62  ;;  %v4762_v10 = vsel %vm525_vm9, %v4665_v33, %v4571_v41  ;;  %v3610_v56 = vld [vmem:[%s4153_s30 + $0x520] sm:$0xff] }
  0x79   : > { %v4743_v9 = vsel %vm9855_vm4, %v4507_v11, %v4541_v38  ;;  %v4750_v5 = vsel %vm9856_vm11, %v4507_v11, %v4559_v61  ;;  %v4778_v13 = vsel %vm526_vm3, %v4674_v40, %v4578_v63  ;;  %v4785_v3 = vsel %vm527_vm14, %v4676_v42, %v4594_v52  ;;  %v3611_v57 = vld [vmem:[%s4153_s30 + $0x620] sm:$0xff]  ;;  %v4920_v40 = vld [vmem:[%s4153_s30 + $0x28] sm:$0xff] }
  0x7a   : > { %v4792_v37 = vsel %vm9799_vm2, %v4678_v50, %v4601_v53  ;;  %v4799_v11 = vsel %vm9798_vm0, %v4687_v51, %v4608_v43  ;;  %v4804_v38 = vld [vmem:[%s4153_s30 + $0x720] sm:$0xff]  ;;  %v4811_v61 = vsel %vm9797_vm5, %v4689_v1, %v4615_v44  ;;  %v4818_v46 = vsel %vm9796_vm1, %v4691_v2, %v4624_v12  ;;  %v4923_v42 = vld [vmem:[%s4153_s30 + $0x128] sm:$0xff] }
  0x7b   : > { %v4824_v34 = vsel %vm524_vm6, %v4701_v58, %v4630_v23  ;;  %v565_v48 = vshra.s32 %v4733_v0, 31  ;;  %v566_v14 = vshra.s32 %v4736_v8, 31  ;;  %v567_v35 = vshra.s32 %v4765_v59, 31 }
  0x7c   : > { %v568_v36 = vshra.s32 %v4768_v45, 31  ;;  %v569_v15 = vshra.s32 %v4771_v55, 31  ;;  %v570_v16 = vshra.s32 %v3610_v56, 31  ;;  %v571_v17 = vshra.s32 %v3611_v57, 31 }
  0x7d   : > { %v572_v18 = vshra.s32 %v4804_v38, 31  ;;  %v573_v19 = vand.u32 2147483647, %v565_v48  ;;  %v574_v20 = vand.u32 2147483647, %v566_v14  ;;  %vm605_vm13 = vcmp.ne.f32.partialorder %v4733_v0, %v4733_v0 }
  0x7e   : > { %v575_v21 = vand.u32 2147483647, %v567_v35  ;;  %v576_v62 = vand.u32 2147483647, %v568_v36  ;;  %v577_v23 = vand.u32 2147483647, %v569_v15  ;;  %vm606_vm1 = vcmp.ne.f32.partialorder %v4736_v8, %v4736_v8 }
  0x7f   : > { %v578_v22 = vand.u32 2147483647, %v570_v16  ;;  %v579_v54 = vand.u32 2147483647, %v571_v17  ;;  %v581_v24 = vxor.u32 %v4733_v0, %v573_v19  ;;  %v580_v25 = vand.u32 2147483647, %v572_v18 }
  0x80   : > { %v582_v26 = vxor.u32 %v4736_v8, %v574_v20  ;;  %v583_v27 = vxor.u32 %v4765_v59, %v575_v21  ;;  %v584_v28 = vxor.u32 %v4768_v45, %v576_v62  ;;  %v585_v29 = vxor.u32 %v4771_v55, %v577_v23 }
  0x81   : > { %v586_v30 = vxor.u32 %v3610_v56, %v578_v22  ;;  %v587_v31 = vxor.u32 %v3611_v57, %v579_v54  ;;  %vm589_vm7 = vcmp.eq.f32.partialorder %v4733_v0, 0.0  ;;  %v588_v32 = vxor.u32 %v4804_v38, %v580_v25 }
  0x82   : > { %vm590_vm8 = vcmp.eq.f32.partialorder %v4736_v8, 0.0  ;;  %vm591_vm10 = vcmp.eq.f32.partialorder %v4765_v59, 0.0  ;;  %vm592_vm6 = vcmp.eq.f32.partialorder %v4768_v45, 0.0  ;;  %vm593_vm12 = vcmp.eq.f32.partialorder %v4771_v55, 0.0 }
  0x83   : > { %vm594_vm15 = vcmp.eq.f32.partialorder %v3610_v56, 0.0  ;;  %vm595_vm4 = vcmp.eq.f32.partialorder %v3611_v57, 0.0  ;;  %vm596_vm11 = vcmp.eq.f32.partialorder %v4804_v38, 0.0  ;;  %v597_v48 = vsel %vm589_vm7, 0, %v581_v24 }
  0x84   : > { %v598_v14 = vsel %vm590_vm8, 0, %v582_v26  ;;  %v599_v35 = vsel %vm591_vm10, 0, %v583_v27  ;;  %v600_v36 = vsel %vm592_vm6, 0, %v584_v28  ;;  %v601_v15 = vsel %vm593_vm12, 0, %v585_v29 }
  0x85   : > { %v602_v16 = vsel %vm594_vm15, 0, %v586_v30  ;;  %v603_v17 = vsel %vm595_vm4, 0, %v587_v31  ;;  %v604_v18 = vsel %vm596_vm11, 0, %v588_v32  ;;  %vm607_vm5 = vcmp.ne.f32.partialorder %v4765_v59, %v4765_v59 }
  0x86   : > { %vm608_vm0 = vcmp.ne.f32.partialorder %v4768_v45, %v4768_v45  ;;  %vm609_vm2 = vcmp.ne.f32.partialorder %v4771_v55, %v4771_v55  ;;  %vm610_vm7 = vcmp.ne.f32.partialorder %v3610_v56, %v3610_v56  ;;  %vm611_vm8 = vcmp.ne.f32.partialorder %v3611_v57, %v3611_v57 }
  0x87   : > { %vm612_vm10 = vcmp.ne.f32.partialorder %v4804_v38, %v4804_v38  ;;  %v613_v19 = vsel %vm605_vm13, 2147483647, %v597_v48  ;;  %v4864_v8 = vsel %vm525_vm9, %v4701_v58, %v4672_v39  ;;  %v4866_v59 = vsel %vm606_vm1, 2147483647, %v598_v14 }
  0x88   : > { %v4868_v45 = vsel %vm607_vm5, 2147483647, %v599_v35  ;;  %v4870_v55 = vsel %vm608_vm0, 2147483647, %v600_v36  ;;  %v4877_v0 = vsel %vm526_vm3, %v4701_v58, %v4685_v60  ;;  %v4879_v56 = vsel %vm609_vm2, 2147483647, %v601_v15 }
  0x89   : > { %v4881_v41 = vsel %vm610_vm7, 2147483647, %v602_v16  ;;  %v4883_v33 = vsel %vm611_vm8, 2147483647, %v603_v17  ;;  %v4890_v39 = vsel %vm527_vm14, %v4701_v58, %v4698_v4  ;;  %v4892_v57 = vsel %vm612_vm10, 2147483647, %v604_v18 }
  0x8a   : > { %vm622_vm9 = vcmp.gt.s32.totalorder %v613_v19, %v4755_v6  ;;  %vm623_vm3 = vcmp.gt.s32.totalorder %v4866_v59, %v4762_v10  ;;  %v4898_v63 = vadd.s32 32, %v4178_v47  ;;  %vm624_vm2 = vcmp.gt.s32.totalorder %v4868_v45, %v4778_v13  ;;  %v4955_v4 = vld [vmem:[%s4153_s30 + $0x328] sm:$0xff] }
  0x8b   : > { %vm9804_vm14 = vcmp.gt.s32.totalorder %v4870_v55, %v4785_v3  ;;  %vm9803_vm0 = vcmp.gt.s32.totalorder %v4879_v56, %v4792_v37  ;;  %vm9857_vm5 = vcmp.gt.s32.totalorder %v4678_v50, %v4601_v53  ;;  %vm9802_vm1 = vcmp.gt.s32.totalorder %v4881_v41, %v4799_v11 }
  0x8c   : > { %v4911_v52 = vsel %vm9857_vm5, %v4701_v58, %v4719_v49  ;;  %vm9801_vm13 = vcmp.gt.s32.totalorder %v4883_v33, %v4811_v61  ;;  %vm9800_vm6 = vcmp.gt.s32.totalorder %v4892_v57, %v4818_v46  ;;  %vm9858_vm12 = vcmp.gt.s32.totalorder %v4687_v51, %v4608_v43  ;;  %v4952_v51 = vld [vmem:[%s4153_s30 + $0x228] sm:$0xff] }
  0x8d   : > { %v4930_v53 = vsel %vm9858_vm12, %v4701_v58, %v4726_v7  ;;  %vm9859_vm15 = vcmp.gt.s32.totalorder %v4689_v1, %v4615_v44  ;;  %vm9860_vm4 = vcmp.gt.s32.totalorder %v4691_v2, %v4624_v12  ;;  %v4949_v43 = vsel %vm622_vm9, %v613_v19, %v4755_v6  ;;  %v4958_v49 = vld [vmem:[%s4153_s30 + $0x428] sm:$0xff] }
  0x8e   : > { %v4937_v50 = vsel %vm9859_vm15, %v4701_v58, %v4743_v9  ;;  %v4944_v60 = vsel %vm9860_vm4, %v4701_v58, %v4750_v5  ;;  %v4965_v44 = vsel %vm623_vm3, %v4866_v59, %v4762_v10  ;;  %v4972_v12 = vsel %vm624_vm2, %v4868_v45, %v4778_v13  ;;  %v4989_v58 = vld [vmem:[%s4153_s30 + $0x528] sm:$0xff] }
  0x8f   : > { %v4979_v1 = vsel %vm9804_vm14, %v4870_v55, %v4785_v3  ;;  %v4986_v2 = vsel %vm9803_vm0, %v4879_v56, %v4792_v37  ;;  %v4992_v7 = vld [vmem:[%s4153_s30 + $0x628] sm:$0xff]  ;;  %v5002_v5 = vsel %vm9802_vm1, %v4881_v41, %v4799_v11  ;;  %v5009_v38 = vsel %vm9801_vm13, %v4883_v33, %v4811_v61 }
  0x90   : > { %v4995_v9 = vld [vmem:[%s4153_s30 + $0x728] sm:$0xff]  ;;  %v5016_v20 = vsel %vm9800_vm6, %v4892_v57, %v4818_v46  ;;  %v5022_v21 = vsel %vm622_vm9, %v4898_v63, %v4824_v34  ;;  %v663_v62 = vshra.s32 %v4920_v40, 31  ;;  %v664_v23 = vshra.s32 %v4923_v42, 31 }
  0x91   : > { %v665_v22 = vshra.s32 %v4952_v51, 31  ;;  %v666_v54 = vshra.s32 %v4955_v4, 31  ;;  %v667_v24 = vshra.s32 %v4958_v49, 31  ;;  %v668_v25 = vshra.s32 %v4989_v58, 31 }
  0x92   : > { %v669_v26 = vshra.s32 %v4992_v7, 31  ;;  %v670_v27 = vshra.s32 %v4995_v9, 31  ;;  %v671_v28 = vand.u32 2147483647, %v663_v62  ;;  %v672_v6 = vand.u32 2147483647, %v664_v23 }
  0x93   : > { %v673_v34 = vand.u32 2147483647, %v665_v22  ;;  %vm703_vm11 = vcmp.ne.f32.partialorder %v4920_v40, %v4920_v40  ;;  %v674_v29 = vand.u32 2147483647, %v666_v54  ;;  %v675_v30 = vand.u32 2147483647, %v667_v24 }
  0x94   : > { %v676_v31 = vand.u32 2147483647, %v668_v25  ;;  %vm704_vm7 = vcmp.ne.f32.partialorder %v4923_v42, %v4923_v42  ;;  %v677_v32 = vand.u32 2147483647, %v669_v26  ;;  %v678_v48 = vand.u32 2147483647, %v670_v27 }
  0x95   : > { %v679_v14 = vxor.u32 %v4920_v40, %v671_v28  ;;  %v680_v35 = vxor.u32 %v4923_v42, %v672_v6  ;;  %v681_v36 = vxor.u32 %v4952_v51, %v673_v34  ;;  %v682_v15 = vxor.u32 %v4955_v4, %v674_v29  ;;  %v3627_v28 = vld [vmem:[%s4153_s30 + $0x630] sm:$0xff] }
  0x96   : > { %v683_v16 = vxor.u32 %v4958_v49, %v675_v30  ;;  %v684_v17 = vxor.u32 %v4989_v58, %v676_v31  ;;  %v685_v18 = vxor.u32 %v4992_v7, %v677_v32  ;;  %v686_v19 = vxor.u32 %v4995_v9, %v678_v48  ;;  %v3628_v6 = vld [vmem:[%s4153_s30 + $0x730] sm:$0xff] }
  0x97   : > { %vm687_vm8 = vcmp.eq.f32.partialorder %v4920_v40, 0.0  ;;  %vm688_vm10 = vcmp.eq.f32.partialorder %v4923_v42, 0.0  ;;  %vm689_vm9 = vcmp.eq.f32.partialorder %v4952_v51, 0.0  ;;  %vm690_vm5 = vcmp.eq.f32.partialorder %v4955_v4, 0.0 }
  0x98   : > { %vm691_vm12 = vcmp.eq.f32.partialorder %v4958_v49, 0.0  ;;  %vm692_vm15 = vcmp.eq.f32.partialorder %v4989_v58, 0.0  ;;  %vm693_vm4 = vcmp.eq.f32.partialorder %v4992_v7, 0.0  ;;  %vm694_vm6 = vcmp.eq.f32.partialorder %v4995_v9, 0.0 }
  0x99   : > { %v695_v62 = vsel %vm687_vm8, 0, %v679_v14  ;;  %v696_v23 = vsel %vm688_vm10, 0, %v680_v35  ;;  %v697_v22 = vsel %vm689_vm9, 0, %v681_v36  ;;  %v698_v54 = vsel %vm690_vm5, 0, %v682_v15 }
  0x9a   : > { %v699_v24 = vsel %vm691_vm12, 0, %v683_v16  ;;  %v700_v25 = vsel %vm692_vm15, 0, %v684_v17  ;;  %v701_v26 = vsel %vm693_vm4, 0, %v685_v18  ;;  %v702_v27 = vsel %vm694_vm6, 0, %v686_v19 }
  0x9b   : > { %vm705_vm13 = vcmp.ne.f32.partialorder %v4952_v51, %v4952_v51  ;;  %vm706_vm1 = vcmp.ne.f32.partialorder %v4955_v4, %v4955_v4  ;;  %vm707_vm0 = vcmp.ne.f32.partialorder %v4958_v49, %v4958_v49  ;;  %vm708_vm14 = vcmp.ne.f32.partialorder %v4989_v58, %v4989_v58 }
  0x9c   : > { %vm709_vm8 = vcmp.ne.f32.partialorder %v4992_v7, %v4992_v7  ;;  %vm710_vm10 = vcmp.ne.f32.partialorder %v4995_v9, %v4995_v9  ;;  %v639_v51 = vsel %vm623_vm3, %v4898_v63, %v4864_v8  ;;  %v711_v4 = vsel %vm703_vm11, 2147483647, %v695_v62 }
  0x9d   : > { %v712_v49 = vsel %vm704_vm7, 2147483647, %v696_v23  ;;  %v5075_v58 = vsel %vm705_vm13, 2147483647, %v697_v22  ;;  %v5082_v7 = vsel %vm624_vm2, %v4898_v63, %v4877_v0  ;;  %v5084_v9 = vsel %vm706_vm1, 2147483647, %v698_v54 }
  0x9e   : > { %v5086_v10 = vsel %vm707_vm0, 2147483647, %v699_v24  ;;  %v5088_v8 = vsel %vm708_vm14, 2147483647, %v700_v25  ;;  %vm9861_vm3 = vcmp.gt.s32.totalorder %v4870_v55, %v4785_v3  ;;  %v5097_v40 = vsel %vm709_vm8, 2147483647, %v701_v26 }
  0x9f   : > { %v5095_v59 = vsel %vm9861_vm3, %v4898_v63, %v4890_v39  ;;  %v5099_v13 = vsel %vm710_vm10, 2147483647, %v702_v27  ;;  %vm720_vm2 = vcmp.gt.s32.totalorder %v711_v4, %v4949_v43  ;;  %v5103_v45 = vadd.s32 40, %v4178_v47 }
  0xa0   : > { %vm721_vm14 = vcmp.gt.s32.totalorder %v712_v49, %v4965_v44  ;;  %vm722_vm0 = vcmp.gt.s32.totalorder %v5075_v58, %v4972_v12  ;;  %vm723_vm1 = vcmp.gt.s32.totalorder %v5084_v9, %v4979_v1  ;;  %vm9808_vm13 = vcmp.gt.s32.totalorder %v5086_v10, %v4986_v2 }
  0xa1   : > { %vm9807_vm6 = vcmp.gt.s32.totalorder %v5088_v8, %v5002_v5  ;;  %vm9806_vm11 = vcmp.gt.s32.totalorder %v5097_v40, %v5009_v38  ;;  %vm9805_vm7 = vcmp.gt.s32.totalorder %v5099_v13, %v5016_v20  ;;  %vm9862_vm9 = vcmp.gt.s32.totalorder %v4879_v56, %v4792_v37  ;;  %v5147_v56 = vld [vmem:[%s4153_s30 + $0x30] sm:$0xff] }
  0xa2   : > { %v5123_v3 = vsel %vm9862_vm9, %v4898_v63, %v4911_v52  ;;  %vm9863_vm5 = vcmp.gt.s32.totalorder %v4881_v41, %v4799_v11  ;;  %vm9864_vm12 = vcmp.gt.s32.totalorder %v4883_v33, %v4811_v61  ;;  %vm9865_vm15 = vcmp.gt.s32.totalorder %v4892_v57, %v4818_v46  ;;  %v5150_v11 = vld [vmem:[%s4153_s30 + $0x130] sm:$0xff] }
  0xa3   : > { %v5130_v55 = vsel %vm9863_vm5, %v4898_v63, %v4930_v53  ;;  %v5137_v0 = vsel %vm9864_vm12, %v4898_v63, %v4937_v50  ;;  %v5144_v37 = vsel %vm9865_vm15, %v4898_v63, %v4944_v60  ;;  %v5153_v41 = vld [vmem:[%s4153_s30 + $0x230] sm:$0xff]  ;;  %v5158_v61 = vsel %vm720_vm2, %v711_v4, %v4949_v43 }
  0xa4   : > { %v5163_v33 = vsel %vm721_vm14, %v712_v49, %v4965_v44  ;;  %v5170_v46 = vsel %vm722_vm0, %v5075_v58, %v4972_v12  ;;  %v5177_v39 = vsel %vm723_vm1, %v5084_v9, %v4979_v1  ;;  %v5180_v57 = vld [vmem:[%s4153_s30 + $0x330] sm:$0xff]  ;;  %v5193_v42 = vsel %vm9808_vm13, %v5086_v10, %v4986_v2 }
  0xa5   : > { %v5183_v63 = vld [vmem:[%s4153_s30 + $0x430] sm:$0xff]  ;;  %v5200_v53 = vsel %vm9807_vm6, %v5088_v8, %v5002_v5  ;;  %v5207_v50 = vsel %vm9806_vm11, %v5097_v40, %v5009_v38  ;;  %v5214_v60 = vsel %vm9805_vm7, %v5099_v13, %v5016_v20  ;;  %v5222_v34 = vsel %vm720_vm2, %v5103_v45, %v5022_v21 }
  0xa6   : > { %v5186_v52 = vld [vmem:[%s4153_s30 + $0x530] sm:$0xff]  ;;  %v5227_v29 = vsel %vm721_vm14, %v5103_v45, %v639_v51  ;;  %v761_v30 = vshra.s32 %v5147_v56, 31  ;;  %v762_v31 = vshra.s32 %v5150_v11, 31  ;;  %v763_v32 = vshra.s32 %v5153_v41, 31 }
  0xa7   : > { %v764_v48 = vshra.s32 %v5180_v57, 31  ;;  %v765_v14 = vshra.s32 %v5183_v63, 31  ;;  %v766_v35 = vshra.s32 %v5186_v52, 31  ;;  %vm801_vm4 = vcmp.ne.f32.partialorder %v5147_v56, %v5147_v56 }
  0xa8   : > { %v767_v43 = vshra.s32 %v3627_v28, 31  ;;  %v768_v21 = vshra.s32 %v3628_v6, 31  ;;  %v769_v44 = vand.u32 2147483647, %v761_v30  ;;  %v770_v36 = vand.u32 2147483647, %v762_v31 }
  0xa9   : > { %v771_v15 = vand.u32 2147483647, %v763_v32  ;;  %v772_v16 = vand.u32 2147483647, %v764_v48  ;;  %v773_v17 = vand.u32 2147483647, %v765_v14  ;;  %vm802_vm8 = vcmp.ne.f32.partialorder %v5150_v11, %v5150_v11 }
  0xaa   : > { %v774_v18 = vand.u32 2147483647, %v766_v35  ;;  %v775_v19 = vand.u32 2147483647, %v767_v43  ;;  %v776_v62 = vand.u32 2147483647, %v768_v21  ;;  %v777_v23 = vxor.u32 %v5147_v56, %v769_v44 }
  0xab   : > { %v778_v22 = vxor.u32 %v5150_v11, %v770_v36  ;;  %v779_v54 = vxor.u32 %v5153_v41, %v771_v15  ;;  %v780_v24 = vxor.u32 %v5180_v57, %v772_v16  ;;  %v781_v25 = vxor.u32 %v5183_v63, %v773_v17  ;;  %v3635_v44 = vld [vmem:[%s4153_s30 + $0x638] sm:$0xff] }
  0xac   : > { %v782_v26 = vxor.u32 %v5186_v52, %v774_v18  ;;  %v783_v27 = vxor.u32 %v3627_v28, %v775_v19  ;;  %v784_v51 = vxor.u32 %v3628_v6, %v776_v62  ;;  %vm785_vm10 = vcmp.eq.f32.partialorder %v5147_v56, 0.0  ;;  %v3636_v36 = vld [vmem:[%s4153_s30 + $0x738] sm:$0xff] }
  0xad   : > { %vm786_vm3 = vcmp.eq.f32.partialorder %v5150_v11, 0.0  ;;  %vm787_vm2 = vcmp.eq.f32.partialorder %v5153_v41, 0.0  ;;  %vm788_vm14 = vcmp.eq.f32.partialorder %v5180_v57, 0.0  ;;  %vm789_vm9 = vcmp.eq.f32.partialorder %v5183_v63, 0.0 }
  0xae   : > { %vm790_vm5 = vcmp.eq.f32.partialorder %v5186_v52, 0.0  ;;  %vm791_vm12 = vcmp.eq.f32.partialorder %v3627_v28, 0.0  ;;  %vm792_vm15 = vcmp.eq.f32.partialorder %v3628_v6, 0.0  ;;  %v793_v4 = vsel %vm785_vm10, 0, %v777_v23 }
  0xaf   : > { %v794_v49 = vsel %vm786_vm3, 0, %v778_v22  ;;  %v795_v30 = vsel %vm787_vm2, 0, %v779_v54  ;;  %v796_v31 = vsel %vm788_vm14, 0, %v780_v24  ;;  %v797_v32 = vsel %vm789_vm9, 0, %v781_v25 }
  0xb0   : > { %v798_v48 = vsel %vm790_vm5, 0, %v782_v26  ;;  %v799_v14 = vsel %vm791_vm12, 0, %v783_v27  ;;  %v800_v35 = vsel %vm792_vm15, 0, %v784_v51  ;;  %vm803_vm7 = vcmp.ne.f32.partialorder %v5153_v41, %v5153_v41 }
  0xb1   : > { %vm804_vm11 = vcmp.ne.f32.partialorder %v5180_v57, %v5180_v57  ;;  %vm805_vm6 = vcmp.ne.f32.partialorder %v5183_v63, %v5183_v63  ;;  %vm806_vm13 = vcmp.ne.f32.partialorder %v5186_v52, %v5186_v52  ;;  %vm807_vm10 = vcmp.ne.f32.partialorder %v3627_v28, %v3627_v28 }
  0xb2   : > { %vm808_vm3 = vcmp.ne.f32.partialorder %v3628_v6, %v3628_v6  ;;  %v809_v43 = vsel %vm801_vm4, 2147483647, %v793_v4  ;;  %v810_v21 = vsel %vm802_vm8, 2147483647, %v794_v49  ;;  %v5265_v41 = vsel %vm803_vm7, 2147483647, %v795_v30 }
  0xb3   : > { %v5272_v57 = vsel %vm722_vm0, %v5103_v45, %v5082_v7  ;;  %v5274_v63 = vsel %vm804_vm11, 2147483647, %v796_v31  ;;  %v5276_v52 = vsel %vm805_vm6, 2147483647, %v797_v32  ;;  %v5278_v28 = vsel %vm806_vm13, 2147483647, %v798_v48 }
  0xb4   : > { %v5285_v56 = vsel %vm723_vm1, %v5103_v45, %v5095_v59  ;;  %v5287_v11 = vsel %vm807_vm10, 2147483647, %v799_v14  ;;  %v5289_v12 = vsel %vm808_vm3, 2147483647, %v800_v35  ;;  %vm818_vm0 = vcmp.gt.s32.totalorder %v809_v43, %v5158_v61 }
  0xb5   : > { %v5293_v58 = vadd.s32 48, %v4178_v47  ;;  %vm819_vm13 = vcmp.gt.s32.totalorder %v810_v21, %v5163_v33  ;;  %vm820_vm6 = vcmp.gt.s32.totalorder %v5265_v41, %v5170_v46  ;;  %vm821_vm1 = vcmp.gt.s32.totalorder %v5274_v63, %v5177_v39 }
  0xb6   : > { %vm822_vm11 = vcmp.gt.s32.totalorder %v5276_v52, %v5193_v42  ;;  %vm9811_vm7 = vcmp.gt.s32.totalorder %v5278_v28, %v5200_v53  ;;  %vm9810_vm4 = vcmp.gt.s32.totalorder %v5287_v11, %v5207_v50  ;;  %vm9809_vm8 = vcmp.gt.s32.totalorder %v5289_v12, %v5214_v60 }
  0xb7   : > { %vm9866_vm2 = vcmp.gt.s32.totalorder %v5086_v10, %v4986_v2  ;;  %vm9867_vm14 = vcmp.gt.s32.totalorder %v5088_v8, %v5002_v5  ;;  %vm9868_vm9 = vcmp.gt.s32.totalorder %v5097_v40, %v5009_v38  ;;  %vm9869_vm5 = vcmp.gt.s32.totalorder %v5099_v13, %v5016_v20  ;;  %v5337_v10 = vld [vmem:[%s4153_s30 + $0x38] sm:$0xff] }
  0xb8   : > { %v5313_v1 = vsel %vm9866_vm2, %v5103_v45, %v5123_v3  ;;  %v5320_v7 = vsel %vm9867_vm14, %v5103_v45, %v5130_v55  ;;  %v5327_v9 = vsel %vm9868_vm9, %v5103_v45, %v5137_v0  ;;  %v5334_v2 = vsel %vm9869_vm5, %v5103_v45, %v5144_v37  ;;  %v5340_v5 = vld [vmem:[%s4153_s30 + $0x138] sm:$0xff] }
  0xb9   : > { %v5343_v8 = vld [vmem:[%s4153_s30 + $0x238] sm:$0xff]  ;;  %v5348_v38 = vsel %vm818_vm0, %v809_v43, %v5158_v61  ;;  %v5353_v59 = vsel %vm819_vm13, %v810_v21, %v5163_v33  ;;  %v5360_v20 = vsel %vm820_vm6, %v5265_v41, %v5170_v46  ;;  %v5367_v40 = vsel %vm821_vm1, %v5274_v63, %v5177_v39 }
  0xba   : > { %v5370_v13 = vld [vmem:[%s4153_s30 + $0x338] sm:$0xff]  ;;  %v5383_v55 = vsel %vm822_vm11, %v5276_v52, %v5193_v42  ;;  %v5390_v0 = vsel %vm9811_vm7, %v5278_v28, %v5200_v53  ;;  %v5397_v37 = vsel %vm9810_vm4, %v5287_v11, %v5207_v50  ;;  %v5404_v6 = vsel %vm9809_vm8, %v5289_v12, %v5214_v60  ;;  %v5518_v42 = vld [vmem:[%s4153_s30 + $0x40] sm:$0xff] }
  0xbb   : > { %v5373_v45 = vld [vmem:[%s4153_s30 + $0x438] sm:$0xff]  ;;  %v5412_v15 = vsel %vm818_vm0, %v5293_v58, %v5222_v34  ;;  %v5418_v16 = vsel %vm819_vm13, %v5293_v58, %v5227_v29  ;;  %v859_v17 = vshra.s32 %v5337_v10, 31  ;;  %v860_v18 = vshra.s32 %v5340_v5, 31  ;;  %v5521_v52 = vld [vmem:[%s4153_s30 + $0x140] sm:$0xff] }
  0xbc   : > { %v5376_v3 = vld [vmem:[%s4153_s30 + $0x538] sm:$0xff]  ;;  %v861_v19 = vshra.s32 %v5343_v8, 31  ;;  %v862_v62 = vshra.s32 %v5370_v13, 31  ;;  %v863_v23 = vshra.s32 %v5373_v45, 31  ;;  %v865_v34 = vshra.s32 %v3635_v44, 31 }
  0xbd   : > { %v864_v61 = vshra.s32 %v5376_v3, 31  ;;  %v866_v22 = vshra.s32 %v3636_v36, 31  ;;  %v867_v54 = vand.u32 2147483647, %v859_v17  ;;  %v868_v24 = vand.u32 2147483647, %v860_v18 }
  0xbe   : > { %v869_v25 = vand.u32 2147483647, %v861_v19  ;;  %v870_v33 = vand.u32 2147483647, %v862_v62  ;;  %v871_v29 = vand.u32 2147483647, %v863_v23  ;;  %vm899_vm12 = vcmp.ne.f32.partialorder %v5337_v10, %v5337_v10 }
  0xbf   : > { %v872_v26 = vand.u32 2147483647, %v864_v61  ;;  %v873_v27 = vand.u32 2147483647, %v865_v34  ;;  %v874_v51 = vand.u32 2147483647, %v866_v22  ;;  %v875_v4 = vxor.u32 %v5337_v10, %v867_v54 }
  0xc0   : > { %v876_v49 = vxor.u32 %v5340_v5, %v868_v24  ;;  %v877_v30 = vxor.u32 %v5343_v8, %v869_v25  ;;  %v878_v31 = vxor.u32 %v5370_v13, %v870_v33  ;;  %v879_v32 = vxor.u32 %v5373_v45, %v871_v29  ;;  %v3644_v54 = vld [vmem:[%s4153_s30 + $0x740] sm:$0xff] }
  0xc1   : > { %v880_v48 = vxor.u32 %v5376_v3, %v872_v26  ;;  %v881_v14 = vxor.u32 %v3635_v44, %v873_v27  ;;  %v882_v35 = vxor.u32 %v3636_v36, %v874_v51  ;;  %vm883_vm15 = vcmp.eq.f32.partialorder %v5337_v10, 0.0 }
  0xc2   : > { %vm884_vm10 = vcmp.eq.f32.partialorder %v5340_v5, 0.0  ;;  %vm885_vm3 = vcmp.eq.f32.partialorder %v5343_v8, 0.0  ;;  %vm886_vm0 = vcmp.eq.f32.partialorder %v5370_v13, 0.0  ;;  %vm887_vm13 = vcmp.eq.f32.partialorder %v5373_v45, 0.0 }
  0xc3   : > { %vm888_vm2 = vcmp.eq.f32.partialorder %v5376_v3, 0.0  ;;  %vm889_vm14 = vcmp.eq.f32.partialorder %v3635_v44, 0.0  ;;  %vm890_vm9 = vcmp.eq.f32.partialorder %v3636_v36, 0.0  ;;  %v891_v43 = vsel %vm883_vm15, 0, %v875_v4 }
  0xc4   : > { %v892_v21 = vsel %vm884_vm10, 0, %v876_v49  ;;  %v893_v17 = vsel %vm885_vm3, 0, %v877_v30  ;;  %v894_v18 = vsel %vm886_vm0, 0, %v878_v31  ;;  %v895_v19 = vsel %vm887_vm13, 0, %v879_v32 }
  0xc5   : > { %v896_v62 = vsel %vm888_vm2, 0, %v880_v48  ;;  %v897_v23 = vsel %vm889_vm14, 0, %v881_v14  ;;  %v898_v61 = vsel %vm890_vm9, 0, %v882_v35  ;;  %vm900_vm5 = vcmp.ne.f32.partialorder %v5340_v5, %v5340_v5 }
  0xc6   : > { %vm901_vm8 = vcmp.ne.f32.partialorder %v5343_v8, %v5343_v8  ;;  %vm902_vm4 = vcmp.ne.f32.partialorder %v5370_v13, %v5370_v13  ;;  %vm903_vm7 = vcmp.ne.f32.partialorder %v5373_v45, %v5373_v45  ;;  %vm904_vm15 = vcmp.ne.f32.partialorder %v5376_v3, %v5376_v3 }
  0xc7   : > { %vm905_vm10 = vcmp.ne.f32.partialorder %v3635_v44, %v3635_v44  ;;  %vm906_vm3 = vcmp.ne.f32.partialorder %v3636_v36, %v3636_v36  ;;  %v907_v34 = vsel %vm899_vm12, 2147483647, %v891_v43  ;;  %v908_v22 = vsel %vm900_vm5, 2147483647, %v892_v21  ;;  %v3642_v44 = vld [vmem:[%s4153_s30 + $0x540] sm:$0xff] }
  0xc8   : > { %v5458_v5 = vsel %vm820_vm6, %v5293_v58, %v5272_v57  ;;  %v5460_v8 = vsel %vm901_vm8, 2147483647, %v893_v17  ;;  %v5462_v13 = vsel %vm902_vm4, 2147483647, %v894_v18  ;;  %v5464_v45 = vsel %vm903_vm7, 2147483647, %v895_v19 }
  0xc9   : > { %v5471_v10 = vsel %vm821_vm1, %v5293_v58, %v5285_v56  ;;  %v5473_v3 = vsel %vm904_vm15, 2147483647, %v896_v62  ;;  %v5475_v46 = vsel %vm905_vm10, 2147483647, %v897_v23  ;;  %v5477_v41 = vsel %vm906_vm3, 2147483647, %v898_v61 }
  0xca   : > { %v5480_v57 = vadd.s32 56, %v4178_v47  ;;  %vm916_vm6 = vcmp.gt.s32.totalorder %v907_v34, %v5348_v38  ;;  %vm917_vm7 = vcmp.gt.s32.totalorder %v908_v22, %v5353_v59  ;;  %vm918_vm1 = vcmp.gt.s32.totalorder %v5460_v8, %v5360_v20  ;;  %v3643_v36 = vld [vmem:[%s4153_s30 + $0x640] sm:$0xff] }
  0xcb   : > { %vm919_vm4 = vcmp.gt.s32.totalorder %v5462_v13, %v5367_v40  ;;  %vm920_vm8 = vcmp.gt.s32.totalorder %v5464_v45, %v5383_v55  ;;  %vm9814_vm12 = vcmp.gt.s32.totalorder %v5473_v3, %v5390_v0  ;;  %vm9813_vm0 = vcmp.gt.s32.totalorder %v5475_v46, %v5397_v37 }
  0xcc   : > { %v5499_v39 = vsel %vm822_vm11, %v5293_v58, %v5313_v1  ;;  %vm9870_vm13 = vcmp.gt.s32.totalorder %v5278_v28, %v5200_v53  ;;  %vm9871_vm2 = vcmp.gt.s32.totalorder %v5287_v11, %v5207_v50  ;;  %vm9812_vm11 = vcmp.gt.s32.totalorder %v5477_v41, %v5404_v6 }
  0xcd   : > { %v5506_v63 = vsel %vm9870_vm13, %v5293_v58, %v5320_v7  ;;  %v5513_v56 = vsel %vm9871_vm2, %v5293_v58, %v5327_v9  ;;  %vm9872_vm14 = vcmp.gt.s32.totalorder %v5289_v12, %v5214_v60  ;;  %v5533_v50 = vsel %vm916_vm6, %v907_v34, %v5348_v38  ;;  %v5548_v60 = vld [vmem:[%s4153_s30 + $0x240] sm:$0xff] }
  0xce   : > { %v5528_v53 = vsel %vm9872_vm14, %v5293_v58, %v5334_v2  ;;  %v5538_v28 = vsel %vm917_vm7, %v908_v22, %v5353_v59  ;;  %v5545_v11 = vsel %vm918_vm1, %v5460_v8, %v5360_v20  ;;  %v5551_v12 = vld [vmem:[%s4153_s30 + $0x340] sm:$0xff]  ;;  %v5561_v1 = vsel %vm919_vm4, %v5462_v13, %v5367_v40 }
  0xcf   : > { %v5554_v58 = vld [vmem:[%s4153_s30 + $0x440] sm:$0xff]  ;;  %v5568_v7 = vsel %vm920_vm8, %v5464_v45, %v5383_v55  ;;  %v5575_v9 = vsel %vm9814_vm12, %v5473_v3, %v5390_v0  ;;  %v5582_v2 = vsel %vm9813_vm0, %v5475_v46, %v5397_v37  ;;  %v5592_v24 = vsel %vm9812_vm11, %v5477_v41, %v5404_v6  ;;  %v5695_v55 = vld [vmem:[%s4153_s30 + $0x148] sm:$0xff] }
  0xd0   : > { %v5598_v25 = vsel %vm916_vm6, %v5480_v57, %v5412_v15  ;;  %v5604_v33 = vsel %vm917_vm7, %v5480_v57, %v5418_v16  ;;  %v957_v29 = vshra.s32 %v5518_v42, 31  ;;  %v958_v26 = vshra.s32 %v5521_v52, 31 }
  0xd1   : > { %v959_v27 = vshra.s32 %v5548_v60, 31  ;;  %v960_v51 = vshra.s32 %v5551_v12, 31  ;;  %v961_v4 = vshra.s32 %v5554_v58, 31  ;;  %v962_v49 = vshra.s32 %v3642_v44, 31 }
  0xd2   : > { %v963_v38 = vshra.s32 %v3643_v36, 31  ;;  %v964_v15 = vshra.s32 %v3644_v54, 31  ;;  %v965_v30 = vand.u32 2147483647, %v957_v29  ;;  %v966_v31 = vand.u32 2147483647, %v958_v26 }
  0xd3   : > { %v967_v32 = vand.u32 2147483647, %v959_v27  ;;  %v968_v48 = vand.u32 2147483647, %v960_v51  ;;  %vm997_vm9 = vcmp.ne.f32.partialorder %v5518_v42, %v5518_v42  ;;  %v969_v59 = vand.u32 2147483647, %v961_v4 }
  0xd4   : > { %v970_v16 = vand.u32 2147483647, %v962_v49  ;;  %v971_v14 = vand.u32 2147483647, %v963_v38  ;;  %v973_v35 = vxor.u32 %v5518_v42, %v965_v30  ;;  %v972_v43 = vand.u32 2147483647, %v964_v15 }
  0xd5   : > { %v974_v21 = vxor.u32 %v5521_v52, %v966_v31  ;;  %v975_v17 = vxor.u32 %v5548_v60, %v967_v32  ;;  %v976_v18 = vxor.u32 %v5551_v12, %v968_v48  ;;  %v977_v19 = vxor.u32 %v5554_v58, %v969_v59 }
  0xd6   : > { %v978_v62 = vxor.u32 %v3642_v44, %v970_v16  ;;  %v979_v23 = vxor.u32 %v3643_v36, %v971_v14  ;;  %vm981_vm5 = vcmp.eq.f32.partialorder %v5518_v42, 0.0  ;;  %v980_v61 = vxor.u32 %v3644_v54, %v972_v43 }
  0xd7   : > { %vm982_vm15 = vcmp.eq.f32.partialorder %v5521_v52, 0.0  ;;  %vm983_vm10 = vcmp.eq.f32.partialorder %v5548_v60, 0.0  ;;  %vm984_vm3 = vcmp.eq.f32.partialorder %v5551_v12, 0.0  ;;  %vm985_vm6 = vcmp.eq.f32.partialorder %v5554_v58, 0.0 }
  0xd8   : > { %vm986_vm7 = vcmp.eq.f32.partialorder %v3642_v44, 0.0  ;;  %vm987_vm13 = vcmp.eq.f32.partialorder %v3643_v36, 0.0  ;;  %vm988_vm2 = vcmp.eq.f32.partialorder %v3644_v54, 0.0  ;;  %v989_v34 = vsel %vm981_vm5, 0, %v973_v35 }
  0xd9   : > { %v990_v22 = vsel %vm982_vm15, 0, %v974_v21  ;;  %v991_v29 = vsel %vm983_vm10, 0, %v975_v17  ;;  %v992_v26 = vsel %vm984_vm3, 0, %v976_v18  ;;  %v993_v27 = vsel %vm985_vm6, 0, %v977_v19 }
  0xda   : > { %v994_v51 = vsel %vm986_vm7, 0, %v978_v62  ;;  %v995_v4 = vsel %vm987_vm13, 0, %v979_v23  ;;  %v996_v49 = vsel %vm988_vm2, 0, %v980_v61  ;;  %vm998_vm14 = vcmp.ne.f32.partialorder %v5521_v52, %v5521_v52 }
  0xdb   : > { %vm999_vm11 = vcmp.ne.f32.partialorder %v5548_v60, %v5548_v60  ;;  %vm1000_vm0 = vcmp.ne.f32.partialorder %v5551_v12, %v5551_v12  ;;  %vm1001_vm12 = vcmp.ne.f32.partialorder %v5554_v58, %v5554_v58  ;;  %vm1002_vm5 = vcmp.ne.f32.partialorder %v3642_v44, %v3642_v44 }
  0xdc   : > { %vm1003_vm15 = vcmp.ne.f32.partialorder %v3643_v36, %v3643_v36  ;;  %vm1004_vm10 = vcmp.ne.f32.partialorder %v3644_v54, %v3644_v54  ;;  %v1005_v38 = vsel %vm997_vm9, 2147483647, %v989_v34  ;;  %v5639_v52 = vsel %vm918_vm1, %v5480_v57, %v5458_v5  ;;  %v5762_v36 = vld [vmem:[%s4153_s30 + $0x648] sm:$0xff] }
  0xdd   : > { %v1006_v60 = vsel %vm998_vm14, 2147483647, %v990_v22  ;;  %v5641_v15 = vsel %vm999_vm11, 2147483647, %v991_v29  ;;  %v5643_v12 = vsel %vm1000_vm0, 2147483647, %v992_v26  ;;  %v5650_v58 = vsel %vm919_vm4, %v5480_v57, %v5471_v10 }
  0xde   : > { %v5652_v42 = vsel %vm1001_vm12, 2147483647, %v993_v27  ;;  %v5654_v44 = vsel %vm1002_vm5, 2147483647, %v994_v51  ;;  %v5656_v20 = vsel %vm1003_vm15, 2147483647, %v995_v4  ;;  %vm1014_vm1 = vcmp.gt.s32.totalorder %v1005_v38, %v5533_v50 }
  0xdf   : > { %v5658_v5 = vsel %vm1004_vm10, 2147483647, %v996_v49  ;;  %v5661_v8 = vadd.s32 64, %v4178_v47  ;;  %vm1015_vm0 = vcmp.gt.s32.totalorder %v1006_v60, %v5538_v28  ;;  %vm1016_vm4 = vcmp.gt.s32.totalorder %v5641_v15, %v5545_v11  ;;  %v5692_v10 = vld [vmem:[%s4153_s30 + $0x48] sm:$0xff] }
  0xe0   : > { %vm1017_vm12 = vcmp.gt.s32.totalorder %v5643_v12, %v5561_v1  ;;  %vm9818_vm11 = vcmp.gt.s32.totalorder %v5652_v42, %v5568_v7  ;;  %vm9817_vm9 = vcmp.gt.s32.totalorder %v5654_v44, %v5575_v9  ;;  %v5678_v40 = vsel %vm920_vm8, %v5480_v57, %v5499_v39  ;;  %v5765_v54 = vld [vmem:[%s4153_s30 + $0x748] sm:$0xff] }
  0xe1   : > { %vm9873_vm3 = vcmp.gt.s32.totalorder %v5473_v3, %v5390_v0  ;;  %vm9816_vm6 = vcmp.gt.s32.totalorder %v5656_v20, %v5582_v2  ;;  %vm9815_vm7 = vcmp.gt.s32.totalorder %v5658_v5, %v5592_v24  ;;  %vm9874_vm8 = vcmp.gt.s32.totalorder %v5475_v46, %v5397_v37  ;;  %v5722_v37 = vld [vmem:[%s4153_s30 + $0x248] sm:$0xff] }
  0xe2   : > { %v5685_v13 = vsel %vm9873_vm3, %v5480_v57, %v5506_v63  ;;  %v5702_v0 = vsel %vm9874_vm8, %v5480_v57, %v5513_v56  ;;  %vm9875_vm13 = vcmp.gt.s32.totalorder %v5477_v41, %v5404_v6  ;;  %v5714_v3 = vsel %vm1014_vm1, %v1005_v38, %v5533_v50  ;;  %v5725_v46 = vld [vmem:[%s4153_s30 + $0x348] sm:$0xff] }
  0xe3   : > { %v5709_v45 = vsel %vm9875_vm13, %v5480_v57, %v5528_v53  ;;  %v5719_v39 = vsel %vm1015_vm0, %v1006_v60, %v5538_v28  ;;  %v5728_v63 = vld [vmem:[%s4153_s30 + $0x448] sm:$0xff]  ;;  %v5735_v6 = vsel %vm1016_vm4, %v5641_v15, %v5545_v11  ;;  %v5742_v41 = vsel %vm1017_vm12, %v5643_v12, %v5561_v1 }
  0xe4   : > { %v5749_v57 = vsel %vm9818_vm11, %v5652_v42, %v5568_v7  ;;  %v5756_v56 = vsel %vm9817_vm9, %v5654_v44, %v5575_v9  ;;  %v5759_v53 = vld [vmem:[%s4153_s30 + $0x548] sm:$0xff]  ;;  %v5772_v30 = vsel %vm9816_vm6, %v5656_v20, %v5582_v2  ;;  %v5779_v31 = vsel %vm9815_vm7, %v5658_v5, %v5592_v24 }
  0xe5   : > { %v5785_v32 = vsel %vm1014_vm1, %v5661_v8, %v5598_v25  ;;  %v5791_v48 = vsel %vm1015_vm0, %v5661_v8, %v5604_v33  ;;  %v1055_v59 = vshra.s32 %v5692_v10, 31  ;;  %v1056_v16 = vshra.s32 %v5695_v55, 31 }
  0xe6   : > { %v1057_v14 = vshra.s32 %v5722_v37, 31  ;;  %v1058_v35 = vshra.s32 %v5725_v46, 31  ;;  %v1059_v43 = vshra.s32 %v5728_v63, 31  ;;  %v1060_v50 = vshra.s32 %v5759_v53, 31 }
  0xe7   : > { %v1061_v25 = vshra.s32 %v5762_v36, 31  ;;  %v1062_v21 = vshra.s32 %v5765_v54, 31  ;;  %v1063_v17 = vand.u32 2147483647, %v1055_v59  ;;  %v1064_v28 = vand.u32 2147483647, %v1056_v16 }
  0xe8   : > { %v1065_v33 = vand.u32 2147483647, %v1057_v14  ;;  %vm1095_vm2 = vcmp.ne.f32.partialorder %v5692_v10, %v5692_v10  ;;  %v1066_v18 = vand.u32 2147483647, %v1058_v35  ;;  %v1067_v19 = vand.u32 2147483647, %v1059_v43 }
  0xe9   : > { %v1068_v62 = vand.u32 2147483647, %v1060_v50  ;;  %vm1096_vm14 = vcmp.ne.f32.partialorder %v5695_v55, %v5695_v55  ;;  %v1069_v23 = vand.u32 2147483647, %v1061_v25  ;;  %v1070_v61 = vand.u32 2147483647, %v1062_v21 }
  0xea   : > { %v1071_v34 = vxor.u32 %v5692_v10, %v1063_v17  ;;  %v1072_v22 = vxor.u32 %v5695_v55, %v1064_v28  ;;  %v1073_v29 = vxor.u32 %v5722_v37, %v1065_v33  ;;  %v1074_v26 = vxor.u32 %v5725_v46, %v1066_v18  ;;  %v3659_v28 = vld [vmem:[%s4153_s30 + $0x650] sm:$0xff] }
  0xeb   : > { %v1075_v27 = vxor.u32 %v5728_v63, %v1067_v19  ;;  %v1076_v51 = vxor.u32 %v5759_v53, %v1068_v62  ;;  %v1077_v4 = vxor.u32 %v5762_v36, %v1069_v23  ;;  %v1078_v49 = vxor.u32 %v5765_v54, %v1070_v61  ;;  %v3660_v33 = vld [vmem:[%s4153_s30 + $0x750] sm:$0xff] }
  0xec   : > { %vm1079_vm5 = vcmp.eq.f32.partialorder %v5692_v10, 0.0  ;;  %vm1080_vm15 = vcmp.eq.f32.partialorder %v5695_v55, 0.0  ;;  %vm1081_vm10 = vcmp.eq.f32.partialorder %v5722_v37, 0.0  ;;  %vm1082_vm1 = vcmp.eq.f32.partialorder %v5725_v46, 0.0 }
  0xed   : > { %vm1083_vm0 = vcmp.eq.f32.partialorder %v5728_v63, 0.0  ;;  %vm1084_vm3 = vcmp.eq.f32.partialorder %v5759_v53, 0.0  ;;  %vm1085_vm8 = vcmp.eq.f32.partialorder %v5762_v36, 0.0  ;;  %vm1086_vm13 = vcmp.eq.f32.partialorder %v5765_v54, 0.0 }
  0xee   : > { %v1087_v38 = vsel %vm1079_vm5, 0, %v1071_v34  ;;  %v1088_v60 = vsel %vm1080_vm15, 0, %v1072_v22  ;;  %v1089_v59 = vsel %vm1081_vm10, 0, %v1073_v29  ;;  %v1090_v16 = vsel %vm1082_vm1, 0, %v1074_v26 }
  0xef   : > { %v1091_v14 = vsel %vm1083_vm0, 0, %v1075_v27  ;;  %v1092_v35 = vsel %vm1084_vm3, 0, %v1076_v51  ;;  %v1093_v43 = vsel %vm1085_vm8, 0, %v1077_v4  ;;  %v1094_v50 = vsel %vm1086_vm13, 0, %v1078_v49 }
  0xf0   : > { %vm1097_vm7 = vcmp.ne.f32.partialorder %v5722_v37, %v5722_v37  ;;  %vm1098_vm6 = vcmp.ne.f32.partialorder %v5725_v46, %v5725_v46  ;;  %vm1099_vm9 = vcmp.ne.f32.partialorder %v5728_v63, %v5728_v63  ;;  %vm1100_vm11 = vcmp.ne.f32.partialorder %v5759_v53, %v5759_v53 }
  0xf1   : > { %vm1101_vm5 = vcmp.ne.f32.partialorder %v5762_v36, %v5762_v36  ;;  %vm1102_vm15 = vcmp.ne.f32.partialorder %v5765_v54, %v5765_v54  ;;  %v1032_v37 = vsel %vm1016_vm4, %v5661_v8, %v5639_v52  ;;  %v1103_v46 = vsel %vm1095_vm2, 2147483647, %v1087_v38 }
  0xf2   : > { %v1104_v63 = vsel %vm1096_vm14, 2147483647, %v1088_v60  ;;  %v1105_v53 = vsel %vm1097_vm7, 2147483647, %v1089_v59  ;;  %v5849_v36 = vsel %vm1017_vm12, %v5661_v8, %v5650_v58  ;;  %v5851_v54 = vsel %vm1098_vm6, 2147483647, %v1090_v16 }
  0xf3   : > { %v5853_v11 = vsel %vm1099_vm9, 2147483647, %v1091_v14  ;;  %v5855_v52 = vsel %vm1100_vm11, 2147483647, %v1092_v35  ;;  %v5857_v15 = vsel %vm1101_vm5, 2147483647, %v1093_v43  ;;  %vm1112_vm4 = vcmp.gt.s32.totalorder %v1103_v46, %v5714_v3 }
  0xf4   : > { %v5859_v10 = vsel %vm1102_vm15, 2147483647, %v1094_v50  ;;  %v5862_v55 = vadd.s32 72, %v4178_v47  ;;  %vm1113_vm12 = vcmp.gt.s32.totalorder %v1104_v63, %v5719_v39  ;;  %vm1114_vm6 = vcmp.gt.s32.totalorder %v1105_v53, %v5735_v6 }
  0xf5   : > { %vm1115_vm11 = vcmp.gt.s32.totalorder %v5851_v54, %v5742_v41  ;;  %vm1116_vm9 = vcmp.gt.s32.totalorder %v5853_v11, %v5749_v57  ;;  %vm9876_vm7 = vcmp.gt.s32.totalorder %v5652_v42, %v5568_v7  ;;  %vm9821_vm2 = vcmp.gt.s32.totalorder %v5855_v52, %v5756_v56  ;;  %v5911_v42 = vld [vmem:[%s4153_s30 + $0x50] sm:$0xff] }
  0xf6   : > { %v5876_v1 = vsel %vm9876_vm7, %v5661_v8, %v5678_v40  ;;  %vm9820_vm14 = vcmp.gt.s32.totalorder %v5857_v15, %v5772_v30  ;;  %vm9819_vm10 = vcmp.gt.s32.totalorder %v5859_v10, %v5779_v31  ;;  %vm9877_vm1 = vcmp.gt.s32.totalorder %v5654_v44, %v5575_v9  ;;  %v5914_v44 = vld [vmem:[%s4153_s30 + $0x150] sm:$0xff] }
  0xf7   : > { %v5889_v7 = vsel %vm9877_vm1, %v5661_v8, %v5685_v13  ;;  %vm9878_vm0 = vcmp.gt.s32.totalorder %v5656_v20, %v5582_v2  ;;  %vm9879_vm3 = vcmp.gt.s32.totalorder %v5658_v5, %v5592_v24  ;;  %v5908_v9 = vsel %vm1112_vm4, %v1103_v46, %v5714_v3  ;;  %v5917_v2 = vld [vmem:[%s4153_s30 + $0x250] sm:$0xff] }
  0xf8   : > { %v5896_v12 = vsel %vm9878_vm0, %v5661_v8, %v5702_v0  ;;  %v5903_v58 = vsel %vm9879_vm3, %v5661_v8, %v5709_v45  ;;  %v5922_v20 = vsel %vm1113_vm12, %v1104_v63, %v5719_v39  ;;  %v5927_v24 = vsel %vm1114_vm6, %v1105_v53, %v5735_v6  ;;  %v5944_v40 = vld [vmem:[%s4153_s30 + $0x350] sm:$0xff] }
  0xf9   : > { %v5934_v5 = vsel %vm1115_vm11, %v5851_v54, %v5742_v41  ;;  %v5941_v8 = vsel %vm1116_vm9, %v5853_v11, %v5749_v57  ;;  %v5947_v13 = vld [vmem:[%s4153_s30 + $0x450] sm:$0xff]  ;;  %v5957_v45 = vsel %vm9821_vm2, %v5855_v52, %v5756_v56  ;;  %v5964_v25 = vsel %vm9820_vm14, %v5857_v15, %v5772_v30  ;;  %v6095_v11 = vld [vmem:[%s4153_s30 + $0x58] sm:$0xff] }
  0xfa   : > { %v5950_v0 = vld [vmem:[%s4153_s30 + $0x550] sm:$0xff]  ;;  %v5971_v21 = vsel %vm9819_vm10, %v5859_v10, %v5779_v31  ;;  %v5977_v17 = vsel %vm1112_vm4, %v5862_v55, %v5785_v32  ;;  %v5985_v18 = vsel %vm1113_vm12, %v5862_v55, %v5791_v48  ;;  %v5990_v19 = vsel %vm1114_vm6, %v5862_v55, %v1032_v37 }
  0xfb   : > { %v1153_v62 = vshra.s32 %v5911_v42, 31  ;;  %v1154_v23 = vshra.s32 %v5914_v44, 31  ;;  %v1155_v3 = vshra.s32 %v5917_v2, 31  ;;  %v1156_v32 = vshra.s32 %v5944_v40, 31 }
  0xfc   : > { %v1157_v61 = vshra.s32 %v5947_v13, 31  ;;  %v1158_v34 = vshra.s32 %v5950_v0, 31  ;;  %vm1193_vm8 = vcmp.ne.f32.partialorder %v5911_v42, %v5911_v42  ;;  %v1159_v39 = vshra.s32 %v3659_v28, 31 }
  0xfd   : > { %v1160_v48 = vshra.s32 %v3660_v33, 31  ;;  %v1161_v6 = vand.u32 2147483647, %v1153_v62  ;;  %v1162_v22 = vand.u32 2147483647, %v1154_v23  ;;  %vm1194_vm13 = vcmp.ne.f32.partialorder %v5914_v44, %v5914_v44 }
  0xfe   : > { %v1163_v29 = vand.u32 2147483647, %v1155_v3  ;;  %v1164_v26 = vand.u32 2147483647, %v1156_v32  ;;  %v1165_v27 = vand.u32 2147483647, %v1157_v61  ;;  %vm1195_vm3 = vcmp.ne.f32.partialorder %v5917_v2, %v5917_v2 }
  0xff   : > { %v1166_v51 = vand.u32 2147483647, %v1158_v34  ;;  %v1167_v4 = vand.u32 2147483647, %v1159_v39  ;;  %v1168_v49 = vand.u32 2147483647, %v1160_v48  ;;  %v1169_v38 = vxor.u32 %v5911_v42, %v1161_v6 }
 0x100   : > { %v1170_v60 = vxor.u32 %v5914_v44, %v1162_v22  ;;  %v1171_v59 = vxor.u32 %v5917_v2, %v1163_v29  ;;  %v1172_v16 = vxor.u32 %v5944_v40, %v1164_v26  ;;  %v1173_v14 = vxor.u32 %v5947_v13, %v1165_v27  ;;  %v3667_v22 = vld [vmem:[%s4153_s30 + $0x658] sm:$0xff] }
 0x101   : > { %v1174_v35 = vxor.u32 %v5950_v0, %v1166_v51  ;;  %v1175_v43 = vxor.u32 %v3659_v28, %v1167_v4  ;;  %v1176_v50 = vxor.u32 %v3660_v33, %v1168_v49  ;;  %vm1177_vm5 = vcmp.eq.f32.partialorder %v5911_v42, 0.0  ;;  %v3668_v29 = vld [vmem:[%s4153_s30 + $0x758] sm:$0xff] }
 0x102   : > { %vm1178_vm15 = vcmp.eq.f32.partialorder %v5914_v44, 0.0  ;;  %vm1179_vm4 = vcmp.eq.f32.partialorder %v5917_v2, 0.0  ;;  %vm1180_vm12 = vcmp.eq.f32.partialorder %v5944_v40, 0.0  ;;  %vm1181_vm6 = vcmp.eq.f32.partialorder %v5947_v13, 0.0 }
 0x103   : > { %vm1182_vm7 = vcmp.eq.f32.partialorder %v5950_v0, 0.0  ;;  %vm1183_vm1 = vcmp.eq.f32.partialorder %v3659_v28, 0.0  ;;  %vm1184_vm0 = vcmp.eq.f32.partialorder %v3660_v33, 0.0  ;;  %v1185_v37 = vsel %vm1177_vm5, 0, %v1169_v38 }
 0x104   : > { %v1186_v46 = vsel %vm1178_vm15, 0, %v1170_v60  ;;  %v1187_v63 = vsel %vm1179_vm4, 0, %v1171_v59  ;;  %v1188_v53 = vsel %vm1180_vm12, 0, %v1172_v16  ;;  %v1189_v62 = vsel %vm1181_vm6, 0, %v1173_v14 }
 0x105   : > { %v1190_v23 = vsel %vm1182_vm7, 0, %v1174_v35  ;;  %v1191_v3 = vsel %vm1183_vm1, 0, %v1175_v43  ;;  %v1192_v32 = vsel %vm1184_vm0, 0, %v1176_v50  ;;  %vm1196_vm10 = vcmp.ne.f32.partialorder %v5944_v40, %v5944_v40 }
 0x106   : > { %vm1197_vm14 = vcmp.ne.f32.partialorder %v5947_v13, %v5947_v13  ;;  %vm1198_vm2 = vcmp.ne.f32.partialorder %v5950_v0, %v5950_v0  ;;  %vm1199_vm5 = vcmp.ne.f32.partialorder %v3659_v28, %v3659_v28  ;;  %vm1200_vm15 = vcmp.ne.f32.partialorder %v3660_v33, %v3660_v33 }
 0x107   : > { %v1201_v61 = vsel %vm1193_vm8, 2147483647, %v1185_v37  ;;  %v1202_v34 = vsel %vm1194_vm13, 2147483647, %v1186_v46  ;;  %v1203_v2 = vsel %vm1195_vm3, 2147483647, %v1187_v63  ;;  %v6033_v40 = vsel %vm1115_vm11, %v5862_v55, %v5849_v36 }
 0x108   : > { %v6035_v13 = vsel %vm1196_vm10, 2147483647, %v1188_v53  ;;  %v6037_v0 = vsel %vm1197_vm14, 2147483647, %v1189_v62  ;;  %v6039_v28 = vsel %vm1198_vm2, 2147483647, %v1190_v23  ;;  %vm1210_vm8 = vcmp.gt.s32.totalorder %v1201_v61, %v5908_v9 }
 0x109   : > { %v6041_v42 = vsel %vm1199_vm5, 2147483647, %v1191_v3  ;;  %v6043_v33 = vsel %vm1200_vm15, 2147483647, %v1192_v32  ;;  %v6046_v44 = vadd.s32 80, %v4178_v47  ;;  %vm1211_vm11 = vcmp.gt.s32.totalorder %v1202_v34, %v5922_v20 }
 0x10a   : > { %vm1212_vm10 = vcmp.gt.s32.totalorder %v1203_v2, %v5927_v24  ;;  %vm1213_vm2 = vcmp.gt.s32.totalorder %v6035_v13, %v5934_v5  ;;  %vm1214_vm14 = vcmp.gt.s32.totalorder %v6037_v0, %v5941_v8  ;;  %v6060_v41 = vsel %vm1116_vm9, %v5862_v55, %v5876_v1  ;;  %v6128_v1 = vld [vmem:[%s4153_s30 + $0x358] sm:$0xff] }
 0x10b   : > { %vm1215_vm13 = vcmp.gt.s32.totalorder %v6039_v28, %v5957_v45  ;;  %vm9823_vm4 = vcmp.gt.s32.totalorder %v6041_v42, %v5964_v25  ;;  %vm9822_vm12 = vcmp.gt.s32.totalorder %v6043_v33, %v5971_v21  ;;  %vm9880_vm6 = vcmp.gt.s32.totalorder %v5855_v52, %v5756_v56  ;;  %v6098_v52 = vld [vmem:[%s4153_s30 + $0x158] sm:$0xff] }
 0x10c   : > { %v6073_v57 = vsel %vm9880_vm6, %v5862_v55, %v5889_v7  ;;  %vm9881_vm9 = vcmp.gt.s32.totalorder %v5857_v15, %v5772_v30  ;;  %vm9882_vm7 = vcmp.gt.s32.totalorder %v5859_v10, %v5779_v31  ;;  %v6092_v56 = vsel %vm1210_vm8, %v1201_v61, %v5908_v9  ;;  %v6101_v30 = vld [vmem:[%s4153_s30 + $0x258] sm:$0xff] }
 0x10d   : > { %v6080_v36 = vsel %vm9881_vm9, %v5862_v55, %v5896_v12  ;;  %v6087_v54 = vsel %vm9882_vm7, %v5862_v55, %v5903_v58  ;;  %v6106_v15 = vsel %vm1211_vm11, %v1202_v34, %v5922_v20  ;;  %v6111_v31 = vsel %vm1212_vm10, %v1203_v2, %v5927_v24  ;;  %v6131_v7 = vld [vmem:[%s4153_s30 + $0x458] sm:$0xff] }
 0x10e   : > { %v6118_v10 = vsel %vm1213_vm2, %v6035_v13, %v5934_v5  ;;  %v6125_v55 = vsel %vm1214_vm14, %v6037_v0, %v5941_v8  ;;  %v6134_v12 = vld [vmem:[%s4153_s30 + $0x558] sm:$0xff]  ;;  %v6141_v58 = vsel %vm1215_vm13, %v6039_v28, %v5957_v45  ;;  %v6148_v39 = vsel %vm9823_vm4, %v6041_v42, %v5964_v25  ;;  %v6272_v45 = vld [vmem:[%s4153_s30 + $0x60] sm:$0xff] }
 0x10f   : > { %v6155_v48 = vsel %vm9822_vm12, %v6043_v33, %v5971_v21  ;;  %v6161_v6 = vsel %vm1210_vm8, %v6046_v44, %v5977_v17  ;;  %v6169_v26 = vsel %vm1211_vm11, %v6046_v44, %v5985_v18  ;;  %v6175_v27 = vsel %vm1212_vm10, %v6046_v44, %v5990_v19  ;;  %v6275_v0 = vld [vmem:[%s4153_s30 + $0x160] sm:$0xff] }
 0x110   : > { %v1251_v51 = vshra.s32 %v6095_v11, 31  ;;  %v1252_v9 = vshra.s32 %v6098_v52, 31  ;;  %v1253_v17 = vshra.s32 %v6101_v30, 31  ;;  %v1254_v4 = vshra.s32 %v6128_v1, 31 }
 0x111   : > { %v1255_v49 = vshra.s32 %v6131_v7, 31  ;;  %v1256_v20 = vshra.s32 %v6134_v12, 31  ;;  %v1257_v18 = vshra.s32 %v3667_v22, 31  ;;  %v1258_v38 = vshra.s32 %v3668_v29, 31 }
 0x112   : > { %v1259_v60 = vand.u32 2147483647, %v1251_v51  ;;  %v1260_v59 = vand.u32 2147483647, %v1252_v9  ;;  %v1261_v16 = vand.u32 2147483647, %v1253_v17  ;;  %vm1291_vm1 = vcmp.ne.f32.partialorder %v6095_v11, %v6095_v11 }
 0x113   : > { %v1262_v24 = vand.u32 2147483647, %v1254_v4  ;;  %v1263_v19 = vand.u32 2147483647, %v1255_v49  ;;  %v1264_v14 = vand.u32 2147483647, %v1256_v20  ;;  %vm1292_vm9 = vcmp.ne.f32.partialorder %v6098_v52, %v6098_v52 }
 0x114   : > { %v1265_v35 = vand.u32 2147483647, %v1257_v18  ;;  %v1266_v43 = vand.u32 2147483647, %v1258_v38  ;;  %v1267_v50 = vxor.u32 %v6095_v11, %v1259_v60  ;;  %v1268_v37 = vxor.u32 %v6098_v52, %v1260_v59  ;;  %v3674_v38 = vld [vmem:[%s4153_s30 + $0x560] sm:$0xff] }
 0x115   : > { %v1269_v46 = vxor.u32 %v6101_v30, %v1261_v16  ;;  %v1270_v63 = vxor.u32 %v6128_v1, %v1262_v24  ;;  %v1271_v53 = vxor.u32 %v6131_v7, %v1263_v19  ;;  %v1272_v62 = vxor.u32 %v6134_v12, %v1264_v14  ;;  %v3675_v60 = vld [vmem:[%s4153_s30 + $0x660] sm:$0xff] }
 0x116   : > { %v1273_v23 = vxor.u32 %v3667_v22, %v1265_v35  ;;  %v1274_v3 = vxor.u32 %v3668_v29, %v1266_v43  ;;  %vm1275_vm0 = vcmp.eq.f32.partialorder %v6095_v11, 0.0  ;;  %vm1276_vm3 = vcmp.eq.f32.partialorder %v6098_v52, 0.0  ;;  %v3676_v59 = vld [vmem:[%s4153_s30 + $0x760] sm:$0xff] }
 0x117   : > { %vm1277_vm5 = vcmp.eq.f32.partialorder %v6101_v30, 0.0  ;;  %vm1278_vm15 = vcmp.eq.f32.partialorder %v6128_v1, 0.0  ;;  %vm1279_vm8 = vcmp.eq.f32.partialorder %v6131_v7, 0.0  ;;  %vm1280_vm11 = vcmp.eq.f32.partialorder %v6134_v12, 0.0 }
 0x118   : > { %vm1281_vm10 = vcmp.eq.f32.partialorder %v3667_v22, 0.0  ;;  %vm1282_vm6 = vcmp.eq.f32.partialorder %v3668_v29, 0.0  ;;  %v1283_v32 = vsel %vm1275_vm0, 0, %v1267_v50  ;;  %v1284_v61 = vsel %vm1276_vm3, 0, %v1268_v37 }
 0x119   : > { %v1285_v34 = vsel %vm1277_vm5, 0, %v1269_v46  ;;  %v1286_v2 = vsel %vm1278_vm15, 0, %v1270_v63  ;;  %v1287_v51 = vsel %vm1279_vm8, 0, %v1271_v53  ;;  %v1288_v9 = vsel %vm1280_vm11, 0, %v1272_v62 }
 0x11a   : > { %v1289_v17 = vsel %vm1281_vm10, 0, %v1273_v23  ;;  %v1290_v4 = vsel %vm1282_vm6, 0, %v1274_v3  ;;  %vm1293_vm7 = vcmp.ne.f32.partialorder %v6101_v30, %v6101_v30  ;;  %vm1294_vm12 = vcmp.ne.f32.partialorder %v6128_v1, %v6128_v1 }
 0x11b   : > { %vm1295_vm4 = vcmp.ne.f32.partialorder %v6131_v7, %v6131_v7  ;;  %vm1296_vm0 = vcmp.ne.f32.partialorder %v6134_v12, %v6134_v12  ;;  %vm1297_vm3 = vcmp.ne.f32.partialorder %v3667_v22, %v3667_v22  ;;  %vm1298_vm5 = vcmp.ne.f32.partialorder %v3668_v29, %v3668_v29 }
 0x11c   : > { %v1299_v49 = vsel %vm1291_vm1, 2147483647, %v1283_v32  ;;  %v1300_v20 = vsel %vm1292_vm9, 2147483647, %v1284_v61  ;;  %v6215_v52 = vsel %vm1213_vm2, %v6046_v44, %v6033_v40  ;;  %v1301_v30 = vsel %vm1293_vm7, 2147483647, %v1285_v34 }
 0x11d   : > { %v6217_v1 = vsel %vm1294_vm12, 2147483647, %v1286_v2  ;;  %v6219_v7 = vsel %vm1295_vm4, 2147483647, %v1287_v51  ;;  %v6221_v12 = vsel %vm1296_vm0, 2147483647, %v1288_v9  ;;  %vm1308_vm1 = vcmp.gt.s32.totalorder %v1299_v49, %v6092_v56 }
 0x11e   : > { %v6223_v22 = vsel %vm1297_vm3, 2147483647, %v1289_v17  ;;  %v6225_v11 = vsel %vm1298_vm5, 2147483647, %v1290_v4  ;;  %v6229_v29 = vadd.s32 88, %v4178_v47  ;;  %vm1309_vm2 = vcmp.gt.s32.totalorder %v1300_v20, %v6106_v15 }
 0x11f   : > { %vm1310_vm12 = vcmp.gt.s32.totalorder %v1301_v30, %v6111_v31  ;;  %vm1311_vm4 = vcmp.gt.s32.totalorder %v6217_v1, %v6118_v10  ;;  %vm1312_vm15 = vcmp.gt.s32.totalorder %v6219_v7, %v6125_v55  ;;  %vm1313_vm8 = vcmp.gt.s32.totalorder %v6221_v12, %v6141_v58 }
 0x120   : > { %vm9825_vm11 = vcmp.gt.s32.totalorder %v6223_v22, %v6148_v39  ;;  %vm9824_vm10 = vcmp.gt.s32.totalorder %v6225_v11, %v6155_v48  ;;  %v6248_v5 = vsel %vm1214_vm14, %v6046_v44, %v6060_v41  ;;  %v6255_v40 = vsel %vm1215_vm13, %v6046_v44, %v6073_v57  ;;  %v6306_v41 = vld [vmem:[%s4153_s30 + $0x460] sm:$0xff] }
 0x121   : > { %vm9883_vm6 = vcmp.gt.s32.totalorder %v6041_v42, %v5964_v25  ;;  %vm9884_vm14 = vcmp.gt.s32.totalorder %v6043_v33, %v5971_v21  ;;  %v6280_v25 = vsel %vm1308_vm1, %v1299_v49, %v6092_v56  ;;  %v6285_v28 = vsel %vm1309_vm2, %v1300_v20, %v6106_v15  ;;  %v6300_v33 = vld [vmem:[%s4153_s30 + $0x260] sm:$0xff] }
 0x122   : > { %v6262_v13 = vsel %vm9883_vm6, %v6046_v44, %v6080_v36  ;;  %v6269_v8 = vsel %vm9884_vm14, %v6046_v44, %v6087_v54  ;;  %v6290_v21 = vsel %vm1310_vm12, %v1301_v30, %v6111_v31  ;;  %v6297_v42 = vsel %vm1311_vm4, %v6217_v1, %v6118_v10  ;;  %v6303_v44 = vld [vmem:[%s4153_s30 + $0x360] sm:$0xff] }
 0x123   : > { %v6313_v57 = vsel %vm1312_vm15, %v6219_v7, %v6125_v55  ;;  %v6320_v36 = vsel %vm1313_vm8, %v6221_v12, %v6141_v58  ;;  %v6327_v54 = vsel %vm9825_vm11, %v6223_v22, %v6148_v39  ;;  %v6334_v18 = vsel %vm9824_vm10, %v6225_v11, %v6155_v48  ;;  %v6440_v55 = vld [vmem:[%s4153_s30 + $0x68] sm:$0xff] }
 0x124   : > { %v6343_v16 = vsel %vm1308_vm1, %v6229_v29, %v6161_v6  ;;  %v6349_v24 = vsel %vm1309_vm2, %v6229_v29, %v6169_v26  ;;  %v6355_v19 = vsel %vm1310_vm12, %v6229_v29, %v6175_v27  ;;  %v1349_v14 = vshra.s32 %v6272_v45, 31  ;;  %v6443_v7 = vld [vmem:[%s4153_s30 + $0x168] sm:$0xff] }
 0x125   : > { %v1350_v35 = vshra.s32 %v6275_v0, 31  ;;  %v1351_v56 = vshra.s32 %v6300_v33, 31  ;;  %v1352_v6 = vshra.s32 %v6303_v44, 31  ;;  %v1353_v43 = vshra.s32 %v6306_v41, 31 }
 0x126   : > { %v1354_v50 = vshra.s32 %v3674_v38, 31  ;;  %v1355_v15 = vshra.s32 %v3675_v60, 31  ;;  %v1356_v26 = vshra.s32 %v3676_v59, 31  ;;  %v1357_v37 = vand.u32 2147483647, %v1349_v14 }
 0x127   : > { %v1358_v46 = vand.u32 2147483647, %v1350_v35  ;;  %v1359_v63 = vand.u32 2147483647, %v1351_v56  ;;  %v1360_v53 = vand.u32 2147483647, %v1352_v6  ;;  %vm1389_vm13 = vcmp.ne.f32.partialorder %v6272_v45, %v6272_v45 }
 0x128   : > { %v1361_v31 = vand.u32 2147483647, %v1353_v43  ;;  %v1362_v27 = vand.u32 2147483647, %v1354_v50  ;;  %v1363_v62 = vand.u32 2147483647, %v1355_v15  ;;  %v1365_v23 = vxor.u32 %v6272_v45, %v1357_v37 }
 0x129   : > { %v1364_v3 = vand.u32 2147483647, %v1356_v26  ;;  %v1366_v32 = vxor.u32 %v6275_v0, %v1358_v46  ;;  %v1367_v61 = vxor.u32 %v6300_v33, %v1359_v63  ;;  %v1368_v34 = vxor.u32 %v6303_v44, %v1360_v53  ;;  %v6506_v26 = vld [vmem:[%s4153_s30 + $0x668] sm:$0xff] }
 0x12a   : > { %v1369_v2 = vxor.u32 %v6306_v41, %v1361_v31  ;;  %v1370_v51 = vxor.u32 %v3674_v38, %v1362_v27  ;;  %v1371_v9 = vxor.u32 %v3675_v60, %v1363_v62  ;;  %vm1373_vm9 = vcmp.eq.f32.partialorder %v6272_v45, 0.0  ;;  %v6509_v37 = vld [vmem:[%s4153_s30 + $0x768] sm:$0xff] }
 0x12b   : > { %v1372_v17 = vxor.u32 %v3676_v59, %v1364_v3  ;;  %vm1374_vm7 = vcmp.eq.f32.partialorder %v6275_v0, 0.0  ;;  %vm1375_vm0 = vcmp.eq.f32.partialorder %v6300_v33, 0.0  ;;  %vm1376_vm3 = vcmp.eq.f32.partialorder %v6303_v44, 0.0 }
 0x12c   : > { %vm1377_vm5 = vcmp.eq.f32.partialorder %v6306_v41, 0.0  ;;  %vm1378_vm1 = vcmp.eq.f32.partialorder %v3674_v38, 0.0  ;;  %vm1379_vm2 = vcmp.eq.f32.partialorder %v3675_v60, 0.0  ;;  %vm1380_vm12 = vcmp.eq.f32.partialorder %v3676_v59, 0.0 }
 0x12d   : > { %v1381_v4 = vsel %vm1373_vm9, 0, %v1365_v23  ;;  %v1382_v49 = vsel %vm1374_vm7, 0, %v1366_v32  ;;  %v1383_v20 = vsel %vm1375_vm0, 0, %v1367_v61  ;;  %v1384_v30 = vsel %vm1376_vm3, 0, %v1368_v34 }
 0x12e   : > { %v1385_v14 = vsel %vm1377_vm5, 0, %v1369_v2  ;;  %v1386_v35 = vsel %vm1378_vm1, 0, %v1370_v51  ;;  %v1387_v56 = vsel %vm1379_vm2, 0, %v1371_v9  ;;  %v1388_v6 = vsel %vm1380_vm12, 0, %v1372_v17 }
 0x12f   : > { %vm1390_vm6 = vcmp.ne.f32.partialorder %v6275_v0, %v6275_v0  ;;  %vm1391_vm14 = vcmp.ne.f32.partialorder %v6300_v33, %v6300_v33  ;;  %vm1392_vm10 = vcmp.ne.f32.partialorder %v6303_v44, %v6303_v44  ;;  %vm1393_vm11 = vcmp.ne.f32.partialorder %v6306_v41, %v6306_v41 }
 0x130   : > { %vm1394_vm9 = vcmp.ne.f32.partialorder %v3674_v38, %v3674_v38  ;;  %vm1395_vm7 = vcmp.ne.f32.partialorder %v3675_v60, %v3675_v60  ;;  %vm1396_vm0 = vcmp.ne.f32.partialorder %v3676_v59, %v3676_v59  ;;  %v1397_v43 = vsel %vm1389_vm13, 2147483647, %v1381_v4  ;;  %v3682_v59 = vld [vmem:[%s4153_s30 + $0x568] sm:$0xff] }
 0x131   : > { %v6390_v0 = vsel %vm1311_vm4, %v6229_v29, %v6215_v52  ;;  %v1398_v33 = vsel %vm1390_vm6, 2147483647, %v1382_v49  ;;  %v1399_v50 = vsel %vm1391_vm14, 2147483647, %v1383_v20  ;;  %v6392_v44 = vsel %vm1392_vm10, 2147483647, %v1384_v30 }
 0x132   : > { %v6394_v15 = vsel %vm1393_vm11, 2147483647, %v1385_v14  ;;  %v6396_v41 = vsel %vm1394_vm9, 2147483647, %v1386_v35  ;;  %v6398_v38 = vsel %vm1395_vm7, 2147483647, %v1387_v56  ;;  %vm1406_vm13 = vcmp.gt.s32.totalorder %v1397_v43, %v6280_v25 }
 0x133   : > { %v6401_v45 = vsel %vm1396_vm0, 2147483647, %v1388_v6  ;;  %v6404_v10 = vadd.s32 96, %v4178_v47  ;;  %vm1407_vm4 = vcmp.gt.s32.totalorder %v1398_v33, %v6285_v28  ;;  %vm1408_vm10 = vcmp.gt.s32.totalorder %v1399_v50, %v6290_v21 }
 0x134   : > { %vm1409_vm11 = vcmp.gt.s32.totalorder %v6392_v44, %v6297_v42  ;;  %vm1410_vm3 = vcmp.gt.s32.totalorder %v6394_v15, %v6313_v57  ;;  %vm9828_vm5 = vcmp.gt.s32.totalorder %v6396_v41, %v6320_v36  ;;  %vm9827_vm1 = vcmp.gt.s32.totalorder %v6398_v38, %v6327_v54 }
 0x135   : > { %v6421_v52 = vsel %vm1312_vm15, %v6229_v29, %v6248_v5  ;;  %v6428_v1 = vsel %vm1313_vm8, %v6229_v29, %v6255_v40  ;;  %vm9885_vm2 = vcmp.gt.s32.totalorder %v6223_v22, %v6148_v39  ;;  %vm9826_vm15 = vcmp.gt.s32.totalorder %v6401_v45, %v6334_v18  ;;  %v6468_v5 = vld [vmem:[%s4153_s30 + $0x268] sm:$0xff] }
 0x136   : > { %v6435_v60 = vsel %vm9885_vm2, %v6229_v29, %v6262_v13  ;;  %vm9886_vm8 = vcmp.gt.s32.totalorder %v6225_v11, %v6155_v48  ;;  %v6455_v39 = vsel %vm1406_vm13, %v1397_v43, %v6280_v25  ;;  %v6460_v12 = vsel %vm1407_vm4, %v1398_v33, %v6285_v28  ;;  %v6471_v48 = vld [vmem:[%s4153_s30 + $0x368] sm:$0xff] }
 0x137   : > { %v6450_v58 = vsel %vm9886_vm8, %v6229_v29, %v6269_v8  ;;  %v6465_v22 = vsel %vm1408_vm10, %v1399_v50, %v6290_v21  ;;  %v6474_v11 = vld [vmem:[%s4153_s30 + $0x468] sm:$0xff]  ;;  %v6481_v29 = vsel %vm1409_vm11, %v6392_v44, %v6297_v42  ;;  %v6488_v40 = vsel %vm1410_vm3, %v6394_v15, %v6313_v57 }
 0x138   : > { %v6495_v13 = vsel %vm9828_vm5, %v6396_v41, %v6320_v36  ;;  %v6502_v8 = vsel %vm9827_vm1, %v6398_v38, %v6327_v54  ;;  %v6516_v46 = vsel %vm9826_vm15, %v6401_v45, %v6334_v18  ;;  %v6522_v63 = vsel %vm1406_vm13, %v6404_v10, %v6343_v16 }
 0x139   : > { %v6528_v53 = vsel %vm1407_vm4, %v6404_v10, %v6349_v24  ;;  %v6534_v31 = vsel %vm1408_vm10, %v6404_v10, %v6355_v19  ;;  %v1447_v27 = vshra.s32 %v6440_v55, 31  ;;  %v1448_v62 = vshra.s32 %v6443_v7, 31 }
 0x13a   : > { %v1449_v25 = vshra.s32 %v6468_v5, 31  ;;  %v1450_v16 = vshra.s32 %v6471_v48, 31  ;;  %v1451_v23 = vshra.s32 %v6474_v11, 31  ;;  %v1452_v3 = vshra.s32 %v3682_v59, 31 }
 0x13b   : > { %v1453_v28 = vshra.s32 %v6506_v26, 31  ;;  %v1454_v24 = vshra.s32 %v6509_v37, 31  ;;  %v1455_v32 = vand.u32 2147483647, %v1447_v27  ;;  %v1456_v61 = vand.u32 2147483647, %v1448_v62 }
 0x13c   : > { %v1457_v21 = vand.u32 2147483647, %v1449_v25  ;;  %vm1487_vm12 = vcmp.ne.f32.partialorder %v6440_v55, %v6440_v55  ;;  %v1458_v19 = vand.u32 2147483647, %v1450_v16  ;;  %v1459_v34 = vand.u32 2147483647, %v1451_v23 }
 0x13d   : > { %v1460_v2 = vand.u32 2147483647, %v1452_v3  ;;  %vm1488_vm6 = vcmp.ne.f32.partialorder %v6443_v7, %v6443_v7  ;;  %v1461_v51 = vand.u32 2147483647, %v1453_v28  ;;  %v1462_v9 = vand.u32 2147483647, %v1454_v24 }
 0x13e   : > { %v1463_v17 = vxor.u32 %v6440_v55, %v1455_v32  ;;  %v1464_v4 = vxor.u32 %v6443_v7, %v1456_v61  ;;  %v1465_v49 = vxor.u32 %v6468_v5, %v1457_v21  ;;  %v1466_v20 = vxor.u32 %v6471_v48, %v1458_v19  ;;  %v3691_v21 = vld [vmem:[%s4153_s30 + $0x670] sm:$0xff] }
 0x13f   : > { %v1467_v30 = vxor.u32 %v6474_v11, %v1459_v34  ;;  %v1468_v14 = vxor.u32 %v3682_v59, %v1460_v2  ;;  %v1469_v35 = vxor.u32 %v6506_v26, %v1461_v51  ;;  %v1470_v56 = vxor.u32 %v6509_v37, %v1462_v9  ;;  %v3692_v19 = vld [vmem:[%s4153_s30 + $0x770] sm:$0xff] }
 0x140   : > { %vm1471_vm14 = vcmp.eq.f32.partialorder %v6440_v55, 0.0  ;;  %vm1472_vm9 = vcmp.eq.f32.partialorder %v6443_v7, 0.0  ;;  %vm1473_vm7 = vcmp.eq.f32.partialorder %v6468_v5, 0.0  ;;  %vm1474_vm0 = vcmp.eq.f32.partialorder %v6471_v48, 0.0  ;;  %v6680_v7 = vld [vmem:[%s4153_s30 + $0x470] sm:$0xff] }
 0x141   : > { %vm1475_vm13 = vcmp.eq.f32.partialorder %v6474_v11, 0.0  ;;  %vm1476_vm4 = vcmp.eq.f32.partialorder %v3682_v59, 0.0  ;;  %vm1477_vm10 = vcmp.eq.f32.partialorder %v6506_v26, 0.0  ;;  %vm1478_vm2 = vcmp.eq.f32.partialorder %v6509_v37, 0.0 }
 0x142   : > { %v1479_v6 = vsel %vm1471_vm14, 0, %v1463_v17  ;;  %v1480_v43 = vsel %vm1472_vm9, 0, %v1464_v4  ;;  %v1481_v33 = vsel %vm1473_vm7, 0, %v1465_v49  ;;  %v1482_v50 = vsel %vm1474_vm0, 0, %v1466_v20 }
 0x143   : > { %v1483_v27 = vsel %vm1475_vm13, 0, %v1467_v30  ;;  %v1484_v62 = vsel %vm1476_vm4, 0, %v1468_v14  ;;  %v1485_v25 = vsel %vm1477_vm10, 0, %v1469_v35  ;;  %v1486_v16 = vsel %vm1478_vm2, 0, %v1470_v56 }
 0x144   : > { %vm1489_vm8 = vcmp.ne.f32.partialorder %v6468_v5, %v6468_v5  ;;  %vm1490_vm15 = vcmp.ne.f32.partialorder %v6471_v48, %v6471_v48  ;;  %vm1491_vm1 = vcmp.ne.f32.partialorder %v6474_v11, %v6474_v11  ;;  %vm1492_vm5 = vcmp.ne.f32.partialorder %v3682_v59, %v3682_v59 }
 0x145   : > { %vm1493_vm14 = vcmp.ne.f32.partialorder %v6506_v26, %v6506_v26  ;;  %vm1494_vm9 = vcmp.ne.f32.partialorder %v6509_v37, %v6509_v37  ;;  %v1425_v23 = vsel %vm1409_vm11, %v6404_v10, %v6390_v0  ;;  %v1495_v5 = vsel %vm1487_vm12, 2147483647, %v1479_v6 }
 0x146   : > { %v1496_v48 = vsel %vm1488_vm6, 2147483647, %v1480_v43  ;;  %v1497_v11 = vsel %vm1489_vm8, 2147483647, %v1481_v33  ;;  %v1498_v59 = vsel %vm1490_vm15, 2147483647, %v1482_v50  ;;  %vm1504_vm7 = vcmp.gt.s32.totalorder %v1495_v5, %v6455_v39 }
 0x147   : > { %v6582_v26 = vsel %vm1491_vm1, 2147483647, %v1483_v27  ;;  %v6584_v3 = vsel %vm1492_vm5, 2147483647, %v1484_v62  ;;  %v6587_v37 = vsel %vm1493_vm14, 2147483647, %v1485_v25  ;;  %vm1505_vm11 = vcmp.gt.s32.totalorder %v1496_v48, %v6460_v12 }
 0x148   : > { %v6589_v42 = vsel %vm1494_vm9, 2147483647, %v1486_v16  ;;  %v6592_v0 = vadd.s32 104, %v4178_v47  ;;  %vm1506_vm15 = vcmp.gt.s32.totalorder %v1497_v11, %v6465_v22  ;;  %vm1507_vm1 = vcmp.gt.s32.totalorder %v1498_v59, %v6481_v29 }
 0x149   : > { %vm1508_vm5 = vcmp.gt.s32.totalorder %v6582_v26, %v6488_v40  ;;  %vm1509_vm12 = vcmp.gt.s32.totalorder %v6584_v3, %v6495_v13  ;;  %v6606_v44 = vsel %vm1410_vm3, %v6404_v10, %v6421_v52  ;;  %vm9887_vm6 = vcmp.gt.s32.totalorder %v6396_v41, %v6320_v36  ;;  %v6650_v52 = vld [vmem:[%s4153_s30 + $0x270] sm:$0xff] }
 0x14a   : > { %v6613_v55 = vsel %vm9887_vm6, %v6404_v10, %v6428_v1  ;;  %vm9830_vm0 = vcmp.gt.s32.totalorder %v6587_v37, %v6502_v8  ;;  %vm9829_vm13 = vcmp.gt.s32.totalorder %v6589_v42, %v6516_v46  ;;  %vm9888_vm3 = vcmp.gt.s32.totalorder %v6398_v38, %v6327_v54  ;;  %v6644_v54 = vld [vmem:[%s4153_s30 + $0x70] sm:$0xff] }
 0x14b   : > { %v6624_v57 = vsel %vm9888_vm3, %v6404_v10, %v6435_v60  ;;  %vm9889_vm4 = vcmp.gt.s32.totalorder %v6401_v45, %v6334_v18  ;;  %v6636_v15 = vsel %vm1504_vm7, %v1495_v5, %v6455_v39  ;;  %v6641_v41 = vsel %vm1505_vm11, %v1496_v48, %v6460_v12  ;;  %v6647_v38 = vld [vmem:[%s4153_s30 + $0x170] sm:$0xff] }
 0x14c   : > { %v6631_v36 = vsel %vm9889_vm4, %v6404_v10, %v6450_v58  ;;  %v6655_v18 = vsel %vm1506_vm15, %v1497_v11, %v6465_v22  ;;  %v6660_v45 = vsel %vm1507_vm1, %v1498_v59, %v6481_v29  ;;  %v6667_v10 = vsel %vm1508_vm5, %v6582_v26, %v6488_v40  ;;  %v6677_v60 = vld [vmem:[%s4153_s30 + $0x370] sm:$0xff] }
 0x14d   : > { %v6674_v1 = vsel %vm1509_vm12, %v6584_v3, %v6495_v13  ;;  %v6683_v58 = vld [vmem:[%s4153_s30 + $0x570] sm:$0xff]  ;;  %v6690_v28 = vsel %vm9830_vm0, %v6587_v37, %v6502_v8  ;;  %v6697_v24 = vsel %vm9829_vm13, %v6589_v42, %v6516_v46  ;;  %v6703_v32 = vsel %vm1504_vm7, %v6592_v0, %v6522_v63 }
 0x14e   : > { %v6709_v61 = vsel %vm1505_vm11, %v6592_v0, %v6528_v53  ;;  %v6717_v34 = vsel %vm1506_vm15, %v6592_v0, %v6534_v31  ;;  %v6722_v39 = vsel %vm1507_vm1, %v6592_v0, %v1425_v23  ;;  %v1545_v63 = vshra.s32 %v6644_v54, 31 }
 0x14f   : > { %v1546_v2 = vshra.s32 %v6647_v38, 31  ;;  %v1547_v12 = vshra.s32 %v6650_v52, 31  ;;  %v1548_v53 = vshra.s32 %v6677_v60, 31  ;;  %v1549_v51 = vshra.s32 %v6680_v7, 31 }
 0x150   : > { %v1550_v9 = vshra.s32 %v6683_v58, 31  ;;  %vm1585_vm10 = vcmp.ne.f32.partialorder %v6644_v54, %v6644_v54  ;;  %v1551_v22 = vshra.s32 %v3691_v21, 31  ;;  %v1552_v31 = vshra.s32 %v3692_v19, 31 }
 0x151   : > { %v1553_v29 = vand.u32 2147483647, %v1545_v63  ;;  %v1554_v17 = vand.u32 2147483647, %v1546_v2  ;;  %v1555_v4 = vand.u32 2147483647, %v1547_v12  ;;  %vm1586_vm2 = vcmp.ne.f32.partialorder %v6647_v38, %v6647_v38 }
 0x152   : > { %v1556_v49 = vand.u32 2147483647, %v1548_v53  ;;  %v1557_v20 = vand.u32 2147483647, %v1549_v51  ;;  %v1558_v30 = vand.u32 2147483647, %v1550_v9  ;;  %vm1587_vm3 = vcmp.ne.f32.partialorder %v6650_v52, %v6650_v52 }
 0x153   : > { %v1559_v14 = vand.u32 2147483647, %v1551_v22  ;;  %v1560_v35 = vand.u32 2147483647, %v1552_v31  ;;  %v1561_v56 = vxor.u32 %v6644_v54, %v1553_v29  ;;  %v1562_v6 = vxor.u32 %v6647_v38, %v1554_v17 }
 0x154   : > { %v1563_v43 = vxor.u32 %v6650_v52, %v1555_v4  ;;  %v1564_v33 = vxor.u32 %v6677_v60, %v1556_v49  ;;  %v1565_v50 = vxor.u32 %v6680_v7, %v1557_v20  ;;  %v1566_v27 = vxor.u32 %v6683_v58, %v1558_v30  ;;  %v3699_v4 = vld [vmem:[%s4153_s30 + $0x678] sm:$0xff] }
 0x155   : > { %v1567_v62 = vxor.u32 %v3691_v21, %v1559_v14  ;;  %v1568_v25 = vxor.u32 %v3692_v19, %v1560_v35  ;;  %vm1569_vm8 = vcmp.eq.f32.partialorder %v6644_v54, 0.0  ;;  %vm1570_vm14 = vcmp.eq.f32.partialorder %v6647_v38, 0.0  ;;  %v3700_v49 = vld [vmem:[%s4153_s30 + $0x778] sm:$0xff] }
 0x156   : > { %vm1571_vm9 = vcmp.eq.f32.partialorder %v6650_v52, 0.0  ;;  %vm1572_vm7 = vcmp.eq.f32.partialorder %v6677_v60, 0.0  ;;  %vm1573_vm11 = vcmp.eq.f32.partialorder %v6680_v7, 0.0  ;;  %vm1574_vm15 = vcmp.eq.f32.partialorder %v6683_v58, 0.0 }
 0x157   : > { %vm1575_vm1 = vcmp.eq.f32.partialorder %v3691_v21, 0.0  ;;  %vm1576_vm6 = vcmp.eq.f32.partialorder %v3692_v19, 0.0  ;;  %v1577_v16 = vsel %vm1569_vm8, 0, %v1561_v56  ;;  %v1578_v23 = vsel %vm1570_vm14, 0, %v1562_v6 }
 0x158   : > { %v1579_v5 = vsel %vm1571_vm9, 0, %v1563_v43  ;;  %v1580_v48 = vsel %vm1572_vm7, 0, %v1564_v33  ;;  %v1581_v11 = vsel %vm1573_vm11, 0, %v1565_v50  ;;  %v1582_v59 = vsel %vm1574_vm15, 0, %v1566_v27 }
 0x159   : > { %v1583_v63 = vsel %vm1575_vm1, 0, %v1567_v62  ;;  %v1584_v2 = vsel %vm1576_vm6, 0, %v1568_v25  ;;  %vm1588_vm4 = vcmp.ne.f32.partialorder %v6677_v60, %v6677_v60  ;;  %vm1589_vm13 = vcmp.ne.f32.partialorder %v6680_v7, %v6680_v7 }
 0x15a   : > { %vm1590_vm0 = vcmp.ne.f32.partialorder %v6683_v58, %v6683_v58  ;;  %vm1591_vm8 = vcmp.ne.f32.partialorder %v3691_v21, %v3691_v21  ;;  %vm1592_vm14 = vcmp.ne.f32.partialorder %v3692_v19, %v3692_v19  ;;  %v1593_v12 = vsel %vm1585_vm10, 2147483647, %v1577_v16  ;;  %v6861_v19 = vld [vmem:[%s4153_s30 + $0x578] sm:$0xff] }
 0x15b   : > { %v1594_v53 = vsel %vm1586_vm2, 2147483647, %v1578_v23  ;;  %v1595_v52 = vsel %vm1587_vm3, 2147483647, %v1579_v5  ;;  %v1596_v51 = vsel %vm1588_vm4, 2147483647, %v1580_v48  ;;  %vm1602_vm9 = vcmp.gt.s32.totalorder %v1593_v12, %v6636_v15 }
 0x15c   : > { %v6760_v9 = vsel %vm1589_vm13, 2147483647, %v1581_v11  ;;  %v6762_v60 = vsel %vm1590_vm0, 2147483647, %v1582_v59  ;;  %v6765_v7 = vsel %vm1591_vm8, 2147483647, %v1583_v63  ;;  %vm1603_vm10 = vcmp.gt.s32.totalorder %v1594_v53, %v6641_v41 }
 0x15d   : > { %v6767_v58 = vsel %vm1592_vm14, 2147483647, %v1584_v2  ;;  %v6770_v54 = vadd.s32 112, %v4178_v47  ;;  %vm1604_vm2 = vcmp.gt.s32.totalorder %v1595_v52, %v6655_v18  ;;  %vm1605_vm13 = vcmp.gt.s32.totalorder %v1596_v51, %v6660_v45 }
 0x15e   : > { %vm1606_vm0 = vcmp.gt.s32.totalorder %v6760_v9, %v6667_v10  ;;  %vm1607_vm7 = vcmp.gt.s32.totalorder %v6762_v60, %v6674_v1  ;;  %v6784_v38 = vsel %vm1508_vm5, %v6592_v0, %v6606_v44  ;;  %v6791_v21 = vsel %vm1509_vm12, %v6592_v0, %v6613_v55  ;;  %v6828_v44 = vld [vmem:[%s4153_s30 + $0x278] sm:$0xff] }
 0x15f   : > { %vm1608_vm11 = vcmp.gt.s32.totalorder %v6765_v7, %v6690_v28  ;;  %vm9831_vm15 = vcmp.gt.s32.totalorder %v6767_v58, %v6697_v24  ;;  %vm9890_vm5 = vcmp.gt.s32.totalorder %v6587_v37, %v6502_v8  ;;  %vm9891_vm12 = vcmp.gt.s32.totalorder %v6589_v42, %v6516_v46  ;;  %v6822_v8 = vld [vmem:[%s4153_s30 + $0x78] sm:$0xff] }
 0x160   : > { %v6802_v40 = vsel %vm9890_vm5, %v6592_v0, %v6624_v57  ;;  %v6809_v13 = vsel %vm9891_vm12, %v6592_v0, %v6631_v36  ;;  %v6814_v26 = vsel %vm1602_vm9, %v1593_v12, %v6636_v15  ;;  %v6819_v3 = vsel %vm1603_vm10, %v1594_v53, %v6641_v41  ;;  %v6825_v37 = vld [vmem:[%s4153_s30 + $0x178] sm:$0xff] }
 0x161   : > { %v6833_v46 = vsel %vm1604_vm2, %v1595_v52, %v6655_v18  ;;  %v6838_v42 = vsel %vm1605_vm13, %v1596_v51, %v6660_v45  ;;  %v6845_v0 = vsel %vm1606_vm0, %v6760_v9, %v6667_v10  ;;  %v6852_v55 = vsel %vm1607_vm7, %v6762_v60, %v6674_v1  ;;  %v6855_v57 = vld [vmem:[%s4153_s30 + $0x378] sm:$0xff]  ;;  %v6993_v60 = vld [vmem:[%s4153_s30 + $0x80] sm:$0xff] }
 0x162   : > { %v6858_v36 = vld [vmem:[%s4153_s30 + $0x478] sm:$0xff]  ;;  %v6868_v22 = vsel %vm1608_vm11, %v6765_v7, %v6690_v28  ;;  %v6875_v31 = vsel %vm9831_vm15, %v6767_v58, %v6697_v24  ;;  %v6881_v29 = vsel %vm1602_vm9, %v6770_v54, %v6703_v32  ;;  %v6887_v17 = vsel %vm1603_vm10, %v6770_v54, %v6709_v61  ;;  %v6996_v28 = vld [vmem:[%s4153_s30 + $0x180] sm:$0xff] }
 0x163   : > { %v6895_v20 = vsel %vm1604_vm2, %v6770_v54, %v6717_v34  ;;  %v6901_v15 = vsel %vm1605_vm13, %v6770_v54, %v6722_v39  ;;  %v1643_v32 = vshra.s32 %v6822_v8, 31  ;;  %v1644_v41 = vshra.s32 %v6825_v37, 31 }
 0x164   : > { %v1645_v61 = vshra.s32 %v6828_v44, 31  ;;  %v1646_v30 = vshra.s32 %v6855_v57, 31  ;;  %v1647_v14 = vshra.s32 %v6858_v36, 31  ;;  %v1648_v18 = vshra.s32 %v6861_v19, 31 }
 0x165   : > { %v1649_v34 = vshra.s32 %v3699_v4, 31  ;;  %v1650_v35 = vshra.s32 %v3700_v49, 31  ;;  %v1651_v56 = vand.u32 2147483647, %v1643_v32  ;;  %v1652_v6 = vand.u32 2147483647, %v1644_v41 }
 0x166   : > { %v1653_v43 = vand.u32 2147483647, %v1645_v61  ;;  %v1654_v45 = vand.u32 2147483647, %v1646_v30  ;;  %v1655_v39 = vand.u32 2147483647, %v1647_v14  ;;  %vm1683_vm1 = vcmp.ne.f32.partialorder %v6822_v8, %v6822_v8 }
 0x167   : > { %v1656_v33 = vand.u32 2147483647, %v1648_v18  ;;  %v1657_v50 = vand.u32 2147483647, %v1649_v34  ;;  %v1658_v27 = vand.u32 2147483647, %v1650_v35  ;;  %v1659_v62 = vxor.u32 %v6822_v8, %v1651_v56 }
 0x168   : > { %v1660_v25 = vxor.u32 %v6825_v37, %v1652_v6  ;;  %v1661_v16 = vxor.u32 %v6828_v44, %v1653_v43  ;;  %v1662_v23 = vxor.u32 %v6855_v57, %v1654_v45  ;;  %v1663_v5 = vxor.u32 %v6858_v36, %v1655_v39  ;;  %v3706_v56 = vld [vmem:[%s4153_s30 + $0x580] sm:$0xff] }
 0x169   : > { %v1664_v48 = vxor.u32 %v6861_v19, %v1656_v33  ;;  %v1665_v11 = vxor.u32 %v3699_v4, %v1657_v50  ;;  %v1666_v59 = vxor.u32 %v3700_v49, %v1658_v27  ;;  %vm1667_vm6 = vcmp.eq.f32.partialorder %v6822_v8, 0.0  ;;  %v3707_v6 = vld [vmem:[%s4153_s30 + $0x680] sm:$0xff] }
 0x16a   : > { %vm1668_vm3 = vcmp.eq.f32.partialorder %v6825_v37, 0.0  ;;  %vm1669_vm4 = vcmp.eq.f32.partialorder %v6828_v44, 0.0  ;;  %vm1670_vm8 = vcmp.eq.f32.partialorder %v6855_v57, 0.0  ;;  %vm1671_vm14 = vcmp.eq.f32.partialorder %v6858_v36, 0.0  ;;  %v3708_v43 = vld [vmem:[%s4153_s30 + $0x780] sm:$0xff] }
 0x16b   : > { %vm1672_vm9 = vcmp.eq.f32.partialorder %v6861_v19, 0.0  ;;  %vm1673_vm10 = vcmp.eq.f32.partialorder %v3699_v4, 0.0  ;;  %vm1674_vm2 = vcmp.eq.f32.partialorder %v3700_v49, 0.0  ;;  %v1675_v63 = vsel %vm1667_vm6, 0, %v1659_v62 }
 0x16c   : > { %v1676_v2 = vsel %vm1668_vm3, 0, %v1660_v25  ;;  %v1677_v12 = vsel %vm1669_vm4, 0, %v1661_v16  ;;  %v1678_v53 = vsel %vm1670_vm8, 0, %v1662_v23  ;;  %v1679_v52 = vsel %vm1671_vm14, 0, %v1663_v5 }
 0x16d   : > { %v1680_v51 = vsel %vm1672_vm9, 0, %v1664_v48  ;;  %v1681_v32 = vsel %vm1673_vm10, 0, %v1665_v11  ;;  %v1682_v41 = vsel %vm1674_vm2, 0, %v1666_v59  ;;  %vm1684_vm13 = vcmp.ne.f32.partialorder %v6825_v37, %v6825_v37 }
 0x16e   : > { %vm1685_vm5 = vcmp.ne.f32.partialorder %v6828_v44, %v6828_v44  ;;  %vm1686_vm12 = vcmp.ne.f32.partialorder %v6855_v57, %v6855_v57  ;;  %vm1687_vm15 = vcmp.ne.f32.partialorder %v6858_v36, %v6858_v36  ;;  %vm1688_vm6 = vcmp.ne.f32.partialorder %v6861_v19, %v6861_v19 }
 0x16f   : > { %vm1689_vm3 = vcmp.ne.f32.partialorder %v3699_v4, %v3699_v4  ;;  %vm1690_vm4 = vcmp.ne.f32.partialorder %v3700_v49, %v3700_v49  ;;  %v1691_v61 = vsel %vm1683_vm1, 2147483647, %v1675_v63  ;;  %v1692_v30 = vsel %vm1684_vm13, 2147483647, %v1676_v2 }
 0x170   : > { %v1693_v37 = vsel %vm1685_vm5, 2147483647, %v1677_v12  ;;  %v1694_v14 = vsel %vm1686_vm12, 2147483647, %v1678_v53  ;;  %v6936_v18 = vsel %vm1687_vm15, 2147483647, %v1679_v52  ;;  %vm1700_vm8 = vcmp.gt.s32.totalorder %v1691_v61, %v6814_v26 }
 0x171   : > { %v6939_v44 = vsel %vm1688_vm6, 2147483647, %v1680_v51  ;;  %v6941_v57 = vsel %vm1689_vm3, 2147483647, %v1681_v32  ;;  %v6943_v36 = vsel %vm1690_vm4, 2147483647, %v1682_v41  ;;  %vm1701_vm14 = vcmp.gt.s32.totalorder %v1692_v30, %v6819_v3 }
 0x172   : > { %v6947_v8 = vadd.s32 120, %v4178_v47  ;;  %vm1702_vm1 = vcmp.gt.s32.totalorder %v1693_v37, %v6833_v46  ;;  %vm1703_vm15 = vcmp.gt.s32.totalorder %v1694_v14, %v6838_v42  ;;  %vm1704_vm9 = vcmp.gt.s32.totalorder %v6936_v18, %v6845_v0 }
 0x173   : > { %v6958_v19 = vsel %vm1606_vm0, %v6770_v54, %v6784_v38  ;;  %vm1705_vm10 = vcmp.gt.s32.totalorder %v6939_v44, %v6852_v55  ;;  %vm1706_vm2 = vcmp.gt.s32.totalorder %v6941_v57, %v6868_v22  ;;  %vm9832_vm13 = vcmp.gt.s32.totalorder %v6943_v36, %v6875_v31  ;;  %v7021_v38 = vld [vmem:[%s4153_s30 + $0x280] sm:$0xff] }
 0x174   : > { %v6971_v4 = vsel %vm1607_vm7, %v6770_v54, %v6791_v21  ;;  %v6978_v10 = vsel %vm1608_vm11, %v6770_v54, %v6802_v40  ;;  %vm9892_vm0 = vcmp.gt.s32.totalorder %v6767_v58, %v6697_v24  ;;  %v6990_v1 = vsel %vm1700_vm8, %v1691_v61, %v6814_v26  ;;  %v7024_v21 = vld [vmem:[%s4153_s30 + $0x380] sm:$0xff] }
 0x175   : > { %v6985_v9 = vsel %vm9892_vm0, %v6770_v54, %v6809_v13  ;;  %v7001_v7 = vsel %vm1701_vm14, %v1692_v30, %v6819_v3  ;;  %v7006_v24 = vsel %vm1702_vm1, %v1693_v37, %v6833_v46  ;;  %v7011_v58 = vsel %vm1703_vm15, %v1694_v14, %v6838_v42  ;;  %v7027_v40 = vld [vmem:[%s4153_s30 + $0x480] sm:$0xff] }
 0x176   : > { %v7018_v54 = vsel %vm1704_vm9, %v6936_v18, %v6845_v0  ;;  %v7034_v13 = vsel %vm1705_vm10, %v6939_v44, %v6852_v55  ;;  %v7041_v49 = vsel %vm1706_vm2, %v6941_v57, %v6868_v22  ;;  %v7048_v34 = vsel %vm9832_vm13, %v6943_v36, %v6875_v31  ;;  %v7157_v55 = vld [vmem:[%s4153_s30 + $0x88] sm:$0xff] }
 0x177   : > { %v7054_v35 = vsel %vm1700_vm8, %v6947_v8, %v6881_v29  ;;  %v7063_v45 = vsel %vm1701_vm14, %v6947_v8, %v6887_v17  ;;  %v7069_v39 = vsel %vm1702_vm1, %v6947_v8, %v6895_v20  ;;  %v7075_v26 = vsel %vm1703_vm15, %v6947_v8, %v6901_v15  ;;  %v7160_v18 = vld [vmem:[%s4153_s30 + $0x188] sm:$0xff] }
 0x178   : > { %v1741_v29 = vshra.s32 %v6993_v60, 31  ;;  %v1742_v33 = vshra.s32 %v6996_v28, 31  ;;  %v1743_v3 = vshra.s32 %v7021_v38, 31  ;;  %v1744_v17 = vshra.s32 %v7024_v21, 31 }
 0x179   : > { %v1745_v50 = vshra.s32 %v7027_v40, 31  ;;  %v1746_v27 = vshra.s32 %v3706_v56, 31  ;;  %v1747_v46 = vshra.s32 %v3707_v6, 31  ;;  %v1748_v20 = vshra.s32 %v3708_v43, 31 }
 0x17a   : > { %v1749_v62 = vand.u32 2147483647, %v1741_v29  ;;  %v1750_v25 = vand.u32 2147483647, %v1742_v33  ;;  %v1751_v16 = vand.u32 2147483647, %v1743_v3  ;;  %vm1781_vm7 = vcmp.ne.f32.partialorder %v6993_v60, %v6993_v60 }
 0x17b   : > { %v1752_v23 = vand.u32 2147483647, %v1744_v17  ;;  %v1753_v42 = vand.u32 2147483647, %v1745_v50  ;;  %v1754_v15 = vand.u32 2147483647, %v1746_v27  ;;  %vm1782_vm1 = vcmp.ne.f32.partialorder %v6996_v28, %v6996_v28 }
 0x17c   : > { %v1755_v5 = vand.u32 2147483647, %v1747_v46  ;;  %v1757_v48 = vxor.u32 %v6993_v60, %v1749_v62  ;;  %v1756_v11 = vand.u32 2147483647, %v1748_v20  ;;  %v1758_v59 = vxor.u32 %v6996_v28, %v1750_v25  ;;  %v3714_v20 = vld [vmem:[%s4153_s30 + $0x588] sm:$0xff] }
 0x17d   : > { %v1759_v63 = vxor.u32 %v7021_v38, %v1751_v16  ;;  %v1760_v2 = vxor.u32 %v7024_v21, %v1752_v23  ;;  %v1761_v12 = vxor.u32 %v7027_v40, %v1753_v42  ;;  %v1762_v53 = vxor.u32 %v3706_v56, %v1754_v15  ;;  %v7221_v62 = vld [vmem:[%s4153_s30 + $0x688] sm:$0xff] }
 0x17e   : > { %v1763_v52 = vxor.u32 %v3707_v6, %v1755_v5  ;;  %vm1765_vm11 = vcmp.eq.f32.partialorder %v6993_v60, 0.0  ;;  %v1764_v51 = vxor.u32 %v3708_v43, %v1756_v11  ;;  %vm1766_vm5 = vcmp.eq.f32.partialorder %v6996_v28, 0.0  ;;  %v7224_v25 = vld [vmem:[%s4153_s30 + $0x788] sm:$0xff] }
 0x17f   : > { %vm1767_vm12 = vcmp.eq.f32.partialorder %v7021_v38, 0.0  ;;  %vm1768_vm6 = vcmp.eq.f32.partialorder %v7024_v21, 0.0  ;;  %vm1769_vm3 = vcmp.eq.f32.partialorder %v7027_v40, 0.0  ;;  %vm1770_vm4 = vcmp.eq.f32.partialorder %v3706_v56, 0.0 }
 0x180   : > { %vm1771_vm8 = vcmp.eq.f32.partialorder %v3707_v6, 0.0  ;;  %vm1772_vm14 = vcmp.eq.f32.partialorder %v3708_v43, 0.0  ;;  %v1773_v32 = vsel %vm1765_vm11, 0, %v1757_v48  ;;  %v1774_v41 = vsel %vm1766_vm5, 0, %v1758_v59 }
 0x181   : > { %v1775_v61 = vsel %vm1767_vm12, 0, %v1759_v63  ;;  %v1776_v30 = vsel %vm1768_vm6, 0, %v1760_v2  ;;  %v1777_v37 = vsel %vm1769_vm3, 0, %v1761_v12  ;;  %v1778_v14 = vsel %vm1770_vm4, 0, %v1762_v53 }
 0x182   : > { %v1779_v29 = vsel %vm1771_vm8, 0, %v1763_v52  ;;  %v1780_v33 = vsel %vm1772_vm14, 0, %v1764_v51  ;;  %vm1783_vm15 = vcmp.ne.f32.partialorder %v7021_v38, %v7021_v38  ;;  %vm1784_vm0 = vcmp.ne.f32.partialorder %v7024_v21, %v7024_v21 }
 0x183   : > { %vm1785_vm13 = vcmp.ne.f32.partialorder %v7027_v40, %v7027_v40  ;;  %vm1786_vm11 = vcmp.ne.f32.partialorder %v3706_v56, %v3706_v56  ;;  %vm1787_vm5 = vcmp.ne.f32.partialorder %v3707_v6, %v3707_v6  ;;  %vm1788_vm12 = vcmp.ne.f32.partialorder %v3708_v43, %v3708_v43 }
 0x184   : > { %v1789_v3 = vsel %vm1781_vm7, 2147483647, %v1773_v32  ;;  %v1790_v17 = vsel %vm1782_vm1, 2147483647, %v1774_v41  ;;  %v1791_v50 = vsel %vm1783_vm15, 2147483647, %v1775_v61  ;;  %v7133_v56 = vsel %vm1704_vm9, %v6947_v8, %v6958_v19 }
 0x185   : > { %v1792_v27 = vsel %vm1784_vm0, 2147483647, %v1776_v30  ;;  %vm1798_vm6 = vcmp.gt.s32.totalorder %v1789_v3, %v6990_v1  ;;  %v7106_v28 = vsel %vm1785_vm13, 2147483647, %v1777_v37  ;;  %v7108_v38 = vsel %vm1786_vm11, 2147483647, %v1778_v14 }
 0x186   : > { %v7110_v21 = vsel %vm1787_vm5, 2147483647, %v1779_v29  ;;  %vm1799_vm3 = vcmp.gt.s32.totalorder %v1790_v17, %v7001_v7  ;;  %v7113_v40 = vsel %vm1788_vm12, 2147483647, %v1780_v33  ;;  %v7116_v60 = vadd.s32 128, %v4178_v47  ;;  %v7189_v19 = vld [vmem:[%s4153_s30 + $0x488] sm:$0xff] }
 0x187   : > { %vm1800_vm7 = vcmp.gt.s32.totalorder %v1791_v50, %v7006_v24  ;;  %vm1801_vm4 = vcmp.gt.s32.totalorder %v1792_v27, %v7011_v58  ;;  %vm1802_vm13 = vcmp.gt.s32.totalorder %v7106_v28, %v7018_v54  ;;  %vm1803_vm8 = vcmp.gt.s32.totalorder %v7108_v38, %v7034_v13 }
 0x188   : > { %vm9834_vm14 = vcmp.gt.s32.totalorder %v7110_v21, %v7041_v49  ;;  %vm9833_vm1 = vcmp.gt.s32.totalorder %v7113_v40, %v7048_v34  ;;  %v7140_v6 = vsel %vm1705_vm10, %v6947_v8, %v6971_v4  ;;  %v7147_v43 = vsel %vm1706_vm2, %v6947_v8, %v6978_v10 }
 0x189   : > { %vm9893_vm9 = vcmp.gt.s32.totalorder %v6943_v36, %v6875_v31  ;;  %v7165_v22 = vsel %vm1798_vm6, %v1789_v3, %v6990_v1  ;;  %v7170_v44 = vsel %vm1799_vm3, %v1790_v17, %v7001_v7  ;;  %v7175_v31 = vsel %vm1800_vm7, %v1791_v50, %v7006_v24  ;;  %v7183_v36 = vld [vmem:[%s4153_s30 + $0x288] sm:$0xff] }
 0x18a   : > { %v7154_v0 = vsel %vm9893_vm9, %v6947_v8, %v6985_v9  ;;  %v7180_v57 = vsel %vm1801_vm4, %v1792_v27, %v7011_v58  ;;  %v7186_v8 = vld [vmem:[%s4153_s30 + $0x388] sm:$0xff]  ;;  %v7196_v4 = vsel %vm1802_vm13, %v7106_v28, %v7018_v54  ;;  %v7203_v10 = vsel %vm1803_vm8, %v7108_v38, %v7034_v13 }
 0x18b   : > { %v7210_v9 = vsel %vm9834_vm14, %v7110_v21, %v7041_v49  ;;  %v7217_v46 = vsel %vm9833_vm1, %v7113_v40, %v7048_v34  ;;  %v7230_v16 = vsel %vm1798_vm6, %v7116_v60, %v7054_v35  ;;  %v7236_v23 = vsel %vm1799_vm3, %v7116_v60, %v7063_v45 }
 0x18c   : > { %v7242_v42 = vsel %vm1800_vm7, %v7116_v60, %v7069_v39  ;;  %v7248_v15 = vsel %vm1801_vm4, %v7116_v60, %v7075_v26  ;;  %v1839_v1 = vshra.s32 %v7157_v55, 31  ;;  %v1840_v35 = vshra.s32 %v7160_v18, 31 }
 0x18d   : > { %v1841_v7 = vshra.s32 %v7183_v36, 31  ;;  %v1842_v45 = vshra.s32 %v7186_v8, 31  ;;  %v1843_v5 = vshra.s32 %v7189_v19, 31  ;;  %v1844_v48 = vshra.s32 %v3714_v20, 31 }
 0x18e   : > { %v1845_v24 = vshra.s32 %v7221_v62, 31  ;;  %v1846_v39 = vshra.s32 %v7224_v25, 31  ;;  %v1847_v11 = vand.u32 2147483647, %v1839_v1  ;;  %v1848_v59 = vand.u32 2147483647, %v1840_v35 }
 0x18f   : > { %v1849_v58 = vand.u32 2147483647, %v1841_v7  ;;  %vm1879_vm10 = vcmp.ne.f32.partialorder %v7157_v55, %v7157_v55  ;;  %v1850_v26 = vand.u32 2147483647, %v1842_v45  ;;  %v1851_v63 = vand.u32 2147483647, %v1843_v5 }
 0x190   : > { %v1852_v2 = vand.u32 2147483647, %v1844_v48  ;;  %vm1880_vm2 = vcmp.ne.f32.partialorder %v7160_v18, %v7160_v18  ;;  %v1853_v12 = vand.u32 2147483647, %v1845_v24  ;;  %v1854_v53 = vand.u32 2147483647, %v1846_v39 }
 0x191   : > { %v1855_v52 = vxor.u32 %v7157_v55, %v1847_v11  ;;  %v1856_v51 = vxor.u32 %v7160_v18, %v1848_v59  ;;  %v1857_v32 = vxor.u32 %v7183_v36, %v1849_v58  ;;  %v1858_v41 = vxor.u32 %v7186_v8, %v1850_v26  ;;  %v7386_v5 = vld [vmem:[%s4153_s30 + $0x390] sm:$0xff] }
 0x192   : > { %v1859_v61 = vxor.u32 %v7189_v19, %v1851_v63  ;;  %v1860_v30 = vxor.u32 %v3714_v20, %v1852_v2  ;;  %v1861_v37 = vxor.u32 %v7221_v62, %v1853_v12  ;;  %v1862_v14 = vxor.u32 %v7224_v25, %v1854_v53  ;;  %v7389_v48 = vld [vmem:[%s4153_s30 + $0x490] sm:$0xff] }
 0x193   : > { %vm1863_vm15 = vcmp.eq.f32.partialorder %v7157_v55, 0.0  ;;  %vm1864_vm0 = vcmp.eq.f32.partialorder %v7160_v18, 0.0  ;;  %vm1865_vm11 = vcmp.eq.f32.partialorder %v7183_v36, 0.0  ;;  %vm1866_vm5 = vcmp.eq.f32.partialorder %v7186_v8, 0.0  ;;  %v7392_v24 = vld [vmem:[%s4153_s30 + $0x590] sm:$0xff] }
 0x194   : > { %vm1867_vm12 = vcmp.eq.f32.partialorder %v7189_v19, 0.0  ;;  %vm1868_vm6 = vcmp.eq.f32.partialorder %v3714_v20, 0.0  ;;  %vm1869_vm3 = vcmp.eq.f32.partialorder %v7221_v62, 0.0  ;;  %vm1870_vm7 = vcmp.eq.f32.partialorder %v7224_v25, 0.0  ;;  %v3723_v26 = vld [vmem:[%s4153_s30 + $0x690] sm:$0xff] }
 0x195   : > { %v1871_v29 = vsel %vm1863_vm15, 0, %v1855_v52  ;;  %v1872_v33 = vsel %vm1864_vm0, 0, %v1856_v51  ;;  %v1873_v3 = vsel %vm1865_vm11, 0, %v1857_v32  ;;  %v1874_v17 = vsel %vm1866_vm5, 0, %v1858_v41  ;;  %v3724_v63 = vld [vmem:[%s4153_s30 + $0x790] sm:$0xff] }
 0x196   : > { %v1875_v50 = vsel %vm1867_vm12, 0, %v1859_v61  ;;  %v1876_v27 = vsel %vm1868_vm6, 0, %v1860_v30  ;;  %v1877_v1 = vsel %vm1869_vm3, 0, %v1861_v37  ;;  %v1878_v35 = vsel %vm1870_vm7, 0, %v1862_v14 }
 0x197   : > { %vm1881_vm4 = vcmp.ne.f32.partialorder %v7183_v36, %v7183_v36  ;;  %vm1882_vm9 = vcmp.ne.f32.partialorder %v7186_v8, %v7186_v8  ;;  %vm1883_vm1 = vcmp.ne.f32.partialorder %v7189_v19, %v7189_v19  ;;  %vm1884_vm14 = vcmp.ne.f32.partialorder %v3714_v20, %v3714_v20 }
 0x198   : > { %vm1885_vm15 = vcmp.ne.f32.partialorder %v7221_v62, %v7221_v62  ;;  %vm1886_vm0 = vcmp.ne.f32.partialorder %v7224_v25, %v7224_v25  ;;  %v1818_v7 = vsel %vm1802_vm13, %v7116_v60, %v7133_v56  ;;  %v1887_v36 = vsel %vm1879_vm10, 2147483647, %v1871_v29 }
 0x199   : > { %v1888_v8 = vsel %vm1880_vm2, 2147483647, %v1872_v33  ;;  %v1889_v19 = vsel %vm1881_vm4, 2147483647, %v1873_v3  ;;  %v1890_v20 = vsel %vm1882_vm9, 2147483647, %v1874_v17  ;;  %vm1896_vm11 = vcmp.gt.s32.totalorder %v1887_v36, %v7165_v22 }
 0x19a   : > { %v1891_v62 = vsel %vm1883_vm1, 2147483647, %v1875_v50  ;;  %v7296_v45 = vsel %vm1884_vm14, 2147483647, %v1876_v27  ;;  %v7299_v25 = vsel %vm1885_vm15, 2147483647, %v1877_v1  ;;  %vm1897_vm13 = vcmp.gt.s32.totalorder %v1888_v8, %v7170_v44 }
 0x19b   : > { %v7301_v54 = vsel %vm1886_vm0, 2147483647, %v1878_v35  ;;  %v7304_v28 = vadd.s32 136, %v4178_v47  ;;  %vm1898_vm10 = vcmp.gt.s32.totalorder %v1889_v19, %v7175_v31  ;;  %vm1899_vm1 = vcmp.gt.s32.totalorder %v1890_v20, %v7180_v57 }
 0x19c   : > { %vm1900_vm14 = vcmp.gt.s32.totalorder %v1891_v62, %v7196_v4  ;;  %vm1901_vm2 = vcmp.gt.s32.totalorder %v7296_v45, %v7203_v10  ;;  %v7317_v56 = vsel %vm1803_vm8, %v7116_v60, %v7140_v6  ;;  %vm9894_vm5 = vcmp.gt.s32.totalorder %v7110_v21, %v7041_v49 }
 0x19d   : > { %v7324_v55 = vsel %vm9894_vm5, %v7116_v60, %v7147_v43  ;;  %vm1902_vm12 = vcmp.gt.s32.totalorder %v7299_v25, %v7210_v9  ;;  %vm9835_vm6 = vcmp.gt.s32.totalorder %v7301_v54, %v7217_v46  ;;  %vm9895_vm8 = vcmp.gt.s32.totalorder %v7113_v40, %v7048_v34  ;;  %v7353_v34 = vld [vmem:[%s4153_s30 + $0x90] sm:$0xff] }
 0x19e   : > { %v7335_v13 = vsel %vm9895_vm8, %v7116_v60, %v7154_v0  ;;  %v7340_v49 = vsel %vm1896_vm11, %v1887_v36, %v7165_v22  ;;  %v7345_v38 = vsel %vm1897_vm13, %v1888_v8, %v7170_v44  ;;  %v7350_v21 = vsel %vm1898_vm10, %v1889_v19, %v7175_v31  ;;  %v7356_v40 = vld [vmem:[%s4153_s30 + $0x190] sm:$0xff] }
 0x19f   : > { %v7359_v60 = vld [vmem:[%s4153_s30 + $0x290] sm:$0xff]  ;;  %v7364_v6 = vsel %vm1899_vm1, %v1890_v20, %v7180_v57  ;;  %v7369_v43 = vsel %vm1900_vm14, %v1891_v62, %v7196_v4  ;;  %v7376_v0 = vsel %vm1901_vm2, %v7296_v45, %v7203_v10  ;;  %v7383_v18 = vsel %vm1902_vm12, %v7299_v25, %v7210_v9 }
 0x1a0   : > { %v7399_v39 = vsel %vm9835_vm6, %v7301_v54, %v7217_v46  ;;  %v7405_v11 = vsel %vm1896_vm11, %v7304_v28, %v7230_v16  ;;  %v7411_v59 = vsel %vm1897_vm13, %v7304_v28, %v7236_v23  ;;  %v7417_v58 = vsel %vm1898_vm10, %v7304_v28, %v7242_v42 }
 0x1a1   : > { %v7425_v22 = vsel %vm1899_vm1, %v7304_v28, %v7248_v15  ;;  %v7430_v44 = vsel %vm1900_vm14, %v7304_v28, %v1818_v7  ;;  %v1937_v16 = vshra.s32 %v7353_v34, 31  ;;  %v1938_v23 = vshra.s32 %v7356_v40, 31 }
 0x1a2   : > { %v1939_v31 = vshra.s32 %v7359_v60, 31  ;;  %v1940_v42 = vshra.s32 %v7386_v5, 31  ;;  %v1941_v2 = vshra.s32 %v7389_v48, 31  ;;  %v1942_v12 = vshra.s32 %v7392_v24, 31 }
 0x1a3   : > { %vm1977_vm3 = vcmp.ne.f32.partialorder %v7353_v34, %v7353_v34  ;;  %v1943_v57 = vshra.s32 %v3723_v26, 31  ;;  %v1944_v15 = vshra.s32 %v3724_v63, 31  ;;  %v1945_v4 = vand.u32 2147483647, %v1937_v16 }
 0x1a4   : > { %v1946_v53 = vand.u32 2147483647, %v1938_v23  ;;  %v1947_v52 = vand.u32 2147483647, %v1939_v31  ;;  %v1948_v51 = vand.u32 2147483647, %v1940_v42  ;;  %vm1978_vm7 = vcmp.ne.f32.partialorder %v7356_v40, %v7356_v40 }
 0x1a5   : > { %v1949_v32 = vand.u32 2147483647, %v1941_v2  ;;  %v1950_v41 = vand.u32 2147483647, %v1942_v12  ;;  %v1951_v61 = vand.u32 2147483647, %v1943_v57  ;;  %v1953_v37 = vxor.u32 %v7353_v34, %v1945_v4 }
 0x1a6   : > { %v1952_v30 = vand.u32 2147483647, %v1944_v15  ;;  %v1954_v14 = vxor.u32 %v7356_v40, %v1946_v53  ;;  %v1955_v29 = vxor.u32 %v7359_v60, %v1947_v52  ;;  %v1956_v33 = vxor.u32 %v7386_v5, %v1948_v51  ;;  %v7558_v2 = vld [vmem:[%s4153_s30 + $0x398] sm:$0xff] }
 0x1a7   : > { %v1957_v3 = vxor.u32 %v7389_v48, %v1949_v32  ;;  %v1958_v17 = vxor.u32 %v7392_v24, %v1950_v41  ;;  %v1959_v50 = vxor.u32 %v3723_v26, %v1951_v61  ;;  %vm1961_vm4 = vcmp.eq.f32.partialorder %v7353_v34, 0.0  ;;  %v7561_v12 = vld [vmem:[%s4153_s30 + $0x498] sm:$0xff] }
 0x1a8   : > { %v1960_v27 = vxor.u32 %v3724_v63, %v1952_v30  ;;  %vm1962_vm9 = vcmp.eq.f32.partialorder %v7356_v40, 0.0  ;;  %vm1963_vm15 = vcmp.eq.f32.partialorder %v7359_v60, 0.0  ;;  %vm1964_vm0 = vcmp.eq.f32.partialorder %v7386_v5, 0.0  ;;  %v7564_v57 = vld [vmem:[%s4153_s30 + $0x598] sm:$0xff] }
 0x1a9   : > { %vm1965_vm11 = vcmp.eq.f32.partialorder %v7389_v48, 0.0  ;;  %vm1966_vm13 = vcmp.eq.f32.partialorder %v7392_v24, 0.0  ;;  %vm1967_vm10 = vcmp.eq.f32.partialorder %v3723_v26, 0.0  ;;  %vm1968_vm1 = vcmp.eq.f32.partialorder %v3724_v63, 0.0  ;;  %v3731_v51 = vld [vmem:[%s4153_s30 + $0x698] sm:$0xff] }
 0x1aa   : > { %v1969_v1 = vsel %vm1961_vm4, 0, %v1953_v37  ;;  %v1970_v35 = vsel %vm1962_vm9, 0, %v1954_v14  ;;  %v1971_v7 = vsel %vm1963_vm15, 0, %v1955_v29  ;;  %v1972_v36 = vsel %vm1964_vm0, 0, %v1956_v33  ;;  %v3732_v32 = vld [vmem:[%s4153_s30 + $0x798] sm:$0xff] }
 0x1ab   : > { %v1973_v8 = vsel %vm1965_vm11, 0, %v1957_v3  ;;  %v1974_v19 = vsel %vm1966_vm13, 0, %v1958_v17  ;;  %v1975_v20 = vsel %vm1967_vm10, 0, %v1959_v50  ;;  %v1976_v62 = vsel %vm1968_vm1, 0, %v1960_v27 }
 0x1ac   : > { %vm1979_vm14 = vcmp.ne.f32.partialorder %v7359_v60, %v7359_v60  ;;  %vm1980_vm5 = vcmp.ne.f32.partialorder %v7386_v5, %v7386_v5  ;;  %vm1981_vm8 = vcmp.ne.f32.partialorder %v7389_v48, %v7389_v48  ;;  %vm1982_vm6 = vcmp.ne.f32.partialorder %v7392_v24, %v7392_v24 }
 0x1ad   : > { %vm1983_vm4 = vcmp.ne.f32.partialorder %v3723_v26, %v3723_v26  ;;  %vm1984_vm9 = vcmp.ne.f32.partialorder %v3724_v63, %v3724_v63  ;;  %v1985_v16 = vsel %vm1977_vm3, 2147483647, %v1969_v1  ;;  %v1986_v23 = vsel %vm1978_vm7, 2147483647, %v1970_v35 }
 0x1ae   : > { %v1987_v60 = vsel %vm1979_vm14, 2147483647, %v1971_v7  ;;  %v1988_v31 = vsel %vm1980_vm5, 2147483647, %v1972_v36  ;;  %v1989_v42 = vsel %vm1981_vm8, 2147483647, %v1973_v8  ;;  %vm1994_vm15 = vcmp.gt.s32.totalorder %v1985_v16, %v7340_v49 }
 0x1af   : > { %v7468_v5 = vsel %vm1982_vm6, 2147483647, %v1974_v19  ;;  %v7471_v48 = vsel %vm1983_vm4, 2147483647, %v1975_v20  ;;  %v7473_v24 = vsel %vm1984_vm9, 2147483647, %v1976_v62  ;;  %vm1995_vm3 = vcmp.gt.s32.totalorder %v1986_v23, %v7345_v38 }
 0x1b0   : > { %v7476_v34 = vadd.s32 144, %v4178_v47  ;;  %vm1996_vm7 = vcmp.gt.s32.totalorder %v1987_v60, %v7350_v21  ;;  %vm1997_vm0 = vcmp.gt.s32.totalorder %v1988_v31, %v7364_v6  ;;  %vm1998_vm6 = vcmp.gt.s32.totalorder %v1989_v42, %v7369_v43 }
 0x1b1   : > { %vm1999_vm11 = vcmp.gt.s32.totalorder %v7468_v5, %v7376_v0  ;;  %v7489_v40 = vsel %vm1901_vm2, %v7304_v28, %v7317_v56  ;;  %v7496_v26 = vsel %vm1902_vm12, %v7304_v28, %v7324_v55  ;;  %vm2000_vm13 = vcmp.gt.s32.totalorder %v7471_v48, %v7383_v18 }
 0x1b2   : > { %vm2001_vm10 = vcmp.gt.s32.totalorder %v7473_v24, %v7399_v39  ;;  %vm9896_vm2 = vcmp.gt.s32.totalorder %v7301_v54, %v7217_v46  ;;  %v7512_v9 = vsel %vm1994_vm15, %v1985_v16, %v7340_v49  ;;  %v7517_v45 = vsel %vm1995_vm3, %v1986_v23, %v7345_v38  ;;  %v7525_v46 = vld [vmem:[%s4153_s30 + $0x98] sm:$0xff] }
 0x1b3   : > { %v7507_v10 = vsel %vm9896_vm2, %v7304_v28, %v7335_v13  ;;  %v7522_v25 = vsel %vm1996_vm7, %v1987_v60, %v7350_v21  ;;  %v7528_v54 = vld [vmem:[%s4153_s30 + $0x198] sm:$0xff]  ;;  %v7536_v56 = vsel %vm1997_vm0, %v1988_v31, %v7364_v6  ;;  %v7541_v55 = vsel %vm1998_vm6, %v1989_v42, %v7369_v43 }
 0x1b4   : > { %v7531_v28 = vld [vmem:[%s4153_s30 + $0x298] sm:$0xff]  ;;  %v7548_v13 = vsel %vm1999_vm11, %v7468_v5, %v7376_v0  ;;  %v7555_v63 = vsel %vm2000_vm13, %v7471_v48, %v7383_v18  ;;  %v7571_v15 = vsel %vm2001_vm10, %v7473_v24, %v7399_v39  ;;  %v7577_v4 = vsel %vm1994_vm15, %v7476_v34, %v7405_v11  ;;  %v7690_v48 = vld [vmem:[%s4153_s30 + $0xa0] sm:$0xff] }
 0x1b5   : > { %v7583_v53 = vsel %vm1995_vm3, %v7476_v34, %v7411_v59  ;;  %v7589_v52 = vsel %vm1996_vm7, %v7476_v34, %v7417_v58  ;;  %v7597_v49 = vsel %vm1997_vm0, %v7476_v34, %v7425_v22  ;;  %v7603_v38 = vsel %vm1998_vm6, %v7476_v34, %v7430_v44 }
 0x1b6   : > { %v2035_v11 = vshra.s32 %v7525_v46, 31  ;;  %v2036_v21 = vshra.s32 %v7528_v54, 31  ;;  %v2037_v59 = vshra.s32 %v7531_v28, 31  ;;  %v2038_v58 = vshra.s32 %v7558_v2, 31 }
 0x1b7   : > { %v2039_v41 = vshra.s32 %v7561_v12, 31  ;;  %v2040_v6 = vshra.s32 %v7564_v57, 31  ;;  %v2041_v22 = vshra.s32 %v3731_v51, 31  ;;  %v2042_v61 = vshra.s32 %v3732_v32, 31 }
 0x1b8   : > { %v2043_v30 = vand.u32 2147483647, %v2035_v11  ;;  %v2044_v37 = vand.u32 2147483647, %v2036_v21  ;;  %v2045_v14 = vand.u32 2147483647, %v2037_v59  ;;  %vm2075_vm12 = vcmp.ne.f32.partialorder %v7525_v46, %v7525_v46 }
 0x1b9   : > { %v2046_v43 = vand.u32 2147483647, %v2038_v58  ;;  %v2047_v44 = vand.u32 2147483647, %v2039_v41  ;;  %v2048_v29 = vand.u32 2147483647, %v2040_v6  ;;  %vm2076_vm7 = vcmp.ne.f32.partialorder %v7528_v54, %v7528_v54 }
 0x1ba   : > { %v2049_v33 = vand.u32 2147483647, %v2041_v22  ;;  %v2050_v3 = vand.u32 2147483647, %v2042_v61  ;;  %v2051_v17 = vxor.u32 %v7525_v46, %v2043_v30  ;;  %v2052_v50 = vxor.u32 %v7528_v54, %v2044_v37  ;;  %v7724_v41 = vld [vmem:[%s4153_s30 + $0x4a0] sm:$0xff] }
 0x1bb   : > { %v2053_v27 = vxor.u32 %v7531_v28, %v2045_v14  ;;  %v2054_v1 = vxor.u32 %v7558_v2, %v2046_v43  ;;  %v2055_v35 = vxor.u32 %v7561_v12, %v2047_v44  ;;  %v2056_v7 = vxor.u32 %v7564_v57, %v2048_v29  ;;  %v3738_v37 = vld [vmem:[%s4153_s30 + $0x5a0] sm:$0xff] }
 0x1bc   : > { %v2057_v36 = vxor.u32 %v3731_v51, %v2049_v33  ;;  %v2058_v8 = vxor.u32 %v3732_v32, %v2050_v3  ;;  %vm2059_vm1 = vcmp.eq.f32.partialorder %v7525_v46, 0.0  ;;  %vm2060_vm14 = vcmp.eq.f32.partialorder %v7528_v54, 0.0  ;;  %v3739_v14 = vld [vmem:[%s4153_s30 + $0x6a0] sm:$0xff] }
 0x1bd   : > { %vm2061_vm5 = vcmp.eq.f32.partialorder %v7531_v28, 0.0  ;;  %vm2062_vm8 = vcmp.eq.f32.partialorder %v7558_v2, 0.0  ;;  %vm2063_vm4 = vcmp.eq.f32.partialorder %v7561_v12, 0.0  ;;  %vm2064_vm9 = vcmp.eq.f32.partialorder %v7564_v57, 0.0  ;;  %v3740_v43 = vld [vmem:[%s4153_s30 + $0x7a0] sm:$0xff] }
 0x1be   : > { %vm2065_vm15 = vcmp.eq.f32.partialorder %v3731_v51, 0.0  ;;  %vm2066_vm3 = vcmp.eq.f32.partialorder %v3732_v32, 0.0  ;;  %v2067_v19 = vsel %vm2059_vm1, 0, %v2051_v17  ;;  %v2068_v20 = vsel %vm2060_vm14, 0, %v2052_v50 }
 0x1bf   : > { %v2069_v62 = vsel %vm2061_vm5, 0, %v2053_v27  ;;  %v2070_v16 = vsel %vm2062_vm8, 0, %v2054_v1  ;;  %v2071_v23 = vsel %vm2063_vm4, 0, %v2055_v35  ;;  %v2072_v60 = vsel %vm2064_vm9, 0, %v2056_v7 }
 0x1c0   : > { %v2073_v31 = vsel %vm2065_vm15, 0, %v2057_v36  ;;  %v2074_v42 = vsel %vm2066_vm3, 0, %v2058_v8  ;;  %vm2077_vm0 = vcmp.ne.f32.partialorder %v7531_v28, %v7531_v28  ;;  %vm2078_vm6 = vcmp.ne.f32.partialorder %v7558_v2, %v7558_v2 }
 0x1c1   : > { %vm2079_vm2 = vcmp.ne.f32.partialorder %v7561_v12, %v7561_v12  ;;  %vm2080_vm1 = vcmp.ne.f32.partialorder %v7564_v57, %v7564_v57  ;;  %vm2081_vm14 = vcmp.ne.f32.partialorder %v3731_v51, %v3731_v51  ;;  %vm2082_vm5 = vcmp.ne.f32.partialorder %v3732_v32, %v3732_v32  ;;  %v7721_v32 = vld [vmem:[%s4153_s30 + $0x3a0] sm:$0xff] }
 0x1c2   : > { %v2083_v11 = vsel %vm2075_vm12, 2147483647, %v2067_v19  ;;  %v2084_v21 = vsel %vm2076_vm7, 2147483647, %v2068_v20  ;;  %v2085_v54 = vsel %vm2077_vm0, 2147483647, %v2069_v62  ;;  %v7657_v46 = vsel %vm1999_vm11, %v7476_v34, %v7489_v40 }
 0x1c3   : > { %v2086_v59 = vsel %vm2078_vm6, 2147483647, %v2070_v16  ;;  %v2087_v58 = vsel %vm2079_vm2, 2147483647, %v2071_v23  ;;  %vm2092_vm8 = vcmp.gt.s32.totalorder %v2083_v11, %v7512_v9  ;;  %v7639_v28 = vsel %vm2080_vm1, 2147483647, %v2072_v60 }
 0x1c4   : > { %v7641_v2 = vsel %vm2081_vm14, 2147483647, %v2073_v31  ;;  %v7643_v12 = vsel %vm2082_vm5, 2147483647, %v2074_v42  ;;  %vm2093_vm4 = vcmp.gt.s32.totalorder %v2084_v21, %v7517_v45  ;;  %v7647_v57 = vadd.s32 152, %v4178_v47  ;;  %v7693_v40 = vld [vmem:[%s4153_s30 + $0x1a0] sm:$0xff] }
 0x1c5   : > { %vm2094_vm12 = vcmp.gt.s32.totalorder %v2085_v54, %v7522_v25  ;;  %vm2095_vm9 = vcmp.gt.s32.totalorder %v2086_v59, %v7536_v56  ;;  %vm2096_vm15 = vcmp.gt.s32.totalorder %v2087_v58, %v7541_v55  ;;  %vm2097_vm3 = vcmp.gt.s32.totalorder %v7639_v28, %v7548_v13 }
 0x1c6   : > { %vm2098_vm7 = vcmp.gt.s32.totalorder %v7641_v2, %v7555_v63  ;;  %vm2099_vm0 = vcmp.gt.s32.totalorder %v7643_v12, %v7571_v15  ;;  %v7670_v51 = vsel %vm2000_vm13, %v7476_v34, %v7496_v26  ;;  %v7677_v0 = vsel %vm2001_vm10, %v7476_v34, %v7507_v10  ;;  %v7718_v10 = vld [vmem:[%s4153_s30 + $0x2a0] sm:$0xff] }
 0x1c7   : > { %v7682_v5 = vsel %vm2092_vm8, %v2083_v11, %v7512_v9  ;;  %v7687_v18 = vsel %vm2093_vm4, %v2084_v21, %v7517_v45  ;;  %v7698_v39 = vsel %vm2094_vm12, %v2085_v54, %v7522_v25  ;;  %v7703_v24 = vsel %vm2095_vm9, %v2086_v59, %v7536_v56 }
 0x1c8   : > { %v7708_v34 = vsel %vm2096_vm15, %v2087_v58, %v7541_v55  ;;  %v7715_v26 = vsel %vm2097_vm3, %v7639_v28, %v7548_v13  ;;  %v7731_v6 = vsel %vm2098_vm7, %v7641_v2, %v7555_v63  ;;  %v7738_v22 = vsel %vm2099_vm0, %v7643_v12, %v7571_v15  ;;  %v7848_v28 = vld [vmem:[%s4153_s30 + $0xa8] sm:$0xff] }
 0x1c9   : > { %v7744_v61 = vsel %vm2092_vm8, %v7647_v57, %v7577_v4  ;;  %v7750_v30 = vsel %vm2093_vm4, %v7647_v57, %v7583_v53  ;;  %v7759_v44 = vsel %vm2094_vm12, %v7647_v57, %v7589_v52  ;;  %v7765_v9 = vsel %vm2095_vm9, %v7647_v57, %v7597_v49  ;;  %v7851_v63 = vld [vmem:[%s4153_s30 + $0x1a8] sm:$0xff] }
 0x1ca   : > { %v7771_v45 = vsel %vm2096_vm15, %v7647_v57, %v7603_v38  ;;  %v2133_v4 = vshra.s32 %v7690_v48, 31  ;;  %v2134_v53 = vshra.s32 %v7693_v40, 31  ;;  %v2135_v25 = vshra.s32 %v7718_v10, 31 }
 0x1cb   : > { %v2136_v52 = vshra.s32 %v7721_v32, 31  ;;  %v2137_v29 = vshra.s32 %v7724_v41, 31  ;;  %v2138_v33 = vshra.s32 %v3738_v37, 31  ;;  %v2139_v56 = vshra.s32 %v3739_v14, 31 }
 0x1cc   : > { %v2140_v49 = vshra.s32 %v3740_v43, 31  ;;  %v2141_v3 = vand.u32 2147483647, %v2133_v4  ;;  %v2142_v17 = vand.u32 2147483647, %v2134_v53  ;;  %vm2173_vm11 = vcmp.ne.f32.partialorder %v7690_v48, %v7690_v48 }
 0x1cd   : > { %v2143_v50 = vand.u32 2147483647, %v2135_v25  ;;  %v2144_v27 = vand.u32 2147483647, %v2136_v52  ;;  %v2145_v55 = vand.u32 2147483647, %v2137_v29  ;;  %vm2174_vm4 = vcmp.ne.f32.partialorder %v7693_v40, %v7693_v40 }
 0x1ce   : > { %v2146_v38 = vand.u32 2147483647, %v2138_v33  ;;  %v2147_v1 = vand.u32 2147483647, %v2139_v56  ;;  %v2149_v35 = vxor.u32 %v7690_v48, %v2141_v3  ;;  %v2148_v7 = vand.u32 2147483647, %v2140_v49 }
 0x1cf   : > { %v2150_v36 = vxor.u32 %v7693_v40, %v2142_v17  ;;  %v2151_v8 = vxor.u32 %v7718_v10, %v2143_v50  ;;  %v2152_v19 = vxor.u32 %v7721_v32, %v2144_v27  ;;  %v2153_v20 = vxor.u32 %v7724_v41, %v2145_v55  ;;  %v3746_v3 = vld [vmem:[%s4153_s30 + $0x5a8] sm:$0xff] }
 0x1d0   : > { %v2154_v62 = vxor.u32 %v3738_v37, %v2146_v38  ;;  %v2155_v16 = vxor.u32 %v3739_v14, %v2147_v1  ;;  %vm2157_vm13 = vcmp.eq.f32.partialorder %v7690_v48, 0.0  ;;  %v2156_v23 = vxor.u32 %v3740_v43, %v2148_v7  ;;  %v7911_v17 = vld [vmem:[%s4153_s30 + $0x6a8] sm:$0xff] }
 0x1d1   : > { %vm2158_vm10 = vcmp.eq.f32.partialorder %v7693_v40, 0.0  ;;  %vm2159_vm6 = vcmp.eq.f32.partialorder %v7718_v10, 0.0  ;;  %vm2160_vm2 = vcmp.eq.f32.partialorder %v7721_v32, 0.0  ;;  %vm2161_vm1 = vcmp.eq.f32.partialorder %v7724_v41, 0.0  ;;  %v7914_v50 = vld [vmem:[%s4153_s30 + $0x7a8] sm:$0xff] }
 0x1d2   : > { %vm2162_vm14 = vcmp.eq.f32.partialorder %v3738_v37, 0.0  ;;  %vm2163_vm5 = vcmp.eq.f32.partialorder %v3739_v14, 0.0  ;;  %vm2164_vm8 = vcmp.eq.f32.partialorder %v3740_v43, 0.0  ;;  %v2165_v60 = vsel %vm2157_vm13, 0, %v2149_v35 }
 0x1d3   : > { %v2166_v31 = vsel %vm2158_vm10, 0, %v2150_v36  ;;  %v2167_v42 = vsel %vm2159_vm6, 0, %v2151_v8  ;;  %v2168_v11 = vsel %vm2160_vm2, 0, %v2152_v19  ;;  %v2169_v21 = vsel %vm2161_vm1, 0, %v2153_v20 }
 0x1d4   : > { %v2170_v54 = vsel %vm2162_vm14, 0, %v2154_v62  ;;  %v2171_v59 = vsel %vm2163_vm5, 0, %v2155_v16  ;;  %v2172_v58 = vsel %vm2164_vm8, 0, %v2156_v23  ;;  %vm2175_vm12 = vcmp.ne.f32.partialorder %v7718_v10, %v7718_v10 }
 0x1d5   : > { %vm2176_vm9 = vcmp.ne.f32.partialorder %v7721_v32, %v7721_v32  ;;  %vm2177_vm15 = vcmp.ne.f32.partialorder %v7724_v41, %v7724_v41  ;;  %vm2178_vm13 = vcmp.ne.f32.partialorder %v3738_v37, %v3738_v37  ;;  %vm2179_vm10 = vcmp.ne.f32.partialorder %v3739_v14, %v3739_v14 }
 0x1d6   : > { %vm2180_vm6 = vcmp.ne.f32.partialorder %v3740_v43, %v3740_v43  ;;  %v2181_v4 = vsel %vm2173_vm11, 2147483647, %v2165_v60  ;;  %v2182_v53 = vsel %vm2174_vm4, 2147483647, %v2166_v31  ;;  %v2183_v25 = vsel %vm2175_vm12, 2147483647, %v2167_v42 }
 0x1d7   : > { %v2184_v52 = vsel %vm2176_vm9, 2147483647, %v2168_v11  ;;  %vm2190_vm2 = vcmp.gt.s32.totalorder %v2181_v4, %v7682_v5  ;;  %v2185_v40 = vsel %vm2177_vm15, 2147483647, %v2169_v21  ;;  %v7802_v10 = vsel %vm2178_vm13, 2147483647, %v2170_v54 }
 0x1d8   : > { %v7804_v32 = vsel %vm2179_vm10, 2147483647, %v2171_v59  ;;  %vm2191_vm1 = vcmp.gt.s32.totalorder %v2182_v53, %v7687_v18  ;;  %v7807_v41 = vsel %vm2180_vm6, 2147483647, %v2172_v58  ;;  %v7810_v37 = vadd.s32 160, %v4178_v47 }
 0x1d9   : > { %vm2192_vm11 = vcmp.gt.s32.totalorder %v2183_v25, %v7698_v39  ;;  %vm2193_vm14 = vcmp.gt.s32.totalorder %v2184_v52, %v7703_v24  ;;  %vm2194_vm5 = vcmp.gt.s32.totalorder %v2185_v40, %v7708_v34  ;;  %vm2195_vm8 = vcmp.gt.s32.totalorder %v7802_v10, %v7715_v26 }
 0x1da   : > { %vm2196_vm4 = vcmp.gt.s32.totalorder %v7804_v32, %v7731_v6  ;;  %vm9836_vm12 = vcmp.gt.s32.totalorder %v7807_v41, %v7738_v22  ;;  %v7826_v48 = vsel %vm2097_vm3, %v7647_v57, %v7657_v46  ;;  %v7833_v14 = vsel %vm2098_vm7, %v7647_v57, %v7670_v51  ;;  %v7874_v46 = vld [vmem:[%s4153_s30 + $0x2a8] sm:$0xff] }
 0x1db   : > { %v7840_v43 = vsel %vm2099_vm0, %v7647_v57, %v7677_v0  ;;  %v7845_v13 = vsel %vm2190_vm2, %v2181_v4, %v7682_v5  ;;  %v7856_v2 = vsel %vm2191_vm1, %v2182_v53, %v7687_v18  ;;  %v7861_v15 = vsel %vm2192_vm11, %v2183_v25, %v7698_v39  ;;  %v7877_v51 = vld [vmem:[%s4153_s30 + $0x3a8] sm:$0xff] }
 0x1dc   : > { %v7866_v12 = vsel %vm2193_vm14, %v2184_v52, %v7703_v24  ;;  %v7871_v57 = vsel %vm2194_vm5, %v2185_v40, %v7708_v34  ;;  %v7880_v0 = vld [vmem:[%s4153_s30 + $0x4a8] sm:$0xff]  ;;  %v7887_v29 = vsel %vm2195_vm8, %v7802_v10, %v7715_v26  ;;  %v7894_v33 = vsel %vm2196_vm4, %v7804_v32, %v7731_v6 }
 0x1dd   : > { %v7901_v56 = vsel %vm9836_vm12, %v7807_v41, %v7738_v22  ;;  %v7907_v49 = vsel %vm2190_vm2, %v7810_v37, %v7744_v61  ;;  %v7920_v27 = vsel %vm2191_vm1, %v7810_v37, %v7750_v30  ;;  %v7926_v55 = vsel %vm2192_vm11, %v7810_v37, %v7759_v44 }
 0x1de   : > { %v7932_v5 = vsel %vm2193_vm14, %v7810_v37, %v7765_v9  ;;  %v7938_v61 = vsel %vm2194_vm5, %v7810_v37, %v7771_v45  ;;  %v2231_v18 = vshra.s32 %v7848_v28, 31  ;;  %v2232_v30 = vshra.s32 %v7851_v63, 31 }
 0x1df   : > { %v2233_v39 = vshra.s32 %v7874_v46, 31  ;;  %v2234_v44 = vshra.s32 %v7877_v51, 31  ;;  %v2235_v38 = vshra.s32 %v7880_v0, 31  ;;  %v2236_v1 = vshra.s32 %v3746_v3, 31 }
 0x1e0   : > { %v2237_v24 = vshra.s32 %v7911_v17, 31  ;;  %v2238_v9 = vshra.s32 %v7914_v50, 31  ;;  %v2239_v35 = vand.u32 2147483647, %v2231_v18  ;;  %v2240_v7 = vand.u32 2147483647, %v2232_v30 }
 0x1e1   : > { %v2241_v34 = vand.u32 2147483647, %v2233_v39  ;;  %vm2271_vm3 = vcmp.ne.f32.partialorder %v7848_v28, %v7848_v28  ;;  %v2242_v45 = vand.u32 2147483647, %v2234_v44  ;;  %v2243_v36 = vand.u32 2147483647, %v2235_v38 }
 0x1e2   : > { %v2244_v8 = vand.u32 2147483647, %v2236_v1  ;;  %vm2272_vm7 = vcmp.ne.f32.partialorder %v7851_v63, %v7851_v63  ;;  %v2245_v19 = vand.u32 2147483647, %v2237_v24  ;;  %v2246_v20 = vand.u32 2147483647, %v2238_v9 }
 0x1e3   : > { %v2247_v62 = vxor.u32 %v7848_v28, %v2239_v35  ;;  %v2248_v16 = vxor.u32 %v7851_v63, %v2240_v7  ;;  %v2249_v23 = vxor.u32 %v7874_v46, %v2241_v34  ;;  %v2250_v60 = vxor.u32 %v7877_v51, %v2242_v45  ;;  %v8071_v1 = vld [vmem:[%s4153_s30 + $0x3b0] sm:$0xff] }
 0x1e4   : > { %v2251_v31 = vxor.u32 %v7880_v0, %v2243_v36  ;;  %v2252_v42 = vxor.u32 %v3746_v3, %v2244_v8  ;;  %v2253_v11 = vxor.u32 %v7911_v17, %v2245_v19  ;;  %v2254_v21 = vxor.u32 %v7914_v50, %v2246_v20  ;;  %v8074_v24 = vld [vmem:[%s4153_s30 + $0x4b0] sm:$0xff] }
 0x1e5   : > { %vm2255_vm0 = vcmp.eq.f32.partialorder %v7848_v28, 0.0  ;;  %vm2256_vm9 = vcmp.eq.f32.partialorder %v7851_v63, 0.0  ;;  %vm2257_vm15 = vcmp.eq.f32.partialorder %v7874_v46, 0.0  ;;  %vm2258_vm13 = vcmp.eq.f32.partialorder %v7877_v51, 0.0  ;;  %v8077_v9 = vld [vmem:[%s4153_s30 + $0x5b0] sm:$0xff] }
 0x1e6   : > { %vm2259_vm10 = vcmp.eq.f32.partialorder %v7880_v0, 0.0  ;;  %vm2260_vm6 = vcmp.eq.f32.partialorder %v3746_v3, 0.0  ;;  %vm2261_vm2 = vcmp.eq.f32.partialorder %v7911_v17, 0.0  ;;  %vm2262_vm1 = vcmp.eq.f32.partialorder %v7914_v50, 0.0 }
 0x1e7   : > { %v2263_v54 = vsel %vm2255_vm0, 0, %v2247_v62  ;;  %v2264_v59 = vsel %vm2256_vm9, 0, %v2248_v16  ;;  %v2265_v58 = vsel %vm2257_vm15, 0, %v2249_v23  ;;  %v2266_v4 = vsel %vm2258_vm13, 0, %v2250_v60 }
 0x1e8   : > { %v2267_v53 = vsel %vm2259_vm10, 0, %v2251_v31  ;;  %v2268_v25 = vsel %vm2260_vm6, 0, %v2252_v42  ;;  %v2269_v52 = vsel %vm2261_vm2, 0, %v2253_v11  ;;  %v2270_v40 = vsel %vm2262_vm1, 0, %v2254_v21 }
 0x1e9   : > { %vm2273_vm11 = vcmp.ne.f32.partialorder %v7874_v46, %v7874_v46  ;;  %vm2274_vm14 = vcmp.ne.f32.partialorder %v7877_v51, %v7877_v51  ;;  %vm2275_vm5 = vcmp.ne.f32.partialorder %v7880_v0, %v7880_v0  ;;  %vm2276_vm12 = vcmp.ne.f32.partialorder %v3746_v3, %v3746_v3 }
 0x1ea   : > { %vm2277_vm0 = vcmp.ne.f32.partialorder %v7911_v17, %v7911_v17  ;;  %vm2278_vm9 = vcmp.ne.f32.partialorder %v7914_v50, %v7914_v50  ;;  %v2211_v18 = vsel %vm2195_vm8, %v7810_v37, %v7826_v48  ;;  %v2279_v46 = vsel %vm2271_vm3, 2147483647, %v2263_v54 }
 0x1eb   : > { %v2280_v51 = vsel %vm2272_vm7, 2147483647, %v2264_v59  ;;  %v2281_v0 = vsel %vm2273_vm11, 2147483647, %v2265_v58  ;;  %v2282_v3 = vsel %vm2274_vm14, 2147483647, %v2266_v4  ;;  %vm2288_vm15 = vcmp.gt.s32.totalorder %v2279_v46, %v7845_v13 }
 0x1ec   : > { %v2283_v17 = vsel %vm2275_vm5, 2147483647, %v2267_v53  ;;  %v2284_v30 = vsel %vm2276_vm12, 2147483647, %v2268_v25  ;;  %v7987_v50 = vsel %vm2277_vm0, 2147483647, %v2269_v52  ;;  %vm2289_vm8 = vcmp.gt.s32.totalorder %v2280_v51, %v7856_v2 }
 0x1ed   : > { %v7989_v39 = vsel %vm2278_vm9, 2147483647, %v2270_v40  ;;  %v7992_v26 = vadd.s32 168, %v4178_v47  ;;  %vm2290_vm3 = vcmp.gt.s32.totalorder %v2281_v0, %v7861_v15  ;;  %vm2291_vm7 = vcmp.gt.s32.totalorder %v2282_v3, %v7866_v12 }
 0x1ee   : > { %vm2292_vm12 = vcmp.gt.s32.totalorder %v2283_v17, %v7871_v57  ;;  %vm2293_vm13 = vcmp.gt.s32.totalorder %v2284_v30, %v7887_v29  ;;  %v8004_v10 = vsel %vm2196_vm4, %v7810_v37, %v7833_v14  ;;  %vm9897_vm10 = vcmp.gt.s32.totalorder %v7807_v41, %v7738_v22  ;;  %v8041_v14 = vld [vmem:[%s4153_s30 + $0x1b0] sm:$0xff] }
 0x1ef   : > { %v8011_v48 = vsel %vm9897_vm10, %v7810_v37, %v7840_v43  ;;  %vm2294_vm6 = vcmp.gt.s32.totalorder %v7987_v50, %v7894_v33  ;;  %vm2295_vm2 = vcmp.gt.s32.totalorder %v7989_v39, %v7901_v56  ;;  %v8020_v6 = vsel %vm2288_vm15, %v2279_v46, %v7845_v13  ;;  %v8038_v37 = vld [vmem:[%s4153_s30 + $0xb0] sm:$0xff] }
 0x1f0   : > { %v8025_v32 = vsel %vm2289_vm8, %v2280_v51, %v7856_v2  ;;  %v8030_v22 = vsel %vm2290_vm3, %v2281_v0, %v7861_v15  ;;  %v8035_v41 = vsel %vm2291_vm7, %v2282_v3, %v7866_v12  ;;  %v8044_v43 = vld [vmem:[%s4153_s30 + $0x2b0] sm:$0xff]  ;;  %v8049_v28 = vsel %vm2292_vm12, %v2283_v17, %v7871_v57 }
 0x1f1   : > { %v8054_v63 = vsel %vm2293_vm13, %v2284_v30, %v7887_v29  ;;  %v8061_v44 = vsel %vm2294_vm6, %v7987_v50, %v7894_v33  ;;  %v8068_v38 = vsel %vm2295_vm2, %v7989_v39, %v7901_v56  ;;  %v8083_v35 = vsel %vm2288_vm15, %v7992_v26, %v7907_v49  ;;  %v3755_v13 = vld [vmem:[%s4153_s30 + $0x6b0] sm:$0xff] }
 0x1f2   : > { %v8089_v7 = vsel %vm2289_vm8, %v7992_v26, %v7920_v27  ;;  %v8095_v34 = vsel %vm2290_vm3, %v7992_v26, %v7926_v55  ;;  %v8101_v45 = vsel %vm2291_vm7, %v7992_v26, %v7932_v5  ;;  %v3756_v49 = vld [vmem:[%s4153_s30 + $0x7b0] sm:$0xff]  ;;  %v8109_v2 = vsel %vm2292_vm12, %v7992_v26, %v7938_v61 }
 0x1f3   : > { %v8114_v15 = vsel %vm2293_vm13, %v7992_v26, %v2211_v18  ;;  %v2329_v27 = vshra.s32 %v8038_v37, 31  ;;  %v2330_v55 = vshra.s32 %v8041_v14, 31  ;;  %v2331_v12 = vshra.s32 %v8044_v43, 31 }
 0x1f4   : > { %v2332_v5 = vshra.s32 %v8071_v1, 31  ;;  %v2333_v36 = vshra.s32 %v8074_v24, 31  ;;  %v2334_v8 = vshra.s32 %v8077_v9, 31  ;;  %vm2369_vm4 = vcmp.ne.f32.partialorder %v8038_v37, %v8038_v37 }
 0x1f5   : > { %v2335_v57 = vshra.s32 %v3755_v13, 31  ;;  %v2336_v61 = vshra.s32 %v3756_v49, 31  ;;  %v2337_v29 = vand.u32 2147483647, %v2329_v27  ;;  %v2338_v19 = vand.u32 2147483647, %v2330_v55 }
 0x1f6   : > { %v2339_v20 = vand.u32 2147483647, %v2331_v12  ;;  %v2340_v62 = vand.u32 2147483647, %v2332_v5  ;;  %v2341_v16 = vand.u32 2147483647, %v2333_v36  ;;  %vm2370_vm1 = vcmp.ne.f32.partialorder %v8041_v14, %v8041_v14 }
 0x1f7   : > { %v2342_v23 = vand.u32 2147483647, %v2334_v8  ;;  %v2343_v60 = vand.u32 2147483647, %v2335_v57  ;;  %v2344_v31 = vand.u32 2147483647, %v2336_v61  ;;  %v2345_v42 = vxor.u32 %v8038_v37, %v2337_v29 }
 0x1f8   : > { %v2346_v11 = vxor.u32 %v8041_v14, %v2338_v19  ;;  %v2347_v21 = vxor.u32 %v8044_v43, %v2339_v20  ;;  %v2348_v54 = vxor.u32 %v8071_v1, %v2340_v62  ;;  %v2349_v59 = vxor.u32 %v8074_v24, %v2341_v16  ;;  %v8237_v8 = vld [vmem:[%s4153_s30 + $0x3b8] sm:$0xff] }
 0x1f9   : > { %v2350_v58 = vxor.u32 %v8077_v9, %v2342_v23  ;;  %v2351_v4 = vxor.u32 %v3755_v13, %v2343_v60  ;;  %v2352_v53 = vxor.u32 %v3756_v49, %v2344_v31  ;;  %vm2353_vm11 = vcmp.eq.f32.partialorder %v8038_v37, 0.0  ;;  %v8240_v57 = vld [vmem:[%s4153_s30 + $0x4b8] sm:$0xff] }
 0x1fa   : > { %vm2354_vm14 = vcmp.eq.f32.partialorder %v8041_v14, 0.0  ;;  %vm2355_vm5 = vcmp.eq.f32.partialorder %v8044_v43, 0.0  ;;  %vm2356_vm0 = vcmp.eq.f32.partialorder %v8071_v1, 0.0  ;;  %vm2357_vm9 = vcmp.eq.f32.partialorder %v8074_v24, 0.0  ;;  %v8243_v61 = vld [vmem:[%s4153_s30 + $0x5b8] sm:$0xff] }
 0x1fb   : > { %vm2358_vm15 = vcmp.eq.f32.partialorder %v8077_v9, 0.0  ;;  %vm2359_vm8 = vcmp.eq.f32.partialorder %v3755_v13, 0.0  ;;  %vm2360_vm3 = vcmp.eq.f32.partialorder %v3756_v49, 0.0  ;;  %v2361_v25 = vsel %vm2353_vm11, 0, %v2345_v42 }
 0x1fc   : > { %v2362_v52 = vsel %vm2354_vm14, 0, %v2346_v11  ;;  %v2363_v40 = vsel %vm2355_vm5, 0, %v2347_v21  ;;  %v2364_v18 = vsel %vm2356_vm0, 0, %v2348_v54  ;;  %v2365_v46 = vsel %vm2357_vm9, 0, %v2349_v59 }
 0x1fd   : > { %v2366_v51 = vsel %vm2358_vm15, 0, %v2350_v58  ;;  %v2367_v0 = vsel %vm2359_vm8, 0, %v2351_v4  ;;  %v2368_v3 = vsel %vm2360_vm3, 0, %v2352_v53  ;;  %vm2371_vm7 = vcmp.ne.f32.partialorder %v8044_v43, %v8044_v43 }
 0x1fe   : > { %vm2372_vm12 = vcmp.ne.f32.partialorder %v8071_v1, %v8071_v1  ;;  %vm2373_vm13 = vcmp.ne.f32.partialorder %v8074_v24, %v8074_v24  ;;  %vm2374_vm10 = vcmp.ne.f32.partialorder %v8077_v9, %v8077_v9  ;;  %vm2375_vm11 = vcmp.ne.f32.partialorder %v3755_v13, %v3755_v13 }
 0x1ff   : > { %vm2376_vm14 = vcmp.ne.f32.partialorder %v3756_v49, %v3756_v49  ;;  %v2377_v17 = vsel %vm2369_vm4, 2147483647, %v2361_v25  ;;  %v2378_v30 = vsel %vm2370_vm1, 2147483647, %v2362_v52  ;;  %v2379_v43 = vsel %vm2371_vm7, 2147483647, %v2363_v40 }
 0x200   : > { %v2380_v27 = vsel %vm2372_vm12, 2147483647, %v2364_v18  ;;  %v2381_v55 = vsel %vm2373_vm13, 2147483647, %v2365_v46  ;;  %v2382_v1 = vsel %vm2374_vm10, 2147483647, %v2366_v51  ;;  %vm2386_vm5 = vcmp.gt.s32.totalorder %v2377_v17, %v8020_v6 }
 0x201   : > { %v8153_v24 = vsel %vm2375_vm11, 2147483647, %v2367_v0  ;;  %v8155_v9 = vsel %vm2376_vm14, 2147483647, %v2368_v3  ;;  %v8158_v13 = vadd.s32 176, %v4178_v47  ;;  %vm2387_vm4 = vcmp.gt.s32.totalorder %v2378_v30, %v8025_v32 }
 0x202   : > { %vm2388_vm1 = vcmp.gt.s32.totalorder %v2379_v43, %v8030_v22  ;;  %vm2389_vm0 = vcmp.gt.s32.totalorder %v2380_v27, %v8035_v41  ;;  %vm2390_vm9 = vcmp.gt.s32.totalorder %v2381_v55, %v8049_v28  ;;  %vm2391_vm15 = vcmp.gt.s32.totalorder %v2382_v1, %v8054_v63 }
 0x203   : > { %v8170_v37 = vsel %vm2294_vm6, %v7992_v26, %v8004_v10  ;;  %v8177_v14 = vsel %vm2295_vm2, %v7992_v26, %v8011_v48  ;;  %vm2392_vm8 = vcmp.gt.s32.totalorder %v8153_v24, %v8061_v44  ;;  %vm2393_vm3 = vcmp.gt.s32.totalorder %v8155_v9, %v8068_v38  ;;  %v8204_v26 = vld [vmem:[%s4153_s30 + $0xb8] sm:$0xff] }
 0x204   : > { %v8186_v33 = vsel %vm2386_vm5, %v2377_v17, %v8020_v6  ;;  %v8191_v50 = vsel %vm2387_vm4, %v2378_v30, %v8025_v32  ;;  %v8196_v56 = vsel %vm2388_vm1, %v2379_v43, %v8030_v22  ;;  %v8201_v39 = vsel %vm2389_vm0, %v2380_v27, %v8035_v41  ;;  %v8207_v10 = vld [vmem:[%s4153_s30 + $0x1b8] sm:$0xff] }
 0x205   : > { %v8210_v48 = vld [vmem:[%s4153_s30 + $0x2b8] sm:$0xff]  ;;  %v8215_v49 = vsel %vm2390_vm9, %v2381_v55, %v8049_v28  ;;  %v8220_v12 = vsel %vm2391_vm15, %v2382_v1, %v8054_v63  ;;  %v8227_v5 = vsel %vm2392_vm8, %v8153_v24, %v8061_v44  ;;  %v8234_v36 = vsel %vm2393_vm3, %v8155_v9, %v8068_v38  ;;  %v8363_v38 = vld [vmem:[%s4153_s30 + $0xc0] sm:$0xff] }
 0x206   : > { %v8249_v29 = vsel %vm2386_vm5, %v8158_v13, %v8083_v35  ;;  %v8255_v19 = vsel %vm2387_vm4, %v8158_v13, %v8089_v7  ;;  %v8261_v20 = vsel %vm2388_vm1, %v8158_v13, %v8095_v34  ;;  %v8267_v62 = vsel %vm2389_vm0, %v8158_v13, %v8101_v45  ;;  %v3763_v6 = vld [vmem:[%s4153_s30 + $0x6b8] sm:$0xff]  ;;  %v8366_v9 = vld [vmem:[%s4153_s30 + $0x1c0] sm:$0xff] }
 0x207   : > { %v3764_v35 = vld [vmem:[%s4153_s30 + $0x7b8] sm:$0xff]  ;;  %v8275_v32 = vsel %vm2390_vm9, %v8158_v13, %v8109_v2  ;;  %v8281_v22 = vsel %vm2391_vm15, %v8158_v13, %v8114_v15  ;;  %v2427_v7 = vshra.s32 %v8204_v26, 31  ;;  %v2428_v41 = vshra.s32 %v8207_v10, 31 }
 0x208   : > { %v2429_v34 = vshra.s32 %v8210_v48, 31  ;;  %v2430_v45 = vshra.s32 %v8237_v8, 31  ;;  %v2431_v16 = vshra.s32 %v8240_v57, 31  ;;  %v2432_v28 = vshra.s32 %v8243_v61, 31 }
 0x209   : > { %v2433_v2 = vshra.s32 %v3763_v6, 31  ;;  %v2434_v23 = vshra.s32 %v3764_v35, 31  ;;  %v2435_v60 = vand.u32 2147483647, %v2427_v7  ;;  %v2436_v31 = vand.u32 2147483647, %v2428_v41 }
 0x20a   : > { %v2437_v42 = vand.u32 2147483647, %v2429_v34  ;;  %v2438_v63 = vand.u32 2147483647, %v2430_v45  ;;  %v2439_v15 = vand.u32 2147483647, %v2431_v16  ;;  %vm2467_vm6 = vcmp.ne.f32.partialorder %v8204_v26, %v8204_v26 }
 0x20b   : > { %v2440_v11 = vand.u32 2147483647, %v2432_v28  ;;  %v2441_v21 = vand.u32 2147483647, %v2433_v2  ;;  %v2442_v54 = vand.u32 2147483647, %v2434_v23  ;;  %v2443_v59 = vxor.u32 %v8204_v26, %v2435_v60 }
 0x20c   : > { %v2444_v58 = vxor.u32 %v8207_v10, %v2436_v31  ;;  %v2445_v4 = vxor.u32 %v8210_v48, %v2437_v42  ;;  %v2446_v53 = vxor.u32 %v8237_v8, %v2438_v63  ;;  %v2447_v25 = vxor.u32 %v8240_v57, %v2439_v15  ;;  %v8391_v45 = vld [vmem:[%s4153_s30 + $0x2c0] sm:$0xff] }
 0x20d   : > { %v2448_v52 = vxor.u32 %v8243_v61, %v2440_v11  ;;  %v2449_v40 = vxor.u32 %v3763_v6, %v2441_v21  ;;  %v2450_v18 = vxor.u32 %v3764_v35, %v2442_v54  ;;  %vm2451_vm2 = vcmp.eq.f32.partialorder %v8204_v26, 0.0  ;;  %v8394_v16 = vld [vmem:[%s4153_s30 + $0x3c0] sm:$0xff] }
 0x20e   : > { %vm2452_vm7 = vcmp.eq.f32.partialorder %v8207_v10, 0.0  ;;  %vm2453_vm12 = vcmp.eq.f32.partialorder %v8210_v48, 0.0  ;;  %vm2454_vm13 = vcmp.eq.f32.partialorder %v8237_v8, 0.0  ;;  %vm2455_vm10 = vcmp.eq.f32.partialorder %v8240_v57, 0.0  ;;  %v8397_v28 = vld [vmem:[%s4153_s30 + $0x4c0] sm:$0xff] }
 0x20f   : > { %vm2456_vm11 = vcmp.eq.f32.partialorder %v8243_v61, 0.0  ;;  %vm2457_vm14 = vcmp.eq.f32.partialorder %v3763_v6, 0.0  ;;  %vm2458_vm5 = vcmp.eq.f32.partialorder %v3764_v35, 0.0  ;;  %v2459_v46 = vsel %vm2451_vm2, 0, %v2443_v59  ;;  %v3770_v42 = vld [vmem:[%s4153_s30 + $0x5c0] sm:$0xff] }
 0x210   : > { %v2460_v51 = vsel %vm2452_vm7, 0, %v2444_v58  ;;  %v2461_v0 = vsel %vm2453_vm12, 0, %v2445_v4  ;;  %v2462_v3 = vsel %vm2454_vm13, 0, %v2446_v53  ;;  %v2463_v17 = vsel %vm2455_vm10, 0, %v2447_v25  ;;  %v3771_v63 = vld [vmem:[%s4153_s30 + $0x6c0] sm:$0xff] }
 0x211   : > { %v2464_v30 = vsel %vm2456_vm11, 0, %v2448_v52  ;;  %v2465_v43 = vsel %vm2457_vm14, 0, %v2449_v40  ;;  %v2466_v27 = vsel %vm2458_vm5, 0, %v2450_v18  ;;  %vm2468_vm4 = vcmp.ne.f32.partialorder %v8207_v10, %v8207_v10  ;;  %v3772_v15 = vld [vmem:[%s4153_s30 + $0x7c0] sm:$0xff] }
 0x212   : > { %vm2469_vm1 = vcmp.ne.f32.partialorder %v8210_v48, %v8210_v48  ;;  %vm2470_vm0 = vcmp.ne.f32.partialorder %v8237_v8, %v8237_v8  ;;  %vm2471_vm9 = vcmp.ne.f32.partialorder %v8240_v57, %v8240_v57  ;;  %vm2472_vm15 = vcmp.ne.f32.partialorder %v8243_v61, %v8243_v61 }
 0x213   : > { %vm2473_vm2 = vcmp.ne.f32.partialorder %v3763_v6, %v3763_v6  ;;  %vm2474_vm7 = vcmp.ne.f32.partialorder %v3764_v35, %v3764_v35  ;;  %v2475_v55 = vsel %vm2467_vm6, 2147483647, %v2459_v46  ;;  %v2476_v1 = vsel %vm2468_vm4, 2147483647, %v2460_v51 }
 0x214   : > { %v2477_v10 = vsel %vm2469_vm1, 2147483647, %v2461_v0  ;;  %v2478_v7 = vsel %vm2470_vm0, 2147483647, %v2462_v3  ;;  %v2479_v41 = vsel %vm2471_vm9, 2147483647, %v2463_v17  ;;  %vm2484_vm12 = vcmp.gt.s32.totalorder %v2475_v55, %v8186_v33 }
 0x215   : > { %v2480_v48 = vsel %vm2472_vm15, 2147483647, %v2464_v30  ;;  %v8317_v8 = vsel %vm2473_vm2, 2147483647, %v2465_v43  ;;  %v8319_v57 = vsel %vm2474_vm7, 2147483647, %v2466_v27  ;;  %vm2485_vm13 = vcmp.gt.s32.totalorder %v2476_v1, %v8191_v50 }
 0x216   : > { %v8323_v61 = vadd.s32 184, %v4178_v47  ;;  %vm2486_vm6 = vcmp.gt.s32.totalorder %v2477_v10, %v8196_v56  ;;  %vm2487_vm10 = vcmp.gt.s32.totalorder %v2478_v7, %v8201_v39  ;;  %vm2488_vm11 = vcmp.gt.s32.totalorder %v2479_v41, %v8215_v49 }
 0x217   : > { %v8333_v26 = vsel %vm2392_vm8, %v8158_v13, %v8170_v37  ;;  %vm2489_vm14 = vcmp.gt.s32.totalorder %v2480_v48, %v8220_v12  ;;  %vm2490_vm5 = vcmp.gt.s32.totalorder %v8317_v8, %v8227_v5  ;;  %vm2491_vm4 = vcmp.gt.s32.totalorder %v8319_v57, %v8234_v36 }
 0x218   : > { %v8345_v6 = vsel %vm2393_vm3, %v8158_v13, %v8177_v14  ;;  %v8350_v44 = vsel %vm2484_vm12, %v2475_v55, %v8186_v33  ;;  %v8355_v24 = vsel %vm2485_vm13, %v2476_v1, %v8191_v50  ;;  %v8360_v37 = vsel %vm2486_vm6, %v2477_v10, %v8196_v56 }
 0x219   : > { %v8371_v13 = vsel %vm2487_vm10, %v2478_v7, %v8201_v39  ;;  %v8376_v14 = vsel %vm2488_vm11, %v2479_v41, %v8215_v49  ;;  %v8381_v35 = vsel %vm2489_vm14, %v2480_v48, %v8220_v12  ;;  %v8388_v34 = vsel %vm2490_vm5, %v8317_v8, %v8227_v5  ;;  %v8515_v8 = vld [vmem:[%s4153_s30 + $0xc8] sm:$0xff] }
 0x21a   : > { %v8404_v2 = vsel %vm2491_vm4, %v8319_v57, %v8234_v36  ;;  %v8410_v23 = vsel %vm2484_vm12, %v8323_v61, %v8249_v29  ;;  %v8416_v60 = vsel %vm2485_vm13, %v8323_v61, %v8255_v19  ;;  %v8422_v31 = vsel %vm2486_vm6, %v8323_v61, %v8261_v20 }
 0x21b   : > { %v8431_v33 = vsel %vm2487_vm10, %v8323_v61, %v8267_v62  ;;  %v8437_v50 = vsel %vm2488_vm11, %v8323_v61, %v8275_v32  ;;  %v8443_v56 = vsel %vm2489_vm14, %v8323_v61, %v8281_v22  ;;  %v2525_v29 = vshra.s32 %v8363_v38, 31 }
 0x21c   : > { %v2526_v19 = vshra.s32 %v8366_v9, 31  ;;  %v2527_v39 = vshra.s32 %v8391_v45, 31  ;;  %v2528_v20 = vshra.s32 %v8394_v16, 31  ;;  %v2529_v62 = vshra.s32 %v8397_v28, 31 }
 0x21d   : > { %v2530_v11 = vshra.s32 %v3770_v42, 31  ;;  %v2531_v49 = vshra.s32 %v3771_v63, 31  ;;  %v2532_v32 = vshra.s32 %v3772_v15, 31  ;;  %v2533_v21 = vand.u32 2147483647, %v2525_v29 }
 0x21e   : > { %v2534_v54 = vand.u32 2147483647, %v2526_v19  ;;  %v2535_v59 = vand.u32 2147483647, %v2527_v39  ;;  %v2536_v58 = vand.u32 2147483647, %v2528_v20  ;;  %vm2565_vm8 = vcmp.ne.f32.partialorder %v8363_v38, %v8363_v38 }
 0x21f   : > { %v2537_v12 = vand.u32 2147483647, %v2529_v62  ;;  %v2538_v22 = vand.u32 2147483647, %v2530_v11  ;;  %v2539_v4 = vand.u32 2147483647, %v2531_v49  ;;  %v2541_v53 = vxor.u32 %v8363_v38, %v2533_v21 }
 0x220   : > { %v2540_v25 = vand.u32 2147483647, %v2532_v32  ;;  %v2542_v52 = vxor.u32 %v8366_v9, %v2534_v54  ;;  %v2543_v40 = vxor.u32 %v8391_v45, %v2535_v59  ;;  %v2544_v18 = vxor.u32 %v8394_v16, %v2536_v58  ;;  %v8541_v39 = vld [vmem:[%s4153_s30 + $0x2c8] sm:$0xff] }
 0x221   : > { %v2545_v46 = vxor.u32 %v8397_v28, %v2537_v12  ;;  %v2546_v51 = vxor.u32 %v3770_v42, %v2538_v22  ;;  %v2547_v0 = vxor.u32 %v3771_v63, %v2539_v4  ;;  %vm2549_vm3 = vcmp.eq.f32.partialorder %v8363_v38, 0.0  ;;  %v8544_v20 = vld [vmem:[%s4153_s30 + $0x3c8] sm:$0xff] }
 0x222   : > { %v2548_v3 = vxor.u32 %v3772_v15, %v2540_v25  ;;  %vm2550_vm1 = vcmp.eq.f32.partialorder %v8366_v9, 0.0  ;;  %vm2551_vm0 = vcmp.eq.f32.partialorder %v8391_v45, 0.0  ;;  %vm2552_vm9 = vcmp.eq.f32.partialorder %v8394_v16, 0.0  ;;  %v8547_v62 = vld [vmem:[%s4153_s30 + $0x4c8] sm:$0xff] }
 0x223   : > { %vm2553_vm15 = vcmp.eq.f32.partialorder %v8397_v28, 0.0  ;;  %vm2554_vm2 = vcmp.eq.f32.partialorder %v3770_v42, 0.0  ;;  %vm2555_vm7 = vcmp.eq.f32.partialorder %v3771_v63, 0.0  ;;  %vm2556_vm12 = vcmp.eq.f32.partialorder %v3772_v15, 0.0  ;;  %v3778_v54 = vld [vmem:[%s4153_s30 + $0x5c8] sm:$0xff] }
 0x224   : > { %v2557_v17 = vsel %vm2549_vm3, 0, %v2541_v53  ;;  %v2558_v30 = vsel %vm2550_vm1, 0, %v2542_v52  ;;  %v2559_v43 = vsel %vm2551_vm0, 0, %v2543_v40  ;;  %v2560_v27 = vsel %vm2552_vm9, 0, %v2544_v18  ;;  %v8577_v59 = vld [vmem:[%s4153_s30 + $0x6c8] sm:$0xff] }
 0x225   : > { %v2561_v55 = vsel %vm2553_vm15, 0, %v2545_v46  ;;  %v2562_v1 = vsel %vm2554_vm2, 0, %v2546_v51  ;;  %v2563_v10 = vsel %vm2555_vm7, 0, %v2547_v0  ;;  %v2564_v7 = vsel %vm2556_vm12, 0, %v2548_v3  ;;  %v8580_v58 = vld [vmem:[%s4153_s30 + $0x7c8] sm:$0xff] }
 0x226   : > { %vm2566_vm13 = vcmp.ne.f32.partialorder %v8366_v9, %v8366_v9  ;;  %vm2567_vm6 = vcmp.ne.f32.partialorder %v8391_v45, %v8391_v45  ;;  %vm2568_vm10 = vcmp.ne.f32.partialorder %v8394_v16, %v8394_v16  ;;  %vm2569_vm11 = vcmp.ne.f32.partialorder %v8397_v28, %v8397_v28 }
 0x227   : > { %vm2570_vm14 = vcmp.ne.f32.partialorder %v3770_v42, %v3770_v42  ;;  %vm2571_vm3 = vcmp.ne.f32.partialorder %v3771_v63, %v3771_v63  ;;  %vm2572_vm1 = vcmp.ne.f32.partialorder %v3772_v15, %v3772_v15  ;;  %v2573_v41 = vsel %vm2565_vm8, 2147483647, %v2557_v17 }
 0x228   : > { %v2574_v48 = vsel %vm2566_vm13, 2147483647, %v2558_v30  ;;  %v2575_v29 = vsel %vm2567_vm6, 2147483647, %v2559_v43  ;;  %v2576_v19 = vsel %vm2568_vm10, 2147483647, %v2560_v27  ;;  %vm2582_vm0 = vcmp.gt.s32.totalorder %v2573_v41, %v8350_v44 }
 0x229   : > { %v2577_v9 = vsel %vm2569_vm11, 2147483647, %v2561_v55  ;;  %v2578_v45 = vsel %vm2570_vm14, 2147483647, %v2562_v1  ;;  %v8474_v16 = vsel %vm2571_vm3, 2147483647, %v2563_v10  ;;  %vm2583_vm9 = vcmp.gt.s32.totalorder %v2574_v48, %v8355_v24 }
 0x22a   : > { %v8477_v28 = vsel %vm2572_vm1, 2147483647, %v2564_v7  ;;  %v8480_v42 = vadd.s32 192, %v4178_v47  ;;  %vm2584_vm8 = vcmp.gt.s32.totalorder %v2575_v29, %v8360_v37  ;;  %vm2585_vm15 = vcmp.gt.s32.totalorder %v2576_v19, %v8371_v13 }
 0x22b   : > { %vm2586_vm2 = vcmp.gt.s32.totalorder %v2577_v9, %v8376_v14  ;;  %vm2587_vm7 = vcmp.gt.s32.totalorder %v2578_v45, %v8381_v35  ;;  %vm2588_vm12 = vcmp.gt.s32.totalorder %v8474_v16, %v8388_v34  ;;  %vm2589_vm13 = vcmp.gt.s32.totalorder %v8477_v28, %v8404_v2 }
 0x22c   : > { %v8495_v38 = vsel %vm2490_vm5, %v8323_v61, %v8333_v26  ;;  %v8502_v63 = vsel %vm2491_vm4, %v8323_v61, %v8345_v6  ;;  %v8507_v15 = vsel %vm2582_vm0, %v2573_v41, %v8350_v44  ;;  %v8512_v5 = vsel %vm2583_vm9, %v2574_v48, %v8355_v24  ;;  %v8518_v26 = vld [vmem:[%s4153_s30 + $0x1c8] sm:$0xff] }
 0x22d   : > { %v8523_v36 = vsel %vm2584_vm8, %v2575_v29, %v8360_v37  ;;  %v8528_v57 = vsel %vm2585_vm15, %v2576_v19, %v8371_v13  ;;  %v8533_v61 = vsel %vm2586_vm2, %v2577_v9, %v8376_v14  ;;  %v8538_v6 = vsel %vm2587_vm7, %v2578_v45, %v8381_v35 }
 0x22e   : > { %v8554_v11 = vsel %vm2588_vm12, %v8474_v16, %v8388_v34  ;;  %v8561_v49 = vsel %vm2589_vm13, %v8477_v28, %v8404_v2  ;;  %v8567_v32 = vsel %vm2582_vm0, %v8480_v42, %v8410_v23  ;;  %v8573_v21 = vsel %vm2583_vm9, %v8480_v42, %v8416_v60 }
 0x22f   : > { %v8586_v12 = vsel %vm2584_vm8, %v8480_v42, %v8422_v31  ;;  %v8592_v44 = vsel %vm2585_vm15, %v8480_v42, %v8431_v33  ;;  %v8598_v24 = vsel %vm2586_vm2, %v8480_v42, %v8437_v50  ;;  %v8604_v23 = vsel %vm2587_vm7, %v8480_v42, %v8443_v56 }
 0x230   : > { %v2623_v37 = vshra.s32 %v8515_v8, 31  ;;  %v2624_v60 = vshra.s32 %v8518_v26, 31  ;;  %v2625_v13 = vshra.s32 %v8541_v39, 31  ;;  %v2626_v31 = vshra.s32 %v8544_v20, 31 }
 0x231   : > { %v2627_v33 = vshra.s32 %v8547_v62, 31  ;;  %v2628_v22 = vshra.s32 %v3778_v54, 31  ;;  %v2629_v14 = vshra.s32 %v8577_v59, 31  ;;  %v2630_v50 = vshra.s32 %v8580_v58, 31 }
 0x232   : > { %v2631_v4 = vand.u32 2147483647, %v2623_v37  ;;  %v2632_v53 = vand.u32 2147483647, %v2624_v60  ;;  %v2633_v35 = vand.u32 2147483647, %v2625_v13  ;;  %vm2663_vm5 = vcmp.ne.f32.partialorder %v8515_v8, %v8515_v8 }
 0x233   : > { %v2634_v56 = vand.u32 2147483647, %v2626_v31  ;;  %v2635_v25 = vand.u32 2147483647, %v2627_v33  ;;  %v2636_v52 = vand.u32 2147483647, %v2628_v22  ;;  %vm2664_vm4 = vcmp.ne.f32.partialorder %v8518_v26, %v8518_v26 }
 0x234   : > { %v2637_v40 = vand.u32 2147483647, %v2629_v14  ;;  %v2638_v18 = vand.u32 2147483647, %v2630_v50  ;;  %v2639_v46 = vxor.u32 %v8515_v8, %v2631_v4  ;;  %v2640_v51 = vxor.u32 %v8518_v26, %v2632_v53  ;;  %v8705_v60 = vld [vmem:[%s4153_s30 + $0x2d0] sm:$0xff] }
 0x235   : > { %v2641_v0 = vxor.u32 %v8541_v39, %v2633_v35  ;;  %v2642_v3 = vxor.u32 %v8544_v20, %v2634_v56  ;;  %v2643_v17 = vxor.u32 %v8547_v62, %v2635_v25  ;;  %v2644_v30 = vxor.u32 %v3778_v54, %v2636_v52  ;;  %v8731_v14 = vld [vmem:[%s4153_s30 + $0x3d0] sm:$0xff] }
 0x236   : > { %v2645_v43 = vxor.u32 %v8577_v59, %v2637_v40  ;;  %v2646_v27 = vxor.u32 %v8580_v58, %v2638_v18  ;;  %vm2647_vm6 = vcmp.eq.f32.partialorder %v8515_v8, 0.0  ;;  %vm2648_vm10 = vcmp.eq.f32.partialorder %v8518_v26, 0.0  ;;  %v8702_v26 = vld [vmem:[%s4153_s30 + $0x1d0] sm:$0xff] }
 0x237   : > { %vm2649_vm11 = vcmp.eq.f32.partialorder %v8541_v39, 0.0  ;;  %vm2650_vm14 = vcmp.eq.f32.partialorder %v8544_v20, 0.0  ;;  %vm2651_vm3 = vcmp.eq.f32.partialorder %v8547_v62, 0.0  ;;  %vm2652_vm1 = vcmp.eq.f32.partialorder %v3778_v54, 0.0  ;;  %v8734_v50 = vld [vmem:[%s4153_s30 + $0x4d0] sm:$0xff] }
 0x238   : > { %vm2653_vm0 = vcmp.eq.f32.partialorder %v8577_v59, 0.0  ;;  %vm2654_vm9 = vcmp.eq.f32.partialorder %v8580_v58, 0.0  ;;  %v2655_v55 = vsel %vm2647_vm6, 0, %v2639_v46  ;;  %v2656_v1 = vsel %vm2648_vm10, 0, %v2640_v51  ;;  %v8737_v4 = vld [vmem:[%s4153_s30 + $0x5d0] sm:$0xff] }
 0x239   : > { %v2657_v10 = vsel %vm2649_vm11, 0, %v2641_v0  ;;  %v2658_v7 = vsel %vm2650_vm14, 0, %v2642_v3  ;;  %v2659_v41 = vsel %vm2651_vm3, 0, %v2643_v17  ;;  %v2660_v48 = vsel %vm2652_vm1, 0, %v2644_v30 }
 0x23a   : > { %v2661_v29 = vsel %vm2653_vm0, 0, %v2645_v43  ;;  %v2662_v19 = vsel %vm2654_vm9, 0, %v2646_v27  ;;  %vm2665_vm8 = vcmp.ne.f32.partialorder %v8541_v39, %v8541_v39  ;;  %vm2666_vm15 = vcmp.ne.f32.partialorder %v8544_v20, %v8544_v20 }
 0x23b   : > { %vm2667_vm2 = vcmp.ne.f32.partialorder %v8547_v62, %v8547_v62  ;;  %vm2668_vm7 = vcmp.ne.f32.partialorder %v3778_v54, %v3778_v54  ;;  %vm2669_vm6 = vcmp.ne.f32.partialorder %v8577_v59, %v8577_v59  ;;  %vm2670_vm10 = vcmp.ne.f32.partialorder %v8580_v58, %v8580_v58 }
 0x23c   : > { %v2604_v9 = vsel %vm2588_vm12, %v8480_v42, %v8495_v38  ;;  %v2671_v45 = vsel %vm2663_vm5, 2147483647, %v2655_v55  ;;  %v2672_v39 = vsel %vm2664_vm4, 2147483647, %v2656_v1  ;;  %v2673_v20 = vsel %vm2665_vm8, 2147483647, %v2657_v10 }
 0x23d   : > { %v2674_v62 = vsel %vm2666_vm15, 2147483647, %v2658_v7  ;;  %v2675_v54 = vsel %vm2667_vm2, 2147483647, %v2659_v41  ;;  %v2676_v59 = vsel %vm2668_vm7, 2147483647, %v2660_v48  ;;  %vm2680_vm11 = vcmp.gt.s32.totalorder %v2671_v45, %v8507_v15 }
 0x23e   : > { %v2677_v58 = vsel %vm2669_vm6, 2147483647, %v2661_v29  ;;  %v8653_v37 = vsel %vm2670_vm10, 2147483647, %v2662_v19  ;;  %v8656_v34 = vadd.s32 200, %v4178_v47  ;;  %vm2681_vm12 = vcmp.gt.s32.totalorder %v2672_v39, %v8512_v5 }
 0x23f   : > { %vm2682_vm5 = vcmp.gt.s32.totalorder %v2673_v20, %v8523_v36  ;;  %vm2683_vm4 = vcmp.gt.s32.totalorder %v2674_v62, %v8528_v57  ;;  %vm2684_vm14 = vcmp.gt.s32.totalorder %v2675_v54, %v8533_v61  ;;  %vm2685_vm3 = vcmp.gt.s32.totalorder %v2676_v59, %v8538_v6 }
 0x240   : > { %v8668_v16 = vsel %vm2589_vm13, %v8480_v42, %v8502_v63  ;;  %vm2686_vm1 = vcmp.gt.s32.totalorder %v2677_v58, %v8554_v11  ;;  %vm2687_vm0 = vcmp.gt.s32.totalorder %v8653_v37, %v8561_v49  ;;  %v8676_v38 = vsel %vm2680_vm11, %v2671_v45, %v8507_v15  ;;  %v8699_v63 = vld [vmem:[%s4153_s30 + $0xd0] sm:$0xff] }
 0x241   : > { %v8681_v8 = vsel %vm2681_vm12, %v2672_v39, %v8512_v5  ;;  %v8686_v2 = vsel %vm2682_vm5, %v2673_v20, %v8523_v36  ;;  %v8691_v28 = vsel %vm2683_vm4, %v2674_v62, %v8528_v57  ;;  %v8696_v42 = vsel %vm2684_vm14, %v2675_v54, %v8533_v61  ;;  %v3787_v5 = vld [vmem:[%s4153_s30 + $0x6d0] sm:$0xff] }
 0x242   : > { %v8710_v13 = vsel %vm2685_vm3, %v2676_v59, %v8538_v6  ;;  %v8715_v31 = vsel %vm2686_vm1, %v2677_v58, %v8554_v11  ;;  %v8722_v33 = vsel %vm2687_vm0, %v8653_v37, %v8561_v49  ;;  %v8728_v22 = vsel %vm2680_vm11, %v8656_v34, %v8567_v32 }
 0x243   : > { %v8743_v53 = vsel %vm2681_vm12, %v8656_v34, %v8573_v21  ;;  %v8749_v35 = vsel %vm2682_vm5, %v8656_v34, %v8586_v12  ;;  %v8755_v15 = vsel %vm2683_vm4, %v8656_v34, %v8592_v44  ;;  %v8761_v32 = vsel %vm2684_vm14, %v8656_v34, %v8598_v24  ;;  %v3788_v21 = vld [vmem:[%s4153_s30 + $0x7d0] sm:$0xff] }
 0x244   : > { %v8769_v36 = vsel %vm2685_vm3, %v8656_v34, %v8604_v23  ;;  %v8774_v57 = vsel %vm2686_vm1, %v8656_v34, %v2604_v9  ;;  %v2721_v12 = vshra.s32 %v8699_v63, 31  ;;  %v2722_v44 = vshra.s32 %v8702_v26, 31 }
 0x245   : > { %v2723_v61 = vshra.s32 %v8705_v60, 31  ;;  %v2724_v24 = vshra.s32 %v8731_v14, 31  ;;  %v2725_v56 = vshra.s32 %v8734_v50, 31  ;;  %v2726_v25 = vshra.s32 %v8737_v4, 31 }
 0x246   : > { %vm2761_vm13 = vcmp.ne.f32.partialorder %v8699_v63, %v8699_v63  ;;  %v2727_v6 = vshra.s32 %v3787_v5, 31  ;;  %v2728_v23 = vshra.s32 %v3788_v21, 31  ;;  %v2729_v11 = vand.u32 2147483647, %v2721_v12 }
 0x247   : > { %v2730_v52 = vand.u32 2147483647, %v2722_v44  ;;  %v2731_v40 = vand.u32 2147483647, %v2723_v61  ;;  %v2732_v18 = vand.u32 2147483647, %v2724_v24  ;;  %vm2762_vm9 = vcmp.ne.f32.partialorder %v8702_v26, %v8702_v26 }
 0x248   : > { %v2733_v46 = vand.u32 2147483647, %v2725_v56  ;;  %v2734_v51 = vand.u32 2147483647, %v2726_v25  ;;  %v2735_v0 = vand.u32 2147483647, %v2727_v6  ;;  %v2737_v17 = vxor.u32 %v8699_v63, %v2729_v11 }
 0x249   : > { %v2736_v3 = vand.u32 2147483647, %v2728_v23  ;;  %v2738_v30 = vxor.u32 %v8702_v26, %v2730_v52  ;;  %v2739_v43 = vxor.u32 %v8705_v60, %v2731_v40  ;;  %v2740_v27 = vxor.u32 %v8731_v14, %v2732_v18  ;;  %v8865_v44 = vld [vmem:[%s4153_s30 + $0x2d8] sm:$0xff] }
 0x24a   : > { %v2741_v55 = vxor.u32 %v8734_v50, %v2733_v46  ;;  %v2742_v1 = vxor.u32 %v8737_v4, %v2734_v51  ;;  %v2743_v10 = vxor.u32 %v3787_v5, %v2735_v0  ;;  %vm2745_vm8 = vcmp.eq.f32.partialorder %v8699_v63, 0.0  ;;  %v8891_v6 = vld [vmem:[%s4153_s30 + $0x3d8] sm:$0xff] }
 0x24b   : > { %v2744_v7 = vxor.u32 %v3788_v21, %v2736_v3  ;;  %vm2746_vm15 = vcmp.eq.f32.partialorder %v8702_v26, 0.0  ;;  %vm2747_vm2 = vcmp.eq.f32.partialorder %v8705_v60, 0.0  ;;  %vm2748_vm7 = vcmp.eq.f32.partialorder %v8731_v14, 0.0  ;;  %v8894_v23 = vld [vmem:[%s4153_s30 + $0x4d8] sm:$0xff] }
 0x24c   : > { %vm2749_vm6 = vcmp.eq.f32.partialorder %v8734_v50, 0.0  ;;  %vm2750_vm10 = vcmp.eq.f32.partialorder %v8737_v4, 0.0  ;;  %vm2751_vm11 = vcmp.eq.f32.partialorder %v3787_v5, 0.0  ;;  %vm2752_vm12 = vcmp.eq.f32.partialorder %v3788_v21, 0.0  ;;  %v8897_v11 = vld [vmem:[%s4153_s30 + $0x5d8] sm:$0xff] }
 0x24d   : > { %v2753_v41 = vsel %vm2745_vm8, 0, %v2737_v17  ;;  %v2754_v48 = vsel %vm2746_vm15, 0, %v2738_v30  ;;  %v2755_v29 = vsel %vm2747_vm2, 0, %v2739_v43  ;;  %v2756_v19 = vsel %vm2748_vm7, 0, %v2740_v27 }
 0x24e   : > { %v2757_v9 = vsel %vm2749_vm6, 0, %v2741_v55  ;;  %v2758_v45 = vsel %vm2750_vm10, 0, %v2742_v1  ;;  %v2759_v39 = vsel %vm2751_vm11, 0, %v2743_v10  ;;  %v2760_v20 = vsel %vm2752_vm12, 0, %v2744_v7 }
 0x24f   : > { %vm2763_vm5 = vcmp.ne.f32.partialorder %v8705_v60, %v8705_v60  ;;  %vm2764_vm4 = vcmp.ne.f32.partialorder %v8731_v14, %v8731_v14  ;;  %vm2765_vm14 = vcmp.ne.f32.partialorder %v8734_v50, %v8734_v50  ;;  %vm2766_vm3 = vcmp.ne.f32.partialorder %v8737_v4, %v8737_v4 }
 0x250   : > { %vm2767_vm1 = vcmp.ne.f32.partialorder %v3787_v5, %v3787_v5  ;;  %vm2768_vm8 = vcmp.ne.f32.partialorder %v3788_v21, %v3788_v21  ;;  %v2769_v62 = vsel %vm2761_vm13, 2147483647, %v2753_v41  ;;  %v2770_v54 = vsel %vm2762_vm9, 2147483647, %v2754_v48  ;;  %v8862_v21 = vld [vmem:[%s4153_s30 + $0x1d8] sm:$0xff] }
 0x251   : > { %v2771_v59 = vsel %vm2763_vm5, 2147483647, %v2755_v29  ;;  %v2772_v58 = vsel %vm2764_vm4, 2147483647, %v2756_v19  ;;  %v2773_v60 = vsel %vm2765_vm14, 2147483647, %v2757_v9  ;;  %vm2778_vm15 = vcmp.gt.s32.totalorder %v2769_v62, %v8676_v38 }
 0x252   : > { %v2774_v14 = vsel %vm2766_vm3, 2147483647, %v2758_v45  ;;  %v2775_v50 = vsel %vm2767_vm1, 2147483647, %v2759_v39  ;;  %v8813_v12 = vsel %vm2768_vm8, 2147483647, %v2760_v20  ;;  %vm2779_vm13 = vcmp.gt.s32.totalorder %v2770_v54, %v8681_v8 }
 0x253   : > { %v8816_v4 = vadd.s32 208, %v4178_v47  ;;  %vm2780_vm2 = vcmp.gt.s32.totalorder %v2771_v59, %v8686_v2  ;;  %vm2781_vm9 = vcmp.gt.s32.totalorder %v2772_v58, %v8691_v28  ;;  %vm2782_vm7 = vcmp.gt.s32.totalorder %v2773_v60, %v8696_v42 }
 0x254   : > { %vm2783_vm6 = vcmp.gt.s32.totalorder %v2774_v14, %v8710_v13  ;;  %v8828_v63 = vsel %vm2687_vm0, %v8656_v34, %v8668_v16  ;;  %vm2784_vm10 = vcmp.gt.s32.totalorder %v2775_v50, %v8715_v31  ;;  %vm2785_vm11 = vcmp.gt.s32.totalorder %v8813_v12, %v8722_v33  ;;  %v8859_v16 = vld [vmem:[%s4153_s30 + $0xd8] sm:$0xff] }
 0x255   : > { %v8836_v26 = vsel %vm2778_vm15, %v2769_v62, %v8676_v38  ;;  %v8841_v5 = vsel %vm2779_vm13, %v2770_v54, %v8681_v8  ;;  %v8846_v49 = vsel %vm2780_vm2, %v2771_v59, %v8686_v2  ;;  %v8851_v37 = vsel %vm2781_vm9, %v2772_v58, %v8691_v28  ;;  %v3795_v8 = vld [vmem:[%s4153_s30 + $0x6d8] sm:$0xff] }
 0x256   : > { %v8856_v34 = vsel %vm2782_vm7, %v2773_v60, %v8696_v42  ;;  %v8870_v61 = vsel %vm2783_vm6, %v2774_v14, %v8710_v13  ;;  %v8875_v24 = vsel %vm2784_vm10, %v2775_v50, %v8715_v31  ;;  %v8882_v56 = vsel %vm2785_vm11, %v8813_v12, %v8722_v33 }
 0x257   : > { %v8888_v25 = vsel %vm2778_vm15, %v8816_v4, %v8728_v22  ;;  %v8903_v52 = vsel %vm2779_vm13, %v8816_v4, %v8743_v53  ;;  %v8909_v40 = vsel %vm2780_vm2, %v8816_v4, %v8749_v35  ;;  %v8915_v38 = vsel %vm2781_vm9, %v8816_v4, %v8755_v15  ;;  %v3796_v53 = vld [vmem:[%s4153_s30 + $0x7d8] sm:$0xff] }
 0x258   : > { %v8921_v22 = vsel %vm2782_vm7, %v8816_v4, %v8761_v32  ;;  %v8929_v2 = vsel %vm2783_vm6, %v8816_v4, %v8769_v36  ;;  %v8935_v28 = vsel %vm2784_vm10, %v8816_v4, %v8774_v57  ;;  %v2819_v35 = vshra.s32 %v8859_v16, 31 }
 0x259   : > { %v2820_v42 = vshra.s32 %v8862_v21, 31  ;;  %v2821_v15 = vshra.s32 %v8865_v44, 31  ;;  %v2822_v32 = vshra.s32 %v8891_v6, 31  ;;  %v2823_v18 = vshra.s32 %v8894_v23, 31 }
 0x25a   : > { %v2824_v13 = vshra.s32 %v8897_v11, 31  ;;  %v2825_v36 = vshra.s32 %v3795_v8, 31  ;;  %v2826_v46 = vshra.s32 %v3796_v53, 31  ;;  %v2827_v51 = vand.u32 2147483647, %v2819_v35 }
 0x25b   : > { %v2828_v0 = vand.u32 2147483647, %v2820_v42  ;;  %v2829_v3 = vand.u32 2147483647, %v2821_v15  ;;  %v2830_v31 = vand.u32 2147483647, %v2822_v32  ;;  %vm2859_vm0 = vcmp.ne.f32.partialorder %v8859_v16, %v8859_v16 }
 0x25c   : > { %v2831_v57 = vand.u32 2147483647, %v2823_v18  ;;  %v2832_v17 = vand.u32 2147483647, %v2824_v13  ;;  %v2833_v30 = vand.u32 2147483647, %v2825_v36  ;;  %v2835_v27 = vxor.u32 %v8859_v16, %v2827_v51 }
 0x25d   : > { %v2834_v43 = vand.u32 2147483647, %v2826_v46  ;;  %v2836_v55 = vxor.u32 %v8862_v21, %v2828_v0  ;;  %v2837_v1 = vxor.u32 %v8865_v44, %v2829_v3  ;;  %v2838_v10 = vxor.u32 %v8891_v6, %v2830_v31  ;;  %v9040_v18 = vld [vmem:[%s4153_s30 + $0x2e0] sm:$0xff] }
 0x25e   : > { %v2839_v7 = vxor.u32 %v8894_v23, %v2831_v57  ;;  %v2840_v41 = vxor.u32 %v8897_v11, %v2832_v17  ;;  %v2841_v48 = vxor.u32 %v3795_v8, %v2833_v30  ;;  %vm2843_vm12 = vcmp.eq.f32.partialorder %v8859_v16, 0.0  ;;  %v9043_v13 = vld [vmem:[%s4153_s30 + $0x3e0] sm:$0xff] }
 0x25f   : > { %v2842_v29 = vxor.u32 %v3796_v53, %v2834_v43  ;;  %vm2844_vm5 = vcmp.eq.f32.partialorder %v8862_v21, 0.0  ;;  %vm2845_vm4 = vcmp.eq.f32.partialorder %v8865_v44, 0.0  ;;  %vm2846_vm14 = vcmp.eq.f32.partialorder %v8891_v6, 0.0  ;;  %v9046_v36 = vld [vmem:[%s4153_s30 + $0x4e0] sm:$0xff] }
 0x260   : > { %vm2847_vm3 = vcmp.eq.f32.partialorder %v8894_v23, 0.0  ;;  %vm2848_vm1 = vcmp.eq.f32.partialorder %v8897_v11, 0.0  ;;  %vm2849_vm8 = vcmp.eq.f32.partialorder %v3795_v8, 0.0  ;;  %vm2850_vm15 = vcmp.eq.f32.partialorder %v3796_v53, 0.0  ;;  %v3804_v31 = vld [vmem:[%s4153_s30 + $0x7e0] sm:$0xff] }
 0x261   : > { %v2851_v19 = vsel %vm2843_vm12, 0, %v2835_v27  ;;  %v2852_v9 = vsel %vm2844_vm5, 0, %v2836_v55  ;;  %v2853_v45 = vsel %vm2845_vm4, 0, %v2837_v1  ;;  %v2854_v39 = vsel %vm2846_vm14, 0, %v2838_v10 }
 0x262   : > { %v2855_v20 = vsel %vm2847_vm3, 0, %v2839_v7  ;;  %v2856_v62 = vsel %vm2848_vm1, 0, %v2840_v41  ;;  %v2857_v54 = vsel %vm2849_vm8, 0, %v2841_v48  ;;  %v2858_v59 = vsel %vm2850_vm15, 0, %v2842_v29 }
 0x263   : > { %vm2860_vm13 = vcmp.ne.f32.partialorder %v8862_v21, %v8862_v21  ;;  %vm2861_vm2 = vcmp.ne.f32.partialorder %v8865_v44, %v8865_v44  ;;  %vm2862_vm9 = vcmp.ne.f32.partialorder %v8891_v6, %v8891_v6  ;;  %vm2863_vm7 = vcmp.ne.f32.partialorder %v8894_v23, %v8894_v23 }
 0x264   : > { %vm2864_vm6 = vcmp.ne.f32.partialorder %v8897_v11, %v8897_v11  ;;  %vm2865_vm10 = vcmp.ne.f32.partialorder %v3795_v8, %v3795_v8  ;;  %vm2866_vm12 = vcmp.ne.f32.partialorder %v3796_v53, %v3796_v53  ;;  %v2867_v58 = vsel %vm2859_vm0, 2147483647, %v2851_v19  ;;  %v9015_v53 = vld [vmem:[%s4153_s30 + $0x1e0] sm:$0xff] }
 0x265   : > { %v2868_v60 = vsel %vm2860_vm13, 2147483647, %v2852_v9  ;;  %v2869_v14 = vsel %vm2861_vm2, 2147483647, %v2853_v45  ;;  %v2870_v50 = vsel %vm2862_vm9, 2147483647, %v2854_v39  ;;  %vm2876_vm5 = vcmp.gt.s32.totalorder %v2867_v58, %v8836_v26 }
 0x266   : > { %v2871_v21 = vsel %vm2863_vm7, 2147483647, %v2855_v20  ;;  %v2872_v44 = vsel %vm2864_vm6, 2147483647, %v2856_v62  ;;  %v2873_v6 = vsel %vm2865_vm10, 2147483647, %v2857_v54  ;;  %vm2877_vm4 = vcmp.gt.s32.totalorder %v2868_v60, %v8841_v5 }
 0x267   : > { %v8971_v23 = vsel %vm2866_vm12, 2147483647, %v2858_v59  ;;  %v8975_v11 = vadd.s32 216, %v4178_v47  ;;  %vm2878_vm14 = vcmp.gt.s32.totalorder %v2869_v14, %v8846_v49  ;;  %vm2879_vm0 = vcmp.gt.s32.totalorder %v2870_v50, %v8851_v37 }
 0x268   : > { %vm2880_vm3 = vcmp.gt.s32.totalorder %v2871_v21, %v8856_v34  ;;  %v8985_v16 = vsel %vm2785_vm11, %v8816_v4, %v8828_v63  ;;  %vm2881_vm1 = vcmp.gt.s32.totalorder %v2872_v44, %v8870_v61  ;;  %vm2882_vm8 = vcmp.gt.s32.totalorder %v2873_v6, %v8875_v24  ;;  %v9012_v63 = vld [vmem:[%s4153_s30 + $0xe0] sm:$0xff] }
 0x269   : > { %vm2883_vm15 = vcmp.gt.s32.totalorder %v8971_v23, %v8882_v56  ;;  %v8994_v8 = vsel %vm2876_vm5, %v2867_v58, %v8836_v26  ;;  %v8999_v33 = vsel %vm2877_vm4, %v2868_v60, %v8841_v5  ;;  %v9004_v12 = vsel %vm2878_vm14, %v2869_v14, %v8846_v49  ;;  %v3802_v26 = vld [vmem:[%s4153_s30 + $0x5e0] sm:$0xff] }
 0x26a   : > { %v9009_v4 = vsel %vm2879_vm0, %v2870_v50, %v8851_v37  ;;  %v9020_v35 = vsel %vm2880_vm3, %v2871_v21, %v8856_v34  ;;  %v9025_v42 = vsel %vm2881_vm1, %v2872_v44, %v8870_v61  ;;  %v9030_v15 = vsel %vm2882_vm8, %v2873_v6, %v8875_v24 }
 0x26b   : > { %v9037_v32 = vsel %vm2883_vm15, %v8971_v23, %v8882_v56  ;;  %v9052_v46 = vsel %vm2876_vm5, %v8975_v11, %v8888_v25  ;;  %v9058_v51 = vsel %vm2877_vm4, %v8975_v11, %v8903_v52  ;;  %v9064_v0 = vsel %vm2878_vm14, %v8975_v11, %v8909_v40  ;;  %v3803_v25 = vld [vmem:[%s4153_s30 + $0x6e0] sm:$0xff]  ;;  %v9158_v56 = vld [vmem:[%s4153_s30 + $0xe8] sm:$0xff] }
 0x26c   : > { %v9070_v3 = vsel %vm2879_vm0, %v8975_v11, %v8915_v38  ;;  %v9079_v5 = vsel %vm2880_vm3, %v8975_v11, %v8921_v22  ;;  %v9085_v49 = vsel %vm2881_vm1, %v8975_v11, %v8929_v2  ;;  %v9091_v37 = vsel %vm2882_vm8, %v8975_v11, %v8935_v28  ;;  %v9161_v23 = vld [vmem:[%s4153_s30 + $0x1e8] sm:$0xff] }
 0x26d   : > { %v2917_v52 = vshra.s32 %v9012_v63, 31  ;;  %v2918_v40 = vshra.s32 %v9015_v53, 31  ;;  %v2919_v34 = vshra.s32 %v9040_v18, 31  ;;  %v2920_v38 = vshra.s32 %v9043_v13, 31 }
 0x26e   : > { %v2921_v22 = vshra.s32 %v9046_v36, 31  ;;  %v2922_v57 = vshra.s32 %v3802_v26, 31  ;;  %v2923_v61 = vshra.s32 %v3803_v25, 31  ;;  %v2924_v2 = vshra.s32 %v3804_v31, 31 }
 0x26f   : > { %v2925_v17 = vand.u32 2147483647, %v2917_v52  ;;  %v2926_v30 = vand.u32 2147483647, %v2918_v40  ;;  %v2927_v43 = vand.u32 2147483647, %v2919_v34  ;;  %vm2957_vm11 = vcmp.ne.f32.partialorder %v9012_v63, %v9012_v63 }
 0x270   : > { %v2928_v27 = vand.u32 2147483647, %v2920_v38  ;;  %v2929_v24 = vand.u32 2147483647, %v2921_v22  ;;  %v2930_v28 = vand.u32 2147483647, %v2922_v57  ;;  %vm2958_vm4 = vcmp.ne.f32.partialorder %v9015_v53, %v9015_v53 }
 0x271   : > { %v2931_v55 = vand.u32 2147483647, %v2923_v61  ;;  %v2933_v1 = vxor.u32 %v9012_v63, %v2925_v17  ;;  %v2932_v10 = vand.u32 2147483647, %v2924_v2  ;;  %v2934_v7 = vxor.u32 %v9015_v53, %v2926_v30  ;;  %v9184_v38 = vld [vmem:[%s4153_s30 + $0x2e8] sm:$0xff] }
 0x272   : > { %v2935_v41 = vxor.u32 %v9040_v18, %v2927_v43  ;;  %v2936_v48 = vxor.u32 %v9043_v13, %v2928_v27  ;;  %v2937_v29 = vxor.u32 %v9046_v36, %v2929_v24  ;;  %v2938_v19 = vxor.u32 %v3802_v26, %v2930_v28  ;;  %v9187_v22 = vld [vmem:[%s4153_s30 + $0x3e8] sm:$0xff] }
 0x273   : > { %v2939_v9 = vxor.u32 %v3803_v25, %v2931_v55  ;;  %vm2941_vm13 = vcmp.eq.f32.partialorder %v9012_v63, 0.0  ;;  %v2940_v45 = vxor.u32 %v3804_v31, %v2932_v10  ;;  %vm2942_vm2 = vcmp.eq.f32.partialorder %v9015_v53, 0.0  ;;  %v9190_v57 = vld [vmem:[%s4153_s30 + $0x4e8] sm:$0xff] }
 0x274   : > { %vm2943_vm9 = vcmp.eq.f32.partialorder %v9040_v18, 0.0  ;;  %vm2944_vm7 = vcmp.eq.f32.partialorder %v9043_v13, 0.0  ;;  %vm2945_vm6 = vcmp.eq.f32.partialorder %v9046_v36, 0.0  ;;  %vm2946_vm10 = vcmp.eq.f32.partialorder %v3802_v26, 0.0  ;;  %v3810_v43 = vld [vmem:[%s4153_s30 + $0x5e8] sm:$0xff] }
 0x275   : > { %vm2947_vm12 = vcmp.eq.f32.partialorder %v3803_v25, 0.0  ;;  %vm2948_vm5 = vcmp.eq.f32.partialorder %v3804_v31, 0.0  ;;  %v2949_v39 = vsel %vm2941_vm13, 0, %v2933_v1  ;;  %v2950_v20 = vsel %vm2942_vm2, 0, %v2934_v7  ;;  %v9219_v27 = vld [vmem:[%s4153_s30 + $0x6e8] sm:$0xff] }
 0x276   : > { %v2951_v62 = vsel %vm2943_vm9, 0, %v2935_v41  ;;  %v2952_v54 = vsel %vm2944_vm7, 0, %v2936_v48  ;;  %v2953_v59 = vsel %vm2945_vm6, 0, %v2937_v29  ;;  %v2954_v58 = vsel %vm2946_vm10, 0, %v2938_v19  ;;  %v9222_v24 = vld [vmem:[%s4153_s30 + $0x7e8] sm:$0xff] }
 0x277   : > { %v2955_v60 = vsel %vm2947_vm12, 0, %v2939_v9  ;;  %v2956_v14 = vsel %vm2948_vm5, 0, %v2940_v45  ;;  %vm2959_vm14 = vcmp.ne.f32.partialorder %v9040_v18, %v9040_v18  ;;  %vm2960_vm0 = vcmp.ne.f32.partialorder %v9043_v13, %v9043_v13 }
 0x278   : > { %vm2961_vm3 = vcmp.ne.f32.partialorder %v9046_v36, %v9046_v36  ;;  %vm2962_vm1 = vcmp.ne.f32.partialorder %v3802_v26, %v3802_v26  ;;  %vm2963_vm8 = vcmp.ne.f32.partialorder %v3803_v25, %v3803_v25  ;;  %vm2964_vm13 = vcmp.ne.f32.partialorder %v3804_v31, %v3804_v31 }
 0x279   : > { %v2965_v50 = vsel %vm2957_vm11, 2147483647, %v2949_v39  ;;  %v2966_v21 = vsel %vm2958_vm4, 2147483647, %v2950_v20  ;;  %v2967_v44 = vsel %vm2959_vm14, 2147483647, %v2951_v62  ;;  %v9140_v63 = vsel %vm2883_vm15, %v8975_v11, %v8985_v16 }
 0x27a   : > { %v2968_v6 = vsel %vm2960_vm0, 2147483647, %v2952_v54  ;;  %vm2974_vm2 = vcmp.gt.s32.totalorder %v2965_v50, %v8994_v8  ;;  %v2969_v53 = vsel %vm2961_vm3, 2147483647, %v2953_v59  ;;  %v2970_v18 = vsel %vm2962_vm1, 2147483647, %v2954_v58 }
 0x27b   : > { %v2971_v13 = vsel %vm2963_vm8, 2147483647, %v2955_v60  ;;  %vm2975_vm9 = vcmp.gt.s32.totalorder %v2966_v21, %v8999_v33  ;;  %v9123_v36 = vsel %vm2964_vm13, 2147483647, %v2956_v14  ;;  %v9126_v26 = vadd.s32 224, %v4178_v47 }
 0x27c   : > { %vm2976_vm7 = vcmp.gt.s32.totalorder %v2967_v44, %v9004_v12  ;;  %vm2977_vm11 = vcmp.gt.s32.totalorder %v2968_v6, %v9009_v4  ;;  %vm2978_vm6 = vcmp.gt.s32.totalorder %v2969_v53, %v9020_v35  ;;  %vm2979_vm10 = vcmp.gt.s32.totalorder %v2970_v18, %v9025_v42 }
 0x27d   : > { %vm2980_vm12 = vcmp.gt.s32.totalorder %v2971_v13, %v9030_v15  ;;  %vm2981_vm5 = vcmp.gt.s32.totalorder %v9123_v36, %v9037_v32  ;;  %v9145_v25 = vsel %vm2974_vm2, %v2965_v50, %v8994_v8  ;;  %v9150_v31 = vsel %vm2975_vm9, %v2966_v21, %v8999_v33 }
 0x27e   : > { %v9155_v52 = vsel %vm2976_vm7, %v2967_v44, %v9004_v12  ;;  %v9166_v11 = vsel %vm2977_vm11, %v2968_v6, %v9009_v4  ;;  %v9171_v16 = vsel %vm2978_vm6, %v2969_v53, %v9020_v35  ;;  %v9176_v40 = vsel %vm2979_vm10, %v2970_v18, %v9025_v42 }
 0x27f   : > { %v9181_v34 = vsel %vm2980_vm12, %v2971_v13, %v9030_v15  ;;  %v9197_v61 = vsel %vm2981_vm5, %v9123_v36, %v9037_v32  ;;  %v9203_v2 = vsel %vm2974_vm2, %v9126_v26, %v9052_v46  ;;  %v9209_v17 = vsel %vm2975_vm9, %v9126_v26, %v9058_v51 }
 0x280   : > { %v9215_v30 = vsel %vm2976_vm7, %v9126_v26, %v9064_v0  ;;  %v9228_v8 = vsel %vm2977_vm11, %v9126_v26, %v9070_v3  ;;  %v9234_v33 = vsel %vm2978_vm6, %v9126_v26, %v9079_v5  ;;  %v9240_v12 = vsel %vm2979_vm10, %v9126_v26, %v9085_v49 }
 0x281   : > { %v9246_v46 = vsel %vm2980_vm12, %v9126_v26, %v9091_v37  ;;  %v3015_v4 = vshra.s32 %v9158_v56, 31  ;;  %v3016_v51 = vshra.s32 %v9161_v23, 31  ;;  %v3017_v35 = vshra.s32 %v9184_v38, 31 }
 0x282   : > { %v3018_v0 = vshra.s32 %v9187_v22, 31  ;;  %v3019_v3 = vshra.s32 %v9190_v57, 31  ;;  %v3020_v5 = vshra.s32 %v3810_v43, 31  ;;  %v3021_v42 = vshra.s32 %v9219_v27, 31 }
 0x283   : > { %v3022_v49 = vshra.s32 %v9222_v24, 31  ;;  %v3023_v28 = vand.u32 2147483647, %v3015_v4  ;;  %v3024_v55 = vand.u32 2147483647, %v3016_v51  ;;  %vm3055_vm15 = vcmp.ne.f32.partialorder %v9158_v56, %v9158_v56  ;;  %v9334_v4 = vld [vmem:[%s4153_s30 + $0xf0] sm:$0xff] }
 0x284   : > { %v3025_v15 = vand.u32 2147483647, %v3017_v35  ;;  %v3026_v37 = vand.u32 2147483647, %v3018_v0  ;;  %v3027_v1 = vand.u32 2147483647, %v3019_v3  ;;  %vm3056_vm4 = vcmp.ne.f32.partialorder %v9161_v23, %v9161_v23 }
 0x285   : > { %v3028_v10 = vand.u32 2147483647, %v3020_v5  ;;  %v3029_v7 = vand.u32 2147483647, %v3021_v42  ;;  %v3030_v41 = vand.u32 2147483647, %v3022_v49  ;;  %v3031_v48 = vxor.u32 %v9158_v56, %v3023_v28 }
 0x286   : > { %v3032_v29 = vxor.u32 %v9161_v23, %v3024_v55  ;;  %v3033_v19 = vxor.u32 %v9184_v38, %v3025_v15  ;;  %v3034_v9 = vxor.u32 %v9187_v22, %v3026_v37  ;;  %v3035_v45 = vxor.u32 %v9190_v57, %v3027_v1  ;;  %v9337_v51 = vld [vmem:[%s4153_s30 + $0x1f0] sm:$0xff] }
 0x287   : > { %v3036_v39 = vxor.u32 %v3810_v43, %v3028_v10  ;;  %v3037_v20 = vxor.u32 %v9219_v27, %v3029_v7  ;;  %v3038_v62 = vxor.u32 %v9222_v24, %v3030_v41  ;;  %vm3039_vm14 = vcmp.eq.f32.partialorder %v9158_v56, 0.0  ;;  %v9340_v35 = vld [vmem:[%s4153_s30 + $0x2f0] sm:$0xff] }
 0x288   : > { %vm3040_vm0 = vcmp.eq.f32.partialorder %v9161_v23, 0.0  ;;  %vm3041_vm3 = vcmp.eq.f32.partialorder %v9184_v38, 0.0  ;;  %vm3042_vm1 = vcmp.eq.f32.partialorder %v9187_v22, 0.0  ;;  %vm3043_vm8 = vcmp.eq.f32.partialorder %v9190_v57, 0.0  ;;  %v9363_v49 = vld [vmem:[%s4153_s30 + $0x3f0] sm:$0xff] }
 0x289   : > { %vm3044_vm13 = vcmp.eq.f32.partialorder %v3810_v43, 0.0  ;;  %vm3045_vm2 = vcmp.eq.f32.partialorder %v9219_v27, 0.0  ;;  %vm3046_vm9 = vcmp.eq.f32.partialorder %v9222_v24, 0.0  ;;  %v3047_v54 = vsel %vm3039_vm14, 0, %v3031_v48  ;;  %v9366_v28 = vld [vmem:[%s4153_s30 + $0x4f0] sm:$0xff] }
 0x28a   : > { %v3048_v59 = vsel %vm3040_vm0, 0, %v3032_v29  ;;  %v3049_v58 = vsel %vm3041_vm3, 0, %v3033_v19  ;;  %v3050_v60 = vsel %vm3042_vm1, 0, %v3034_v9  ;;  %v3051_v14 = vsel %vm3043_vm8, 0, %v3035_v45  ;;  %v9369_v55 = vld [vmem:[%s4153_s30 + $0x5f0] sm:$0xff] }
 0x28b   : > { %v3052_v50 = vsel %vm3044_vm13, 0, %v3036_v39  ;;  %v3053_v21 = vsel %vm3045_vm2, 0, %v3037_v20  ;;  %v3054_v44 = vsel %vm3046_vm9, 0, %v3038_v62  ;;  %vm3057_vm7 = vcmp.ne.f32.partialorder %v9184_v38, %v9184_v38  ;;  %v3820_v37 = vld [vmem:[%s4153_s30 + $0x7f0] sm:$0xff] }
 0x28c   : > { %vm3058_vm11 = vcmp.ne.f32.partialorder %v9187_v22, %v9187_v22  ;;  %vm3059_vm6 = vcmp.ne.f32.partialorder %v9190_v57, %v9190_v57  ;;  %vm3060_vm10 = vcmp.ne.f32.partialorder %v3810_v43, %v3810_v43  ;;  %vm3061_vm12 = vcmp.ne.f32.partialorder %v9219_v27, %v9219_v27 }
 0x28d   : > { %vm3062_vm14 = vcmp.ne.f32.partialorder %v9222_v24, %v9222_v24  ;;  %v2997_v6 = vsel %vm2981_vm5, %v9126_v26, %v9140_v63  ;;  %v3063_v53 = vsel %vm3055_vm15, 2147483647, %v3047_v54  ;;  %v3064_v18 = vsel %vm3056_vm4, 2147483647, %v3048_v59 }
 0x28e   : > { %v3065_v13 = vsel %vm3057_vm7, 2147483647, %v3049_v58  ;;  %v3066_v38 = vsel %vm3058_vm11, 2147483647, %v3050_v60  ;;  %v3067_v22 = vsel %vm3059_vm6, 2147483647, %v3051_v14  ;;  %vm3072_vm0 = vcmp.gt.s32.totalorder %v3063_v53, %v9145_v25 }
 0x28f   : > { %v3068_v57 = vsel %vm3060_vm10, 2147483647, %v3052_v50  ;;  %v3069_v43 = vsel %vm3061_vm12, 2147483647, %v3053_v21  ;;  %v3070_v27 = vsel %vm3062_vm14, 2147483647, %v3054_v44  ;;  %vm3073_vm5 = vcmp.gt.s32.totalorder %v3064_v18, %v9150_v31 }
 0x290   : > { %v3071_v32 = vadd.s32 232, %v4178_v47  ;;  %vm3074_vm15 = vcmp.gt.s32.totalorder %v3065_v13, %v9155_v52  ;;  %vm3075_vm3 = vcmp.gt.s32.totalorder %v3066_v38, %v9166_v11  ;;  %vm3076_vm4 = vcmp.gt.s32.totalorder %v3067_v22, %v9171_v16 }
 0x291   : > { %vm3077_vm1 = vcmp.gt.s32.totalorder %v3068_v57, %v9176_v40  ;;  %vm3078_vm8 = vcmp.gt.s32.totalorder %v3069_v43, %v9181_v34  ;;  %vm3079_vm13 = vcmp.gt.s32.totalorder %v3070_v27, %v9197_v61  ;;  %v9306_v36 = vsel %vm3072_vm0, %v3063_v53, %v9145_v25 }
 0x292   : > { %v9311_v26 = vsel %vm3073_vm5, %v3064_v18, %v9150_v31  ;;  %v9316_v63 = vsel %vm3074_vm15, %v3065_v13, %v9155_v52  ;;  %v9321_v56 = vsel %vm3075_vm3, %v3066_v38, %v9166_v11  ;;  %v9326_v23 = vsel %vm3076_vm4, %v3067_v22, %v9171_v16 }
 0x293   : > { %v9331_v24 = vsel %vm3077_vm1, %v3068_v57, %v9176_v40  ;;  %v9345_v0 = vsel %vm3078_vm8, %v3069_v43, %v9181_v34  ;;  %v9350_v3 = vsel %vm3079_vm13, %v3070_v27, %v9197_v61  ;;  %v9355_v5 = vsel %vm3072_vm0, %v3071_v32, %v9203_v2 }
 0x294   : > { %v9360_v42 = vsel %vm3073_vm5, %v3071_v32, %v9209_v17  ;;  %v9374_v15 = vsel %vm3074_vm15, %v3071_v32, %v9215_v30  ;;  %v9379_v25 = vsel %vm3075_vm3, %v3071_v32, %v9228_v8  ;;  %v9384_v31 = vsel %vm3076_vm4, %v3071_v32, %v9234_v33  ;;  %v3819_v17 = vld [vmem:[%s4153_s30 + $0x6f0] sm:$0xff] }
 0x295   : > { %v9389_v2 = vsel %vm3077_vm1, %v3071_v32, %v9240_v12  ;;  %v9396_v52 = vsel %vm3078_vm8, %v3071_v32, %v9246_v46  ;;  %v9400_v11 = vsel %vm3079_vm13, %v3071_v32, %v2997_v6  ;;  %v3113_v16 = vshra.s32 %v9334_v4, 31 }
 0x296   : > { %v3114_v30 = vshra.s32 %v9337_v51, 31  ;;  %v3115_v8 = vshra.s32 %v9340_v35, 31  ;;  %v3116_v40 = vshra.s32 %v9363_v49, 31  ;;  %v3117_v33 = vshra.s32 %v9366_v28, 31 }
 0x297   : > { %v3118_v12 = vshra.s32 %v9369_v55, 31  ;;  %vm3153_vm2 = vcmp.ne.f32.partialorder %v9334_v4, %v9334_v4  ;;  %v3119_v34 = vshra.s32 %v3819_v17, 31  ;;  %v3120_v46 = vshra.s32 %v3820_v37, 31 }
 0x298   : > { %v3121_v61 = vand.u32 2147483647, %v3113_v16  ;;  %v3122_v1 = vand.u32 2147483647, %v3114_v30  ;;  %v3123_v10 = vand.u32 2147483647, %v3115_v8  ;;  %vm3154_vm9 = vcmp.ne.f32.partialorder %v9337_v51, %v9337_v51 }
 0x299   : > { %v3124_v7 = vand.u32 2147483647, %v3116_v40  ;;  %v3125_v41 = vand.u32 2147483647, %v3117_v33  ;;  %v3126_v48 = vand.u32 2147483647, %v3118_v12  ;;  %vm3155_vm15 = vcmp.ne.f32.partialorder %v9340_v35, %v9340_v35 }
 0x29a   : > { %v3127_v29 = vand.u32 2147483647, %v3119_v34  ;;  %v3128_v19 = vand.u32 2147483647, %v3120_v46  ;;  %v3129_v9 = vxor.u32 %v9334_v4, %v3121_v61  ;;  %v3130_v45 = vxor.u32 %v9337_v51, %v3122_v1  ;;  %v9478_v16 = vld [vmem:[%s4153_s30 + $0xf8] sm:$0xff] }
 0x29b   : > { %v3131_v39 = vxor.u32 %v9340_v35, %v3123_v10  ;;  %v3132_v20 = vxor.u32 %v9363_v49, %v3124_v7  ;;  %v3133_v62 = vxor.u32 %v9366_v28, %v3125_v41  ;;  %v3134_v54 = vxor.u32 %v9369_v55, %v3126_v48  ;;  %v9481_v30 = vld [vmem:[%s4153_s30 + $0x1f8] sm:$0xff] }
 0x29c   : > { %v3135_v59 = vxor.u32 %v3819_v17, %v3127_v29  ;;  %v3136_v58 = vxor.u32 %v3820_v37, %v3128_v19  ;;  %vm3137_vm7 = vcmp.eq.f32.partialorder %v9334_v4, 0.0  ;;  %vm3138_vm11 = vcmp.eq.f32.partialorder %v9337_v51, 0.0  ;;  %v9484_v8 = vld [vmem:[%s4153_s30 + $0x2f8] sm:$0xff] }
 0x29d   : > { %vm3139_vm6 = vcmp.eq.f32.partialorder %v9340_v35, 0.0  ;;  %vm3140_vm10 = vcmp.eq.f32.partialorder %v9363_v49, 0.0  ;;  %vm3141_vm12 = vcmp.eq.f32.partialorder %v9366_v28, 0.0  ;;  %vm3142_vm14 = vcmp.eq.f32.partialorder %v9369_v55, 0.0  ;;  %v9507_v46 = vld [vmem:[%s4153_s30 + $0x3f8] sm:$0xff] }
 0x29e   : > { %vm3143_vm0 = vcmp.eq.f32.partialorder %v3819_v17, 0.0  ;;  %vm3144_vm5 = vcmp.eq.f32.partialorder %v3820_v37, 0.0  ;;  %v3145_v60 = vsel %vm3137_vm7, 0, %v3129_v9  ;;  %v3146_v14 = vsel %vm3138_vm11, 0, %v3130_v45  ;;  %v9510_v61 = vld [vmem:[%s4153_s30 + $0x4f8] sm:$0xff] }
 0x29f   : > { %v3147_v50 = vsel %vm3139_vm6, 0, %v3131_v39  ;;  %v3148_v21 = vsel %vm3140_vm10, 0, %v3132_v20  ;;  %v3149_v44 = vsel %vm3141_vm12, 0, %v3133_v62  ;;  %v3150_v6 = vsel %vm3142_vm14, 0, %v3134_v54  ;;  %v9513_v1 = vld [vmem:[%s4153_s30 + $0x5f8] sm:$0xff] }
 0x2a0   : > { %v3151_v53 = vsel %vm3143_vm0, 0, %v3135_v59  ;;  %v3152_v18 = vsel %vm3144_vm5, 0, %v3136_v58  ;;  %vm3156_vm3 = vcmp.ne.f32.partialorder %v9363_v49, %v9363_v49  ;;  %vm3157_vm4 = vcmp.ne.f32.partialorder %v9366_v28, %v9366_v28  ;;  %v3828_v7 = vld [vmem:[%s4153_s30 + $0x7f8] sm:$0xff] }
 0x2a1   : > { %vm3158_vm1 = vcmp.ne.f32.partialorder %v9369_v55, %v9369_v55  ;;  %vm3159_vm8 = vcmp.ne.f32.partialorder %v3819_v17, %v3819_v17  ;;  %vm3160_vm13 = vcmp.ne.f32.partialorder %v3820_v37, %v3820_v37  ;;  %v3161_v13 = vsel %vm3153_vm2, 2147483647, %v3145_v60 }
 0x2a2   : > { %v3162_v38 = vsel %vm3154_vm9, 2147483647, %v3146_v14  ;;  %v3163_v22 = vsel %vm3155_vm15, 2147483647, %v3147_v50  ;;  %v3164_v57 = vsel %vm3156_vm3, 2147483647, %v3148_v21  ;;  %vm3170_vm7 = vcmp.gt.s32.totalorder %v3161_v13, %v9306_v36 }
 0x2a3   : > { %v3165_v43 = vsel %vm3157_vm4, 2147483647, %v3149_v44  ;;  %v3166_v27 = vsel %vm3158_vm1, 2147483647, %v3150_v6  ;;  %v3167_v32 = vsel %vm3159_vm8, 2147483647, %v3151_v53  ;;  %vm3171_vm11 = vcmp.gt.s32.totalorder %v3162_v38, %v9311_v26 }
 0x2a4   : > { %v3168_v35 = vsel %vm3160_vm13, 2147483647, %v3152_v18  ;;  %v3169_v49 = vadd.s32 240, %v4178_v47  ;;  %vm3172_vm2 = vcmp.gt.s32.totalorder %v3163_v22, %v9316_v63  ;;  %vm3173_vm6 = vcmp.gt.s32.totalorder %v3164_v57, %v9321_v56 }
 0x2a5   : > { %vm3174_vm9 = vcmp.gt.s32.totalorder %v3165_v43, %v9326_v23  ;;  %vm3175_vm10 = vcmp.gt.s32.totalorder %v3166_v27, %v9331_v24  ;;  %vm3176_vm12 = vcmp.gt.s32.totalorder %v3167_v32, %v9345_v0  ;;  %vm3177_vm14 = vcmp.gt.s32.totalorder %v3168_v35, %v9350_v3 }
 0x2a6   : > { %v9450_v4 = vsel %vm3170_vm7, %v3161_v13, %v9306_v36  ;;  %v9455_v51 = vsel %vm3171_vm11, %v3162_v38, %v9311_v26  ;;  %v9460_v28 = vsel %vm3172_vm2, %v3163_v22, %v9316_v63  ;;  %v9465_v55 = vsel %vm3173_vm6, %v3164_v57, %v9321_v56 }
 0x2a7   : > { %v9470_v17 = vsel %vm3174_vm9, %v3165_v43, %v9326_v23  ;;  %v9475_v37 = vsel %vm3175_vm10, %v3166_v27, %v9331_v24  ;;  %v9489_v40 = vsel %vm3176_vm12, %v3167_v32, %v9345_v0  ;;  %v9494_v33 = vsel %vm3177_vm14, %v3168_v35, %v9350_v3 }
 0x2a8   : > { %v9499_v12 = vsel %vm3170_vm7, %v3169_v49, %v9355_v5  ;;  %v9504_v34 = vsel %vm3171_vm11, %v3169_v49, %v9360_v42  ;;  %v9518_v10 = vsel %vm3172_vm2, %v3169_v49, %v9374_v15  ;;  %v9523_v36 = vsel %vm3173_vm6, %v3169_v49, %v9379_v25  ;;  %v3827_v42 = vld [vmem:[%s4153_s30 + $0x6f8] sm:$0xff] }
 0x2a9   : > { %v9528_v26 = vsel %vm3174_vm9, %v3169_v49, %v9384_v31  ;;  %v9533_v5 = vsel %vm3175_vm10, %v3169_v49, %v9389_v2  ;;  %v9540_v63 = vsel %vm3176_vm12, %v3169_v49, %v9396_v52  ;;  %v9545_v56 = vsel %vm3177_vm14, %v3169_v49, %v9400_v11 }
 0x2aa   : > { %v3211_v23 = vshra.s32 %v9478_v16, 31  ;;  %v3212_v15 = vshra.s32 %v9481_v30, 31  ;;  %v3213_v24 = vshra.s32 %v9484_v8, 31  ;;  %v3214_v25 = vshra.s32 %v9507_v46, 31 }
 0x2ab   : > { %v3215_v31 = vshra.s32 %v9510_v61, 31  ;;  %v3216_v2 = vshra.s32 %v9513_v1, 31  ;;  %v3217_v0 = vshra.s32 %v3827_v42, 31  ;;  %v3218_v52 = vshra.s32 %v3828_v7, 31 }
 0x2ac   : > { %v3219_v41 = vand.u32 2147483647, %v3211_v23  ;;  %v3220_v48 = vand.u32 2147483647, %v3212_v15  ;;  %v3221_v29 = vand.u32 2147483647, %v3213_v24  ;;  %vm3251_vm0 = vcmp.ne.f32.partialorder %v9478_v16, %v9478_v16 }
 0x2ad   : > { %v3222_v3 = vand.u32 2147483647, %v3214_v25  ;;  %v3223_v11 = vand.u32 2147483647, %v3215_v31  ;;  %v3224_v19 = vand.u32 2147483647, %v3216_v2  ;;  %vm3252_vm11 = vcmp.ne.f32.partialorder %v9481_v30, %v9481_v30 }
 0x2ae   : > { %v3225_v9 = vand.u32 2147483647, %v3217_v0  ;;  %v3226_v45 = vand.u32 2147483647, %v3218_v52  ;;  %v3227_v39 = vxor.u32 %v9478_v16, %v3219_v41  ;;  %v3228_v20 = vxor.u32 %v9481_v30, %v3220_v48 }
 0x2af   : > { %v3229_v62 = vxor.u32 %v9484_v8, %v3221_v29  ;;  %v3230_v54 = vxor.u32 %v9507_v46, %v3222_v3  ;;  %v3231_v59 = vxor.u32 %v9510_v61, %v3223_v11  ;;  %v3232_v58 = vxor.u32 %v9513_v1, %v3224_v19 }
 0x2b0   : > { %v3233_v60 = vxor.u32 %v3827_v42, %v3225_v9  ;;  %v3234_v14 = vxor.u32 %v3828_v7, %v3226_v45  ;;  %vm3235_vm5 = vcmp.eq.f32.partialorder %v9478_v16, 0.0  ;;  %vm3236_vm15 = vcmp.eq.f32.partialorder %v9481_v30, 0.0 }
 0x2b1   : > { %vm3237_vm3 = vcmp.eq.f32.partialorder %v9484_v8, 0.0  ;;  %vm3238_vm4 = vcmp.eq.f32.partialorder %v9507_v46, 0.0  ;;  %vm3239_vm1 = vcmp.eq.f32.partialorder %v9510_v61, 0.0  ;;  %vm3240_vm8 = vcmp.eq.f32.partialorder %v9513_v1, 0.0 }
 0x2b2   : > { %vm3241_vm13 = vcmp.eq.f32.partialorder %v3827_v42, 0.0  ;;  %vm3242_vm7 = vcmp.eq.f32.partialorder %v3828_v7, 0.0  ;;  %v3243_v50 = vsel %vm3235_vm5, 0, %v3227_v39  ;;  %v3244_v21 = vsel %vm3236_vm15, 0, %v3228_v20 }
 0x2b3   : > { %v3245_v44 = vsel %vm3237_vm3, 0, %v3229_v62  ;;  %v3246_v6 = vsel %vm3238_vm4, 0, %v3230_v54  ;;  %v3247_v53 = vsel %vm3239_vm1, 0, %v3231_v59  ;;  %v3248_v18 = vsel %vm3240_vm8, 0, %v3232_v58 }
 0x2b4   : > { %v3249_v13 = vsel %vm3241_vm13, 0, %v3233_v60  ;;  %v3250_v38 = vsel %vm3242_vm7, 0, %v3234_v14  ;;  %vm3253_vm2 = vcmp.ne.f32.partialorder %v9484_v8, %v9484_v8  ;;  %vm3254_vm6 = vcmp.ne.f32.partialorder %v9507_v46, %v9507_v46 }
 0x2b5   : > { %vm3255_vm9 = vcmp.ne.f32.partialorder %v9510_v61, %v9510_v61  ;;  %vm3256_vm10 = vcmp.ne.f32.partialorder %v9513_v1, %v9513_v1  ;;  %vm3257_vm12 = vcmp.ne.f32.partialorder %v3827_v42, %v3827_v42  ;;  %vm3258_vm14 = vcmp.ne.f32.partialorder %v3828_v7, %v3828_v7 }
 0x2b6   : > { %v3259_v22 = vsel %vm3251_vm0, 2147483647, %v3243_v50  ;;  %v3260_v57 = vsel %vm3252_vm11, 2147483647, %v3244_v21  ;;  %v3261_v43 = vsel %vm3253_vm2, 2147483647, %v3245_v44 }
 0x2b7   : > { %v3262_v27 = vsel %vm3254_vm6, 2147483647, %v3246_v6  ;;  %v3263_v32 = vsel %vm3255_vm9, 2147483647, %v3247_v53  ;;  %vm3268_vm5 = vcmp.gt.s32.totalorder %v3259_v22, %v9450_v4  ;;  %v3264_v35 = vsel %vm3256_vm10, 2147483647, %v3248_v18 }
 0x2b8   : > { %v3265_v49 = vsel %vm3257_vm12, 2147483647, %v3249_v13  ;;  %v3266_v30 = vsel %vm3258_vm14, 2147483647, %v3250_v38  ;;  %vm3269_vm15 = vcmp.gt.s32.totalorder %v3260_v57, %v9455_v51  ;;  %v3267_v8 = vadd.s32 248, %v4178_v47 }
 0x2b9   : > { %vm3270_vm3 = vcmp.gt.s32.totalorder %v3261_v43, %v9460_v28  ;;  %vm3271_vm4 = vcmp.gt.s32.totalorder %v3262_v27, %v9465_v55  ;;  %vm3272_vm1 = vcmp.gt.s32.totalorder %v3263_v32, %v9470_v17  ;;  %vm3273_vm0 = vcmp.gt.s32.totalorder %v3264_v35, %v9475_v37 }
 0x2ba   : > { %vm3274_vm8 = vcmp.gt.s32.totalorder %v3265_v49, %v9489_v40  ;;  %vm3275_vm13 = vcmp.gt.s32.totalorder %v3266_v30, %v9494_v33  ;;  %v9592_v16 = vsel %vm3268_vm5, %v3259_v22, %v9450_v4  ;;  %v9597_v47 = vsel %vm3269_vm15, %v3260_v57, %v9455_v51 }
 0x2bb   : > { %v9602_v46 = vsel %vm3270_vm3, %v3261_v43, %v9460_v28  ;;  %v9607_v61 = vsel %vm3271_vm4, %v3262_v27, %v9465_v55  ;;  %v9612_v1 = vsel %vm3272_vm1, %v3263_v32, %v9470_v17  ;;  %v9617_v42 = vsel %vm3273_vm0, %v3264_v35, %v9475_v37 }
 0x2bc   : > { %v9622_v7 = vsel %vm3274_vm8, %v3265_v49, %v9489_v40  ;;  %v9627_v23 = vsel %vm3275_vm13, %v3266_v30, %v9494_v33  ;;  %v9632_v15 = vsel %vm3268_vm5, %v3267_v8, %v9499_v12  ;;  %v9637_v24 = vsel %vm3269_vm15, %v3267_v8, %v9504_v34 }
 0x2bd   : > { %v9642_v25 = vsel %vm3270_vm3, %v3267_v8, %v9518_v10  ;;  %v9647_v31 = vsel %vm3271_vm4, %v3267_v8, %v9523_v36  ;;  %v9652_v4 = vsel %vm3272_vm1, %v3267_v8, %v9528_v26  ;;  %v9657_v51 = vsel %vm3273_vm0, %v3267_v8, %v9533_v5 }
 0x2be   : > { %v9662_v28 = vsel %vm3274_vm8, %v3267_v8, %v9540_v63  ;;  %v9667_v55 = vsel %vm3275_vm13, %v3267_v8, %v9545_v56  ;;  %v3292_v12 = vrot.slane %v9592_v16, 4  ;;  %v3301_v17 = vrot.slane %v9597_v47, 4 }
 0x2bf   : > { %v3310_v34 = vrot.slane %v9602_v46, 4  ;;  %v3319_v37 = vrot.slane %v9607_v61, 4  ;;  %v3328_v10 = vrot.slane %v9612_v1, 4  ;;  %v3337_v40 = vrot.slane %v9617_v42, 4 }
 0x2c0   : > { %vm3293_vm7 = vcmp.gt.s32.totalorder %v9592_v16, %v3292_v12  ;;  %v3346_v36 = vrot.slane %v9622_v7, 4  ;;  %v3355_v33 = vrot.slane %v9627_v23, 4  ;;  %vm3302_vm11 = vcmp.gt.s32.totalorder %v9597_v47, %v3301_v17 }
 0x2c1   : > { %v3294_v26 = vsel %vm3293_vm7, %v9592_v16, %v3292_v12  ;;  %vm3311_vm2 = vcmp.gt.s32.totalorder %v9602_v46, %v3310_v34  ;;  %vm3320_vm6 = vcmp.gt.s32.totalorder %v9607_v61, %v3319_v37  ;;  %v3303_v63 = vsel %vm3302_vm11, %v9597_v47, %v3301_v17 }
 0x2c2   : > { %v3295_v5 = vrot.slane %v3294_v26, 2  ;;  %v3312_v56 = vsel %vm3311_vm2, %v9602_v46, %v3310_v34  ;;  %v3321_v2 = vsel %vm3320_vm6, %v9607_v61, %v3319_v37  ;;  %v3304_v0 = vrot.slane %v3303_v63, 2 }
 0x2c3   : > { %v3313_v52 = vrot.slane %v3312_v56, 2  ;;  %v3322_v41 = vrot.slane %v3321_v2, 2  ;;  %vm3329_vm9 = vcmp.gt.s32.totalorder %v9612_v1, %v3328_v10  ;;  %vm3338_vm12 = vcmp.gt.s32.totalorder %v9617_v42, %v3337_v40 }
 0x2c4   : > { %vm3296_vm10 = vcmp.gt.s32.totalorder %v3294_v26, %v3295_v5  ;;  %v3330_v48 = vsel %vm3329_vm9, %v9612_v1, %v3328_v10  ;;  %vm3347_vm14 = vcmp.gt.s32.totalorder %v9622_v7, %v3346_v36  ;;  %vm3305_vm5 = vcmp.gt.s32.totalorder %v3303_v63, %v3304_v0 }
 0x2c5   : > { %v3297_v29 = vsel %vm3296_vm10, %v3294_v26, %v3295_v5  ;;  %vm3314_vm15 = vcmp.gt.s32.totalorder %v3312_v56, %v3313_v52  ;;  %vm3323_vm3 = vcmp.gt.s32.totalorder %v3321_v2, %v3322_v41  ;;  %v3306_v11 = vsel %vm3305_vm5, %v3303_v63, %v3304_v0 }
 0x2c6   : > { %v3298_v3 = vrot.slane %v3297_v29, 1  ;;  %v3315_v19 = vsel %vm3314_vm15, %v3312_v56, %v3313_v52  ;;  %v3324_v9 = vsel %vm3323_vm3, %v3321_v2, %v3322_v41  ;;  %v3307_v45 = vrot.slane %v3306_v11, 1 }
 0x2c7   : > { %v3316_v39 = vrot.slane %v3315_v19, 1  ;;  %v3325_v20 = vrot.slane %v3324_v9, 1  ;;  %v3331_v62 = vrot.slane %v3330_v48, 2  ;;  %v3339_v54 = vsel %vm3338_vm12, %v9617_v42, %v3337_v40 }
 0x2c8   : > { %vm3299_vm4 = vcmp.gt.s32.totalorder %v3297_v29, %v3298_v3  ;;  %v3348_v59 = vsel %vm3347_vm14, %v9622_v7, %v3346_v36  ;;  %vm3356_vm1 = vcmp.gt.s32.totalorder %v9627_v23, %v3355_v33  ;;  %vm3308_vm0 = vcmp.gt.s32.totalorder %v3306_v11, %v3307_v45 }
 0x2c9   : > { %v3300_v58 = vsel %vm3299_vm4, %v3297_v29, %v3298_v3  ;;  %vm3317_vm8 = vcmp.gt.s32.totalorder %v3315_v19, %v3316_v39  ;;  %vm3326_vm13 = vcmp.gt.s32.totalorder %v3324_v9, %v3325_v20  ;;  %v3309_v60 = vsel %vm3308_vm0, %v3306_v11, %v3307_v45 }
 0x2ca   : > { %v3318_v14 = vsel %vm3317_vm8, %v3315_v19, %v3316_v39  ;;  %v3327_v50 = vsel %vm3326_vm13, %v3324_v9, %v3325_v20  ;;  %vm3332_vm7 = vcmp.gt.s32.totalorder %v3330_v48, %v3331_v62  ;;  %v3340_v44 = vrot.slane %v3339_v54, 2 }
 0x2cb   : > { %v3333_v21 = vsel %vm3332_vm7, %v3330_v48, %v3331_v62  ;;  %v3349_v6 = vrot.slane %v3348_v59, 2  ;;  %v3357_v53 = vsel %vm3356_vm1, %v9627_v23, %v3355_v33  ;;  %vm3364_vm11 = vcmp.eq.s32.totalorder %v9592_v16, %v3300_v58 }
 0x2cc   : > { %v3334_v18 = vrot.slane %v3333_v21, 1  ;;  %v3358_v13 = vrot.slane %v3357_v53, 2  ;;  %vm3365_vm2 = vcmp.eq.s32.totalorder %v9597_v47, %v3309_v60  ;;  %vm3341_vm6 = vcmp.gt.s32.totalorder %v3339_v54, %v3340_v44 }
 0x2cd   : > { %vm3350_vm9 = vcmp.gt.s32.totalorder %v3348_v59, %v3349_v6  ;;  %vm3366_vm10 = vcmp.eq.s32.totalorder %v9602_v46, %v3318_v14  ;;  %vm3367_vm12 = vcmp.eq.s32.totalorder %v9607_v61, %v3327_v50  ;;  %v3342_v38 = vsel %vm3341_vm6, %v3339_v54, %v3340_v44 }
 0x2ce   : > { %vm3335_vm14 = vcmp.gt.s32.totalorder %v3333_v21, %v3334_v18  ;;  %v3351_v22 = vsel %vm3350_vm9, %v3348_v59, %v3349_v6  ;;  %vm3359_vm5 = vcmp.gt.s32.totalorder %v3357_v53, %v3358_v13  ;;  %v3343_v43 = vrot.slane %v3342_v38, 1 }
 0x2cf   : > { %v3336_v57 = vsel %vm3335_vm14, %v3333_v21, %v3334_v18  ;;  %v3352_v27 = vrot.slane %v3351_v22, 1  ;;  %v3360_v32 = vsel %vm3359_vm5, %v3357_v53, %v3358_v13  ;;  %v3372_v49 = vsel %vm3364_vm11, %v9632_v15, 256 }
 0x2d0   : > { %v3361_v35 = vrot.slane %v3360_v32, 1  ;;  %vm3368_vm15 = vcmp.eq.s32.totalorder %v9612_v1, %v3336_v57  ;;  %v3373_v30 = vsel %vm3365_vm2, %v9637_v24, 256  ;;  %vm3344_vm3 = vcmp.gt.s32.totalorder %v3342_v38, %v3343_v43 }
 0x2d1   : > { %vm3353_vm4 = vcmp.gt.s32.totalorder %v3351_v22, %v3352_v27  ;;  %v3374_v8 = vsel %vm3366_vm10, %v9642_v25, 256  ;;  %v3375_v12 = vsel %vm3367_vm12, %v9647_v31, 256  ;;  %v3345_v17 = vsel %vm3344_vm3, %v3342_v38, %v3343_v43 }
 0x2d2   : > { %v3354_v1 = vsel %vm3353_vm4, %v3351_v22, %v3352_v27  ;;  %vm3362_vm1 = vcmp.gt.s32.totalorder %v3360_v32, %v3361_v35  ;;  %v3376_v16 = vsel %vm3368_vm15, %v9652_v4, 256  ;;  %vm3369_vm0 = vcmp.eq.s32.totalorder %v9617_v42, %v3345_v17 }
 0x2d3   : > { %v3363_v15 = vsel %vm3362_vm1, %v3360_v32, %v3361_v35  ;;  %vm3370_vm8 = vcmp.eq.s32.totalorder %v9622_v7, %v3354_v1  ;;  %v3380_v47 = vrot.slane %v3372_v49, 4  ;;  %v3377_v46 = vsel %vm3369_vm0, %v9657_v51, 256 }
 0x2d4   : > { %vm3371_vm13 = vcmp.eq.s32.totalorder %v9627_v23, %v3363_v15  ;;  %v9716_v24 = vsel %vm3370_vm8, %v9662_v28, 256  ;;  %v3389_v61 = vrot.slane %v3373_v30, 4  ;;  %v3398_v31 = vrot.slane %v3374_v8, 4 }
 0x2d5   : > { %v9719_v25 = vsel %vm3371_vm13, %v9667_v55, 256  ;;  %vm3381_vm7 = vcmp.lt.s32.totalorder %v3372_v49, %v3380_v47  ;;  %v3407_v4 = vrot.slane %v3375_v12, 4  ;;  %v3416_v42 = vrot.slane %v3376_v16, 4 }
 0x2d6   : > { %v3382_v34 = vsel %vm3381_vm7, %v3372_v49, %v3380_v47  ;;  %vm3390_vm11 = vcmp.lt.s32.totalorder %v3373_v30, %v3389_v61  ;;  %v3425_v37 = vrot.slane %v3377_v46, 4  ;;  %vm3399_vm2 = vcmp.lt.s32.totalorder %v3374_v8, %v3398_v31 }
 0x2d7   : > { %v3383_v7 = vrot.slane %v3382_v34, 2  ;;  %v3391_v10 = vsel %vm3390_vm11, %v3373_v30, %v3389_v61  ;;  %vm3408_vm6 = vcmp.lt.s32.totalorder %v3375_v12, %v3407_v4  ;;  %v3400_v51 = vsel %vm3399_vm2, %v3374_v8, %v3398_v31 }
 0x2d8   : > { %v3392_v23 = vrot.slane %v3391_v10, 2  ;;  %v3409_v40 = vsel %vm3408_vm6, %v3375_v12, %v3407_v4  ;;  %vm3417_vm9 = vcmp.lt.s32.totalorder %v3376_v16, %v3416_v42  ;;  %v3401_v28 = vrot.slane %v3400_v51, 2 }
 0x2d9   : > { %vm3384_vm10 = vcmp.lt.s32.totalorder %v3382_v34, %v3383_v7  ;;  %v3410_v36 = vrot.slane %v3409_v40, 2  ;;  %v3418_v55 = vsel %vm3417_vm9, %v3376_v16, %v3416_v42  ;;  %vm9721_vm14 = vcmp.lt.s32.totalorder %v3377_v46, %v3425_v37 }
 0x2da   : > { %v3385_v33 = vsel %vm3384_vm10, %v3382_v34, %v3383_v7  ;;  %vm3393_vm12 = vcmp.lt.s32.totalorder %v3391_v10, %v3392_v23  ;;  %v3419_v26 = vrot.slane %v3418_v55, 2  ;;  %vm3402_vm5 = vcmp.lt.s32.totalorder %v3400_v51, %v3401_v28 }
 0x2db   : > { %v3386_v63 = vrot.slane %v3385_v33, 1  ;;  %v3394_v56 = vsel %vm3393_vm12, %v3391_v10, %v3392_v23  ;;  %vm3411_vm15 = vcmp.lt.s32.totalorder %v3409_v40, %v3410_v36  ;;  %v3403_v0 = vsel %vm3402_vm5, %v3400_v51, %v3401_v28 }
 0x2dc   : > { %v3395_v2 = vrot.slane %v3394_v56, 1  ;;  %v3412_v52 = vsel %vm3411_vm15, %v3409_v40, %v3410_v36  ;;  %vm3420_vm3 = vcmp.lt.s32.totalorder %v3418_v55, %v3419_v26  ;;  %v3404_v41 = vrot.slane %v3403_v0, 1 }
 0x2dd   : > { %vm3387_vm4 = vcmp.lt.s32.totalorder %v3385_v33, %v3386_v63  ;;  %v3413_v48 = vrot.slane %v3412_v52, 1  ;;  %v3421_v29 = vsel %vm3420_vm3, %v3418_v55, %v3419_v26  ;;  %v3427_v19 = vsel %vm9721_vm14, %v3377_v46, %v3425_v37 }
 0x2de   : > { %v3388_v3 = vsel %vm3387_vm4, %v3385_v33, %v3386_v63  ;;  %vm3396_vm1 = vcmp.lt.s32.totalorder %v3394_v56, %v3395_v2  ;;  %v3422_v11 = vrot.slane %v3421_v29, 1  ;;  %vm3405_vm0 = vcmp.lt.s32.totalorder %v3403_v0, %v3404_v41 }
 0x2df   : > { %v3397_v9 = vsel %vm3396_vm1, %v3394_v56, %v3395_v2  ;;  %vm3414_vm8 = vcmp.lt.s32.totalorder %v3412_v52, %v3413_v48  ;;  %v3428_v45 = vrot.slane %v3427_v19, 2  ;;  %v3406_v39 = vsel %vm3405_vm0, %v3403_v0, %v3404_v41 }
 0x2e0   : > { %v3415_v20 = vsel %vm3414_vm8, %v3412_v52, %v3413_v48  ;;  %vm3423_vm13 = vcmp.lt.s32.totalorder %v3421_v29, %v3422_v11  ;;  %v3434_v62 = vrot.slane %v9716_v24, 4  ;;  %v3443_v59 = vrot.slane %v9719_v25, 4 }
 0x2e1   : > { %v3424_v54 = vsel %vm3423_vm13, %v3421_v29, %v3422_v11  ;;  %vm3429_vm7 = vcmp.lt.s32.totalorder %v3427_v19, %v3428_v45  ;;  %vm3452_vm11 = vcmask 1041409   ;;  %vm3454_vm6 = vcmask 1042434  }
 0x2e2   : > { %v3430_v58 = vsel %vm3429_vm7, %v3427_v19, %v3428_v45  ;;  %vm3435_vm2 = vcmp.lt.s32.totalorder %v9716_v24, %v3434_v62  ;;  %v3453_v60 = vsel %vm3452_vm11, %v3397_v9, %v3388_v3  ;;  %vm3444_vm9 = vcmp.lt.s32.totalorder %v9719_v25, %v3443_v59 }
 0x2e3   : > { %v3431_v14 = vrot.slane %v3430_v58, 1  ;;  %v3436_v50 = vsel %vm3435_vm2, %v9716_v24, %v3434_v62  ;;  %v3455_v21 = vsel %vm3454_vm6, %v3406_v39, %v3453_v60  ;;  %v3445_v6 = vsel %vm3444_vm9, %v9719_v25, %v3443_v59 }
 0x2e4   : > { %v3437_v44 = vrot.slane %v3436_v50, 2  ;;  %vm3456_vm10 = vcmask 1043459   ;;  %vm3458_vm12 = vcmask 1044484   ;;  %v3446_v53 = vrot.slane %v3445_v6, 2 }
 0x2e5   : > { %vm3432_vm14 = vcmp.lt.s32.totalorder %v3430_v58, %v3431_v14  ;;  %v3457_v18 = vsel %vm3456_vm10, %v3415_v20, %v3455_v21  ;;  %vm3460_vm15 = vcmask 1045509   ;;  %vm3462_vm4 = vcmask 1046534  }
 0x2e6   : > { %v3433_v13 = vsel %vm3432_vm14, %v3430_v58, %v3431_v14  ;;  %vm3438_vm5 = vcmp.lt.s32.totalorder %v3436_v50, %v3437_v44  ;;  %v3459_v38 = vsel %vm3458_vm12, %v3424_v54, %v3457_v18  ;;  %vm3447_vm3 = vcmp.lt.s32.totalorder %v3445_v6, %v3446_v53 }
 0x2e7   : > { %v3439_v22 = vsel %vm3438_vm5, %v3436_v50, %v3437_v44  ;;  %v3448_v43 = vsel %vm3447_vm3, %v3445_v6, %v3446_v53  ;;  %v3461_v32 = vsel %vm3460_vm15, %v3433_v13, %v3459_v38  ;;  %vm3464_vm0 = vcmask 1047559  }
 0x2e8   : > { %v3440_v57 = vrot.slane %v3439_v22, 1  ;;  %v3449_v27 = vrot.slane %v3448_v43, 1 }
 0x2ea   : > { %vm3441_vm1 = vcmp.lt.s32.totalorder %v3439_v22, %v3440_v57  ;;  %vm3450_vm8 = vcmp.lt.s32.totalorder %v3448_v43, %v3449_v27 }
 0x2eb   : > { %v3442_v35 = vsel %vm3441_vm1, %v3439_v22, %v3440_v57  ;;  %v3451_v49 = vsel %vm3450_vm8, %v3448_v43, %v3449_v27 }
 0x2ec   : > { %v3463_v30 = vsel %vm3462_vm4, %v3442_v35, %v3461_v32 }
 0x2ed   : > { %v3465_v8 = vsel %vm3464_vm0, %v3451_v49, %v3463_v30 }
 0x2ee   : > { %3466 = vst [vmem:[%s154_s4] sm:$0xff] %v3465_v8 }
 0x2ef   : > { %3973 = shalt.err (!%p3970_p11)
}
 0x2f0   : > { %3837 = dma.vmem_to_hbm [thread:$0]  (%p4124_p9), %s3483_s5, 128, %s3485_s14, %s3468_s15  }
 0x2f1 PF: > { %p3848_p13 = scmp.ge.s32.totalorder %s4044_s13, 2  ;;  %s3496_s28 = sand.u32 1, %s4016_s6  }
 0x2f2   : > { %s3497_s17 = scalar_lea.sflag [#allocation4], %s3496_s28 }
 0x2f3   : > { %p3844_p0 = pnand %p3848_p13, %p4130_p12 }
 0x2f5   : > { %p3845_p1 = pneg %p3844_p0 }
 0x2f7   : > { %4011 = dma.done.wait (%p3845_p1), %s3497_s17, 128  }
 0x2f8   : > { %4013 = vsyncadd (%p3845_p1), %s3497_s17, 4294967168  ;;  %s17_s13 = sadd.s32 1, %s4044_s13   ;;  %s9900_s22 = sld [smem:[#allocation8_spill]] }
 0x2f9   : > { %p14_p2 = scmp.ge.s32.totalorder %s17_s13, 6   ;;  %s9901_s6 = smov %s4020_s7 }
 0x2fa   : > { %s9902_s7 = smov %s4024_s8  ;;  %s9903_s8 = smov %s4137_s27 }
 0x2fb   : > { %s9904_s9 = smov %s4036_s11  ;;  %s9905_s10 = smov %s4040_s12 }
 0x2fc   : > { %s9906_s11 = smov %s9909_s16  ;;  %16 = sbr.rel (!%p14_p2) target bundleno = 7 (0x7), region = 100 }
 0x2fe   : > { %s9907_s12 = smov %s9900_s22 }
 0x301   :  { %3503 = vsyncpa [#allocation3], 1 }
 0x302   :  { %3505 = vsyncpa [#allocation3 + $0x1], 1 }
 0x303   :  { %3506 = vsyncpa [#allocation4], 1 }
 0x304   :  { %3508 = vsyncpa [#allocation4 + $0x1], 1 }

</bundles_post_ra>
